<compile_context>
chip_gen: v6e
topology: v6e:2x2x1
jax: 0.10.0
libtpu: 0.0.40
codegen_flags: <defaults>
</compile_context>

<pallas_src>
import functools

import jax
import jax.numpy as jnp
from jax.experimental import pallas as pl
from jax.experimental.pallas import tpu as pltpu


# ============================================================================
# Kernel 1: fused conv1+relu -> conv2+relu -> conv3+relu  (one sample / step)
# ============================================================================
def _conv_stack_kernel(x_ref, w1_ref, b1_ref, w2_ref, b2_ref, w3_ref, b3_ref,
                       o_ref, buf0, buf1, buf2, *, H, W, pad_off):
    """All refs are channels-major.

    x_ref  : (1, C0, H*W)  f32   flattened input image (row-major pixels)
    wL_ref : (9, CoutL, CinL) f32  3x3 taps, tap index t = ky*3 + kx
    bL_ref : (CoutL, 1)    f32
    o_ref  : (1, C3, H*W)  bf16
    bufL   : (C, PF)       f32 VMEM; activation at lanes [pad_off, pad_off+H*W)
             with zeroed halo lanes on both sides (acts as the conv padding).
    """
    HW = H * W
    PF = buf0.shape[1]
    # Tap (dy, dx) of output pixel p reads lane  base + dy*W + dx + p.
    base = pad_off - (W + 1)

    col = jax.lax.broadcasted_iota(jnp.int32, (1, HW), 1) % W
    mask_l = col != 0          # taps with dx == 0 wrap at image column x == 0
    mask_r = col != (W - 1)    # taps with dx == 2 wrap at image column x == W-1

    def repad(buf, y):
        # Zero the halo lanes, then drop the activation at a lane-aligned
        # offset so every store is an unmasked, full-lane store.
        rows = buf.shape[0]
        buf[:, :pad_off] = jnp.zeros((rows, pad_off), jnp.float32)
        buf[:, pad_off + HW:] = jnp.zeros((rows, PF - pad_off - HW), jnp.float32)
        buf[:, pad_off:pad_off + HW] = y

    def conv3x3_relu(src, w_ref, b_ref):
        cout = w_ref.shape[1]
        acc = jnp.zeros((cout, HW), jnp.float32)
        for t in range(9):                       # static unroll over the 9 taps
            dy, dx = t // 3, t % 3
            s = base + dy * W + dx
            rhs = src[:, s:s + HW]               # (Cin, H*W)
            if dx == 0:
                rhs = jnp.where(mask_l, rhs, 0.0)
            elif dx == 2:
                rhs = jnp.where(mask_r, rhs, 0.0)
            acc = acc + jnp.dot(w_ref[t], rhs, preferred_element_type=jnp.float32)
        return jnp.maximum(acc + b_ref[...], 0.0)

    repad(buf0, x_ref[0])
    repad(buf1, conv3x3_relu(buf0, w1_ref, b1_ref))
    repad(buf2, conv3x3_relu(buf1, w2_ref, b2_ref))
    o_ref[0] = conv3x3_relu(buf2, w3_ref, b3_ref).astype(o_ref.dtype)


def conv_stack(x_flat, c1_w, c1_b, c2_w, c2_b, c3_w, c3_b, *, H, W):
    """x_flat: (N, C0, H*W) f32 -> (N, C3, H*W) bf16 (NCHW-flatten ordering)."""
    N, C0, HW = x_flat.shape
    assert HW == H * W
    assert W + 1 <= 128, "halo offset assumes W < 128"
    C1, C2, C3 = c1_w.shape[1], c2_w.shape[1], c3_w.shape[1]

    pad_off = 128                                        # lane-aligned halo
    PF = pl.cdiv(pad_off + HW + W + 1, 128) * 128        # padded buffer width

    kernel = functools.partial(_conv_stack_kernel, H=H, W=W, pad_off=pad_off)
    return pl.pallas_call(
        kernel,
        out_shape=jax.ShapeDtypeStruct((N, C3, HW), jnp.bfloat16),
        grid_spec=pltpu.PrefetchScalarGridSpec(
            num_scalar_prefetch=0,
            grid=(N,),
            in_specs=[
                pl.BlockSpec((1, C0, HW), lambda n: (n, 0, 0)),
                pl.BlockSpec((9, C1, C0), lambda n: (0, 0, 0)),
                pl.BlockSpec((C1, 1), lambda n: (0, 0)),
                pl.BlockSpec((9, C2, C1), lambda n: (0, 0, 0)),
                pl.BlockSpec((C2, 1), lambda n: (0, 0)),
                pl.BlockSpec((9, C3, C2), lambda n: (0, 0, 0)),
                pl.BlockSpec((C3, 1), lambda n: (0, 0)),
            ],
            out_specs=pl.BlockSpec((1, C3, HW), lambda n: (n, 0, 0)),
            scratch_shapes=[
                pltpu.VMEM((C0, PF), jnp.float32),
                pltpu.VMEM((C1, PF), jnp.float32),
                pltpu.VMEM((C2, PF), jnp.float32),
            ],
        ),
        compiler_params=pltpu.CompilerParams(dimension_semantics=("parallel",)),
    )(x_flat, c1_w, c1_b, c2_w, c2_b, c3_w, c3_b)


# ============================================================================
# Kernel 2: fused fc1 (bf16 weight stream, f32 acc, ReLU) + fc2 epilogue
# ============================================================================
def _fc_fused_kernel(x_ref, w1_ref, b1_ref, w2_ref, o_ref, acc_ref):
    k = pl.program_id(1)

    @pl.when(k == 0)
    def _():
        acc_ref[...] = jnp.zeros_like(acc_ref)

    acc_ref[...] += jnp.dot(x_ref[...], w1_ref[...],
                            preferred_element_type=jnp.float32)

    @pl.when(k == pl.num_programs(1) - 1)
    def _():
        h = jnp.maximum(acc_ref[...] + b1_ref[...], 0.0)      # fc1 + ReLU (f32)
        # fc2 partial for this column block; summed over blocks in the wrapper.
        o_ref[0] = jnp.dot(h.astype(w2_ref.dtype), w2_ref[...],
                           preferred_element_type=jnp.float32)


def fc1_fc2_fused(x, w1, b1, w2, *, tk_max=4096, tn_max=256):
    """x:(M,K) bf16, w1:(K,NH) bf16, b1:(1,NH) f32, w2:(NH,NC) bf16.

    Returns per-column-block partial logits of shape (NH//tn, M, NC), f32.
    """
    M, K = x.shape
    K2, NH = w1.shape
    NH2, NC = w2.shape
    assert K == K2 and NH == NH2 and b1.shape == (1, NH)

    tk = next(t for t in (tk_max, 2048, 1024, 512, 256, 128, K) if K % t == 0)
    tn = next(t for t in (tn_max, 128, NH) if NH % t == 0)
    jc, kt = NH // tn, K // tk

    return pl.pallas_call(
        _fc_fused_kernel,
        out_shape=jax.ShapeDtypeStruct((jc, M, NC), jnp.float32),
        grid_spec=pltpu.PrefetchScalarGridSpec(
            num_scalar_prefetch=0,
            grid=(jc, kt),
            in_specs=[
                pl.BlockSpec((M, tk), lambda j, k: (0, k)),
                pl.BlockSpec((tk, tn), lambda j, k: (k, j)),
                pl.BlockSpec((1, tn), lambda j, k: (0, j)),
                pl.BlockSpec((tn, NC), lambda j, k: (j, 0)),
            ],
            out_specs=pl.BlockSpec((1, M, NC), lambda j, k: (j, 0, 0)),
            scratch_shapes=[pltpu.VMEM((M, tn), jnp.float32)],
        ),
        compiler_params=pltpu.CompilerParams(
            dimension_semantics=("parallel", "arbitrary")),
    )(x, w1, b1, w2)


# ============================================================================
# Parameters (PyTorch layouts) and one-time conversion to kernel layouts.
# ============================================================================
def init_params(key, input_shape, n_classes):
    """Deterministic params in PyTorch layouts (conv OIHW, linear (out,in))."""
    H, W, C = input_shape
    ks = jax.random.split(key, 10)

    def winit(k, shape, fan_in):
        return jax.random.normal(k, shape, jnp.float32) / jnp.sqrt(float(fan_in))

    return {
        "conv1_w": winit(ks[0], (32, C, 3, 3), C * 9),
        "conv1_b": winit(ks[1], (32,), C * 9),
        "conv2_w": winit(ks[2], (64, 32, 3, 3), 32 * 9),
        "conv2_b": winit(ks[3], (64,), 32 * 9),
        "conv3_w": winit(ks[4], (64, 64, 3, 3), 64 * 9),
        "conv3_b": winit(ks[5], (64,), 64 * 9),
        "fc1_w": winit(ks[6], (512, H * W * 64), H * W * 64),
        "fc1_b": winit(ks[7], (512,), H * W * 64),
        "fc2_w": winit(ks[8], (n_classes, 512), 512),
        "fc2_b": winit(ks[9], (n_classes,), 512),
    }


def prepare_params(tp):
    """PyTorch-layout params -> kernel-friendly layouts (done once, off hot path)."""
    def conv_taps(w):  # (Cout, Cin, 3, 3) -> (9, Cout, Cin), tap t = ky*3 + kx
        co, ci = w.shape[0], w.shape[1]
        return jnp.transpose(w, (2, 3, 0, 1)).reshape(9, co, ci)

    return {
        "c1_w": conv_taps(tp["conv1_w"]), "c1_b": tp["conv1_b"].reshape(-1, 1),
        "c2_w": conv_taps(tp["conv2_w"]), "c2_b": tp["conv2_b"].reshape(-1, 1),
        "c3_w": conv_taps(tp["conv3_w"]), "c3_b": tp["conv3_b"].reshape(-1, 1),
        # fc weights stored (in, out) and streamed as bf16 (f32 accumulation).
        "fc1_w": jnp.asarray(tp["fc1_w"].T, jnp.bfloat16),
        "fc1_b": tp["fc1_b"].reshape(1, -1).astype(jnp.float32),
        "fc2_w": jnp.asarray(tp["fc2_w"].T, jnp.bfloat16),
        "fc2_b": tp["fc2_b"].astype(jnp.float32),
    }


# ============================================================================
# Forward pass (2 pallas_calls total) and pure-JAX reference.
# ============================================================================
def cnn_qnet_forward(params, x_nchw):
    N, C0, H, W = x_nchw.shape
    feats = conv_stack(
        x_nchw.reshape(N, C0, H * W),
        params["c1_w"], params["c1_b"],
        params["c2_w"], params["c2_b"],
        params["c3_w"], params["c3_b"],
        H=H, W=W)                                   # (N, 64, H*W) bf16
    x_flat = feats.reshape(N, -1)                   # == torch.nn.Flatten on NCHW
    partials = fc1_fc2_fused(x_flat, params["fc1_w"], params["fc1_b"],
                             params["fc2_w"])       # (jc, N, n_classes)
    return partials.sum(axis=0) + params["fc2_b"]   # (N, n_classes) f32


def reference_forward(tp, x):
    """Pure-JAX/XLA f32 reference of CNN_QNet.forward (PyTorch layouts)."""
    def conv(x, w, b):
        y = jax.lax.conv_general_dilated(
            x, w, window_strides=(1, 1), padding="SAME",
            dimension_numbers=("NCHW", "OIHW", "NCHW"))
        return jax.nn.relu(y + b.reshape(1, -1, 1, 1))

    x = conv(x, tp["conv1_w"], tp["conv1_b"])
    x = conv(x, tp["conv2_w"], tp["conv2_b"])
    x = conv(x, tp["conv3_w"], tp["conv3_b"])
    x = x.reshape(x.shape[0], -1)
    x = jax.nn.relu(x @ tp["fc1_w"].T + tp["fc1_b"])
    return x @ tp["fc2_w"].T + tp["fc2_b"]


if __name__ == "__main__":
    input_shape = (16, 16, 4)   # (H, W, C) as used by CNN_QNet(input_shape, n_classes)
    n_classes = 8
    batch = 2
    H, W, C = input_shape

    key = jax.random.PRNGKey(0)
    kparams, kx = jax.random.split(key)
    torch_params = init_params(kparams, input_shape, n_classes)
    params = prepare_params(torch_params)

    # PyTorch NCHW input: (N, C, H, W)
    x = jax.random.normal(kx, (batch, C, H, W), jnp.float32)

    fwd = jax.jit(cnn_qnet_forward)
    out = fwd(params, x)
    jax.block_until_ready(out)
    assert out.shape == (batch, n_classes), out.shape

    # Correctness vs the f32 XLA reference (tolerance covers bf16 fc weights).
    ref = reference_forward(torch_params, x)
    scale = float(jnp.max(jnp.abs(ref))) + 1e-6
    err = float(jnp.max(jnp.abs(out - ref))) / scale
    assert err < 5e-2, f"kernel/reference mismatch: scaled max err {err:.4f}"
    print("KERNEL_OK")
</pallas_src>

<mosaic_0001>
module attributes {stable_mosaic.version = 11 : i64} {
  func.func @_fc_fused_kernel(%arg0: i32, %arg1: i32, %arg2: memref<2x4096xbf16, #tpu.memory_space<vmem>>, %arg3: memref<4096x256xbf16, #tpu.memory_space<vmem>>, %arg4: memref<1x256xf32, #tpu.memory_space<vmem>>, %arg5: memref<256x8xbf16, #tpu.memory_space<vmem>>, %arg6: memref<1x2x8xf32, #tpu.memory_space<vmem>>, %arg7: memref<2x256xf32, #tpu.memory_space<vmem>>) attributes {dimension_semantics = [#tpu.dimension_semantics<parallel>, #tpu.dimension_semantics<arbitrary>], iteration_bounds = array<i64: 2, 4>, scalar_prefetch = 0 : i64, scratch_operands = 1 : i64, tpu.core_type = #tpu.core_type<tc>, window_params = [{transform_indices = @transform_0, window_bounds = array<i64: 2, 4096>}, {transform_indices = @transform_1, window_bounds = array<i64: 4096, 256>}, {transform_indices = @transform_2, window_bounds = array<i64: 1, 256>}, {transform_indices = @transform_3, window_bounds = array<i64: 256, 8>}, {transform_indices = @transform_4, window_bounds = array<i64: 1, 2, 8>}]} {
    %c0_i32 = arith.constant 0 : i32
    %0 = arith.cmpi eq, %arg1, %c0_i32 : i32
    %1 = arith.extui %0 : i1 to i32
    %c0_i32_0 = arith.constant 0 : i32
    %2 = arith.cmpi ne, %1, %c0_i32_0 : i32
    scf.if %2 {
      %cst_9 = arith.constant 0.000000e+00 : f32
      %12 = vector.broadcast %cst_9 : f32 to vector<2x256xf32>
      %c0_10 = arith.constant 0 : index
      %c0_11 = arith.constant 0 : index
      %13 = vector.load %arg7[%c0_10, %c0_11] : memref<2x256xf32, #tpu.memory_space<vmem>>, vector<2x256xf32>
      tpu.vector_store %arg7[%c0_10, %c0_11], %12 {strides = array<i32>} : memref<2x256xf32, #tpu.memory_space<vmem>>, vector<2x256xf32>,
    } else {
    }
    %c0 = arith.constant 0 : index
    %c0_1 = arith.constant 0 : index
    %3 = vector.load %arg7[%c0, %c0_1] : memref<2x256xf32, #tpu.memory_space<vmem>>, vector<2x256xf32>
    %c0_2 = arith.constant 0 : index
    %c0_3 = arith.constant 0 : index
    %4 = vector.load %arg2[%c0_2, %c0_3] : memref<2x4096xbf16, #tpu.memory_space<vmem>>, vector<2x4096xbf16>
    %c0_4 = arith.constant 0 : index
    %c0_5 = arith.constant 0 : index
    %5 = vector.load %arg3[%c0_4, %c0_5] : memref<4096x256xbf16, #tpu.memory_space<vmem>>, vector<4096x256xbf16>
    %cst = arith.constant dense<0.000000e+00> : vector<2x256xf32>
    %6 = tpu.matmul %4, %5, %cst {dimension_numbers = #tpu.dot_dimension_numbers<[1], [0], [0], [1], [0, 0, 1, 1], [], []>} : vector<2x4096xbf16>, vector<4096x256xbf16>, vector<2x256xf32> -> vector<2x256xf32>
    %7 = arith.addf %3, %6 : vector<2x256xf32>
    %c0_6 = arith.constant 0 : index
    %c0_7 = arith.constant 0 : index
    %8 = vector.load %arg7[%c0_6, %c0_7] : memref<2x256xf32, #tpu.memory_space<vmem>>, vector<2x256xf32>
    tpu.vector_store %arg7[%c0_6, %c0_7], %7 {strides = array<i32>} : memref<2x256xf32, #tpu.memory_space<vmem>>, vector<2x256xf32>,
    %c3_i32 = arith.constant 3 : i32
    %9 = arith.cmpi eq, %arg1, %c3_i32 : i32
    %10 = arith.extui %9 : i1 to i32
    %c0_i32_8 = arith.constant 0 : i32
    %11 = arith.cmpi ne, %10, %c0_i32_8 : i32
    scf.if %11 {
      %c0_9 = arith.constant 0 : index
      %c0_10 = arith.constant 0 : index
      %12 = vector.load %arg7[%c0_9, %c0_10] : memref<2x256xf32, #tpu.memory_space<vmem>>, vector<2x256xf32>
      %c0_11 = arith.constant 0 : index
      %c0_12 = arith.constant 0 : index
      %13 = vector.load %arg4[%c0_11, %c0_12] : memref<1x256xf32, #tpu.memory_space<vmem>>, vector<1x256xf32>
      %14 = vector.broadcast %13 : vector<1x256xf32> to vector<2x256xf32>
      %15 = arith.addf %12, %14 : vector<2x256xf32>
      %cst_13 = arith.constant 0.000000e+00 : f32
      %16 = vector.broadcast %cst_13 : f32 to vector<2x256xf32>
      %17 = arith.maximumf %15, %16 : vector<2x256xf32>
      %18 = arith.truncf %17 : vector<2x256xf32> to vector<2x256xbf16>
      %c0_14 = arith.constant 0 : index
      %c0_15 = arith.constant 0 : index
      %19 = vector.load %arg5[%c0_14, %c0_15] : memref<256x8xbf16, #tpu.memory_space<vmem>>, vector<256x8xbf16>
      %cst_16 = arith.constant dense<0.000000e+00> : vector<2x8xf32>
      %20 = tpu.matmul %18, %19, %cst_16 {dimension_numbers = #tpu.dot_dimension_numbers<[1], [0], [0], [1], [0, 0, 1, 1], [], []>} : vector<2x256xbf16>, vector<256x8xbf16>, vector<2x8xf32> -> vector<2x8xf32>
      %c0_17 = arith.constant 0 : index
      %c0_18 = arith.constant 0 : index
      %c0_19 = arith.constant 0 : index
      %21 = vector.load %arg6[%c0_17, %c0_18, %c0_19] : memref<1x2x8xf32, #tpu.memory_space<vmem>>, vector<1x2x8xf32>
      %22 = vector.shape_cast %21 : vector<1x2x8xf32> to vector<2x8xf32>
      %23 = vector.shape_cast %20 : vector<2x8xf32> to vector<1x2x8xf32>
      tpu.vector_store %arg6[%c0_17, %c0_18, %c0_19], %23 {strides = array<i32>} : memref<1x2x8xf32, #tpu.memory_space<vmem>>, vector<1x2x8xf32>,
    } else {
    }
    return
  }
  func.func @transform_0(%arg0: i32, %arg1: i32) -> (i32, i32) {
    %c0_i32 = arith.constant 0 : i32
    %c0_i32_0 = arith.constant 0 : i32
    return %c0_i32, %arg1 : i32, i32
  }
  func.func @transform_1(%arg0: i32, %arg1: i32) -> (i32, i32) {
    %c0_i32 = arith.constant 0 : i32
    return %arg1, %arg0 : i32, i32
  }
  func.func @transform_2(%arg0: i32, %arg1: i32) -> (i32, i32) {
    %c0_i32 = arith.constant 0 : i32
    %c0_i32_0 = arith.constant 0 : i32
    return %c0_i32, %arg0 : i32, i32
  }
  func.func @transform_3(%arg0: i32, %arg1: i32) -> (i32, i32) {
    %c0_i32 = arith.constant 0 : i32
    %c0_i32_0 = arith.constant 0 : i32
    return %arg0, %c0_i32 : i32, i32
  }
  func.func @transform_4(%arg0: i32, %arg1: i32) -> (i32, i32, i32) {
    %c0_i32 = arith.constant 0 : i32
    %c0_i32_0 = arith.constant 0 : i32
    %c0_i32_1 = arith.constant 0 : i32
    return %arg0, %c0_i32, %c0_i32_0 : i32, i32, i32
  }
}

module attributes {stable_mosaic.version = 11 : i64} {
  func.func @_conv_stack_kernel(%arg0: i32, %arg1: memref<1x4x256xf32, #tpu.memory_space<vmem>>, %arg2: memref<9x32x4xf32, #tpu.memory_space<vmem>>, %arg3: memref<32x1xf32, #tpu.memory_space<vmem>>, %arg4: memref<9x64x32xf32, #tpu.memory_space<vmem>>, %arg5: memref<64x1xf32, #tpu.memory_space<vmem>>, %arg6: memref<9x64x64xf32, #tpu.memory_space<vmem>>, %arg7: memref<64x1xf32, #tpu.memory_space<vmem>>, %arg8: memref<1x64x256xbf16, #tpu.memory_space<vmem>>, %arg9: memref<4x512xf32, #tpu.memory_space<vmem>>, %arg10: memref<32x512xf32, #tpu.memory_space<vmem>>, %arg11: memref<64x512xf32, #tpu.memory_space<vmem>>) attributes {dimension_semantics = [#tpu.dimension_semantics<parallel>], iteration_bounds = array<i64: 2>, scalar_prefetch = 0 : i64, scratch_operands = 3 : i64, tpu.core_type = #tpu.core_type<tc>, window_params = [{transform_indices = @transform_0, window_bounds = array<i64: 1, 4, 256>}, {pipeline_mode = #tpu.pipeline_mode<synchronous>, transform_indices = @transform_1, window_bounds = array<i64: 9, 32, 4>}, {pipeline_mode = #tpu.pipeline_mode<synchronous>, transform_indices = @transform_2, window_bounds = array<i64: 32, 1>}, {pipeline_mode = #tpu.pipeline_mode<synchronous>, transform_indices = @transform_3, window_bounds = array<i64: 9, 64, 32>}, {pipeline_mode = #tpu.pipeline_mode<synchronous>, transform_indices = @transform_4, window_bounds = array<i64: 64, 1>}, {pipeline_mode = #tpu.pipeline_mode<synchronous>, transform_indices = @transform_5, window_bounds = array<i64: 9, 64, 64>}, {pipeline_mode = #tpu.pipeline_mode<synchronous>, transform_indices = @transform_6, window_bounds = array<i64: 64, 1>}, {transform_indices = @transform_7, window_bounds = array<i64: 1, 64, 256>}]} {
    %0 = tpu.iota {dimensions = array<i32: 1>} : vector<1x256xi32>
    %c16_i32 = arith.constant 16 : i32
    %c0_i32 = arith.constant 0 : i32
    %1 = arith.cmpi eq, %c16_i32, %c0_i32 : i32
    %c1_i32 = arith.constant 1 : i32
    %2 = arith.select %1, %c1_i32, %c16_i32 : i32
    %3 = vector.broadcast %2 : i32 to vector<1x256xi32>
    %4 = arith.remsi %0, %3 : vector<1x256xi32>
    %c0_i32_0 = arith.constant 0 : i32
    %5 = vector.broadcast %c0_i32_0 : i32 to vector<1x256xi32>
    %6 = arith.cmpi ne, %4, %5 : vector<1x256xi32>
    %c0_i32_1 = arith.constant 0 : i32
    %7 = vector.broadcast %c0_i32_1 : i32 to vector<1x256xi32>
    %8 = arith.cmpi slt, %4, %7 : vector<1x256xi32>
    %c0_i32_2 = arith.constant 0 : i32
    %9 = arith.cmpi slt, %2, %c0_i32_2 : i32
    %10 = vector.broadcast %9 : i1 to vector<1x256xi1>
    %11 = vector.broadcast %10 : vector<1x256xi1> to vector<1x256xi1>
    %12 = arith.xori %8, %11 : vector<1x256xi1>
    %13 = arith.andi %12, %6 : vector<1x256xi1>
    %14 = vector.broadcast %2 : i32 to vector<1x256xi32>
    %15 = arith.addi %4, %14 : vector<1x256xi32>
    %16 = arith.select %13, %15, %4 : vector<1x256xi1>, vector<1x256xi32>
    %c0_i32_3 = arith.constant 0 : i32
    %17 = vector.broadcast %c0_i32_3 : i32 to vector<1x256xi32>
    %18 = arith.cmpi ne, %16, %17 : vector<1x256xi32>
    %c15_i32 = arith.constant 15 : i32
    %19 = vector.broadcast %c15_i32 : i32 to vector<1x256xi32>
    %20 = arith.cmpi ne, %16, %19 : vector<1x256xi32>
    %c0 = arith.constant 0 : index
    %c0_4 = arith.constant 0 : index
    %c0_5 = arith.constant 0 : index
    %21 = vector.load %arg1[%c0, %c0_4, %c0_5] : memref<1x4x256xf32, #tpu.memory_space<vmem>>, vector<1x4x256xf32>
    %22 = vector.shape_cast %21 : vector<1x4x256xf32> to vector<4x256xf32>
    %cst = arith.constant 0.000000e+00 : f32
    %23 = vector.broadcast %cst : f32 to vector<4x128xf32>
    %c0_6 = arith.constant 0 : index
    %c0_7 = arith.constant 0 : index
    %24 = vector.load %arg9[%c0_6, %c0_7] : memref<4x512xf32, #tpu.memory_space<vmem>>, vector<4x128xf32>
    tpu.vector_store %arg9[%c0_6, %c0_7], %23 {strides = array<i32>} : memref<4x512xf32, #tpu.memory_space<vmem>>, vector<4x128xf32>,
    %cst_8 = arith.constant 0.000000e+00 : f32
    %25 = vector.broadcast %cst_8 : f32 to vector<4x128xf32>
    %c0_9 = arith.constant 0 : index
    %c384 = arith.constant 384 : index
    %26 = vector.load %arg9[%c0_9, %c384] : memref<4x512xf32, #tpu.memory_space<vmem>>, vector<4x128xf32>
    tpu.vector_store %arg9[%c0_9, %c384], %25 {strides = array<i32>} : memref<4x512xf32, #tpu.memory_space<vmem>>, vector<4x128xf32>,
    %c0_10 = arith.constant 0 : index
    %c128 = arith.constant 128 : index
    %27 = vector.load %arg9[%c0_10, %c128] : memref<4x512xf32, #tpu.memory_space<vmem>>, vector<4x256xf32>
    tpu.vector_store %arg9[%c0_10, %c128], %22 {strides = array<i32>} : memref<4x512xf32, #tpu.memory_space<vmem>>, vector<4x256xf32>,
    %cst_11 = arith.constant 0.000000e+00 : f32
    %28 = vector.broadcast %cst_11 : f32 to vector<32x256xf32>
    %c0_12 = arith.constant 0 : index
    %c111 = arith.constant 111 : index
    %29 = vector.load %arg9[%c0_12, %c111] : memref<4x512xf32, #tpu.memory_space<vmem>>, vector<4x256xf32>
    %cst_13 = arith.constant 0.000000e+00 : f32
    %30 = vector.shape_cast %18 : vector<1x256xi1> to vector<1x256xi1>
    %31 = vector.broadcast %30 : vector<1x256xi1> to vector<4x256xi1>
    %32 = vector.broadcast %cst_13 : f32 to vector<4x256xf32>
    %33 = arith.select %31, %29, %32 : vector<4x256xi1>, vector<4x256xf32>
    %c0_14 = arith.constant 0 : index
    %c0_15 = arith.constant 0 : index
    %c0_16 = arith.constant 0 : index
    %34 = vector.load %arg2[%c0_14, %c0_15, %c0_16] : memref<9x32x4xf32, #tpu.memory_space<vmem>>, vector<1x32x4xf32>
    %35 = vector.shape_cast %34 : vector<1x32x4xf32> to vector<32x4xf32>
    %cst_17 = arith.constant dense<0.000000e+00> : vector<32x256xf32>
    %36 = tpu.matmul %35, %33, %cst_17 {dimension_numbers = #tpu.dot_dimension_numbers<[1], [0], [0], [1], [0, 0, 1, 1], [], []>} : vector<32x4xf32>, vector<4x256xf32>, vector<32x256xf32> -> vector<32x256xf32>
    %37 = arith.addf %28, %36 : vector<32x256xf32>
    %c0_18 = arith.constant 0 : index
    %c112 = arith.constant 112 : index
    %38 = vector.load %arg9[%c0_18, %c112] : memref<4x512xf32, #tpu.memory_space<vmem>>, vector<4x256xf32>
    %c1 = arith.constant 1 : index
    %c0_19 = arith.constant 0 : index
    %c0_20 = arith.constant 0 : index
    %39 = vector.load %arg2[%c1, %c0_19, %c0_20] : memref<9x32x4xf32, #tpu.memory_space<vmem>>, vector<1x32x4xf32>
    %40 = vector.shape_cast %39 : vector<1x32x4xf32> to vector<32x4xf32>
    %cst_21 = arith.constant dense<0.000000e+00> : vector<32x256xf32>
    %41 = tpu.matmul %40, %38, %cst_21 {dimension_numbers = #tpu.dot_dimension_numbers<[1], [0], [0], [1], [0, 0, 1, 1], [], []>} : vector<32x4xf32>, vector<4x256xf32>, vector<32x256xf32> -> vector<32x256xf32>
    %42 = arith.addf %37, %41 : vector<32x256xf32>
    %c0_22 = arith.constant 0 : index
    %c113 = arith.constant 113 : index
    %43 = vector.load %arg9[%c0_22, %c113] : memref<4x512xf32, #tpu.memory_space<vmem>>, vector<4x256xf32>
    %cst_23 = arith.constant 0.000000e+00 : f32
    %44 = vector.shape_cast %20 : vector<1x256xi1> to vector<1x256xi1>
    %45 = vector.broadcast %44 : vector<1x256xi1> to vector<4x256xi1>
    %46 = vector.broadcast %cst_23 : f32 to vector<4x256xf32>
    %47 = arith.select %45, %43, %46 : vector<4x256xi1>, vector<4x256xf32>
    %c2 = arith.constant 2 : index
    %c0_24 = arith.constant 0 : index
    %c0_25 = arith.constant 0 : index
    %48 = vector.load %arg2[%c2, %c0_24, %c0_25] : memref<9x32x4xf32, #tpu.memory_space<vmem>>, vector<1x32x4xf32>
    %49 = vector.shape_cast %48 : vector<1x32x4xf32> to vector<32x4xf32>
    %cst_26 = arith.constant dense<0.000000e+00> : vector<32x256xf32>
    %50 = tpu.matmul %49, %47, %cst_26 {dimension_numbers = #tpu.dot_dimension_numbers<[1], [0], [0], [1], [0, 0, 1, 1], [], []>} : vector<32x4xf32>, vector<4x256xf32>, vector<32x256xf32> -> vector<32x256xf32>
    %51 = arith.addf %42, %50 : vector<32x256xf32>
    %c0_27 = arith.constant 0 : index
    %c127 = arith.constant 127 : index
    %52 = vector.load %arg9[%c0_27, %c127] : memref<4x512xf32, #tpu.memory_space<vmem>>, vector<4x256xf32>
    %cst_28 = arith.constant 0.000000e+00 : f32
    %53 = vector.shape_cast %18 : vector<1x256xi1> to vector<1x256xi1>
    %54 = vector.broadcast %53 : vector<1x256xi1> to vector<4x256xi1>
    %55 = vector.broadcast %cst_28 : f32 to vector<4x256xf32>
    %56 = arith.select %54, %52, %55 : vector<4x256xi1>, vector<4x256xf32>
    %c3 = arith.constant 3 : index
    %c0_29 = arith.constant 0 : index
    %c0_30 = arith.constant 0 : index
    %57 = vector.load %arg2[%c3, %c0_29, %c0_30] : memref<9x32x4xf32, #tpu.memory_space<vmem>>, vector<1x32x4xf32>
    %58 = vector.shape_cast %57 : vector<1x32x4xf32> to vector<32x4xf32>
    %cst_31 = arith.constant dense<0.000000e+00> : vector<32x256xf32>
    %59 = tpu.matmul %58, %56, %cst_31 {dimension_numbers = #tpu.dot_dimension_numbers<[1], [0], [0], [1], [0, 0, 1, 1], [], []>} : vector<32x4xf32>, vector<4x256xf32>, vector<32x256xf32> -> vector<32x256xf32>
    %60 = arith.addf %51, %59 : vector<32x256xf32>
    %c0_32 = arith.constant 0 : index
    %c128_33 = arith.constant 128 : index
    %61 = vector.load %arg9[%c0_32, %c128_33] : memref<4x512xf32, #tpu.memory_space<vmem>>, vector<4x256xf32>
    %c4 = arith.constant 4 : index
    %c0_34 = arith.constant 0 : index
    %c0_35 = arith.constant 0 : index
    %62 = vector.load %arg2[%c4, %c0_34, %c0_35] : memref<9x32x4xf32, #tpu.memory_space<vmem>>, vector<1x32x4xf32>
    %63 = vector.shape_cast %62 : vector<1x32x4xf32> to vector<32x4xf32>
    %cst_36 = arith.constant dense<0.000000e+00> : vector<32x256xf32>
    %64 = tpu.matmul %63, %61, %cst_36 {dimension_numbers = #tpu.dot_dimension_numbers<[1], [0], [0], [1], [0, 0, 1, 1], [], []>} : vector<32x4xf32>, vector<4x256xf32>, vector<32x256xf32> -> vector<32x256xf32>
    %65 = arith.addf %60, %64 : vector<32x256xf32>
    %c0_37 = arith.constant 0 : index
    %c129 = arith.constant 129 : index
    %66 = vector.load %arg9[%c0_37, %c129] : memref<4x512xf32, #tpu.memory_space<vmem>>, vector<4x256xf32>
    %cst_38 = arith.constant 0.000000e+00 : f32
    %67 = vector.shape_cast %20 : vector<1x256xi1> to vector<1x256xi1>
    %68 = vector.broadcast %67 : vector<1x256xi1> to vector<4x256xi1>
    %69 = vector.broadcast %cst_38 : f32 to vector<4x256xf32>
    %70 = arith.select %68, %66, %69 : vector<4x256xi1>, vector<4x256xf32>
    %c5 = arith.constant 5 : index
    %c0_39 = arith.constant 0 : index
    %c0_40 = arith.constant 0 : index
    %71 = vector.load %arg2[%c5, %c0_39, %c0_40] : memref<9x32x4xf32, #tpu.memory_space<vmem>>, vector<1x32x4xf32>
    %72 = vector.shape_cast %71 : vector<1x32x4xf32> to vector<32x4xf32>
    %cst_41 = arith.constant dense<0.000000e+00> : vector<32x256xf32>
    %73 = tpu.matmul %72, %70, %cst_41 {dimension_numbers = #tpu.dot_dimension_numbers<[1], [0], [0], [1], [0, 0, 1, 1], [], []>} : vector<32x4xf32>, vector<4x256xf32>, vector<32x256xf32> -> vector<32x256xf32>
    %74 = arith.addf %65, %73 : vector<32x256xf32>
    %c0_42 = arith.constant 0 : index
    %c143 = arith.constant 143 : index
    %75 = vector.load %arg9[%c0_42, %c143] : memref<4x512xf32, #tpu.memory_space<vmem>>, vector<4x256xf32>
    %cst_43 = arith.constant 0.000000e+00 : f32
    %76 = vector.shape_cast %18 : vector<1x256xi1> to vector<1x256xi1>
    %77 = vector.broadcast %76 : vector<1x256xi1> to vector<4x256xi1>
    %78 = vector.broadcast %cst_43 : f32 to vector<4x256xf32>
    %79 = arith.select %77, %75, %78 : vector<4x256xi1>, vector<4x256xf32>
    %c6 = arith.constant 6 : index
    %c0_44 = arith.constant 0 : index
    %c0_45 = arith.constant 0 : index
    %80 = vector.load %arg2[%c6, %c0_44, %c0_45] : memref<9x32x4xf32, #tpu.memory_space<vmem>>, vector<1x32x4xf32>
    %81 = vector.shape_cast %80 : vector<1x32x4xf32> to vector<32x4xf32>
    %cst_46 = arith.constant dense<0.000000e+00> : vector<32x256xf32>
    %82 = tpu.matmul %81, %79, %cst_46 {dimension_numbers = #tpu.dot_dimension_numbers<[1], [0], [0], [1], [0, 0, 1, 1], [], []>} : vector<32x4xf32>, vector<4x256xf32>, vector<32x256xf32> -> vector<32x256xf32>
    %83 = arith.addf %74, %82 : vector<32x256xf32>
    %c0_47 = arith.constant 0 : index
    %c144 = arith.constant 144 : index
    %84 = vector.load %arg9[%c0_47, %c144] : memref<4x512xf32, #tpu.memory_space<vmem>>, vector<4x256xf32>
    %c7 = arith.constant 7 : index
    %c0_48 = arith.constant 0 : index
    %c0_49 = arith.constant 0 : index
    %85 = vector.load %arg2[%c7, %c0_48, %c0_49] : memref<9x32x4xf32, #tpu.memory_space<vmem>>, vector<1x32x4xf32>
    %86 = vector.shape_cast %85 : vector<1x32x4xf32> to vector<32x4xf32>
    %cst_50 = arith.constant dense<0.000000e+00> : vector<32x256xf32>
    %87 = tpu.matmul %86, %84, %cst_50 {dimension_numbers = #tpu.dot_dimension_numbers<[1], [0], [0], [1], [0, 0, 1, 1], [], []>} : vector<32x4xf32>, vector<4x256xf32>, vector<32x256xf32> -> vector<32x256xf32>
    %88 = arith.addf %83, %87 : vector<32x256xf32>
    %c0_51 = arith.constant 0 : index
    %c145 = arith.constant 145 : index
    %89 = vector.load %arg9[%c0_51, %c145] : memref<4x512xf32, #tpu.memory_space<vmem>>, vector<4x256xf32>
    %cst_52 = arith.constant 0.000000e+00 : f32
    %90 = vector.shape_cast %20 : vector<1x256xi1> to vector<1x256xi1>
    %91 = vector.broadcast %90 : vector<1x256xi1> to vector<4x256xi1>
    %92 = vector.broadcast %cst_52 : f32 to vector<4x256xf32>
    %93 = arith.select %91, %89, %92 : vector<4x256xi1>, vector<4x256xf32>
    %c8 = arith.constant 8 : index
    %c0_53 = arith.constant 0 : index
    %c0_54 = arith.constant 0 : index
    %94 = vector.load %arg2[%c8, %c0_53, %c0_54] : memref<9x32x4xf32, #tpu.memory_space<vmem>>, vector<1x32x4xf32>
    %95 = vector.shape_cast %94 : vector<1x32x4xf32> to vector<32x4xf32>
    %cst_55 = arith.constant dense<0.000000e+00> : vector<32x256xf32>
    %96 = tpu.matmul %95, %93, %cst_55 {dimension_numbers = #tpu.dot_dimension_numbers<[1], [0], [0], [1], [0, 0, 1, 1], [], []>} : vector<32x4xf32>, vector<4x256xf32>, vector<32x256xf32> -> vector<32x256xf32>
    %97 = arith.addf %88, %96 : vector<32x256xf32>
    %c0_56 = arith.constant 0 : index
    %c0_57 = arith.constant 0 : index
    %98 = vector.load %arg3[%c0_56, %c0_57] : memref<32x1xf32, #tpu.memory_space<vmem>>, vector<32x1xf32>
    %99 = vector.broadcast %98 : vector<32x1xf32> to vector<32x256xf32>
    %100 = arith.addf %97, %99 : vector<32x256xf32>
    %cst_58 = arith.constant 0.000000e+00 : f32
    %101 = vector.broadcast %cst_58 : f32 to vector<32x256xf32>
    %102 = arith.maximumf %100, %101 : vector<32x256xf32>
    %cst_59 = arith.constant 0.000000e+00 : f32
    %103 = vector.broadcast %cst_59 : f32 to vector<32x128xf32>
    %c0_60 = arith.constant 0 : index
    %c0_61 = arith.constant 0 : index
    %104 = vector.load %arg10[%c0_60, %c0_61] : memref<32x512xf32, #tpu.memory_space<vmem>>, vector<32x128xf32>
    tpu.vector_store %arg10[%c0_60, %c0_61], %103 {strides = array<i32>} : memref<32x512xf32, #tpu.memory_space<vmem>>, vector<32x128xf32>,
    %cst_62 = arith.constant 0.000000e+00 : f32
    %105 = vector.broadcast %cst_62 : f32 to vector<32x128xf32>
    %c0_63 = arith.constant 0 : index
    %c384_64 = arith.constant 384 : index
    %106 = vector.load %arg10[%c0_63, %c384_64] : memref<32x512xf32, #tpu.memory_space<vmem>>, vector<32x128xf32>
    tpu.vector_store %arg10[%c0_63, %c384_64], %105 {strides = array<i32>} : memref<32x512xf32, #tpu.memory_space<vmem>>, vector<32x128xf32>,
    %c0_65 = arith.constant 0 : index
    %c128_66 = arith.constant 128 : index
    %107 = vector.load %arg10[%c0_65, %c128_66] : memref<32x512xf32, #tpu.memory_space<vmem>>, vector<32x256xf32>
    tpu.vector_store %arg10[%c0_65, %c128_66], %102 {strides = array<i32>} : memref<32x512xf32, #tpu.memory_space<vmem>>, vector<32x256xf32>,
    %cst_67 = arith.constant 0.000000e+00 : f32
    %108 = vector.broadcast %cst_67 : f32 to vector<64x256xf32>
    %c0_68 = arith.constant 0 : index
    %c111_69 = arith.constant 111 : index
    %109 = vector.load %arg10[%c0_68, %c111_69] : memref<32x512xf32, #tpu.memory_space<vmem>>, vector<32x256xf32>
    %cst_70 = arith.constant 0.000000e+00 : f32
    %110 = vector.shape_cast %18 : vector<1x256xi1> to vector<1x256xi1>
    %111 = vector.broadcast %110 : vector<1x256xi1> to vector<32x256xi1>
    %112 = vector.broadcast %cst_70 : f32 to vector<32x256xf32>
    %113 = arith.select %111, %109, %112 : vector<32x256xi1>, vector<32x256xf32>
    %c0_71 = arith.constant 0 : index
    %c0_72 = arith.constant 0 : index
    %c0_73 = arith.constant 0 : index
    %114 = vector.load %arg4[%c0_71, %c0_72, %c0_73] : memref<9x64x32xf32, #tpu.memory_space<vmem>>, vector<1x64x32xf32>
    %115 = vector.shape_cast %114 : vector<1x64x32xf32> to vector<64x32xf32>
    %cst_74 = arith.constant dense<0.000000e+00> : vector<64x256xf32>
    %116 = tpu.matmul %115, %113, %cst_74 {dimension_numbers = #tpu.dot_dimension_numbers<[1], [0], [0], [1], [0, 0, 1, 1], [], []>} : vector<64x32xf32>, vector<32x256xf32>, vector<64x256xf32> -> vector<64x256xf32>
    %117 = arith.addf %108, %116 : vector<64x256xf32>
    %c0_75 = arith.constant 0 : index
    %c112_76 = arith.constant 112 : index
    %118 = vector.load %arg10[%c0_75, %c112_76] : memref<32x512xf32, #tpu.memory_space<vmem>>, vector<32x256xf32>
    %c1_77 = arith.constant 1 : index
    %c0_78 = arith.constant 0 : index
    %c0_79 = arith.constant 0 : index
    %119 = vector.load %arg4[%c1_77, %c0_78, %c0_79] : memref<9x64x32xf32, #tpu.memory_space<vmem>>, vector<1x64x32xf32>
    %120 = vector.shape_cast %119 : vector<1x64x32xf32> to vector<64x32xf32>
    %cst_80 = arith.constant dense<0.000000e+00> : vector<64x256xf32>
    %121 = tpu.matmul %120, %118, %cst_80 {dimension_numbers = #tpu.dot_dimension_numbers<[1], [0], [0], [1], [0, 0, 1, 1], [], []>} : vector<64x32xf32>, vector<32x256xf32>, vector<64x256xf32> -> vector<64x256xf32>
    %122 = arith.addf %117, %121 : vector<64x256xf32>
    %c0_81 = arith.constant 0 : index
    %c113_82 = arith.constant 113 : index
    %123 = vector.load %arg10[%c0_81, %c113_82] : memref<32x512xf32, #tpu.memory_space<vmem>>, vector<32x256xf32>
    %cst_83 = arith.constant 0.000000e+00 : f32
    %124 = vector.shape_cast %20 : vector<1x256xi1> to vector<1x256xi1>
    %125 = vector.broadcast %124 : vector<1x256xi1> to vector<32x256xi1>
    %126 = vector.broadcast %cst_83 : f32 to vector<32x256xf32>
    %127 = arith.select %125, %123, %126 : vector<32x256xi1>, vector<32x256xf32>
    %c2_84 = arith.constant 2 : index
    %c0_85 = arith.constant 0 : index
    %c0_86 = arith.constant 0 : index
    %128 = vector.load %arg4[%c2_84, %c0_85, %c0_86] : memref<9x64x32xf32, #tpu.memory_space<vmem>>, vector<1x64x32xf32>
    %129 = vector.shape_cast %128 : vector<1x64x32xf32> to vector<64x32xf32>
    %cst_87 = arith.constant dense<0.000000e+00> : vector<64x256xf32>
    %130 = tpu.matmul %129, %127, %cst_87 {dimension_numbers = #tpu.dot_dimension_numbers<[1], [0], [0], [1], [0, 0, 1, 1], [], []>} : vector<64x32xf32>, vector<32x256xf32>, vector<64x256xf32> -> vector<64x256xf32>
    %131 = arith.addf %122, %130 : vector<64x256xf32>
    %c0_88 = arith.constant 0 : index
    %c127_89 = arith.constant 127 : index
    %132 = vector.load %arg10[%c0_88, %c127_89] : memref<32x512xf32, #tpu.memory_space<vmem>>, vector<32x256xf32>
    %cst_90 = arith.constant 0.000000e+00 : f32
    %133 = vector.shape_cast %18 : vector<1x256xi1> to vector<1x256xi1>
    %134 = vector.broadcast %133 : vector<1x256xi1> to vector<32x256xi1>
    %135 = vector.broadcast %cst_90 : f32 to vector<32x256xf32>
    %136 = arith.select %134, %132, %135 : vector<32x256xi1>, vector<32x256xf32>
    %c3_91 = arith.constant 3 : index
    %c0_92 = arith.constant 0 : index
    %c0_93 = arith.constant 0 : index
    %137 = vector.load %arg4[%c3_91, %c0_92, %c0_93] : memref<9x64x32xf32, #tpu.memory_space<vmem>>, vector<1x64x32xf32>
    %138 = vector.shape_cast %137 : vector<1x64x32xf32> to vector<64x32xf32>
    %cst_94 = arith.constant dense<0.000000e+00> : vector<64x256xf32>
    %139 = tpu.matmul %138, %136, %cst_94 {dimension_numbers = #tpu.dot_dimension_numbers<[1], [0], [0], [1], [0, 0, 1, 1], [], []>} : vector<64x32xf32>, vector<32x256xf32>, vector<64x256xf32> -> vector<64x256xf32>
    %140 = arith.addf %131, %139 : vector<64x256xf32>
    %c0_95 = arith.constant 0 : index
    %c128_96 = arith.constant 128 : index
    %141 = vector.load %arg10[%c0_95, %c128_96] : memref<32x512xf32, #tpu.memory_space<vmem>>, vector<32x256xf32>
    %c4_97 = arith.constant 4 : index
    %c0_98 = arith.constant 0 : index
    %c0_99 = arith.constant 0 : index
    %142 = vector.load %arg4[%c4_97, %c0_98, %c0_99] : memref<9x64x32xf32, #tpu.memory_space<vmem>>, vector<1x64x32xf32>
    %143 = vector.shape_cast %142 : vector<1x64x32xf32> to vector<64x32xf32>
    %cst_100 = arith.constant dense<0.000000e+00> : vector<64x256xf32>
    %144 = tpu.matmul %143, %141, %cst_100 {dimension_numbers = #tpu.dot_dimension_numbers<[1], [0], [0], [1], [0, 0, 1, 1], [], []>} : vector<64x32xf32>, vector<32x256xf32>, vector<64x256xf32> -> vector<64x256xf32>
    %145 = arith.addf %140, %144 : vector<64x256xf32>
    %c0_101 = arith.constant 0 : index
    %c129_102 = arith.constant 129 : index
    %146 = vector.load %arg10[%c0_101, %c129_102] : memref<32x512xf32, #tpu.memory_space<vmem>>, vector<32x256xf32>
    %cst_103 = arith.constant 0.000000e+00 : f32
    %147 = vector.shape_cast %20 : vector<1x256xi1> to vector<1x256xi1>
    %148 = vector.broadcast %147 : vector<1x256xi1> to vector<32x256xi1>
    %149 = vector.broadcast %cst_103 : f32 to vector<32x256xf32>
    %150 = arith.select %148, %146, %149 : vector<32x256xi1>, vector<32x256xf32>
    %c5_104 = arith.constant 5 : index
    %c0_105 = arith.constant 0 : index
    %c0_106 = arith.constant 0 : index
    %151 = vector.load %arg4[%c5_104, %c0_105, %c0_106] : memref<9x64x32xf32, #tpu.memory_space<vmem>>, vector<1x64x32xf32>
    %152 = vector.shape_cast %151 : vector<1x64x32xf32> to vector<64x32xf32>
    %cst_107 = arith.constant dense<0.000000e+00> : vector<64x256xf32>
    %153 = tpu.matmul %152, %150, %cst_107 {dimension_numbers = #tpu.dot_dimension_numbers<[1], [0], [0], [1], [0, 0, 1, 1], [], []>} : vector<64x32xf32>, vector<32x256xf32>, vector<64x256xf32> -> vector<64x256xf32>
    %154 = arith.addf %145, %153 : vector<64x256xf32>
    %c0_108 = arith.constant 0 : index
    %c143_109 = arith.constant 143 : index
    %155 = vector.load %arg10[%c0_108, %c143_109] : memref<32x512xf32, #tpu.memory_space<vmem>>, vector<32x256xf32>
    %cst_110 = arith.constant 0.000000e+00 : f32
    %156 = vector.shape_cast %18 : vector<1x256xi1> to vector<1x256xi1>
    %157 = vector.broadcast %156 : vector<1x256xi1> to vector<32x256xi1>
    %158 = vector.broadcast %cst_110 : f32 to vector<32x256xf32>
    %159 = arith.select %157, %155, %158 : vector<32x256xi1>, vector<32x256xf32>
    %c6_111 = arith.constant 6 : index
    %c0_112 = arith.constant 0 : index
    %c0_113 = arith.constant 0 : index
    %160 = vector.load %arg4[%c6_111, %c0_112, %c0_113] : memref<9x64x32xf32, #tpu.memory_space<vmem>>, vector<1x64x32xf32>
    %161 = vector.shape_cast %160 : vector<1x64x32xf32> to vector<64x32xf32>
    %cst_114 = arith.constant dense<0.000000e+00> : vector<64x256xf32>
    %162 = tpu.matmul %161, %159, %cst_114 {dimension_numbers = #tpu.dot_dimension_numbers<[1], [0], [0], [1], [0, 0, 1, 1], [], []>} : vector<64x32xf32>, vector<32x256xf32>, vector<64x256xf32> -> vector<64x256xf32>
    %163 = arith.addf %154, %162 : vector<64x256xf32>
    %c0_115 = arith.constant 0 : index
    %c144_116 = arith.constant 144 : index
    %164 = vector.load %arg10[%c0_115, %c144_116] : memref<32x512xf32, #tpu.memory_space<vmem>>, vector<32x256xf32>
    %c7_117 = arith.constant 7 : index
    %c0_118 = arith.constant 0 : index
    %c0_119 = arith.constant 0 : index
    %165 = vector.load %arg4[%c7_117, %c0_118, %c0_119] : memref<9x64x32xf32, #tpu.memory_space<vmem>>, vector<1x64x32xf32>
    %166 = vector.shape_cast %165 : vector<1x64x32xf32> to vector<64x32xf32>
    %cst_120 = arith.constant dense<0.000000e+00> : vector<64x256xf32>
    %167 = tpu.matmul %166, %164, %cst_120 {dimension_numbers = #tpu.dot_dimension_numbers<[1], [0], [0], [1], [0, 0, 1, 1], [], []>} : vector<64x32xf32>, vector<32x256xf32>, vector<64x256xf32> -> vector<64x256xf32>
    %168 = arith.addf %163, %167 : vector<64x256xf32>
    %c0_121 = arith.constant 0 : index
    %c145_122 = arith.constant 145 : index
    %169 = vector.load %arg10[%c0_121, %c145_122] : memref<32x512xf32, #tpu.memory_space<vmem>>, vector<32x256xf32>
    %cst_123 = arith.constant 0.000000e+00 : f32
    %170 = vector.shape_cast %20 : vector<1x256xi1> to vector<1x256xi1>
    %171 = vector.broadcast %170 : vector<1x256xi1> to vector<32x256xi1>
    %172 = vector.broadcast %cst_123 : f32 to vector<32x256xf32>
    %173 = arith.select %171, %169, %172 : vector<32x256xi1>, vector<32x256xf32>
    %c8_124 = arith.constant 8 : index
    %c0_125 = arith.constant 0 : index
    %c0_126 = arith.constant 0 : index
    %174 = vector.load %arg4[%c8_124, %c0_125, %c0_126] : memref<9x64x32xf32, #tpu.memory_space<vmem>>, vector<1x64x32xf32>
    %175 = vector.shape_cast %174 : vector<1x64x32xf32> to vector<64x32xf32>
    %cst_127 = arith.constant dense<0.000000e+00> : vector<64x256xf32>
    %176 = tpu.matmul %175, %173, %cst_127 {dimension_numbers = #tpu.dot_dimension_numbers<[1], [0], [0], [1], [0, 0, 1, 1], [], []>} : vector<64x32xf32>, vector<32x256xf32>, vector<64x256xf32> -> vector<64x256xf32>
    %177 = arith.addf %168, %176 : vector<64x256xf32>
    %c0_128 = arith.constant 0 : index
    %c0_129 = arith.constant 0 : index
    %178 = vector.load %arg5[%c0_128, %c0_129] : memref<64x1xf32, #tpu.memory_space<vmem>>, vector<64x1xf32>
    %179 = vector.broadcast %178 : vector<64x1xf32> to vector<64x256xf32>
    %180 = arith.addf %177, %179 : vector<64x256xf32>
    %cst_130 = arith.constant 0.000000e+00 : f32
    %181 = vector.broadcast %cst_130 : f32 to vector<64x256xf32>
    %182 = arith.maximumf %180, %181 : vector<64x256xf32>
    %cst_131 = arith.constant 0.000000e+00 : f32
    %183 = vector.broadcast %cst_131 : f32 to vector<64x128xf32>
    %c0_132 = arith.constant 0 : index
    %c0_133 = arith.constant 0 : index
    %184 = vector.load %arg11[%c0_132, %c0_133] : memref<64x512xf32, #tpu.memory_space<vmem>>, vector<64x128xf32>
    tpu.vector_store %arg11[%c0_132, %c0_133], %183 {strides = array<i32>} : memref<64x512xf32, #tpu.memory_space<vmem>>, vector<64x128xf32>,
    %cst_134 = arith.constant 0.000000e+00 : f32
    %185 = vector.broadcast %cst_134 : f32 to vector<64x128xf32>
    %c0_135 = arith.constant 0 : index
    %c384_136 = arith.constant 384 : index
    %186 = vector.load %arg11[%c0_135, %c384_136] : memref<64x512xf32, #tpu.memory_space<vmem>>, vector<64x128xf32>
    tpu.vector_store %arg11[%c0_135, %c384_136], %185 {strides = array<i32>} : memref<64x512xf32, #tpu.memory_space<vmem>>, vector<64x128xf32>,
    %c0_137 = arith.constant 0 : index
    %c128_138 = arith.constant 128 : index
    %187 = vector.load %arg11[%c0_137, %c128_138] : memref<64x512xf32, #tpu.memory_space<vmem>>, vector<64x256xf32>
    tpu.vector_store %arg11[%c0_137, %c128_138], %182 {strides = array<i32>} : memref<64x512xf32, #tpu.memory_space<vmem>>, vector<64x256xf32>,
    %cst_139 = arith.constant 0.000000e+00 : f32
    %188 = vector.broadcast %cst_139 : f32 to vector<64x256xf32>
    %c0_140 = arith.constant 0 : index
    %c111_141 = arith.constant 111 : index
    %189 = vector.load %arg11[%c0_140, %c111_141] : memref<64x512xf32, #tpu.memory_space<vmem>>, vector<64x256xf32>
    %cst_142 = arith.constant 0.000000e+00 : f32
    %190 = vector.shape_cast %18 : vector<1x256xi1> to vector<1x256xi1>
    %191 = vector.broadcast %190 : vector<1x256xi1> to vector<64x256xi1>
    %192 = vector.broadcast %cst_142 : f32 to vector<64x256xf32>
    %193 = arith.select %191, %189, %192 : vector<64x256xi1>, vector<64x256xf32>
    %c0_143 = arith.constant 0 : index
    %c0_144 = arith.constant 0 : index
    %c0_145 = arith.constant 0 : index
    %194 = vector.load %arg6[%c0_143, %c0_144, %c0_145] : memref<9x64x64xf32, #tpu.memory_space<vmem>>, vector<1x64x64xf32>
    %195 = vector.shape_cast %194 : vector<1x64x64xf32> to vector<64x64xf32>
    %cst_146 = arith.constant dense<0.000000e+00> : vector<64x256xf32>
    %196 = tpu.matmul %195, %193, %cst_146 {dimension_numbers = #tpu.dot_dimension_numbers<[1], [0], [0], [1], [0, 0, 1, 1], [], []>} : vector<64x64xf32>, vector<64x256xf32>, vector<64x256xf32> -> vector<64x256xf32>
    %197 = arith.addf %188, %196 : vector<64x256xf32>
    %c0_147 = arith.constant 0 : index
    %c112_148 = arith.constant 112 : index
    %198 = vector.load %arg11[%c0_147, %c112_148] : memref<64x512xf32, #tpu.memory_space<vmem>>, vector<64x256xf32>
    %c1_149 = arith.constant 1 : index
    %c0_150 = arith.constant 0 : index
    %c0_151 = arith.constant 0 : index
    %199 = vector.load %arg6[%c1_149, %c0_150, %c0_151] : memref<9x64x64xf32, #tpu.memory_space<vmem>>, vector<1x64x64xf32>
    %200 = vector.shape_cast %199 : vector<1x64x64xf32> to vector<64x64xf32>
    %cst_152 = arith.constant dense<0.000000e+00> : vector<64x256xf32>
    %201 = tpu.matmul %200, %198, %cst_152 {dimension_numbers = #tpu.dot_dimension_numbers<[1], [0], [0], [1], [0, 0, 1, 1], [], []>} : vector<64x64xf32>, vector<64x256xf32>, vector<64x256xf32> -> vector<64x256xf32>
    %202 = arith.addf %197, %201 : vector<64x256xf32>
    %c0_153 = arith.constant 0 : index
    %c113_154 = arith.constant 113 : index
    %203 = vector.load %arg11[%c0_153, %c113_154] : memref<64x512xf32, #tpu.memory_space<vmem>>, vector<64x256xf32>
    %cst_155 = arith.constant 0.000000e+00 : f32
    %204 = vector.shape_cast %20 : vector<1x256xi1> to vector<1x256xi1>
    %205 = vector.broadcast %204 : vector<1x256xi1> to vector<64x256xi1>
    %206 = vector.broadcast %cst_155 : f32 to vector<64x256xf32>
    %207 = arith.select %205, %203, %206 : vector<64x256xi1>, vector<64x256xf32>
    %c2_156 = arith.constant 2 : index
    %c0_157 = arith.constant 0 : index
    %c0_158 = arith.constant 0 : index
    %208 = vector.load %arg6[%c2_156, %c0_157, %c0_158] : memref<9x64x64xf32, #tpu.memory_space<vmem>>, vector<1x64x64xf32>
    %209 = vector.shape_cast %208 : vector<1x64x64xf32> to vector<64x64xf32>
    %cst_159 = arith.constant dense<0.000000e+00> : vector<64x256xf32>
    %210 = tpu.matmul %209, %207, %cst_159 {dimension_numbers = #tpu.dot_dimension_numbers<[1], [0], [0], [1], [0, 0, 1, 1], [], []>} : vector<64x64xf32>, vector<64x256xf32>, vector<64x256xf32> -> vector<64x256xf32>
    %211 = arith.addf %202, %210 : vector<64x256xf32>
    %c0_160 = arith.constant 0 : index
    %c127_161 = arith.constant 127 : index
    %212 = vector.load %arg11[%c0_160, %c127_161] : memref<64x512xf32, #tpu.memory_space<vmem>>, vector<64x256xf32>
    %cst_162 = arith.constant 0.000000e+00 : f32
    %213 = vector.shape_cast %18 : vector<1x256xi1> to vector<1x256xi1>
    %214 = vector.broadcast %213 : vector<1x256xi1> to vector<64x256xi1>
    %215 = vector.broadcast %cst_162 : f32 to vector<64x256xf32>
    %216 = arith.select %214, %212, %215 : vector<64x256xi1>, vector<64x256xf32>
    %c3_163 = arith.constant 3 : index
    %c0_164 = arith.constant 0 : index
    %c0_165 = arith.constant 0 : index
    %217 = vector.load %arg6[%c3_163, %c0_164, %c0_165] : memref<9x64x64xf32, #tpu.memory_space<vmem>>, vector<1x64x64xf32>
    %218 = vector.shape_cast %217 : vector<1x64x64xf32> to vector<64x64xf32>
    %cst_166 = arith.constant dense<0.000000e+00> : vector<64x256xf32>
    %219 = tpu.matmul %218, %216, %cst_166 {dimension_numbers = #tpu.dot_dimension_numbers<[1], [0], [0], [1], [0, 0, 1, 1], [], []>} : vector<64x64xf32>, vector<64x256xf32>, vector<64x256xf32> -> vector<64x256xf32>
    %220 = arith.addf %211, %219 : vector<64x256xf32>
    %c0_167 = arith.constant 0 : index
    %c128_168 = arith.constant 128 : index
    %221 = vector.load %arg11[%c0_167, %c128_168] : memref<64x512xf32, #tpu.memory_space<vmem>>, vector<64x256xf32>
    %c4_169 = arith.constant 4 : index
    %c0_170 = arith.constant 0 : index
    %c0_171 = arith.constant 0 : index
    %222 = vector.load %arg6[%c4_169, %c0_170, %c0_171] : memref<9x64x64xf32, #tpu.memory_space<vmem>>, vector<1x64x64xf32>
    %223 = vector.shape_cast %222 : vector<1x64x64xf32> to vector<64x64xf32>
    %cst_172 = arith.constant dense<0.000000e+00> : vector<64x256xf32>
    %224 = tpu.matmul %223, %221, %cst_172 {dimension_numbers = #tpu.dot_dimension_numbers<[1], [0], [0], [1], [0, 0, 1, 1], [], []>} : vector<64x64xf32>, vector<64x256xf32>, vector<64x256xf32> -> vector<64x256xf32>
    %225 = arith.addf %220, %224 : vector<64x256xf32>
    %c0_173 = arith.constant 0 : index
    %c129_174 = arith.constant 129 : index
    %226 = vector.load %arg11[%c0_173, %c129_174] : memref<64x512xf32, #tpu.memory_space<vmem>>, vector<64x256xf32>
    %cst_175 = arith.constant 0.000000e+00 : f32
    %227 = vector.shape_cast %20 : vector<1x256xi1> to vector<1x256xi1>
    %228 = vector.broadcast %227 : vector<1x256xi1> to vector<64x256xi1>
    %229 = vector.broadcast %cst_175 : f32 to vector<64x256xf32>
    %230 = arith.select %228, %226, %229 : vector<64x256xi1>, vector<64x256xf32>
    %c5_176 = arith.constant 5 : index
    %c0_177 = arith.constant 0 : index
    %c0_178 = arith.constant 0 : index
    %231 = vector.load %arg6[%c5_176, %c0_177, %c0_178] : memref<9x64x64xf32, #tpu.memory_space<vmem>>, vector<1x64x64xf32>
    %232 = vector.shape_cast %231 : vector<1x64x64xf32> to vector<64x64xf32>
    %cst_179 = arith.constant dense<0.000000e+00> : vector<64x256xf32>
    %233 = tpu.matmul %232, %230, %cst_179 {dimension_numbers = #tpu.dot_dimension_numbers<[1], [0], [0], [1], [0, 0, 1, 1], [], []>} : vector<64x64xf32>, vector<64x256xf32>, vector<64x256xf32> -> vector<64x256xf32>
    %234 = arith.addf %225, %233 : vector<64x256xf32>
    %c0_180 = arith.constant 0 : index
    %c143_181 = arith.constant 143 : index
    %235 = vector.load %arg11[%c0_180, %c143_181] : memref<64x512xf32, #tpu.memory_space<vmem>>, vector<64x256xf32>
    %cst_182 = arith.constant 0.000000e+00 : f32
    %236 = vector.shape_cast %18 : vector<1x256xi1> to vector<1x256xi1>
    %237 = vector.broadcast %236 : vector<1x256xi1> to vector<64x256xi1>
    %238 = vector.broadcast %cst_182 : f32 to vector<64x256xf32>
    %239 = arith.select %237, %235, %238 : vector<64x256xi1>, vector<64x256xf32>
    %c6_183 = arith.constant 6 : index
    %c0_184 = arith.constant 0 : index
    %c0_185 = arith.constant 0 : index
    %240 = vector.load %arg6[%c6_183, %c0_184, %c0_185] : memref<9x64x64xf32, #tpu.memory_space<vmem>>, vector<1x64x64xf32>
    %241 = vector.shape_cast %240 : vector<1x64x64xf32> to vector<64x64xf32>
    %cst_186 = arith.constant dense<0.000000e+00> : vector<64x256xf32>
    %242 = tpu.matmul %241, %239, %cst_186 {dimension_numbers = #tpu.dot_dimension_numbers<[1], [0], [0], [1], [0, 0, 1, 1], [], []>} : vector<64x64xf32>, vector<64x256xf32>, vector<64x256xf32> -> vector<64x256xf32>
    %243 = arith.addf %234, %242 : vector<64x256xf32>
    %c0_187 = arith.constant 0 : index
    %c144_188 = arith.constant 144 : index
    %244 = vector.load %arg11[%c0_187, %c144_188] : memref<64x512xf32, #tpu.memory_space<vmem>>, vector<64x256xf32>
    %c7_189 = arith.constant 7 : index
    %c0_190 = arith.constant 0 : index
    %c0_191 = arith.constant 0 : index
    %245 = vector.load %arg6[%c7_189, %c0_190, %c0_191] : memref<9x64x64xf32, #tpu.memory_space<vmem>>, vector<1x64x64xf32>
    %246 = vector.shape_cast %245 : vector<1x64x64xf32> to vector<64x64xf32>
    %cst_192 = arith.constant dense<0.000000e+00> : vector<64x256xf32>
    %247 = tpu.matmul %246, %244, %cst_192 {dimension_numbers = #tpu.dot_dimension_numbers<[1], [0], [0], [1], [0, 0, 1, 1], [], []>} : vector<64x64xf32>, vector<64x256xf32>, vector<64x256xf32> -> vector<64x256xf32>
    %248 = arith.addf %243, %247 : vector<64x256xf32>
    %c0_193 = arith.constant 0 : index
    %c145_194 = arith.constant 145 : index
    %249 = vector.load %arg11[%c0_193, %c145_194] : memref<64x512xf32, #tpu.memory_space<vmem>>, vector<64x256xf32>
    %cst_195 = arith.constant 0.000000e+00 : f32
    %250 = vector.shape_cast %20 : vector<1x256xi1> to vector<1x256xi1>
    %251 = vector.broadcast %250 : vector<1x256xi1> to vector<64x256xi1>
    %252 = vector.broadcast %cst_195 : f32 to vector<64x256xf32>
    %253 = arith.select %251, %249, %252 : vector<64x256xi1>, vector<64x256xf32>
    %c8_196 = arith.constant 8 : index
    %c0_197 = arith.constant 0 : index
    %c0_198 = arith.constant 0 : index
    %254 = vector.load %arg6[%c8_196, %c0_197, %c0_198] : memref<9x64x64xf32, #tpu.memory_space<vmem>>, vector<1x64x64xf32>
    %255 = vector.shape_cast %254 : vector<1x64x64xf32> to vector<64x64xf32>
    %cst_199 = arith.constant dense<0.000000e+00> : vector<64x256xf32>
    %256 = tpu.matmul %255, %253, %cst_199 {dimension_numbers = #tpu.dot_dimension_numbers<[1], [0], [0], [1], [0, 0, 1, 1], [], []>} : vector<64x64xf32>, vector<64x256xf32>, vector<64x256xf32> -> vector<64x256xf32>
    %257 = arith.addf %248, %256 : vector<64x256xf32>
    %c0_200 = arith.constant 0 : index
    %c0_201 = arith.constant 0 : index
    %258 = vector.load %arg7[%c0_200, %c0_201] : memref<64x1xf32, #tpu.memory_space<vmem>>, vector<64x1xf32>
    %259 = vector.broadcast %258 : vector<64x1xf32> to vector<64x256xf32>
    %260 = arith.addf %257, %259 : vector<64x256xf32>
    %cst_202 = arith.constant 0.000000e+00 : f32
    %261 = vector.broadcast %cst_202 : f32 to vector<64x256xf32>
    %262 = arith.maximumf %260, %261 : vector<64x256xf32>
    %263 = arith.truncf %262 : vector<64x256xf32> to vector<64x256xbf16>
    %c0_203 = arith.constant 0 : index
    %c0_204 = arith.constant 0 : index
    %c0_205 = arith.constant 0 : index
    %264 = vector.load %arg8[%c0_203, %c0_204, %c0_205] : memref<1x64x256xbf16, #tpu.memory_space<vmem>>, vector<1x64x256xbf16>
    %265 = vector.shape_cast %264 : vector<1x64x256xbf16> to vector<64x256xbf16>
    %266 = vector.shape_cast %263 : vector<64x256xbf16> to vector<1x64x256xbf16>
    tpu.vector_store %arg8[%c0_203, %c0_204, %c0_205], %266 {strides = array<i32>} : memref<1x64x256xbf16, #tpu.memory_space<vmem>>, vector<1x64x256xbf16>,
    return
  }
  func.func @transform_0(%arg0: i32) -> (i32, i32, i32) {
    %c0_i32 = arith.constant 0 : i32
    %c0_i32_0 = arith.constant 0 : i32
    %c0_i32_1 = arith.constant 0 : i32
    return %arg0, %c0_i32, %c0_i32_0 : i32, i32, i32
  }
  func.func @transform_1(%arg0: i32) -> (i32, i32, i32) {
    %c0_i32 = arith.constant 0 : i32
    %c0_i32_0 = arith.constant 0 : i32
    %c0_i32_1 = arith.constant 0 : i32
    %c0_i32_2 = arith.constant 0 : i32
    return %c0_i32, %c0_i32_0, %c0_i32_1 : i32, i32, i32
  }
  func.func @transform_2(%arg0: i32) -> (i32, i32) {
    %c0_i32 = arith.constant 0 : i32
    %c0_i32_0 = arith.constant 0 : i32
    %c0_i32_1 = arith.constant 0 : i32
    return %c0_i32, %c0_i32_0 : i32, i32
  }
  func.func @transform_3(%arg0: i32) -> (i32, i32, i32) {
    %c0_i32 = arith.constant 0 : i32
    %c0_i32_0 = arith.constant 0 : i32
    %c0_i32_1 = arith.constant 0 : i32
    %c0_i32_2 = arith.constant 0 : i32
    return %c0_i32, %c0_i32_0, %c0_i32_1 : i32, i32, i32
  }
  func.func @transform_4(%arg0: i32) -> (i32, i32) {
    %c0_i32 = arith.constant 0 : i32
    %c0_i32_0 = arith.constant 0 : i32
    %c0_i32_1 = arith.constant 0 : i32
    return %c0_i32, %c0_i32_0 : i32, i32
  }
  func.func @transform_5(%arg0: i32) -> (i32, i32, i32) {
    %c0_i32 = arith.constant 0 : i32
    %c0_i32_0 = arith.constant 0 : i32
    %c0_i32_1 = arith.constant 0 : i32
    %c0_i32_2 = arith.constant 0 : i32
    return %c0_i32, %c0_i32_0, %c0_i32_1 : i32, i32, i32
  }
  func.func @transform_6(%arg0: i32) -> (i32, i32) {
    %c0_i32 = arith.constant 0 : i32
    %c0_i32_0 = arith.constant 0 : i32
    %c0_i32_1 = arith.constant 0 : i32
    return %c0_i32, %c0_i32_0 : i32, i32
  }
  func.func @transform_7(%arg0: i32) -> (i32, i32, i32) {
    %c0_i32 = arith.constant 0 : i32
    %c0_i32_0 = arith.constant 0 : i32
    %c0_i32_1 = arith.constant 0 : i32
    return %arg0, %c0_i32, %c0_i32_0 : i32, i32, i32
  }
}

</mosaic_0001>

<bundles_post_ra>
// kernel: cnn_qnet_forward.3
= control target key start
LH: loop header
LB: loop body
LE: loop exit
PB: predicated region body
PF: predicated region fallthrough
CT: control target
= control target key end

     0   :  { %s7160_s0 = inlined_call_operand.vmem [shape: bf16[2,16384], index: 0, kind: input, shape index: {}]   ;;  %s7161_s1 = inlined_call_operand.hbm [shape: bf16[16384,512], index: 1, kind: input, shape index: {}]   ;;  %s7162_s2 = inlined_call_operand.hbm [shape: f32[1,512], index: 2, kind: input, shape index: {}]   ;;  %s7163_s3 = inlined_call_operand.vmem [shape: bf16[512,8], index: 3, kind: input, shape index: {}]   ;;  %s7164_s4 = inlined_call_operand.vmem [shape: f32[2,2,8], index: 4, kind: output, shape index: {}]  }
   0x1   :  { %7167 = sst [smem:[#allocation11_spill]] %s7161_s1 }
   0x2   :  { %7168 = sst [smem:[#allocation12_spill]] %s7164_s4 }
   0x3   :  { %9 = vsyncpa [#allocation4], 0 }
   0x4   :  { %11 = vsyncpa [#allocation4 + $0x1], 0 }
   0x5   :  { %12 = vsyncpa [#allocation6], 0 }
   0x6   :  { %14 = vsyncpa [#allocation6 + $0x1], 0  ;;  %s6285_s15 = smov 0   ;;  %s6287_s16 = smov 0  }
   0x7   :  { %s6289_s17 = smov 0   ;;  %s6291_s18 = smov 0  }
   0x8   :  { %s6293_s19 = smov 0   ;;  %s6295_s20 = smov 0  }
   0x9   :  { %s6297_s21 = smov 0   ;;  %s6299_s22 = smov 0  }
   0xa   :  { %s6301_s23 = smov 0   ;;  %s6303_s24 = smov 0  }
   0xb   :  { %s6305_s25 = smov 0  }
   0xc LB: > { %s29_s26 = sadd.s32 1, %s6242_s23  ;;  %p74_p1 = scmp.ne.s32.totalorder %s6230_s20, %s6226_s19  ;;  %s6250_s25 = sphi %s6305_s25, %s20_s25   ;;  %s6246_s24 = sphi %s6303_s24, %s7194_s24   ;;  %s6242_s23 = sphi %s6301_s23, %s7193_s23   ;;  %s6238_s22 = sphi %s6299_s22, %s7192_s22   ;;  %s6234_s21 = sphi %s6297_s21, %s7191_s21   ;;  %s6230_s20 = sphi %s6295_s20, %s7190_s20   ;;  %s6226_s19 = sphi %s6293_s19, %s7189_s19   ;;  %s6222_s18 = sphi %s6291_s18, %s7188_s18   ;;  %s6218_s17 = sphi %s6289_s17, %s7187_s17   ;;  %s6214_s16 = sphi %s6287_s16, %s7186_s16   ;;  %s6210_s15 = sphi %s6285_s15, %s7185_s15  }
   0xd   : > { %p6342_p0 = scmp.ge.s32.totalorder %s29_s26, 4  ;;  %p75_p2 = scmp.eq.s32.totalorder %s6250_s25, 0 }
   0xe   : > { %p5217_p4 = scmp.lt.s32.totalorder %s6250_s25, 8  ;;  %s190_s30 = sand.u32 1, %s6230_s20  }
   0xf   : > { %s7196_s26 = smov (%p6342_p0, %s29_s26), 0  ;;  %p76_p3 = por %p75_p2, %p74_p1 }
  0x10   : > { %7170 = sst [smem:[#allocation9_spill]] %s7196_s26  ;;  %s4635_s5 = sshll.u32 %s190_s30, 12 }
  0x11   : > { %s4637_s6 = sshll.u32 %s6246_s24, 1  ;;  %s5182_s7 = sshll.u32 %s6242_s23, 11 }
  0x12   : > { %s194_s8 = scalar_lea.vmem [#allocation3], %s4635_s5  ;;  %s201_s10 = sadd.s32 %s5182_s7, %s4637_s6 }
  0x13   : > { %s204_s9 = sshll.u32 %s194_s8, 4  ;;  %s4639_s11 = sshll.u32 %s201_s10, 6  ;;  %s205_s9 = int_to_ptr.vmem [resolvable:$true] %s204_s9 }
  0x14   : > { %p6363_p5 = pnand %p5217_p4, %p76_p3  ;;  %s7172_s1 = sld [smem:[#allocation11_spill]] }
  0x15   : > { %p4643_p6 = scmp.ge.s32.totalorder %s6250_s25, 1  ;;  %s191_s29 = scalar_lea.sflag [#allocation4], %s190_s30 }
  0x16   : > { %p6102_p7 = pneg %p6363_p5  ;;  %s6113_s4 = scalar_lea.vmem %s205_s9, 65536 }
  0x17   : > { %p6114_p8 = scmp.ne.s32.totalorder %s205_s9, %s6113_s4  ;;  %s6252_s5 = smov [#allocation3]  }
  0x18   : > { %s6118_s6 = sshll.u32 %s6252_s5, 4  ;;  %s6119_s6 = int_to_ptr.vmem [resolvable:$false] %s6118_s6 }
  0x19   : > { %p6116_p9 = pnand %p6114_p8, %p6102_p7  ;;  %s6120_s7 = scalar_lea.vmem %s6119_s6, 131072 }
  0x1a   : > { %s203_s27 = scalar_lea.hbm %s7172_s1, %s4639_s11  ;;  %p6121_p11 = scmp.lt.s32.totalorder %s205_s9, %s6119_s6 }
  0x1b   : > { %p6117_p10 = pneg %p6116_p9  ;;  %p6122_p12 = scmp.lt.s32.totalorder %s6120_s7, %s6113_s4 }
  0x1d   : > { %p6123_p13 = por %p6122_p12, %p6121_p11 }
  0x1f   : > { %p6124_p1 = pnand %p6123_p13, %p6117_p10 }
  0x21   : > { %6127 = shalt.err (!%p6124_p1)
}
  0x22   : > { %s6253_s8 = smov 256   ;;  %s6254_s30 = smov 128  }
  0x23   : > { %s6255_s4 = smov 8   ;;  %p240_p3 = scmp.lt.s32.totalorder %s6250_s25, 9 }
  0x24   : > { %5213 = dma.hbm_to_vmem [thread:$0]  (!%p6363_p5), %s203_s27, 65536, %s205_s9, %s191_s29, %s6253_s8, %s6254_s30, %s6255_s4  }
  0x25   : > { %p6378_p7 = pnand %p4643_p6, %p240_p3  ;;  %s4631_s11 = sadd.s32 4294967295, %s6250_s25  }
  0x26   : > { %s32_s13 = sadd.s32 1, %s6246_s24  ;;  %p80_p8 = scmp.ne.s32.totalorder %s6226_s19, %s6222_s18 }
  0x27   : > { %s7198_s13 = smov (!%p6342_p0, %s32_s13), %s6246_s24  ;;  %p6389_p9 = scmp.eq.s32.totalorder %s4631_s11, 0 }
  0x28   : > { %p34_p5 = scmp.ge.s32.totalorder %s7198_s13, 2  ;;  %s93_s27 = sadd.s32 1, %s6218_s17 }
  0x29   : > { %p6396_p6 = por %p6389_p9, %p80_p8  ;;  %p100_p10 = scmp.ne.s32.totalorder %s6218_s17, %s6214_s16 }
  0x2a   : > { %s7200_s13 = smov (%p34_p5, %s7198_s13), 0  ;;  %p106_p11 = scmp.ne.s32.totalorder %s6214_s16, %s6210_s15 }
  0x2b   : > { %7176 = sst [smem:[#allocation10_spill]] %s7200_s13  ;;  %p6406_p0 = por %p100_p10, %p75_p2 }
  0x2c   : > { %s63_s28 = ssub.s32 %s6246_s24, %s7200_s13  ;;  %s214_s9 = sand.u32 1, %s6218_s17  }
  0x2d   : > { %s7178_s14 = ssub.s32 %s6242_s23, %s7196_s26  ;;  %p91_p12 = scmp.eq.s32.totalorder %s63_s28, 0 }
  0x2e   : > { %s64_s5 = sor.u32 %s63_s28, %s7178_s14  ;;  %p6420_p1 = por %p106_p11, %p6389_p9 }
  0x2f   : > { %p65_p13 = scmp.eq.s32.totalorder %s64_s5, 0  ;;  %s7180_s8 = sadd.s32 1, %s6230_s20 }
  0x30   : > { %s6425_s7 = scalar_select %p91_p12, %s6218_s17, %s93_s27  }
  0x31   : > { %s6430_s30 = scalar_select %p65_p13, %s6230_s20, %s7180_s8  }
  0x32   : > { %s4640_s4 = sshll.u32 %s214_s9, 1  ;;  %s5183_s11 = sshll.u32 %s6246_s24, 5 }
  0x33   : > { %s224_s13 = scalar_lea.hbm %s7162_s2, %s5183_s11  ;;  %s218_s26 = scalar_lea.vmem [#allocation5], %s4640_s4 }
  0x34   : > { %s226_s14 = sshll.u32 %s218_s26, 4  ;;  %p6440_p2 = pnand %p5217_p4, %p6406_p0  ;;  %s227_s14 = int_to_ptr.vmem [resolvable:$true] %s226_s14 }
  0x35   : > { %s215_s27 = scalar_lea.sflag [#allocation6], %s214_s9  ;;  %s6141_s28 = scalar_lea.vmem %s227_s14, 32 }
  0x36   : > { %p6130_p3 = pneg %p6440_p2  ;;  %p6142_p8 = scmp.ne.s32.totalorder %s227_s14, %s6141_s28 }
  0x37   : > { %s6256_s5 = smov [#allocation5]  }
  0x38   : > { %p6144_p9 = pnand %p6142_p8, %p6130_p3  ;;  %s6146_s1 = sshll.u32 %s6256_s5, 4  ;;  %s6147_s1 = int_to_ptr.vmem [resolvable:$false] %s6146_s1 }
  0x39   : > { %s6148_s8 = scalar_lea.vmem %s6147_s1, 64  ;;  %p6149_p10 = scmp.lt.s32.totalorder %s227_s14, %s6147_s1 }
  0x3a   : > { %p6145_p5 = pneg %p6144_p9  ;;  %p6150_p11 = scmp.lt.s32.totalorder %s6148_s8, %s6141_s28 }
  0x3c   : > { %p6151_p12 = por %p6150_p11, %p6149_p10 }
  0x3e   : > { %p6152_p13 = pnand %p6151_p12, %p6145_p5 }
  0x40   : > { %6155 = shalt.err (!%p6152_p13)
}
  0x41   : > { %5216 = dma.hbm_to_vmem [thread:$0]  (!%p6440_p2), %s224_s13, 32, %s227_s14, %s215_s27  }
  0x42   : > { %244 = sbr.rel (%p6378_p7) target bundleno = 1042 (0x412), region = 36  ;;  %s246_s26 = sand.u32 (!%p6378_p7), 1, %s6226_s19  }
  0x43   : > { %s4644_s18 = sshll.u32 (!%p6378_p7), %s246_s26, 12  ;;  %s247_s9 = scalar_lea.sflag (!%p6378_p7), [#allocation4], %s246_s26 }
  0x44   : > { %s6451_s4 = scalar_lea.vmem (!%p6378_p7), [#allocation3], %s4644_s18 }
  0x47   : > { %6201 = dma.done.wait (%p6396_p6), %s247_s9, 65536  }
  0x48   : > { %6203 = vsyncadd (%p6396_p6), %s247_s9, 4294901760  ;;  %s255_s11 = sand.u32 1, %s6214_s16  }
  0x49   : > { %s6458_s15 = sshll.u32 %s255_s11, 1  ;;  %s256_s10 = scalar_lea.sflag [#allocation6], %s255_s11 }
  0x4a   : > { %s259_s13 = scalar_lea.vmem [#allocation5], %s6458_s15 }
  0x4b   : > { %6205 = dma.done.wait (%p6420_p1), %s256_s10, 32  }
  0x4c   : > { %6207 = vsyncadd (%p6420_p1), %s256_s10, 4294967264  ;;  %s4646_s14 = sshll.u32 %s6234_s21, 5  ;;  %s4647_s29 = sshll.u32 %s6238_s22, 5 }
  0x4d   : > { %p298_p4 = scmp.lt.s32.totalorder %s4646_s14, 127  ;;  %p306_p7 = scmp.lt.s32.totalorder %s4647_s29, 63 }
  0x4e   : > { %p311_p6 = scmp.lt.s32.totalorder %s6238_s22, 1  ;;  %s7182_s11 = sld [smem:[#allocation12_spill]] }
  0x4f   : > { %s7202_s14 = smov (!%p298_p4, %s4646_s14), 127  ;;  %s7204_s29 = smov (!%p306_p7, %s4647_s29), 63 }
  0x50   : > { %s6471_s28 = scalar_lea.vmem %s7160_s0, %s7202_s14  ;;  %s4648_s5 = sshll.u32 %s7204_s29, 2 }
  0x51   : > { %s6476_s8 = scalar_lea.vmem %s7163_s3, %s4648_s5  ;;  %s7206_s22 = smov (!%p311_p6, %s6238_s22), 1 }
  0x52   : > { %s4649_s26 = sshll.u32 %s7206_s22, 1  ;;  %p4650_p0 = scmp.ne.s32.totalorder %s6234_s21, 0 }
  0x54   : > { %s6482_s10 = scalar_lea.vmem %s7182_s11, %s4649_s26  ;;  %319 = sbr.rel (%p4650_p0) target bundleno = 91 (0x5b), region = 48 }
  0x59   : > { %v6257_v0 = vmov 0.0  }
  0x5a   : > { %320 = vst [vmem:[#allocation2] sm:$0xf] %v6257_v0 }
  0x5b PF: > { %v5312_v1 = vld [vmem:[%s6451_s4 + $0x74] ss:$8 sps:$4 sm:$0xff]   ;;  %v5316_v3 = vld [vmem:[%s6451_s4 + $0x70] ss:$8 sps:$4 sm:$0xff]   ;;  %v5318_v5 = vld [vmem:[%s6451_s4 + $0x64] ss:$8 sps:$4 sm:$0xff]   ;;  %v846_v39 = vlaneseq }
  0x5c   : > { %v5314_v2 = vld [vmem:[%s6451_s4 + $0x174] ss:$8 sps:$4 sm:$0xff]   ;;  %3630 = vmatprep.subr.bf16.mxu0 %v5312_v1  ;;  %v5317_v4 = vld [vmem:[%s6451_s4 + $0x170] ss:$8 sps:$4 sm:$0xff]   ;;  %v5320_v6 = vld [vmem:[%s6451_s4 + $0x164] ss:$8 sps:$4 sm:$0xff]  }
  0x5d   : > { %3671 = vmatprep.subr.bf16.mxu1 %v5314_v2  ;;  %3631 = vmatpush1.bf16.msra.mxu0 %v5316_v3  ;;  %v5322_v7 = vld [vmem:[%s6451_s4 + $0x60] ss:$8 sps:$4 sm:$0xff]   ;;  %v5324_v9 = vld [vmem:[%s6451_s4 + $0x54] ss:$8 sps:$4 sm:$0xff]   ;;  %v5328_v11 = vld [vmem:[%s6451_s4 + $0x50] ss:$8 sps:$4 sm:$0xff]  }
  0x5e   : > { %3672 = vmatpush1.bf16.msra.mxu1 %v5317_v4  ;;  %3632 = vmatprep.subr.bf16.mxu0 %v5318_v5  ;;  %v5323_v8 = vld [vmem:[%s6451_s4 + $0x160] ss:$8 sps:$4 sm:$0xff]   ;;  %v5326_v10 = vld [vmem:[%s6451_s4 + $0x154] ss:$8 sps:$4 sm:$0xff]   ;;  %v5329_v12 = vld [vmem:[%s6451_s4 + $0x150] ss:$8 sps:$4 sm:$0xff]  }
  0x5f   : > { %3673 = vmatprep.subr.bf16.mxu1 %v5320_v6  ;;  %v5330_v13 = vld [vmem:[%s6451_s4 + $0x44] ss:$8 sps:$4 sm:$0xff]   ;;  %v5334_v15 = vld [vmem:[%s6451_s4 + $0x40] ss:$8 sps:$4 sm:$0xff]   ;;  %v5336_v17 = vld [vmem:[%s6451_s4 + $0x34] ss:$8 sps:$4 sm:$0xff]  }
  0x60   : > { %v5332_v14 = vld [vmem:[%s6451_s4 + $0x144] ss:$8 sps:$4 sm:$0xff]   ;;  %v5335_v16 = vld [vmem:[%s6451_s4 + $0x140] ss:$8 sps:$4 sm:$0xff]   ;;  %v5338_v18 = vld [vmem:[%s6451_s4 + $0x134] ss:$8 sps:$4 sm:$0xff]  }
  0x61   : > { %3633 = vmatpush1.bf16.msra.mxu0 %v5322_v7  ;;  %v5340_v19 = vld [vmem:[%s6451_s4 + $0x30] ss:$8 sps:$4 sm:$0xff]   ;;  %v5342_v21 = vld [vmem:[%s6451_s4 + $0x24] ss:$8 sps:$4 sm:$0xff]   ;;  %v5346_v23 = vld [vmem:[%s6451_s4 + $0x20] ss:$8 sps:$4 sm:$0xff]  }
  0x62   : > { %3674 = vmatpush1.bf16.msra.mxu1 %v5323_v8  ;;  %3634 = vmatprep.subr.bf16.mxu0 %v5324_v9  ;;  %v5341_v20 = vld [vmem:[%s6451_s4 + $0x130] ss:$8 sps:$4 sm:$0xff]   ;;  %v5344_v22 = vld [vmem:[%s6451_s4 + $0x124] ss:$8 sps:$4 sm:$0xff]   ;;  %v5347_v24 = vld [vmem:[%s6451_s4 + $0x120] ss:$8 sps:$4 sm:$0xff]  }
  0x63   : > { %3675 = vmatprep.subr.bf16.mxu1 %v5326_v10  ;;  %v5348_v25 = vld [vmem:[%s6451_s4 + $0x14] ss:$8 sps:$4 sm:$0xff]   ;;  %v5352_v27 = vld [vmem:[%s6451_s4 + $0x10] ss:$8 sps:$4 sm:$0xff]   ;;  %v5354_v29 = vld [vmem:[%s6451_s4 + $0x4] ss:$8 sps:$4 sm:$0xff]  }
  0x64   : > { %v5350_v26 = vld [vmem:[%s6451_s4 + $0x114] ss:$8 sps:$4 sm:$0xff]   ;;  %v5353_v28 = vld [vmem:[%s6451_s4 + $0x110] ss:$8 sps:$4 sm:$0xff]   ;;  %v5356_v30 = vld [vmem:[%s6451_s4 + $0x104] ss:$8 sps:$4 sm:$0xff]  }
  0x65   : > { %3635 = vmatpush1.bf16.msra.mxu0 %v5328_v11  ;;  %v5358_v31 = vld [vmem:[%s6451_s4] ss:$8 sps:$4 sm:$0xff]   ;;  %v5360_v33 = vld [vmem:[%s6451_s4 + $0xf4] ss:$8 sps:$4 sm:$0xff]   ;;  %v5364_v35 = vld [vmem:[%s6451_s4 + $0xf0] ss:$8 sps:$4 sm:$0xff]  }
  0x66   : > { %3676 = vmatpush1.bf16.msra.mxu1 %v5329_v12  ;;  %3636 = vmatprep.subr.bf16.mxu0 %v5330_v13  ;;  %v5359_v32 = vld [vmem:[%s6451_s4 + $0x100] ss:$8 sps:$4 sm:$0xff]   ;;  %v5362_v34 = vld [vmem:[%s6451_s4 + $0x1f4] ss:$8 sps:$4 sm:$0xff]   ;;  %v5365_v36 = vld [vmem:[%s6451_s4 + $0x1f0] ss:$8 sps:$4 sm:$0xff]  }
  0x67   : > { %3677 = vmatprep.subr.bf16.mxu1 %v5332_v14  ;;  %v6258_v37 = vmov 1966171168   ;;  %v5366_v40 = vld [vmem:[%s6451_s4 + $0xe4] ss:$8 sps:$4 sm:$0xff]   ;;  %v5370_v42 = vld [vmem:[%s6451_s4 + $0xe0] ss:$8 sps:$4 sm:$0xff]  }
  0x68   : > { %v844_v38 = vunpack.c.l.s4 %v6258_v37  ;;  %v5368_v41 = vld [vmem:[%s6451_s4 + $0x1e4] ss:$8 sps:$4 sm:$0xff]   ;;  %v6524_v44 = vshrl.u32 %v846_v39, 7  ;;  %v5371_v45 = vld [vmem:[%s6451_s4 + $0x1e0] ss:$8 sps:$4 sm:$0xff]   ;;  %p5163_p1 = scmp.ne.s32.totalorder %s6234_s21, 3 }
  0x69   : > { %3637 = vmatpush1.bf16.msra.mxu0 %v5334_v15  ;;  %v5372_v46 = vld [vmem:[%s6451_s4 + $0xd4] ss:$8 sps:$4 sm:$0xff]   ;;  %v5376_v48 = vld [vmem:[%s6451_s4 + $0xd0] ss:$8 sps:$4 sm:$0xff]   ;;  %v5378_v51 = vld [vmem:[%s6451_s4 + $0xc4] ss:$8 sps:$4 sm:$0xff]  }
  0x6a   : > { %3678 = vmatpush1.bf16.msra.mxu1 %v5335_v16  ;;  %3638 = vmatprep.subr.bf16.mxu0 %v5336_v17  ;;  %v845_v43 = vunpack.c.0.s8 %v844_v38  ;;  %v5374_v47 = vld [vmem:[%s6451_s4 + $0x1d4] ss:$8 sps:$4 sm:$0xff]   ;;  %v5377_v49 = vld [vmem:[%s6451_s4 + $0x1d0] ss:$8 sps:$4 sm:$0xff]   ;;  %v5380_v52 = vld [vmem:[%s6451_s4 + $0x1c4] ss:$8 sps:$4 sm:$0xff]  }
  0x6b   : > { %3679 = vmatprep.subr.bf16.mxu1 %v5338_v18  ;;  %v322_v53 = vld [vmem:[%s6471_s28] sm:$0xff]  ;;  %v5388_v60 = vld [vmem:[%s6451_s4 + $0xb0] ss:$8 sps:$4 sm:$0xff]   ;;  %v5390_v63 = vld [vmem:[%s6451_s4 + $0xa4] ss:$8 sps:$4 sm:$0xff]  }
  0x6c   : > { %v6532_v50 = vsub.s32 %v845_v43, %v6524_v44  ;;  %v5382_v54 = vld [vmem:[%s6451_s4 + $0xc0] ss:$8 sps:$4 sm:$0xff]   ;;  %v5384_v57 = vld [vmem:[%s6451_s4 + $0xb4] ss:$8 sps:$4 sm:$0xff]   ;;  %v5389_v62 = vld [vmem:[%s6451_s4 + $0x1b0] ss:$8 sps:$4 sm:$0xff]   ;;  %v842_v2 = vcombine.high %v322_v53, %v322_v53 }
  0x6d   : > { %3639 = vmatpush1.bf16.msra.mxu0 %v5340_v19  ;;  %v5383_v56 = vld [vmem:[%s6451_s4 + $0x1c0] ss:$8 sps:$4 sm:$0xff]   ;;  %v5386_v58 = vld [vmem:[%s6451_s4 + $0x1b4] ss:$8 sps:$4 sm:$0xff]   ;;  %v5392_v0 = vld [vmem:[%s6451_s4 + $0x1a4] ss:$8 sps:$4 sm:$0xff]  }
  0x6e   : > { %3680 = vmatpush1.bf16.msra.mxu1 %v5341_v20  ;;  %3640 = vmatprep.subr.bf16.mxu0 %v5342_v21  ;;  %v849_v55 = vrot.slane %v322_v53, %v6532_v50  ;;  %v5394_v3 = vld [vmem:[%s6451_s4 + $0xa0] ss:$8 sps:$4 sm:$0xff]   ;;  %v5396_v5 = vld [vmem:[%s6451_s4 + $0x94] ss:$8 sps:$4 sm:$0xff]   ;;  %v6552_v7 = vrot.slane %v842_v2, %v6532_v50  ;;  %v5400_v8 = vld [vmem:[%s6451_s4 + $0x90] ss:$8 sps:$4 sm:$0xff]  }
  0x6f   : > { %3681 = vmatprep.subr.bf16.mxu1 %v5344_v22  ;;  %v5395_v4 = vld [vmem:[%s6451_s4 + $0x1a0] ss:$8 sps:$4 sm:$0xff]   ;;  %v5398_v6 = vld [vmem:[%s6451_s4 + $0x194] ss:$8 sps:$4 sm:$0xff]   ;;  %v5401_v9 = vld [vmem:[%s6451_s4 + $0x190] ss:$8 sps:$4 sm:$0xff]  }
  0x70   : > { %v857_v59 = vcombine.high %v849_v55, %v849_v55  ;;  %v5402_v10 = vld [vmem:[%s6451_s4 + $0x84] ss:$8 sps:$4 sm:$0xff]   ;;  %v858_v12 = vcombine.high %v6552_v7, %v6552_v7  ;;  %v5406_v13 = vld [vmem:[%s6451_s4 + $0x80] ss:$8 sps:$4 sm:$0xff]   ;;  %v865_v14 = vrot.slane %v849_v55, %v6532_v50  ;;  %v5411_v16 = vld [vmem:[%s6451_s4 + $0x274] ss:$8 sps:$4 sm:$0xff]  }
  0x71   : > { %3641 = vmatpush1.bf16.msra.mxu0 %v5346_v23  ;;  %v5404_v11 = vld [vmem:[%s6451_s4 + $0x184] ss:$8 sps:$4 sm:$0xff]   ;;  %v5407_v15 = vld [vmem:[%s6451_s4 + $0x180] ss:$8 sps:$4 sm:$0xff]   ;;  %v5414_v17 = vld [vmem:[%s6451_s4 + $0x374] ss:$8 sps:$4 sm:$0xff]  }
  0x72   : > { %3682 = vmatpush1.bf16.msra.mxu1 %v5347_v24  ;;  %3642 = vmatprep.subr.bf16.mxu0 %v5348_v25  ;;  %v879_v61 = vrot.slane %v857_v59, %v6532_v50  ;;  %v886_v18 = vrot.slane %v858_v12, %v6532_v50  ;;  %v887_v19 = vcombine.high %v865_v14, %v865_v14  ;;  %v5409_v20 = vld [vmem:[%s6451_s4 + $0x270] ss:$8 sps:$4 sm:$0xff]   ;;  %v5417_v22 = vld [vmem:[%s6451_s4 + $0x264] ss:$8 sps:$4 sm:$0xff]   ;;  %v5415_v25 = vld [vmem:[%s6451_s4 + $0x260] ss:$8 sps:$4 sm:$0xff]  }
  0x73   : > { %3683 = vmatprep.subr.bf16.mxu1 %v5350_v26  ;;  %v5412_v21 = vld [vmem:[%s6451_s4 + $0x370] ss:$8 sps:$4 sm:$0xff]   ;;  %v5420_v23 = vld [vmem:[%s6451_s4 + $0x364] ss:$8 sps:$4 sm:$0xff]   ;;  %v5418_v26 = vld [vmem:[%s6451_s4 + $0x360] ss:$8 sps:$4 sm:$0xff]  }
  0x74   : > { %v889_v1 = vcombine.high %v879_v61, %v879_v61  ;;  %3662 = vmatprep.mubr.bf16.mxu0 %v879_v61  ;;  %v890_v24 = vcombine.high %v886_v18, %v886_v18  ;;  %v5433_v37 = vld [vmem:[%s6451_s4 + $0x230] ss:$8 sps:$4 sm:$0xff]   ;;  %v5441_v39 = vld [vmem:[%s6451_s4 + $0x224] ss:$8 sps:$4 sm:$0xff]   ;;  %v5447_v43 = vld [vmem:[%s6451_s4 + $0x214] ss:$8 sps:$4 sm:$0xff]  }
  0x75   : > { %3643 = vmatpush1.bf16.msra.mxu0 %v5352_v27  ;;  %v5423_v27 = vld [vmem:[%s6451_s4 + $0x254] ss:$8 sps:$4 sm:$0xff]   ;;  %v5436_v38 = vld [vmem:[%s6451_s4 + $0x330] ss:$8 sps:$4 sm:$0xff]   ;;  %v5463_v59 = vld [vmem:[%s6451_s4 + $0x2e0] ss:$8 sps:$4 sm:$0xff]  }
  0x76   : > { %3684 = vmatpush1.bf16.msra.mxu1 %v5353_v28  ;;  %3644 = vmatprep.subr.bf16.mxu0 %v5354_v29  ;;  %v5426_v28 = vld [vmem:[%s6451_s4 + $0x354] ss:$8 sps:$4 sm:$0xff]   ;;  %v5421_v29 = vld [vmem:[%s6451_s4 + $0x250] ss:$8 sps:$4 sm:$0xff]   ;;  %v5480_v2 = vld [vmem:[%s6451_s4 + $0x3c4] ss:$8 sps:$4 sm:$0xff]  }
  0x77   : > { %3685 = vmatprep.subr.bf16.mxu1 %v5356_v30  ;;  %3703 = vmatprep.mubr.bf16.mxu1 %v889_v1  ;;  %v5424_v30 = vld [vmem:[%s6451_s4 + $0x350] ss:$8 sps:$4 sm:$0xff]   ;;  %v5459_v53 = vld [vmem:[%s6451_s4 + $0x2f4] ss:$8 sps:$4 sm:$0xff]   ;;  %v5477_v1 = vld [vmem:[%s6451_s4 + $0x2c4] ss:$8 sps:$4 sm:$0xff]  }
  0x78   : > { %v5457_v55 = vld [vmem:[%s6451_s4 + $0x2f0] ss:$8 sps:$4 sm:$0xff]   ;;  %v5471_v61 = vld [vmem:[%s6451_s4 + $0x2d4] ss:$8 sps:$4 sm:$0xff]   ;;  %v5487_v12 = vld [vmem:[%s6451_s4 + $0x2a0] ss:$8 sps:$4 sm:$0xff]  }
  0x79   : > { %3645 = vmatpush1.bf16.msra.mxu0 %v5358_v31  ;;  %v5429_v31 = vld [vmem:[%s6451_s4 + $0x244] ss:$8 sps:$4 sm:$0xff]  }
  0x7a   : > { %3686 = vmatpush1.bf16.msra.mxu1 %v5359_v32  ;;  %3646 = vmatprep.subr.bf16.mxu0 %v5360_v33  ;;  %v5432_v32 = vld [vmem:[%s6451_s4 + $0x344] ss:$8 sps:$4 sm:$0xff]   ;;  %v5427_v33 = vld [vmem:[%s6451_s4 + $0x240] ss:$8 sps:$4 sm:$0xff]  }
  0x7b   : > { %3687 = vmatprep.subr.bf16.mxu1 %v5362_v34  ;;  %v5430_v34 = vld [vmem:[%s6451_s4 + $0x340] ss:$8 sps:$4 sm:$0xff]  }
  0x7d   : > { %3647 = vmatpush2.bf16.msra.mxu0 %v5364_v35  ;;  %v5435_v35 = vld [vmem:[%s6451_s4 + $0x234] ss:$8 sps:$4 sm:$0xff]  }
  0x7e   : > { %3688 = vmatpush2.bf16.msra.mxu1 %v5365_v36  ;;  %3648 = vmatprep.subr.bf16.mxu0 %v5366_v40  ;;  %v5438_v36 = vld [vmem:[%s6451_s4 + $0x334] ss:$8 sps:$4 sm:$0xff]   ;;  %v5444_v40 = vld [vmem:[%s6451_s4 + $0x324] ss:$8 sps:$4 sm:$0xff]  }
  0x7f   : > { %3689 = vmatprep.subr.bf16.mxu1 %v5368_v41  ;;  %v5439_v41 = vld [vmem:[%s6451_s4 + $0x220] ss:$8 sps:$4 sm:$0xff]  }
  0x81   : > { %3649 = vmatpush2.bf16.msra.mxu0 %v5370_v42  ;;  %v5442_v42 = vld [vmem:[%s6451_s4 + $0x320] ss:$8 sps:$4 sm:$0xff]  }
  0x82   : > { %3690 = vmatpush2.bf16.msra.mxu1 %v5371_v45  ;;  %3650 = vmatprep.subr.bf16.mxu0 %v5372_v46  ;;  %v5450_v45 = vld [vmem:[%s6451_s4 + $0x314] ss:$8 sps:$4 sm:$0xff]   ;;  %v5445_v46 = vld [vmem:[%s6451_s4 + $0x210] ss:$8 sps:$4 sm:$0xff]  }
  0x83   : > { %3691 = vmatprep.subr.bf16.mxu1 %v5374_v47  ;;  %v5448_v47 = vld [vmem:[%s6451_s4 + $0x310] ss:$8 sps:$4 sm:$0xff]  }
  0x85   : > { %3651 = vmatpush2.bf16.msra.mxu0 %v5376_v48  ;;  %v5453_v48 = vld [vmem:[%s6451_s4 + $0x204] ss:$8 sps:$4 sm:$0xff]  }
  0x86   : > { %3692 = vmatpush2.bf16.msra.mxu1 %v5377_v49  ;;  %3652 = vmatprep.subr.bf16.mxu0 %v5378_v51  ;;  %v5456_v49 = vld [vmem:[%s6451_s4 + $0x304] ss:$8 sps:$4 sm:$0xff]   ;;  %v5451_v51 = vld [vmem:[%s6451_s4 + $0x200] ss:$8 sps:$4 sm:$0xff]  }
  0x87   : > { %3693 = vmatprep.subr.bf16.mxu1 %v5380_v52  ;;  %v5454_v52 = vld [vmem:[%s6451_s4 + $0x300] ss:$8 sps:$4 sm:$0xff]  }
  0x89   : > { %3653 = vmatpush2.bf16.msra.mxu0 %v5382_v54  ;;  %v5462_v54 = vld [vmem:[%s6451_s4 + $0x3f4] ss:$8 sps:$4 sm:$0xff]  }
  0x8a   : > { %3694 = vmatpush2.bf16.msra.mxu1 %v5383_v56  ;;  %3654 = vmatprep.subr.bf16.mxu0 %v5384_v57  ;;  %v5460_v56 = vld [vmem:[%s6451_s4 + $0x3f0] ss:$8 sps:$4 sm:$0xff]   ;;  %v5465_v57 = vld [vmem:[%s6451_s4 + $0x2e4] ss:$8 sps:$4 sm:$0xff]  }
  0x8b   : > { %3695 = vmatprep.subr.bf16.mxu1 %v5386_v58  ;;  %v5468_v58 = vld [vmem:[%s6451_s4 + $0x3e4] ss:$8 sps:$4 sm:$0xff]  }
  0x8d   : > { %3655 = vmatpush2.bf16.msra.mxu0 %v5388_v60  ;;  %v5466_v60 = vld [vmem:[%s6451_s4 + $0x3e0] ss:$8 sps:$4 sm:$0xff]  }
  0x8e   : > { %3696 = vmatpush2.bf16.msra.mxu1 %v5389_v62  ;;  %3656 = vmatprep.subr.bf16.mxu0 %v5390_v63  ;;  %v5474_v62 = vld [vmem:[%s6451_s4 + $0x3d4] ss:$8 sps:$4 sm:$0xff]   ;;  %v5469_v63 = vld [vmem:[%s6451_s4 + $0x2d0] ss:$8 sps:$4 sm:$0xff]  }
  0x8f   : > { %3697 = vmatprep.subr.bf16.mxu1 %v5392_v0  ;;  %v5472_v0 = vld [vmem:[%s6451_s4 + $0x3d0] ss:$8 sps:$4 sm:$0xff]  }
  0x91   : > { %3657 = vmatpush2.bf16.msra.mxu0 %v5394_v3  ;;  %v5475_v3 = vld [vmem:[%s6451_s4 + $0x2c0] ss:$8 sps:$4 sm:$0xff]  }
  0x92   : > { %3698 = vmatpush2.bf16.msra.mxu1 %v5395_v4  ;;  %3658 = vmatprep.subr.bf16.mxu0 %v5396_v5  ;;  %v5478_v4 = vld [vmem:[%s6451_s4 + $0x3c0] ss:$8 sps:$4 sm:$0xff]   ;;  %v5483_v5 = vld [vmem:[%s6451_s4 + $0x2b4] ss:$8 sps:$4 sm:$0xff]  }
  0x93   : > { %3699 = vmatprep.subr.bf16.mxu1 %v5398_v6  ;;  %v5486_v6 = vld [vmem:[%s6451_s4 + $0x3b4] ss:$8 sps:$4 sm:$0xff]  }
  0x95   : > { %3659 = vmatpush2.bf16.msra.mxu0 %v5400_v8  ;;  %v5481_v8 = vld [vmem:[%s6451_s4 + $0x2b0] ss:$8 sps:$4 sm:$0xff]  }
  0x96   : > { %3700 = vmatpush2.bf16.msra.mxu1 %v5401_v9  ;;  %3660 = vmatprep.subr.bf16.mxu0 %v5402_v10  ;;  %v5484_v9 = vld [vmem:[%s6451_s4 + $0x3b0] ss:$8 sps:$4 sm:$0xff]   ;;  %v5489_v10 = vld [vmem:[%s6451_s4 + $0x2a4] ss:$8 sps:$4 sm:$0xff]  }
  0x97   : > { %3701 = vmatprep.subr.bf16.mxu1 %v5404_v11  ;;  %v5492_v11 = vld [vmem:[%s6451_s4 + $0x3a4] ss:$8 sps:$4 sm:$0xff]  }
  0x99   : > { %3661 = vmatpush2.bf16.msra.mxu0 %v5406_v13  ;;  %v5490_v13 = vld [vmem:[%s6451_s4 + $0x3a0] ss:$8 sps:$4 sm:$0xff]  }
  0x9a   : > { %3702 = vmatpush2.bf16.msra.mxu1 %v5407_v15  ;;  %3712 = vmatprep.subr.bf16.mxu0 %v5411_v16  ;;  %v5498_v15 = vld [vmem:[%s6451_s4 + $0x394] ss:$8 sps:$4 sm:$0xff]   ;;  %v5493_v16 = vld [vmem:[%s6451_s4 + $0x290] ss:$8 sps:$4 sm:$0xff]  }
  0x9b   : > { %3753 = vmatprep.subr.bf16.mxu1 %v5414_v17  ;;  %v5496_v17 = vld [vmem:[%s6451_s4 + $0x390] ss:$8 sps:$4 sm:$0xff]  }
  0x9c   : > { %3663 = vmatmul.mubr.bf16.vlgmr.msra.gmra.mxu0 %v865_v14  ;;  %v5495_v14 = vld [vmem:[%s6451_s4 + $0x294] ss:$8 sps:$4 sm:$0xff]  }
  0x9d   : > { %3704 = vmatmul.mubr.bf16.vlgmr.msra.gmra.mxu1 %v887_v19  ;;  %3713 = vmatpush1.bf16.msra.mxu0 %v5409_v20  ;;  %v5504_v19 = vld [vmem:[%s6451_s4 + $0x384] ss:$8 sps:$4 sm:$0xff]   ;;  %v5499_v20 = vld [vmem:[%s6451_s4 + $0x280] ss:$8 sps:$4 sm:$0xff]  }
  0x9e   : > { %3754 = vmatpush1.bf16.msra.mxu1 %v5412_v21  ;;  %3714 = vmatprep.subr.bf16.mxu0 %v5417_v22  ;;  %v872_v21 = vrot.slane %v6552_v7, %v6532_v50  ;;  %v5502_v22 = vld [vmem:[%s6451_s4 + $0x380] ss:$8 sps:$4 sm:$0xff]   ;;  %v5513_v7 = vld [vmem:[%s6451_s4 + $0x464] ss:$8 sps:$4 sm:$0xff]  }
  0x9f   : > { %3755 = vmatprep.subr.bf16.mxu1 %v5420_v23  ;;  %3744 = vmatprep.mubr.bf16.mxu0 %v886_v18  ;;  %v5501_v18 = vld [vmem:[%s6451_s4 + $0x284] ss:$8 sps:$4 sm:$0xff]   ;;  %v5507_v23 = vld [vmem:[%s6451_s4 + $0x474] ss:$8 sps:$4 sm:$0xff]  }
  0xa0   : > { %3785 = vmatprep.mubr.bf16.mxu1 %v890_v24  ;;  %v5510_v24 = vld [vmem:[%s6451_s4 + $0x574] ss:$8 sps:$4 sm:$0xff]  }
  0xa1   : > { %3715 = vmatpush1.bf16.msra.mxu0 %v5415_v25  ;;  %v888_v25 = vcombine.high %v872_v21, %v872_v21 }
  0xa2   : > { %3756 = vmatpush1.bf16.msra.mxu1 %v5418_v26  ;;  %3716 = vmatprep.subr.bf16.mxu0 %v5423_v27  ;;  %v5505_v26 = vld [vmem:[%s6451_s4 + $0x470] ss:$8 sps:$4 sm:$0xff]  }
  0xa3   : > { %3757 = vmatprep.subr.bf16.mxu1 %v5426_v28  ;;  %v5508_v27 = vld [vmem:[%s6451_s4 + $0x570] ss:$8 sps:$4 sm:$0xff]   ;;  %v6635_v28 = vld [vmem:[%s6471_s28 + $0x8] sm:$0xff] }
  0xa5   : > { %3717 = vmatpush1.bf16.msra.mxu0 %v5421_v29  ;;  %v5516_v29 = vld [vmem:[%s6451_s4 + $0x564] ss:$8 sps:$4 sm:$0xff]  }
  0xa6   : > { %3758 = vmatpush1.bf16.msra.mxu1 %v5424_v30  ;;  %3718 = vmatprep.subr.bf16.mxu0 %v5429_v31  ;;  %v6641_v30 = vrot.slane %v6635_v28, %v6532_v50 }
  0xa7   : > { %3759 = vmatprep.subr.bf16.mxu1 %v5432_v32  ;;  %v5511_v32 = vld [vmem:[%s6451_s4 + $0x460] ss:$8 sps:$4 sm:$0xff]  }
  0xa8   : > { %v906_v31 = vcombine.high %v6641_v30, %v6641_v30 }
  0xa9   : > { %3719 = vmatpush1.bf16.msra.mxu0 %v5427_v33  ;;  %v5514_v33 = vld [vmem:[%s6451_s4 + $0x560] ss:$8 sps:$4 sm:$0xff]  }
  0xaa   : > { %3760 = vmatpush1.bf16.msra.mxu1 %v5430_v34  ;;  %3720 = vmatprep.subr.bf16.mxu0 %v5435_v35  ;;  %v5519_v34 = vld [vmem:[%s6451_s4 + $0x454] ss:$8 sps:$4 sm:$0xff]  }
  0xab   : > { %3761 = vmatprep.subr.bf16.mxu1 %v5438_v36  ;;  %v5522_v35 = vld [vmem:[%s6451_s4 + $0x554] ss:$8 sps:$4 sm:$0xff]   ;;  %v928_v36 = vrot.slane %v906_v31, %v6532_v50 }
  0xad   : > { %3721 = vmatpush1.bf16.msra.mxu0 %v5433_v37  ;;  %v938_v37 = vcombine.high %v928_v36, %v928_v36 }
  0xae   : > { %3762 = vmatpush1.bf16.msra.mxu1 %v5436_v38  ;;  %3722 = vmatprep.subr.bf16.mxu0 %v5441_v39  ;;  %v5517_v38 = vld [vmem:[%s6451_s4 + $0x450] ss:$8 sps:$4 sm:$0xff]  }
  0xaf   : > { %3763 = vmatprep.subr.bf16.mxu1 %v5444_v40  ;;  %v5520_v39 = vld [vmem:[%s6451_s4 + $0x550] ss:$8 sps:$4 sm:$0xff]   ;;  %v5525_v40 = vld [vmem:[%s6451_s4 + $0x444] ss:$8 sps:$4 sm:$0xff]  }
  0xb1   : > { %3723 = vmatpush1.bf16.msra.mxu0 %v5439_v41  ;;  %v5528_v41 = vld [vmem:[%s6451_s4 + $0x544] ss:$8 sps:$4 sm:$0xff]  }
  0xb2   : > { %3764 = vmatpush1.bf16.msra.mxu1 %v5442_v42  ;;  %3724 = vmatprep.subr.bf16.mxu0 %v5447_v43  ;;  %v5523_v42 = vld [vmem:[%s6451_s4 + $0x440] ss:$8 sps:$4 sm:$0xff]  }
  0xb3   : > { %3765 = vmatprep.subr.bf16.mxu1 %v5450_v45  ;;  %v5526_v43 = vld [vmem:[%s6451_s4 + $0x540] ss:$8 sps:$4 sm:$0xff]   ;;  %v5531_v45 = vld [vmem:[%s6451_s4 + $0x434] ss:$8 sps:$4 sm:$0xff]  }
  0xb5   : > { %3725 = vmatpush1.bf16.msra.mxu0 %v5445_v46  ;;  %v5534_v46 = vld [vmem:[%s6451_s4 + $0x534] ss:$8 sps:$4 sm:$0xff]  }
  0xb6   : > { %3766 = vmatpush1.bf16.msra.mxu1 %v5448_v47  ;;  %3726 = vmatprep.subr.bf16.mxu0 %v5453_v48  ;;  %v5529_v47 = vld [vmem:[%s6451_s4 + $0x430] ss:$8 sps:$4 sm:$0xff]  }
  0xb7   : > { %3767 = vmatprep.subr.bf16.mxu1 %v5456_v49  ;;  %v5532_v48 = vld [vmem:[%s6451_s4 + $0x530] ss:$8 sps:$4 sm:$0xff]   ;;  %v5537_v49 = vld [vmem:[%s6451_s4 + $0x424] ss:$8 sps:$4 sm:$0xff]  }
  0xb9   : > { %3727 = vmatpush1.bf16.msra.mxu0 %v5451_v51  ;;  %v5540_v51 = vld [vmem:[%s6451_s4 + $0x524] ss:$8 sps:$4 sm:$0xff]  }
  0xba   : > { %3768 = vmatpush1.bf16.msra.mxu1 %v5454_v52  ;;  %3728 = vmatprep.subr.bf16.mxu0 %v5459_v53  ;;  %v5535_v52 = vld [vmem:[%s6451_s4 + $0x420] ss:$8 sps:$4 sm:$0xff]  }
  0xbb   : > { %3769 = vmatprep.subr.bf16.mxu1 %v5462_v54  ;;  %v5538_v53 = vld [vmem:[%s6451_s4 + $0x520] ss:$8 sps:$4 sm:$0xff]   ;;  %v5543_v54 = vld [vmem:[%s6451_s4 + $0x414] ss:$8 sps:$4 sm:$0xff]  }
  0xbd   : > { %3729 = vmatpush2.bf16.msra.mxu0 %v5457_v55  ;;  %v5546_v55 = vld [vmem:[%s6451_s4 + $0x514] ss:$8 sps:$4 sm:$0xff]  }
  0xbe   : > { %3770 = vmatpush2.bf16.msra.mxu1 %v5460_v56  ;;  %3730 = vmatprep.subr.bf16.mxu0 %v5465_v57  ;;  %v5541_v56 = vld [vmem:[%s6451_s4 + $0x410] ss:$8 sps:$4 sm:$0xff]  }
  0xbf   : > { %3771 = vmatprep.subr.bf16.mxu1 %v5468_v58  ;;  %v5544_v57 = vld [vmem:[%s6451_s4 + $0x510] ss:$8 sps:$4 sm:$0xff]   ;;  %v5549_v58 = vld [vmem:[%s6451_s4 + $0x404] ss:$8 sps:$4 sm:$0xff]  }
  0xc1   : > { %3731 = vmatpush2.bf16.msra.mxu0 %v5463_v59  ;;  %v5552_v59 = vld [vmem:[%s6451_s4 + $0x504] ss:$8 sps:$4 sm:$0xff]  }
  0xc2   : > { %3772 = vmatpush2.bf16.msra.mxu1 %v5466_v60  ;;  %3732 = vmatprep.subr.bf16.mxu0 %v5471_v61  ;;  %v5547_v60 = vld [vmem:[%s6451_s4 + $0x400] ss:$8 sps:$4 sm:$0xff]  }
  0xc3   : > { %3773 = vmatprep.subr.bf16.mxu1 %v5474_v62  ;;  %v5550_v61 = vld [vmem:[%s6451_s4 + $0x500] ss:$8 sps:$4 sm:$0xff]   ;;  %v5555_v62 = vld [vmem:[%s6451_s4 + $0x4f4] ss:$8 sps:$4 sm:$0xff]  }
  0xc5   : > { %3733 = vmatpush2.bf16.msra.mxu0 %v5469_v63  ;;  %v5558_v63 = vld [vmem:[%s6451_s4 + $0x5f4] ss:$8 sps:$4 sm:$0xff]  }
  0xc6   : > { %3774 = vmatpush2.bf16.msra.mxu1 %v5472_v0  ;;  %3734 = vmatprep.subr.bf16.mxu0 %v5477_v1  ;;  %v5553_v0 = vld [vmem:[%s6451_s4 + $0x4f0] ss:$8 sps:$4 sm:$0xff]  }
  0xc7   : > { %3775 = vmatprep.subr.bf16.mxu1 %v5480_v2  ;;  %v5556_v1 = vld [vmem:[%s6451_s4 + $0x5f0] ss:$8 sps:$4 sm:$0xff]   ;;  %v5561_v2 = vld [vmem:[%s6451_s4 + $0x4e4] ss:$8 sps:$4 sm:$0xff]  }
  0xc9   : > { %3735 = vmatpush2.bf16.msra.mxu0 %v5475_v3  ;;  %v5564_v3 = vld [vmem:[%s6451_s4 + $0x5e4] ss:$8 sps:$4 sm:$0xff]  }
  0xca   : > { %3776 = vmatpush2.bf16.msra.mxu1 %v5478_v4  ;;  %3736 = vmatprep.subr.bf16.mxu0 %v5483_v5  ;;  %v5559_v4 = vld [vmem:[%s6451_s4 + $0x4e0] ss:$8 sps:$4 sm:$0xff]  }
  0xcb   : > { %3777 = vmatprep.subr.bf16.mxu1 %v5486_v6  ;;  %v5562_v5 = vld [vmem:[%s6451_s4 + $0x5e0] ss:$8 sps:$4 sm:$0xff]   ;;  %v5567_v6 = vld [vmem:[%s6451_s4 + $0x4d4] ss:$8 sps:$4 sm:$0xff]  }
  0xcd   : > { %3737 = vmatpush2.bf16.msra.mxu0 %v5481_v8  ;;  %v5570_v8 = vld [vmem:[%s6451_s4 + $0x5d4] ss:$8 sps:$4 sm:$0xff]  }
  0xce   : > { %3778 = vmatpush2.bf16.msra.mxu1 %v5484_v9  ;;  %3738 = vmatprep.subr.bf16.mxu0 %v5489_v10  ;;  %v5565_v9 = vld [vmem:[%s6451_s4 + $0x4d0] ss:$8 sps:$4 sm:$0xff]  }
  0xcf   : > { %3779 = vmatprep.subr.bf16.mxu1 %v5492_v11  ;;  %v5568_v10 = vld [vmem:[%s6451_s4 + $0x5d0] ss:$8 sps:$4 sm:$0xff]   ;;  %v5573_v11 = vld [vmem:[%s6451_s4 + $0x4c4] ss:$8 sps:$4 sm:$0xff]  }
  0xd1   : > { %3739 = vmatpush2.bf16.msra.mxu0 %v5487_v12  ;;  %v5576_v12 = vld [vmem:[%s6451_s4 + $0x5c4] ss:$8 sps:$4 sm:$0xff]  }
  0xd2   : > { %3780 = vmatpush2.bf16.msra.mxu1 %v5490_v13  ;;  %3740 = vmatprep.subr.bf16.mxu0 %v5495_v14  ;;  %v5571_v13 = vld [vmem:[%s6451_s4 + $0x4c0] ss:$8 sps:$4 sm:$0xff]  }
  0xd3   : > { %3781 = vmatprep.subr.bf16.mxu1 %v5498_v15  ;;  %v5574_v14 = vld [vmem:[%s6451_s4 + $0x5c0] ss:$8 sps:$4 sm:$0xff]   ;;  %v5579_v15 = vld [vmem:[%s6451_s4 + $0x4b4] ss:$8 sps:$4 sm:$0xff]  }
  0xd5   : > { %3741 = vmatpush2.bf16.msra.mxu0 %v5493_v16  ;;  %v5582_v16 = vld [vmem:[%s6451_s4 + $0x5b4] ss:$8 sps:$4 sm:$0xff]  }
  0xd6   : > { %3782 = vmatpush2.bf16.msra.mxu1 %v5496_v17  ;;  %3742 = vmatprep.subr.bf16.mxu0 %v5501_v18  ;;  %v5577_v17 = vld [vmem:[%s6451_s4 + $0x4b0] ss:$8 sps:$4 sm:$0xff]  }
  0xd7   : > { %3783 = vmatprep.subr.bf16.mxu1 %v5504_v19  ;;  %v5580_v18 = vld [vmem:[%s6451_s4 + $0x5b0] ss:$8 sps:$4 sm:$0xff]   ;;  %v5585_v19 = vld [vmem:[%s6451_s4 + $0x4a4] ss:$8 sps:$4 sm:$0xff]  }
  0xd9   : > { %3743 = vmatpush2.bf16.msra.mxu0 %v5499_v20  ;;  %v5588_v20 = vld [vmem:[%s6451_s4 + $0x5a4] ss:$8 sps:$4 sm:$0xff]  }
  0xda   : > { %3784 = vmatpush2.bf16.msra.mxu1 %v5502_v22  ;;  %3794 = vmatprep.subr.bf16.mxu0 %v5507_v23  ;;  %v5583_v22 = vld [vmem:[%s6451_s4 + $0x4a0] ss:$8 sps:$4 sm:$0xff]  }
  0xdb   : > { %3835 = vmatprep.subr.bf16.mxu1 %v5510_v24  ;;  %v5586_v23 = vld [vmem:[%s6451_s4 + $0x5a0] ss:$8 sps:$4 sm:$0xff]   ;;  %v5591_v24 = vld [vmem:[%s6451_s4 + $0x494] ss:$8 sps:$4 sm:$0xff]  }
  0xdc   : > { %3745 = vmatmul.mubr.bf16.vlgmr.msra.gmra.mxu0 %v872_v21  ;;  %v891_v21 = vcombine.high %v6635_v28, %v6635_v28  ;;  %v5592_v28 = vld [vmem:[%s6451_s4 + $0x590] ss:$8 sps:$4 sm:$0xff]  }
  0xdd   : > { %3786 = vmatmul.mubr.bf16.vlgmr.msra.gmra.mxu1 %v888_v25  ;;  %3795 = vmatpush1.bf16.msra.mxu0 %v5505_v26  ;;  %v5594_v25 = vld [vmem:[%s6451_s4 + $0x594] ss:$8 sps:$4 sm:$0xff]  }
  0xde   : > { %3836 = vmatpush1.bf16.msra.mxu1 %v5508_v27  ;;  %3796 = vmatprep.subr.bf16.mxu0 %v5513_v7  ;;  %v6701_v26 = vrot.slane %v891_v21, %v6532_v50  ;;  %v5589_v27 = vld [vmem:[%s6451_s4 + $0x490] ss:$8 sps:$4 sm:$0xff]   ;;  %v5597_v7 = vld [vmem:[%s6451_s4 + $0x484] ss:$8 sps:$4 sm:$0xff]  }
  0xdf   : > { %3837 = vmatprep.subr.bf16.mxu1 %v5516_v29  ;;  %3826 = vmatprep.mubr.bf16.mxu0 %v928_v36  ;;  %v5600_v29 = vld [vmem:[%s6451_s4 + $0x584] ss:$8 sps:$4 sm:$0xff]   ;;  %v5606_v36 = vld [vmem:[%s6451_s4 + $0x774] ss:$8 sps:$4 sm:$0xff]  }
  0xe0   : > { %3867 = vmatprep.mubr.bf16.mxu1 %v938_v37  ;;  %v907_v31 = vcombine.high %v6701_v26, %v6701_v26  ;;  %v5672_v21 = vld [vmem:[%s6451_s4 + $0x7c4] ss:$8 sps:$4 sm:$0xff]  }
  0xe1   : > { %3797 = vmatpush1.bf16.msra.mxu0 %v5511_v32  ;;  %v914_v32 = vrot.slane %v6641_v30, %v6532_v50  ;;  %v5604_v30 = vld [vmem:[%s6451_s4 + $0x770] ss:$8 sps:$4 sm:$0xff]  }
  0xe2   : > { %3838 = vmatpush1.bf16.msra.mxu1 %v5514_v33  ;;  %3798 = vmatprep.subr.bf16.mxu0 %v5519_v34  ;;  %v5595_v33 = vld [vmem:[%s6451_s4 + $0x480] ss:$8 sps:$4 sm:$0xff]   ;;  %v935_v37 = vrot.slane %v907_v31, %v6532_v50 }
  0xe3   : > { %3839 = vmatprep.subr.bf16.mxu1 %v5522_v35  ;;  %v5598_v34 = vld [vmem:[%s6451_s4 + $0x580] ss:$8 sps:$4 sm:$0xff]   ;;  %v5603_v35 = vld [vmem:[%s6451_s4 + $0x674] ss:$8 sps:$4 sm:$0xff]  }
  0xe4   : > { %v5679_v31 = vld [vmem:[%s6451_s4 + $0x6a0] ss:$8 sps:$4 sm:$0xff]  }
  0xe5   : > { %3799 = vmatpush1.bf16.msra.mxu0 %v5517_v38  ;;  %v936_v38 = vcombine.high %v914_v32, %v914_v32 }
  0xe6   : > { %3840 = vmatpush1.bf16.msra.mxu1 %v5520_v39  ;;  %3800 = vmatprep.subr.bf16.mxu0 %v5525_v40  ;;  %v5601_v39 = vld [vmem:[%s6451_s4 + $0x670] ss:$8 sps:$4 sm:$0xff]   ;;  %v5609_v40 = vld [vmem:[%s6451_s4 + $0x664] ss:$8 sps:$4 sm:$0xff]  }
  0xe7   : > { %3841 = vmatprep.subr.bf16.mxu1 %v5528_v41  ;;  %v5612_v41 = vld [vmem:[%s6451_s4 + $0x764] ss:$8 sps:$4 sm:$0xff]  }
  0xe9   : > { %3801 = vmatpush1.bf16.msra.mxu0 %v5523_v42  ;;  %v939_v42 = vcombine.high %v935_v37, %v935_v37 }
  0xea   : > { %3842 = vmatpush1.bf16.msra.mxu1 %v5526_v43  ;;  %3802 = vmatprep.subr.bf16.mxu0 %v5531_v45  ;;  %v5607_v43 = vld [vmem:[%s6451_s4 + $0x660] ss:$8 sps:$4 sm:$0xff]  }
  0xeb   : > { %3843 = vmatprep.subr.bf16.mxu1 %v5534_v46  ;;  %v5610_v45 = vld [vmem:[%s6451_s4 + $0x760] ss:$8 sps:$4 sm:$0xff]   ;;  %v5615_v46 = vld [vmem:[%s6451_s4 + $0x654] ss:$8 sps:$4 sm:$0xff]  }
  0xed   : > { %3803 = vmatpush1.bf16.msra.mxu0 %v5529_v47  ;;  %v5618_v47 = vld [vmem:[%s6451_s4 + $0x754] ss:$8 sps:$4 sm:$0xff]  }
  0xee   : > { %3844 = vmatpush1.bf16.msra.mxu1 %v5532_v48  ;;  %3804 = vmatprep.subr.bf16.mxu0 %v5537_v49  ;;  %v5613_v48 = vld [vmem:[%s6451_s4 + $0x650] ss:$8 sps:$4 sm:$0xff]  }
  0xef   : > { %3845 = vmatprep.subr.bf16.mxu1 %v5540_v51  ;;  %v5616_v49 = vld [vmem:[%s6451_s4 + $0x750] ss:$8 sps:$4 sm:$0xff]   ;;  %v5621_v51 = vld [vmem:[%s6451_s4 + $0x644] ss:$8 sps:$4 sm:$0xff]  }
  0xf1   : > { %3805 = vmatpush1.bf16.msra.mxu0 %v5535_v52  ;;  %v5624_v52 = vld [vmem:[%s6451_s4 + $0x744] ss:$8 sps:$4 sm:$0xff]  }
  0xf2   : > { %3846 = vmatpush1.bf16.msra.mxu1 %v5538_v53  ;;  %3806 = vmatprep.subr.bf16.mxu0 %v5543_v54  ;;  %v5619_v53 = vld [vmem:[%s6451_s4 + $0x640] ss:$8 sps:$4 sm:$0xff]  }
  0xf3   : > { %3847 = vmatprep.subr.bf16.mxu1 %v5546_v55  ;;  %v5622_v54 = vld [vmem:[%s6451_s4 + $0x740] ss:$8 sps:$4 sm:$0xff]   ;;  %v5627_v55 = vld [vmem:[%s6451_s4 + $0x634] ss:$8 sps:$4 sm:$0xff]  }
  0xf5   : > { %3807 = vmatpush1.bf16.msra.mxu0 %v5541_v56  ;;  %v5630_v56 = vld [vmem:[%s6451_s4 + $0x734] ss:$8 sps:$4 sm:$0xff]  }
  0xf6   : > { %3848 = vmatpush1.bf16.msra.mxu1 %v5544_v57  ;;  %3808 = vmatprep.subr.bf16.mxu0 %v5549_v58  ;;  %v5625_v57 = vld [vmem:[%s6451_s4 + $0x630] ss:$8 sps:$4 sm:$0xff]  }
  0xf7   : > { %3849 = vmatprep.subr.bf16.mxu1 %v5552_v59  ;;  %v5628_v58 = vld [vmem:[%s6451_s4 + $0x730] ss:$8 sps:$4 sm:$0xff]   ;;  %v5633_v59 = vld [vmem:[%s6451_s4 + $0x624] ss:$8 sps:$4 sm:$0xff]  }
  0xf9   : > { %3809 = vmatpush1.bf16.msra.mxu0 %v5547_v60  ;;  %v5636_v60 = vld [vmem:[%s6451_s4 + $0x724] ss:$8 sps:$4 sm:$0xff]  }
  0xfa   : > { %3850 = vmatpush1.bf16.msra.mxu1 %v5550_v61  ;;  %3810 = vmatprep.subr.bf16.mxu0 %v5555_v62  ;;  %v5631_v61 = vld [vmem:[%s6451_s4 + $0x620] ss:$8 sps:$4 sm:$0xff]  }
  0xfb   : > { %3851 = vmatprep.subr.bf16.mxu1 %v5558_v63  ;;  %v5634_v62 = vld [vmem:[%s6451_s4 + $0x720] ss:$8 sps:$4 sm:$0xff]   ;;  %v5639_v63 = vld [vmem:[%s6451_s4 + $0x614] ss:$8 sps:$4 sm:$0xff]  }
  0xfd   : > { %3811 = vmatpush2.bf16.msra.mxu0 %v5553_v0  ;;  %v5642_v0 = vld [vmem:[%s6451_s4 + $0x714] ss:$8 sps:$4 sm:$0xff]  }
  0xfe   : > { %3852 = vmatpush2.bf16.msra.mxu1 %v5556_v1  ;;  %3812 = vmatprep.subr.bf16.mxu0 %v5561_v2  ;;  %v5637_v1 = vld [vmem:[%s6451_s4 + $0x610] ss:$8 sps:$4 sm:$0xff]  }
  0xff   : > { %3853 = vmatprep.subr.bf16.mxu1 %v5564_v3  ;;  %v5640_v2 = vld [vmem:[%s6451_s4 + $0x710] ss:$8 sps:$4 sm:$0xff]   ;;  %v5645_v3 = vld [vmem:[%s6451_s4 + $0x604] ss:$8 sps:$4 sm:$0xff]  }
 0x101   : > { %3813 = vmatpush2.bf16.msra.mxu0 %v5559_v4  ;;  %v5648_v4 = vld [vmem:[%s6451_s4 + $0x704] ss:$8 sps:$4 sm:$0xff]  }
 0x102   : > { %3854 = vmatpush2.bf16.msra.mxu1 %v5562_v5  ;;  %3814 = vmatprep.subr.bf16.mxu0 %v5567_v6  ;;  %v5643_v5 = vld [vmem:[%s6451_s4 + $0x600] ss:$8 sps:$4 sm:$0xff]  }
 0x103   : > { %3855 = vmatprep.subr.bf16.mxu1 %v5570_v8  ;;  %v5646_v6 = vld [vmem:[%s6451_s4 + $0x700] ss:$8 sps:$4 sm:$0xff]   ;;  %v5651_v8 = vld [vmem:[%s6451_s4 + $0x6f4] ss:$8 sps:$4 sm:$0xff]  }
 0x105   : > { %3815 = vmatpush2.bf16.msra.mxu0 %v5565_v9  ;;  %v5654_v9 = vld [vmem:[%s6451_s4 + $0x7f4] ss:$8 sps:$4 sm:$0xff]  }
 0x106   : > { %3856 = vmatpush2.bf16.msra.mxu1 %v5568_v10  ;;  %3816 = vmatprep.subr.bf16.mxu0 %v5573_v11  ;;  %v5649_v10 = vld [vmem:[%s6451_s4 + $0x6f0] ss:$8 sps:$4 sm:$0xff]  }
 0x107   : > { %3857 = vmatprep.subr.bf16.mxu1 %v5576_v12  ;;  %v5652_v11 = vld [vmem:[%s6451_s4 + $0x7f0] ss:$8 sps:$4 sm:$0xff]   ;;  %v5657_v12 = vld [vmem:[%s6451_s4 + $0x6e4] ss:$8 sps:$4 sm:$0xff]  }
 0x109   : > { %3817 = vmatpush2.bf16.msra.mxu0 %v5571_v13  ;;  %v5660_v13 = vld [vmem:[%s6451_s4 + $0x7e4] ss:$8 sps:$4 sm:$0xff]  }
 0x10a   : > { %3858 = vmatpush2.bf16.msra.mxu1 %v5574_v14  ;;  %3818 = vmatprep.subr.bf16.mxu0 %v5579_v15  ;;  %v5655_v14 = vld [vmem:[%s6451_s4 + $0x6e0] ss:$8 sps:$4 sm:$0xff]  }
 0x10b   : > { %3859 = vmatprep.subr.bf16.mxu1 %v5582_v16  ;;  %v5658_v15 = vld [vmem:[%s6451_s4 + $0x7e0] ss:$8 sps:$4 sm:$0xff]   ;;  %v5663_v16 = vld [vmem:[%s6451_s4 + $0x6d4] ss:$8 sps:$4 sm:$0xff]  }
 0x10d   : > { %3819 = vmatpush2.bf16.msra.mxu0 %v5577_v17  ;;  %v5666_v17 = vld [vmem:[%s6451_s4 + $0x7d4] ss:$8 sps:$4 sm:$0xff]  }
 0x10e   : > { %3860 = vmatpush2.bf16.msra.mxu1 %v5580_v18  ;;  %3820 = vmatprep.subr.bf16.mxu0 %v5585_v19  ;;  %v5661_v18 = vld [vmem:[%s6451_s4 + $0x6d0] ss:$8 sps:$4 sm:$0xff]  }
 0x10f   : > { %3861 = vmatprep.subr.bf16.mxu1 %v5588_v20  ;;  %v5664_v19 = vld [vmem:[%s6451_s4 + $0x7d0] ss:$8 sps:$4 sm:$0xff]   ;;  %v5669_v20 = vld [vmem:[%s6451_s4 + $0x6c4] ss:$8 sps:$4 sm:$0xff]  }
 0x111   : > { %3821 = vmatpush2.bf16.msra.mxu0 %v5583_v22  ;;  %v5667_v22 = vld [vmem:[%s6451_s4 + $0x6c0] ss:$8 sps:$4 sm:$0xff]  }
 0x112   : > { %3862 = vmatpush2.bf16.msra.mxu1 %v5586_v23  ;;  %3822 = vmatprep.subr.bf16.mxu0 %v5591_v24  ;;  %v5670_v23 = vld [vmem:[%s6451_s4 + $0x7c0] ss:$8 sps:$4 sm:$0xff]   ;;  %v5675_v24 = vld [vmem:[%s6451_s4 + $0x6b4] ss:$8 sps:$4 sm:$0xff]  }
 0x113   : > { %3863 = vmatprep.subr.bf16.mxu1 %v5594_v25  ;;  %v5678_v25 = vld [vmem:[%s6451_s4 + $0x7b4] ss:$8 sps:$4 sm:$0xff]  }
 0x115   : > { %3823 = vmatpush2.bf16.msra.mxu0 %v5589_v27  ;;  %v5673_v27 = vld [vmem:[%s6451_s4 + $0x6b0] ss:$8 sps:$4 sm:$0xff]  }
 0x116   : > { %3864 = vmatpush2.bf16.msra.mxu1 %v5592_v28  ;;  %3824 = vmatprep.subr.bf16.mxu0 %v5597_v7  ;;  %v5676_v28 = vld [vmem:[%s6451_s4 + $0x7b0] ss:$8 sps:$4 sm:$0xff]   ;;  %v5681_v7 = vld [vmem:[%s6451_s4 + $0x6a4] ss:$8 sps:$4 sm:$0xff]  }
 0x117   : > { %3865 = vmatprep.subr.bf16.mxu1 %v5600_v29  ;;  %v5684_v29 = vld [vmem:[%s6451_s4 + $0x7a4] ss:$8 sps:$4 sm:$0xff]  }
 0x119   : > { %3825 = vmatpush2.bf16.msra.mxu0 %v5595_v33  ;;  %v5682_v33 = vld [vmem:[%s6451_s4 + $0x7a0] ss:$8 sps:$4 sm:$0xff]  }
 0x11a   : > { %3866 = vmatpush2.bf16.msra.mxu1 %v5598_v34  ;;  %3876 = vmatprep.subr.bf16.mxu0 %v5603_v35  ;;  %v5687_v34 = vld [vmem:[%s6451_s4 + $0x694] ss:$8 sps:$4 sm:$0xff]  }
 0x11b   : > { %3917 = vmatprep.subr.bf16.mxu1 %v5606_v36  ;;  %v5690_v35 = vld [vmem:[%s6451_s4 + $0x794] ss:$8 sps:$4 sm:$0xff]  }
 0x11c   : > { %3827 = vmatmul.mubr.bf16.vlgmr.msra.gmra.mxu0 %v914_v32  ;;  %v6770_v32 = vld [vmem:[%s6471_s28 + $0x10] sm:$0xff] }
 0x11d   : > { %3868 = vmatmul.mubr.bf16.vlgmr.msra.gmra.mxu1 %v936_v38  ;;  %3877 = vmatpush1.bf16.msra.mxu0 %v5601_v39  ;;  %v6777_v36 = vrot.slane %v6770_v32, %v6532_v50  ;;  %v5688_v38 = vld [vmem:[%s6451_s4 + $0x790] ss:$8 sps:$4 sm:$0xff]   ;;  %v5693_v39 = vld [vmem:[%s6451_s4 + $0x684] ss:$8 sps:$4 sm:$0xff]  }
 0x11e   : > { %3918 = vmatpush1.bf16.msra.mxu1 %v5604_v30  ;;  %3878 = vmatprep.subr.bf16.mxu0 %v5609_v40  ;;  %v5696_v30 = vld [vmem:[%s6451_s4 + $0x784] ss:$8 sps:$4 sm:$0xff]  }
 0x11f   : > { %3919 = vmatprep.subr.bf16.mxu1 %v5612_v41  ;;  %3908 = vmatprep.mubr.bf16.mxu0 %v935_v37  ;;  %v5685_v37 = vld [vmem:[%s6451_s4 + $0x690] ss:$8 sps:$4 sm:$0xff]   ;;  %v955_v40 = vcombine.high %v6777_v36, %v6777_v36  ;;  %v5691_v41 = vld [vmem:[%s6451_s4 + $0x680] ss:$8 sps:$4 sm:$0xff]  }
 0x120   : > { %3949 = vmatprep.mubr.bf16.mxu1 %v939_v42  ;;  %v921_v42 = vrot.slane %v6701_v26, %v6532_v50  ;;  %v5709_v26 = vld [vmem:[%s6451_s4 + $0x964] ss:$8 sps:$4 sm:$0xff]  }
 0x121   : > { %3879 = vmatpush1.bf16.msra.mxu0 %v5607_v43  ;;  %v5694_v43 = vld [vmem:[%s6451_s4 + $0x780] ss:$8 sps:$4 sm:$0xff]  }
 0x122   : > { %3920 = vmatpush1.bf16.msra.mxu1 %v5610_v45  ;;  %3880 = vmatprep.subr.bf16.mxu0 %v5615_v46  ;;  %v5700_v45 = vld [vmem:[%s6451_s4 + $0x874] ss:$8 sps:$4 sm:$0xff]  }
 0x123   : > { %3921 = vmatprep.subr.bf16.mxu1 %v5618_v47  ;;  %v5703_v46 = vld [vmem:[%s6451_s4 + $0x974] ss:$8 sps:$4 sm:$0xff]   ;;  %v977_v47 = vrot.slane %v955_v40, %v6532_v50  ;;  %v5761_v40 = vld [vmem:[%s6451_s4 + $0x9d0] ss:$8 sps:$4 sm:$0xff]  }
 0x125   : > { %3881 = vmatpush1.bf16.msra.mxu0 %v5613_v48  ;;  %v937_v48 = vcombine.high %v921_v42, %v921_v42 }
 0x126   : > { %3922 = vmatpush1.bf16.msra.mxu1 %v5616_v49  ;;  %3882 = vmatprep.subr.bf16.mxu0 %v5621_v51  ;;  %v5698_v49 = vld [vmem:[%s6451_s4 + $0x870] ss:$8 sps:$4 sm:$0xff]  }
 0x127   : > { %3923 = vmatprep.subr.bf16.mxu1 %v5624_v52  ;;  %v5701_v51 = vld [vmem:[%s6451_s4 + $0x970] ss:$8 sps:$4 sm:$0xff]   ;;  %v5706_v52 = vld [vmem:[%s6451_s4 + $0x864] ss:$8 sps:$4 sm:$0xff]  }
 0x129   : > { %3883 = vmatpush1.bf16.msra.mxu0 %v5619_v53  ;;  %v987_v53 = vcombine.high %v977_v47, %v977_v47 }
 0x12a   : > { %3924 = vmatpush1.bf16.msra.mxu1 %v5622_v54  ;;  %3884 = vmatprep.subr.bf16.mxu0 %v5627_v55 }
 0x12b   : > { %3925 = vmatprep.subr.bf16.mxu1 %v5630_v56  ;;  %v5704_v56 = vld [vmem:[%s6451_s4 + $0x860] ss:$8 sps:$4 sm:$0xff]  }
 0x12d   : > { %3885 = vmatpush1.bf16.msra.mxu0 %v5625_v57  ;;  %v5707_v57 = vld [vmem:[%s6451_s4 + $0x960] ss:$8 sps:$4 sm:$0xff]  }
 0x12e   : > { %3926 = vmatpush1.bf16.msra.mxu1 %v5628_v58  ;;  %3886 = vmatprep.subr.bf16.mxu0 %v5633_v59 }
 0x12f   : > { %3927 = vmatprep.subr.bf16.mxu1 %v5636_v60 }
 0x131   : > { %3887 = vmatpush1.bf16.msra.mxu0 %v5631_v61  ;;  %v5712_v61 = vld [vmem:[%s6451_s4 + $0x854] ss:$8 sps:$4 sm:$0xff]  }
 0x132   : > { %3928 = vmatpush1.bf16.msra.mxu1 %v5634_v62  ;;  %3888 = vmatprep.subr.bf16.mxu0 %v5639_v63  ;;  %v5715_v62 = vld [vmem:[%s6451_s4 + $0x954] ss:$8 sps:$4 sm:$0xff]  }
 0x133   : > { %3929 = vmatprep.subr.bf16.mxu1 %v5642_v0  ;;  %v5710_v0 = vld [vmem:[%s6451_s4 + $0x850] ss:$8 sps:$4 sm:$0xff]  }
 0x135   : > { %3889 = vmatpush1.bf16.msra.mxu0 %v5637_v1  ;;  %v5713_v1 = vld [vmem:[%s6451_s4 + $0x950] ss:$8 sps:$4 sm:$0xff]  }
 0x136   : > { %3930 = vmatpush1.bf16.msra.mxu1 %v5640_v2  ;;  %3890 = vmatprep.subr.bf16.mxu0 %v5645_v3 }
 0x137   : > { %3931 = vmatprep.subr.bf16.mxu1 %v5648_v4 }
 0x139   : > { %3891 = vmatpush1.bf16.msra.mxu0 %v5643_v5 }
 0x13a   : > { %3932 = vmatpush1.bf16.msra.mxu1 %v5646_v6  ;;  %3892 = vmatprep.subr.bf16.mxu0 %v5651_v8  ;;  %v5718_v6 = vld [vmem:[%s6451_s4 + $0x844] ss:$8 sps:$4 sm:$0xff]  }
 0x13b   : > { %3933 = vmatprep.subr.bf16.mxu1 %v5654_v9  ;;  %v5721_v8 = vld [vmem:[%s6451_s4 + $0x944] ss:$8 sps:$4 sm:$0xff]   ;;  %v5716_v9 = vld [vmem:[%s6451_s4 + $0x840] ss:$8 sps:$4 sm:$0xff]  }
 0x13d   : > { %3893 = vmatpush2.bf16.msra.mxu0 %v5649_v10  ;;  %v5719_v10 = vld [vmem:[%s6451_s4 + $0x940] ss:$8 sps:$4 sm:$0xff]  }
 0x13e   : > { %3934 = vmatpush2.bf16.msra.mxu1 %v5652_v11  ;;  %3894 = vmatprep.subr.bf16.mxu0 %v5657_v12  ;;  %v5724_v11 = vld [vmem:[%s6451_s4 + $0x834] ss:$8 sps:$4 sm:$0xff]  }
 0x13f   : > { %3935 = vmatprep.subr.bf16.mxu1 %v5660_v13  ;;  %v5727_v12 = vld [vmem:[%s6451_s4 + $0x934] ss:$8 sps:$4 sm:$0xff]   ;;  %v5722_v13 = vld [vmem:[%s6451_s4 + $0x830] ss:$8 sps:$4 sm:$0xff]  }
 0x141   : > { %3895 = vmatpush2.bf16.msra.mxu0 %v5655_v14  ;;  %v5725_v14 = vld [vmem:[%s6451_s4 + $0x930] ss:$8 sps:$4 sm:$0xff]  }
 0x142   : > { %3936 = vmatpush2.bf16.msra.mxu1 %v5658_v15  ;;  %3896 = vmatprep.subr.bf16.mxu0 %v5663_v16  ;;  %v5730_v15 = vld [vmem:[%s6451_s4 + $0x824] ss:$8 sps:$4 sm:$0xff]  }
 0x143   : > { %3937 = vmatprep.subr.bf16.mxu1 %v5666_v17  ;;  %v5733_v16 = vld [vmem:[%s6451_s4 + $0x924] ss:$8 sps:$4 sm:$0xff]   ;;  %v5728_v17 = vld [vmem:[%s6451_s4 + $0x820] ss:$8 sps:$4 sm:$0xff]  }
 0x145   : > { %3897 = vmatpush2.bf16.msra.mxu0 %v5661_v18  ;;  %v5731_v18 = vld [vmem:[%s6451_s4 + $0x920] ss:$8 sps:$4 sm:$0xff]  }
 0x146   : > { %3938 = vmatpush2.bf16.msra.mxu1 %v5664_v19  ;;  %3898 = vmatprep.subr.bf16.mxu0 %v5669_v20  ;;  %v5736_v19 = vld [vmem:[%s6451_s4 + $0x814] ss:$8 sps:$4 sm:$0xff]  }
 0x147   : > { %3939 = vmatprep.subr.bf16.mxu1 %v5672_v21  ;;  %v5739_v20 = vld [vmem:[%s6451_s4 + $0x914] ss:$8 sps:$4 sm:$0xff]   ;;  %v5734_v21 = vld [vmem:[%s6451_s4 + $0x810] ss:$8 sps:$4 sm:$0xff]  }
 0x149   : > { %3899 = vmatpush2.bf16.msra.mxu0 %v5667_v22  ;;  %v5737_v22 = vld [vmem:[%s6451_s4 + $0x910] ss:$8 sps:$4 sm:$0xff]  }
 0x14a   : > { %3940 = vmatpush2.bf16.msra.mxu1 %v5670_v23  ;;  %3900 = vmatprep.subr.bf16.mxu0 %v5675_v24  ;;  %v5742_v23 = vld [vmem:[%s6451_s4 + $0x804] ss:$8 sps:$4 sm:$0xff]  }
 0x14b   : > { %3941 = vmatprep.subr.bf16.mxu1 %v5678_v25  ;;  %v5745_v24 = vld [vmem:[%s6451_s4 + $0x904] ss:$8 sps:$4 sm:$0xff]   ;;  %v5740_v25 = vld [vmem:[%s6451_s4 + $0x800] ss:$8 sps:$4 sm:$0xff]  }
 0x14d   : > { %3901 = vmatpush2.bf16.msra.mxu0 %v5673_v27  ;;  %v5743_v27 = vld [vmem:[%s6451_s4 + $0x900] ss:$8 sps:$4 sm:$0xff]  }
 0x14e   : > { %3942 = vmatpush2.bf16.msra.mxu1 %v5676_v28  ;;  %3902 = vmatprep.subr.bf16.mxu0 %v5681_v7  ;;  %v5748_v28 = vld [vmem:[%s6451_s4 + $0x8f4] ss:$8 sps:$4 sm:$0xff]  }
 0x14f   : > { %3943 = vmatprep.subr.bf16.mxu1 %v5684_v29  ;;  %v5751_v7 = vld [vmem:[%s6451_s4 + $0x9f4] ss:$8 sps:$4 sm:$0xff]   ;;  %v5746_v29 = vld [vmem:[%s6451_s4 + $0x8f0] ss:$8 sps:$4 sm:$0xff]  }
 0x151   : > { %3903 = vmatpush2.bf16.msra.mxu0 %v5679_v31  ;;  %v5749_v31 = vld [vmem:[%s6451_s4 + $0x9f0] ss:$8 sps:$4 sm:$0xff]  }
 0x152   : > { %3944 = vmatpush2.bf16.msra.mxu1 %v5682_v33  ;;  %3904 = vmatprep.subr.bf16.mxu0 %v5687_v34  ;;  %v5754_v33 = vld [vmem:[%s6451_s4 + $0x8e4] ss:$8 sps:$4 sm:$0xff]  }
 0x153   : > { %3945 = vmatprep.subr.bf16.mxu1 %v5690_v35  ;;  %v5757_v34 = vld [vmem:[%s6451_s4 + $0x9e4] ss:$8 sps:$4 sm:$0xff]   ;;  %v5752_v35 = vld [vmem:[%s6451_s4 + $0x8e0] ss:$8 sps:$4 sm:$0xff]  }
 0x155   : > { %3905 = vmatpush2.bf16.msra.mxu0 %v5685_v37  ;;  %v5755_v37 = vld [vmem:[%s6451_s4 + $0x9e0] ss:$8 sps:$4 sm:$0xff]  }
 0x156   : > { %3946 = vmatpush2.bf16.msra.mxu1 %v5688_v38  ;;  %3906 = vmatprep.subr.bf16.mxu0 %v5693_v39  ;;  %v5760_v38 = vld [vmem:[%s6451_s4 + $0x8d4] ss:$8 sps:$4 sm:$0xff]  }
 0x157   : > { %3947 = vmatprep.subr.bf16.mxu1 %v5696_v30  ;;  %v5763_v39 = vld [vmem:[%s6451_s4 + $0x9d4] ss:$8 sps:$4 sm:$0xff]   ;;  %v5758_v30 = vld [vmem:[%s6451_s4 + $0x8d0] ss:$8 sps:$4 sm:$0xff]  }
 0x159   : > { %3907 = vmatpush2.bf16.msra.mxu0 %v5691_v41  ;;  %v5766_v41 = vld [vmem:[%s6451_s4 + $0x8c4] ss:$8 sps:$4 sm:$0xff]  }
 0x15a   : > { %3948 = vmatpush2.bf16.msra.mxu1 %v5694_v43  ;;  %3958 = vmatprep.subr.bf16.mxu0 %v5700_v45  ;;  %v5764_v43 = vld [vmem:[%s6451_s4 + $0x8c0] ss:$8 sps:$4 sm:$0xff]  }
 0x15b   : > { %3999 = vmatprep.subr.bf16.mxu1 %v5703_v46  ;;  %v5767_v45 = vld [vmem:[%s6451_s4 + $0x9c0] ss:$8 sps:$4 sm:$0xff]   ;;  %v5772_v46 = vld [vmem:[%s6451_s4 + $0x8b4] ss:$8 sps:$4 sm:$0xff]  }
 0x15c   : > { %v3664_v54 = vpop.f32.mrf.mxu0  ;;  %3909 = vmatmul.mubr.bf16.vlgmr.msra.gmra.mxu0 %v921_v42  ;;  %v5769_v42 = vld [vmem:[%s6451_s4 + $0x9c4] ss:$8 sps:$4 sm:$0xff]  }
 0x15d   : > { %v3705_v55 = vpop.f32.mrf.mxu1  ;;  %3950 = vmatmul.mubr.bf16.vlgmr.msra.gmra.mxu1 %v937_v48  ;;  %3959 = vmatpush1.bf16.msra.mxu0 %v5698_v49  ;;  %v5770_v48 = vld [vmem:[%s6451_s4 + $0x8b0] ss:$8 sps:$4 sm:$0xff]  }
 0x15e   : > { %v6798_v58 = vadd.f32 %v3705_v55, %v3664_v54  ;;  %4000 = vmatpush1.bf16.msra.mxu1 %v5701_v51  ;;  %v3666_v59 = vpop.f32.mrf.mxu0  ;;  %3960 = vmatprep.subr.bf16.mxu0 %v5706_v52  ;;  %v5773_v49 = vld [vmem:[%s6451_s4 + $0x9b0] ss:$8 sps:$4 sm:$0xff]   ;;  %v5778_v51 = vld [vmem:[%s6451_s4 + $0x8a4] ss:$8 sps:$4 sm:$0xff]   ;;  %v5779_v54 = vld [vmem:[%s6451_s4 + $0x9a0] ss:$8 sps:$4 sm:$0xff]  }
 0x15f   : > { %v3707_v60 = vpop.f32.mrf.mxu1  ;;  %4001 = vmatprep.subr.bf16.mxu1 %v5709_v26  ;;  %3990 = vmatprep.mubr.bf16.mxu0 %v977_v47  ;;  %v5775_v47 = vld [vmem:[%s6451_s4 + $0x9b4] ss:$8 sps:$4 sm:$0xff]   ;;  %v5781_v52 = vld [vmem:[%s6451_s4 + $0x9a4] ss:$8 sps:$4 sm:$0xff]   ;;  %v940_v26 = vcombine.high %v6770_v32, %v6770_v32  ;;  %v5782_v32 = vld [vmem:[%s6451_s4 + $0x890] ss:$8 sps:$4 sm:$0xff]  }
 0x160   : > { %v6802_v63 = vadd.f32 %v3707_v60, %v3666_v59  ;;  %4031 = vmatprep.mubr.bf16.mxu1 %v987_v53  ;;  %v3668_v2 = vpop.f32.mrf.mxu0  ;;  %v5776_v53 = vld [vmem:[%s6451_s4 + $0x8a0] ss:$8 sps:$4 sm:$0xff]   ;;  %v5784_v55 = vld [vmem:[%s6451_s4 + $0x894] ss:$8 sps:$4 sm:$0xff]   ;;  %v5785_v59 = vld [vmem:[%s6451_s4 + $0x990] ss:$8 sps:$4 sm:$0xff]  }
 0x161   : > { %v3709_v3 = vpop.f32.mrf.mxu1  ;;  %3961 = vmatpush1.bf16.msra.mxu0 %v5704_v56  ;;  %v5787_v56 = vld [vmem:[%s6451_s4 + $0x994] ss:$8 sps:$4 sm:$0xff]   ;;  %v5790_v60 = vld [vmem:[%s6451_s4 + $0x884] ss:$8 sps:$4 sm:$0xff]   ;;  %v5791_v2 = vld [vmem:[%s6451_s4 + $0x980] ss:$8 sps:$4 sm:$0xff]  }
 0x162   : > { %4002 = vmatpush1.bf16.msra.mxu1 %v5707_v57  ;;  %v3669_v4 = vpop.f32.mrf.mxu0  ;;  %3962 = vmatprep.subr.bf16.mxu0 %v5712_v61  ;;  %v6855_v57 = vrot.slane %v940_v26, %v6532_v50  ;;  %v5793_v61 = vld [vmem:[%s6451_s4 + $0x984] ss:$8 sps:$4 sm:$0xff]   ;;  %v5796_v3 = vld [vmem:[%s6451_s4 + $0xa74] ss:$8 sps:$4 sm:$0xff]  }
 0x163   : > { %v3710_v5 = vpop.f32.mrf.mxu1  ;;  %4003 = vmatprep.subr.bf16.mxu1 %v5715_v62  ;;  %v5799_v4 = vld [vmem:[%s6451_s4 + $0xb74] ss:$8 sps:$4 sm:$0xff]  }
 0x164   : > { %v956_v62 = vcombine.high %v6855_v57, %v6855_v57  ;;  %v5794_v5 = vld [vmem:[%s6451_s4 + $0xa70] ss:$8 sps:$4 sm:$0xff]   ;;  %v5847_v26 = vld [vmem:[%s6451_s4 + $0xbf4] ss:$8 sps:$4 sm:$0xff]  }
 0x165   : > { %3963 = vmatpush1.bf16.msra.mxu0 %v5710_v0  ;;  %v963_v0 = vrot.slane %v6777_v36, %v6532_v50  ;;  %v5802_v36 = vld [vmem:[%s6451_s4 + $0xa64] ss:$8 sps:$4 sm:$0xff]  }
 0x166   : > { %4004 = vmatpush1.bf16.msra.mxu1 %v5713_v1  ;;  %3964 = vmatprep.subr.bf16.mxu0 %v5718_v6  ;;  %v5788_v1 = vld [vmem:[%s6451_s4 + $0x880] ss:$8 sps:$4 sm:$0xff]   ;;  %v5797_v6 = vld [vmem:[%s6451_s4 + $0xb70] ss:$8 sps:$4 sm:$0xff]  }
 0x167   : > { %4005 = vmatprep.subr.bf16.mxu1 %v5721_v8  ;;  %v984_v8 = vrot.slane %v956_v62, %v6532_v50  ;;  %v5854_v62 = vld [vmem:[%s6451_s4 + $0xad0] ss:$8 sps:$4 sm:$0xff]  }
 0x169   : > { %3965 = vmatpush1.bf16.msra.mxu0 %v5716_v9  ;;  %v985_v9 = vcombine.high %v963_v0, %v963_v0 }
 0x16a   : > { %4006 = vmatpush1.bf16.msra.mxu1 %v5719_v10  ;;  %3966 = vmatprep.subr.bf16.mxu0 %v5724_v11  ;;  %v5805_v10 = vld [vmem:[%s6451_s4 + $0xb64] ss:$8 sps:$4 sm:$0xff]   ;;  %v988_v11 = vcombine.high %v984_v8, %v984_v8 }
 0x16b   : > { %4007 = vmatprep.subr.bf16.mxu1 %v5727_v12 }
 0x16d   : > { %3967 = vmatpush1.bf16.msra.mxu0 %v5722_v13 }
 0x16e   : > { %4008 = vmatpush1.bf16.msra.mxu1 %v5725_v14  ;;  %3968 = vmatprep.subr.bf16.mxu0 %v5730_v15  ;;  %v5800_v15 = vld [vmem:[%s6451_s4 + $0xa60] ss:$8 sps:$4 sm:$0xff]  }
 0x16f   : > { %4009 = vmatprep.subr.bf16.mxu1 %v5733_v16  ;;  %v5803_v16 = vld [vmem:[%s6451_s4 + $0xb60] ss:$8 sps:$4 sm:$0xff]  }
 0x171   : > { %3969 = vmatpush1.bf16.msra.mxu0 %v5728_v17 }
 0x172   : > { %4010 = vmatpush1.bf16.msra.mxu1 %v5731_v18  ;;  %3970 = vmatprep.subr.bf16.mxu0 %v5736_v19  ;;  %v5808_v19 = vld [vmem:[%s6451_s4 + $0xa54] ss:$8 sps:$4 sm:$0xff]  }
 0x173   : > { %4011 = vmatprep.subr.bf16.mxu1 %v5739_v20  ;;  %v5811_v20 = vld [vmem:[%s6451_s4 + $0xb54] ss:$8 sps:$4 sm:$0xff]  }
 0x175   : > { %3971 = vmatpush1.bf16.msra.mxu0 %v5734_v21 }
 0x176   : > { %4012 = vmatpush1.bf16.msra.mxu1 %v5737_v22  ;;  %3972 = vmatprep.subr.bf16.mxu0 %v5742_v23 }
 0x177   : > { %4013 = vmatprep.subr.bf16.mxu1 %v5745_v24 }
 0x179   : > { %3973 = vmatpush1.bf16.msra.mxu0 %v5740_v25  ;;  %v5806_v25 = vld [vmem:[%s6451_s4 + $0xa50] ss:$8 sps:$4 sm:$0xff]  }
 0x17a   : > { %4014 = vmatpush1.bf16.msra.mxu1 %v5743_v27  ;;  %3974 = vmatprep.subr.bf16.mxu0 %v5748_v28  ;;  %v5809_v27 = vld [vmem:[%s6451_s4 + $0xb50] ss:$8 sps:$4 sm:$0xff]  }
 0x17b   : > { %4015 = vmatprep.subr.bf16.mxu1 %v5751_v7 }
 0x17d   : > { %3975 = vmatpush2.bf16.msra.mxu0 %v5746_v29  ;;  %v5817_v29 = vld [vmem:[%s6451_s4 + $0xb44] ss:$8 sps:$4 sm:$0xff]  }
 0x17e   : > { %4016 = vmatpush2.bf16.msra.mxu1 %v5749_v31  ;;  %3976 = vmatprep.subr.bf16.mxu0 %v5754_v33  ;;  %v5812_v31 = vld [vmem:[%s6451_s4 + $0xa40] ss:$8 sps:$4 sm:$0xff]  }
 0x17f   : > { %4017 = vmatprep.subr.bf16.mxu1 %v5757_v34  ;;  %v5815_v33 = vld [vmem:[%s6451_s4 + $0xb40] ss:$8 sps:$4 sm:$0xff]   ;;  %v5820_v34 = vld [vmem:[%s6451_s4 + $0xa34] ss:$8 sps:$4 sm:$0xff]  }
 0x181   : > { %3977 = vmatpush2.bf16.msra.mxu0 %v5752_v35  ;;  %v5823_v35 = vld [vmem:[%s6451_s4 + $0xb34] ss:$8 sps:$4 sm:$0xff]  }
 0x182   : > { %4018 = vmatpush2.bf16.msra.mxu1 %v5755_v37  ;;  %3978 = vmatprep.subr.bf16.mxu0 %v5760_v38  ;;  %v5818_v37 = vld [vmem:[%s6451_s4 + $0xa30] ss:$8 sps:$4 sm:$0xff]  }
 0x183   : > { %4019 = vmatprep.subr.bf16.mxu1 %v5763_v39  ;;  %v5821_v38 = vld [vmem:[%s6451_s4 + $0xb30] ss:$8 sps:$4 sm:$0xff]   ;;  %v5826_v39 = vld [vmem:[%s6451_s4 + $0xa24] ss:$8 sps:$4 sm:$0xff]  }
 0x185   : > { %3979 = vmatpush2.bf16.msra.mxu0 %v5758_v30  ;;  %v5829_v30 = vld [vmem:[%s6451_s4 + $0xb24] ss:$8 sps:$4 sm:$0xff]  }
 0x186   : > { %4020 = vmatpush2.bf16.msra.mxu1 %v5761_v40  ;;  %3980 = vmatprep.subr.bf16.mxu0 %v5766_v41  ;;  %v5824_v40 = vld [vmem:[%s6451_s4 + $0xa20] ss:$8 sps:$4 sm:$0xff]  }
 0x187   : > { %4021 = vmatprep.subr.bf16.mxu1 %v5769_v42  ;;  %v5827_v41 = vld [vmem:[%s6451_s4 + $0xb20] ss:$8 sps:$4 sm:$0xff]   ;;  %v5832_v42 = vld [vmem:[%s6451_s4 + $0xa14] ss:$8 sps:$4 sm:$0xff]  }
 0x189   : > { %3981 = vmatpush2.bf16.msra.mxu0 %v5764_v43  ;;  %v5835_v43 = vld [vmem:[%s6451_s4 + $0xb14] ss:$8 sps:$4 sm:$0xff]  }
 0x18a   : > { %4022 = vmatpush2.bf16.msra.mxu1 %v5767_v45  ;;  %3982 = vmatprep.subr.bf16.mxu0 %v5772_v46  ;;  %v5830_v45 = vld [vmem:[%s6451_s4 + $0xa10] ss:$8 sps:$4 sm:$0xff]  }
 0x18b   : > { %4023 = vmatprep.subr.bf16.mxu1 %v5775_v47  ;;  %v5833_v46 = vld [vmem:[%s6451_s4 + $0xb10] ss:$8 sps:$4 sm:$0xff]   ;;  %v5838_v47 = vld [vmem:[%s6451_s4 + $0xa04] ss:$8 sps:$4 sm:$0xff]  }
 0x18d   : > { %3983 = vmatpush2.bf16.msra.mxu0 %v5770_v48  ;;  %v5841_v48 = vld [vmem:[%s6451_s4 + $0xb04] ss:$8 sps:$4 sm:$0xff]  }
 0x18e   : > { %4024 = vmatpush2.bf16.msra.mxu1 %v5773_v49  ;;  %3984 = vmatprep.subr.bf16.mxu0 %v5778_v51  ;;  %v5836_v49 = vld [vmem:[%s6451_s4 + $0xa00] ss:$8 sps:$4 sm:$0xff]  }
 0x18f   : > { %4025 = vmatprep.subr.bf16.mxu1 %v5781_v52  ;;  %v5839_v51 = vld [vmem:[%s6451_s4 + $0xb00] ss:$8 sps:$4 sm:$0xff]   ;;  %v5844_v52 = vld [vmem:[%s6451_s4 + $0xaf4] ss:$8 sps:$4 sm:$0xff]  }
 0x191   : > { %3985 = vmatpush2.bf16.msra.mxu0 %v5776_v53  ;;  %v5842_v53 = vld [vmem:[%s6451_s4 + $0xaf0] ss:$8 sps:$4 sm:$0xff]  }
 0x192   : > { %4026 = vmatpush2.bf16.msra.mxu1 %v5779_v54  ;;  %3986 = vmatprep.subr.bf16.mxu0 %v5784_v55  ;;  %v5845_v54 = vld [vmem:[%s6451_s4 + $0xbf0] ss:$8 sps:$4 sm:$0xff]   ;;  %v5850_v55 = vld [vmem:[%s6451_s4 + $0xae4] ss:$8 sps:$4 sm:$0xff]  }
 0x193   : > { %4027 = vmatprep.subr.bf16.mxu1 %v5787_v56  ;;  %v5853_v56 = vld [vmem:[%s6451_s4 + $0xbe4] ss:$8 sps:$4 sm:$0xff]  }
 0x195   : > { %3987 = vmatpush2.bf16.msra.mxu0 %v5782_v32  ;;  %v5848_v32 = vld [vmem:[%s6451_s4 + $0xae0] ss:$8 sps:$4 sm:$0xff]  }
 0x196   : > { %4028 = vmatpush2.bf16.msra.mxu1 %v5785_v59  ;;  %3988 = vmatprep.subr.bf16.mxu0 %v5790_v60  ;;  %v5851_v59 = vld [vmem:[%s6451_s4 + $0xbe0] ss:$8 sps:$4 sm:$0xff]   ;;  %v5856_v60 = vld [vmem:[%s6451_s4 + $0xad4] ss:$8 sps:$4 sm:$0xff]  }
 0x197   : > { %4029 = vmatprep.subr.bf16.mxu1 %v5793_v61  ;;  %v5859_v61 = vld [vmem:[%s6451_s4 + $0xbd4] ss:$8 sps:$4 sm:$0xff]  }
 0x199   : > { %3989 = vmatpush2.bf16.msra.mxu0 %v5788_v1  ;;  %v5862_v1 = vld [vmem:[%s6451_s4 + $0xac4] ss:$8 sps:$4 sm:$0xff]  }
 0x19a   : > { %4030 = vmatpush2.bf16.msra.mxu1 %v5791_v2  ;;  %4040 = vmatprep.subr.bf16.mxu0 %v5796_v3  ;;  %v5865_v2 = vld [vmem:[%s6451_s4 + $0xbc4] ss:$8 sps:$4 sm:$0xff]   ;;  %v5860_v3 = vld [vmem:[%s6451_s4 + $0xac0] ss:$8 sps:$4 sm:$0xff]  }
 0x19b   : > { %4081 = vmatprep.subr.bf16.mxu1 %v5799_v4  ;;  %v5863_v4 = vld [vmem:[%s6451_s4 + $0xbc0] ss:$8 sps:$4 sm:$0xff]  }
 0x19c   : > { %v3746_v12 = vpop.f32.mrf.mxu0  ;;  %3991 = vmatmul.mubr.bf16.vlgmr.msra.gmra.mxu0 %v963_v0  ;;  %v5857_v0 = vld [vmem:[%s6451_s4 + $0xbd0] ss:$8 sps:$4 sm:$0xff]  }
 0x19d   : > { %v3787_v13 = vpop.f32.mrf.mxu1  ;;  %4032 = vmatmul.mubr.bf16.vlgmr.msra.gmra.mxu1 %v985_v9  ;;  %v3747_v14 = vadd.f32 %v3746_v12, %v6798_v58  ;;  %4041 = vmatpush1.bf16.msra.mxu0 %v5794_v5  ;;  %v5868_v5 = vld [vmem:[%s6451_s4 + $0xab4] ss:$8 sps:$4 sm:$0xff]   ;;  %v5869_v9 = vld [vmem:[%s6451_s4 + $0xbb0] ss:$8 sps:$4 sm:$0xff]   ;;  %v5872_v12 = vld [vmem:[%s6451_s4 + $0xaa0] ss:$8 sps:$4 sm:$0xff]  }
 0x19e   : > { %4082 = vmatpush1.bf16.msra.mxu1 %v5797_v6  ;;  %v3748_v17 = vpop.f32.mrf.mxu0  ;;  %4042 = vmatprep.subr.bf16.mxu0 %v5802_v36  ;;  %v5871_v6 = vld [vmem:[%s6451_s4 + $0xbb4] ss:$8 sps:$4 sm:$0xff]   ;;  %v5874_v36 = vld [vmem:[%s6451_s4 + $0xaa4] ss:$8 sps:$4 sm:$0xff]  }
 0x19f   : > { %v3789_v18 = vpop.f32.mrf.mxu1  ;;  %4083 = vmatprep.subr.bf16.mxu1 %v5805_v10  ;;  %v6879_v21 = vadd.f32 %v3787_v13, %v3747_v14  ;;  %v3749_v22 = vadd.f32 %v3748_v17, %v6802_v63  ;;  %4072 = vmatprep.mubr.bf16.mxu0 %v984_v8  ;;  %v5814_v63 = vld [vmem:[%s6451_s4 + $0xa44] ss:$8 sps:$4 sm:$0xff]   ;;  %v5866_v8 = vld [vmem:[%s6451_s4 + $0xab0] ss:$8 sps:$4 sm:$0xff]   ;;  %v5875_v13 = vld [vmem:[%s6451_s4 + $0xba0] ss:$8 sps:$4 sm:$0xff]  }
 0x1a0   : > { %4113 = vmatprep.mubr.bf16.mxu1 %v988_v11  ;;  %v3750_v58 = vpop.f32.mrf.mxu0  ;;  %v5877_v10 = vld [vmem:[%s6451_s4 + $0xba4] ss:$8 sps:$4 sm:$0xff]   ;;  %v6929_v11 = vld [vmem:[%s6471_s28 + $0x18] sm:$0xff] }
 0x1a1   : > { %v3791_v23 = vpop.f32.mrf.mxu1  ;;  %v6882_v24 = vadd.f32 %v3789_v18, %v3749_v22  ;;  %4043 = vmatpush1.bf16.msra.mxu0 %v5800_v15  ;;  %v5880_v14 = vld [vmem:[%s6451_s4 + $0xa94] ss:$8 sps:$4 sm:$0xff]   ;;  %v5878_v17 = vld [vmem:[%s6451_s4 + $0xa90] ss:$8 sps:$4 sm:$0xff]   ;;  %v970_v58 = vrot.slane %v6855_v57, %v6532_v50  ;;  %v5899_v57 = vld [vmem:[%s6451_s4 + $0xc64] ss:$8 sps:$4 sm:$0xff]  }
 0x1a2   : > { %4084 = vmatpush1.bf16.msra.mxu1 %v5803_v16  ;;  %v3751_v28 = vpop.f32.mrf.mxu0  ;;  %4044 = vmatprep.subr.bf16.mxu0 %v5808_v19  ;;  %v5883_v15 = vld [vmem:[%s6451_s4 + $0xb94] ss:$8 sps:$4 sm:$0xff]   ;;  %v6937_v16 = vrot.slane %v6929_v11, %v6532_v50  ;;  %v5881_v18 = vld [vmem:[%s6451_s4 + $0xb90] ss:$8 sps:$4 sm:$0xff]   ;;  %v5886_v19 = vld [vmem:[%s6451_s4 + $0xa84] ss:$8 sps:$4 sm:$0xff]  }
 0x1a3   : > { %v3792_v7 = vpop.f32.mrf.mxu1  ;;  %4085 = vmatprep.subr.bf16.mxu1 %v5811_v20  ;;  %v5889_v20 = vld [vmem:[%s6451_s4 + $0xb84] ss:$8 sps:$4 sm:$0xff]   ;;  %v5884_v23 = vld [vmem:[%s6451_s4 + $0xa80] ss:$8 sps:$4 sm:$0xff]   ;;  %v5896_v28 = vld [vmem:[%s6451_s4 + $0xd74] ss:$8 sps:$4 sm:$0xff]  }
 0x1a4   : > { %v1004_v22 = vcombine.high %v6937_v16, %v6937_v16 }
 0x1a5   : > { %4045 = vmatpush1.bf16.msra.mxu0 %v5806_v25  ;;  %v5887_v25 = vld [vmem:[%s6451_s4 + $0xb80] ss:$8 sps:$4 sm:$0xff]  }
 0x1a6   : > { %4086 = vmatpush1.bf16.msra.mxu1 %v5809_v27  ;;  %4046 = vmatprep.subr.bf16.mxu0 %v5814_v63  ;;  %v5893_v27 = vld [vmem:[%s6451_s4 + $0xc74] ss:$8 sps:$4 sm:$0xff]   ;;  %v1026_v7 = vrot.slane %v1004_v22, %v6532_v50  ;;  %v986_v63 = vcombine.high %v970_v58, %v970_v58 }
 0x1a7   : > { %4087 = vmatprep.subr.bf16.mxu1 %v5817_v29  ;;  %v5891_v29 = vld [vmem:[%s6451_s4 + $0xc70] ss:$8 sps:$4 sm:$0xff]   ;;  %v5956_v22 = vld [vmem:[%s6451_s4 + $0xdd4] ss:$8 sps:$4 sm:$0xff]  }
 0x1a9   : > { %4047 = vmatpush1.bf16.msra.mxu0 %v5812_v31  ;;  %v5894_v31 = vld [vmem:[%s6451_s4 + $0xd70] ss:$8 sps:$4 sm:$0xff]  }
 0x1aa   : > { %4088 = vmatpush1.bf16.msra.mxu1 %v5815_v33  ;;  %4048 = vmatprep.subr.bf16.mxu0 %v5820_v34  ;;  %v5902_v33 = vld [vmem:[%s6451_s4 + $0xd64] ss:$8 sps:$4 sm:$0xff]   ;;  %v1036_v34 = vcombine.high %v1026_v7, %v1026_v7 }
 0x1ab   : > { %4089 = vmatprep.subr.bf16.mxu1 %v5823_v35 }
 0x1ad   : > { %4049 = vmatpush1.bf16.msra.mxu0 %v5818_v37 }
 0x1ae   : > { %4090 = vmatpush1.bf16.msra.mxu1 %v5821_v38  ;;  %4050 = vmatprep.subr.bf16.mxu0 %v5826_v39  ;;  %v5897_v39 = vld [vmem:[%s6451_s4 + $0xc60] ss:$8 sps:$4 sm:$0xff]  }
 0x1af   : > { %4091 = vmatprep.subr.bf16.mxu1 %v5829_v30  ;;  %v5900_v30 = vld [vmem:[%s6451_s4 + $0xd60] ss:$8 sps:$4 sm:$0xff]  }
 0x1b1   : > { %4051 = vmatpush1.bf16.msra.mxu0 %v5824_v40 }
 0x1b2   : > { %4092 = vmatpush1.bf16.msra.mxu1 %v5827_v41  ;;  %4052 = vmatprep.subr.bf16.mxu0 %v5832_v42  ;;  %v5905_v42 = vld [vmem:[%s6451_s4 + $0xc54] ss:$8 sps:$4 sm:$0xff]  }
 0x1b3   : > { %4093 = vmatprep.subr.bf16.mxu1 %v5835_v43  ;;  %v5908_v43 = vld [vmem:[%s6451_s4 + $0xd54] ss:$8 sps:$4 sm:$0xff]  }
 0x1b5   : > { %4053 = vmatpush1.bf16.msra.mxu0 %v5830_v45 }
 0x1b6   : > { %4094 = vmatpush1.bf16.msra.mxu1 %v5833_v46  ;;  %4054 = vmatprep.subr.bf16.mxu0 %v5838_v47 }
 0x1b7   : > { %4095 = vmatprep.subr.bf16.mxu1 %v5841_v48 }
 0x1b9   : > { %4055 = vmatpush1.bf16.msra.mxu0 %v5836_v49  ;;  %v5903_v49 = vld [vmem:[%s6451_s4 + $0xc50] ss:$8 sps:$4 sm:$0xff]  }
 0x1ba   : > { %4096 = vmatpush1.bf16.msra.mxu1 %v5839_v51  ;;  %4056 = vmatprep.subr.bf16.mxu0 %v5844_v52  ;;  %v5906_v51 = vld [vmem:[%s6451_s4 + $0xd50] ss:$8 sps:$4 sm:$0xff]  }
 0x1bb   : > { %4097 = vmatprep.subr.bf16.mxu1 %v5847_v26 }
 0x1bd   : > { %4057 = vmatpush2.bf16.msra.mxu0 %v5842_v53  ;;  %v5914_v53 = vld [vmem:[%s6451_s4 + $0xd44] ss:$8 sps:$4 sm:$0xff]  }
 0x1be   : > { %4098 = vmatpush2.bf16.msra.mxu1 %v5845_v54  ;;  %4058 = vmatprep.subr.bf16.mxu0 %v5850_v55  ;;  %v5909_v54 = vld [vmem:[%s6451_s4 + $0xc40] ss:$8 sps:$4 sm:$0xff]  }
 0x1bf   : > { %4099 = vmatprep.subr.bf16.mxu1 %v5853_v56  ;;  %v5912_v55 = vld [vmem:[%s6451_s4 + $0xd40] ss:$8 sps:$4 sm:$0xff]   ;;  %v5917_v56 = vld [vmem:[%s6451_s4 + $0xc34] ss:$8 sps:$4 sm:$0xff]  }
 0x1c1   : > { %4059 = vmatpush2.bf16.msra.mxu0 %v5848_v32  ;;  %v5920_v32 = vld [vmem:[%s6451_s4 + $0xd34] ss:$8 sps:$4 sm:$0xff]  }
 0x1c2   : > { %4100 = vmatpush2.bf16.msra.mxu1 %v5851_v59  ;;  %4060 = vmatprep.subr.bf16.mxu0 %v5856_v60  ;;  %v5915_v59 = vld [vmem:[%s6451_s4 + $0xc30] ss:$8 sps:$4 sm:$0xff]  }
 0x1c3   : > { %4101 = vmatprep.subr.bf16.mxu1 %v5859_v61  ;;  %v5918_v60 = vld [vmem:[%s6451_s4 + $0xd30] ss:$8 sps:$4 sm:$0xff]   ;;  %v5923_v61 = vld [vmem:[%s6451_s4 + $0xc24] ss:$8 sps:$4 sm:$0xff]  }
 0x1c5   : > { %4061 = vmatpush2.bf16.msra.mxu0 %v5854_v62  ;;  %v5926_v62 = vld [vmem:[%s6451_s4 + $0xd24] ss:$8 sps:$4 sm:$0xff]  }
 0x1c6   : > { %4102 = vmatpush2.bf16.msra.mxu1 %v5857_v0  ;;  %4062 = vmatprep.subr.bf16.mxu0 %v5862_v1  ;;  %v5921_v0 = vld [vmem:[%s6451_s4 + $0xc20] ss:$8 sps:$4 sm:$0xff]  }
 0x1c7   : > { %4103 = vmatprep.subr.bf16.mxu1 %v5865_v2  ;;  %v5924_v1 = vld [vmem:[%s6451_s4 + $0xd20] ss:$8 sps:$4 sm:$0xff]   ;;  %v5929_v2 = vld [vmem:[%s6451_s4 + $0xc14] ss:$8 sps:$4 sm:$0xff]  }
 0x1c9   : > { %4063 = vmatpush2.bf16.msra.mxu0 %v5860_v3  ;;  %v5932_v3 = vld [vmem:[%s6451_s4 + $0xd14] ss:$8 sps:$4 sm:$0xff]  }
 0x1ca   : > { %4104 = vmatpush2.bf16.msra.mxu1 %v5863_v4  ;;  %4064 = vmatprep.subr.bf16.mxu0 %v5868_v5  ;;  %v5927_v4 = vld [vmem:[%s6451_s4 + $0xc10] ss:$8 sps:$4 sm:$0xff]  }
 0x1cb   : > { %4105 = vmatprep.subr.bf16.mxu1 %v5871_v6  ;;  %v5930_v5 = vld [vmem:[%s6451_s4 + $0xd10] ss:$8 sps:$4 sm:$0xff]   ;;  %v5935_v6 = vld [vmem:[%s6451_s4 + $0xc04] ss:$8 sps:$4 sm:$0xff]  }
 0x1cd   : > { %4065 = vmatpush2.bf16.msra.mxu0 %v5866_v8  ;;  %v5938_v8 = vld [vmem:[%s6451_s4 + $0xd04] ss:$8 sps:$4 sm:$0xff]  }
 0x1ce   : > { %4106 = vmatpush2.bf16.msra.mxu1 %v5869_v9  ;;  %4066 = vmatprep.subr.bf16.mxu0 %v5874_v36  ;;  %v5933_v9 = vld [vmem:[%s6451_s4 + $0xc00] ss:$8 sps:$4 sm:$0xff]  }
 0x1cf   : > { %4107 = vmatprep.subr.bf16.mxu1 %v5877_v10  ;;  %v5936_v36 = vld [vmem:[%s6451_s4 + $0xd00] ss:$8 sps:$4 sm:$0xff]   ;;  %v5941_v10 = vld [vmem:[%s6451_s4 + $0xcf4] ss:$8 sps:$4 sm:$0xff]  }
 0x1d1   : > { %4067 = vmatpush2.bf16.msra.mxu0 %v5872_v12  ;;  %v5944_v12 = vld [vmem:[%s6451_s4 + $0xdf4] ss:$8 sps:$4 sm:$0xff]  }
 0x1d2   : > { %4108 = vmatpush2.bf16.msra.mxu1 %v5875_v13  ;;  %4068 = vmatprep.subr.bf16.mxu0 %v5880_v14  ;;  %v5939_v13 = vld [vmem:[%s6451_s4 + $0xcf0] ss:$8 sps:$4 sm:$0xff]  }
 0x1d3   : > { %4109 = vmatprep.subr.bf16.mxu1 %v5883_v15  ;;  %v5942_v14 = vld [vmem:[%s6451_s4 + $0xdf0] ss:$8 sps:$4 sm:$0xff]   ;;  %v5947_v15 = vld [vmem:[%s6451_s4 + $0xce4] ss:$8 sps:$4 sm:$0xff]  }
 0x1d5   : > { %4069 = vmatpush2.bf16.msra.mxu0 %v5878_v17  ;;  %v5950_v17 = vld [vmem:[%s6451_s4 + $0xde4] ss:$8 sps:$4 sm:$0xff]  }
 0x1d6   : > { %4110 = vmatpush2.bf16.msra.mxu1 %v5881_v18  ;;  %4070 = vmatprep.subr.bf16.mxu0 %v5886_v19  ;;  %v5945_v18 = vld [vmem:[%s6451_s4 + $0xce0] ss:$8 sps:$4 sm:$0xff]  }
 0x1d7   : > { %4111 = vmatprep.subr.bf16.mxu1 %v5889_v20  ;;  %v5948_v19 = vld [vmem:[%s6451_s4 + $0xde0] ss:$8 sps:$4 sm:$0xff]   ;;  %v5953_v20 = vld [vmem:[%s6451_s4 + $0xcd4] ss:$8 sps:$4 sm:$0xff]  }
 0x1d9   : > { %4071 = vmatpush2.bf16.msra.mxu0 %v5884_v23  ;;  %v5954_v23 = vld [vmem:[%s6451_s4 + $0xdd0] ss:$8 sps:$4 sm:$0xff]  }
 0x1da   : > { %4112 = vmatpush2.bf16.msra.mxu1 %v5887_v25  ;;  %4122 = vmatprep.subr.bf16.mxu0 %v5893_v27  ;;  %v5959_v25 = vld [vmem:[%s6451_s4 + $0xcc4] ss:$8 sps:$4 sm:$0xff]  }
 0x1db   : > { %4163 = vmatprep.subr.bf16.mxu1 %v5896_v28  ;;  %v5962_v27 = vld [vmem:[%s6451_s4 + $0xdc4] ss:$8 sps:$4 sm:$0xff]   ;;  %v5957_v28 = vld [vmem:[%s6451_s4 + $0xcc0] ss:$8 sps:$4 sm:$0xff]  }
 0x1dc   : > { %v3828_v35 = vpop.f32.mrf.mxu0  ;;  %4073 = vmatmul.mubr.bf16.vlgmr.msra.gmra.mxu0 %v970_v58  ;;  %v5951_v58 = vld [vmem:[%s6451_s4 + $0xcd0] ss:$8 sps:$4 sm:$0xff]  }
 0x1dd   : > { %v3869_v37 = vpop.f32.mrf.mxu1  ;;  %4114 = vmatmul.mubr.bf16.vlgmr.msra.gmra.mxu1 %v986_v63  ;;  %v3829_v38 = vadd.f32 %v3828_v35, %v6879_v21  ;;  %4123 = vmatpush1.bf16.msra.mxu0 %v5891_v29  ;;  %v5965_v63 = vld [vmem:[%s6451_s4 + $0xcb4] ss:$8 sps:$4 sm:$0xff]   ;;  %v989_v35 = vcombine.high %v6929_v11, %v6929_v11  ;;  %v5975_v11 = vld [vmem:[%s6451_s4 + $0xc90] ss:$8 sps:$4 sm:$0xff]  }
 0x1de   : > { %4164 = vmatpush1.bf16.msra.mxu1 %v5894_v31  ;;  %v3830_v40 = vpop.f32.mrf.mxu0  ;;  %4124 = vmatprep.subr.bf16.mxu0 %v5899_v57  ;;  %v5968_v29 = vld [vmem:[%s6451_s4 + $0xdb4] ss:$8 sps:$4 sm:$0xff]   ;;  %v5963_v31 = vld [vmem:[%s6451_s4 + $0xcb0] ss:$8 sps:$4 sm:$0xff]  }
 0x1df   : > { %v3871_v41 = vpop.f32.mrf.mxu1  ;;  %4165 = vmatprep.subr.bf16.mxu1 %v5902_v33  ;;  %v6961_v45 = vadd.f32 %v3869_v37, %v3829_v38  ;;  %v3831_v46 = vadd.f32 %v3830_v40, %v6882_v24  ;;  %4154 = vmatprep.mubr.bf16.mxu0 %v1026_v7  ;;  %v5911_v24 = vld [vmem:[%s6451_s4 + $0xc44] ss:$8 sps:$4 sm:$0xff]   ;;  %v5960_v7 = vld [vmem:[%s6451_s4 + $0xdc0] ss:$8 sps:$4 sm:$0xff]   ;;  %v5966_v57 = vld [vmem:[%s6451_s4 + $0xdb0] ss:$8 sps:$4 sm:$0xff]   ;;  %v7017_v40 = vrot.slane %v989_v35, %v6532_v50 }
 0x1e0   : > { %4195 = vmatprep.mubr.bf16.mxu1 %v1036_v34  ;;  %v3832_v21 = vpop.f32.mrf.mxu0  ;;  %v5971_v33 = vld [vmem:[%s6451_s4 + $0xca4] ss:$8 sps:$4 sm:$0xff]   ;;  %v5969_v37 = vld [vmem:[%s6451_s4 + $0xca0] ss:$8 sps:$4 sm:$0xff]   ;;  %v6040_v35 = vld [vmem:[%s6451_s4 + $0xff4] ss:$8 sps:$4 sm:$0xff]  }
 0x1e1   : > { %v3873_v47 = vpop.f32.mrf.mxu1  ;;  %v6964_v48 = vadd.f32 %v3871_v41, %v3831_v46  ;;  %4125 = vmatpush1.bf16.msra.mxu0 %v5897_v39  ;;  %v5974_v34 = vld [vmem:[%s6451_s4 + $0xda4] ss:$8 sps:$4 sm:$0xff]   ;;  %v5972_v38 = vld [vmem:[%s6451_s4 + $0xda0] ss:$8 sps:$4 sm:$0xff]   ;;  %v5977_v39 = vld [vmem:[%s6451_s4 + $0xc94] ss:$8 sps:$4 sm:$0xff]   ;;  %v1005_v46 = vcombine.high %v7017_v40, %v7017_v40  ;;  %v1012_v21 = vrot.slane %v6937_v16, %v6532_v50 }
 0x1e2   : > { %4166 = vmatpush1.bf16.msra.mxu1 %v5900_v30  ;;  %v3833_v52 = vpop.f32.mrf.mxu0  ;;  %4126 = vmatprep.subr.bf16.mxu0 %v5905_v42  ;;  %v5980_v30 = vld [vmem:[%s6451_s4 + $0xd94] ss:$8 sps:$4 sm:$0xff]   ;;  %v5978_v41 = vld [vmem:[%s6451_s4 + $0xd90] ss:$8 sps:$4 sm:$0xff]   ;;  %v5983_v42 = vld [vmem:[%s6451_s4 + $0xc84] ss:$8 sps:$4 sm:$0xff]  }
 0x1e3   : > { %v3874_v26 = vpop.f32.mrf.mxu1  ;;  %4167 = vmatprep.subr.bf16.mxu1 %v5908_v43  ;;  %v5986_v43 = vld [vmem:[%s6451_s4 + $0xd84] ss:$8 sps:$4 sm:$0xff]   ;;  %v5981_v47 = vld [vmem:[%s6451_s4 + $0xc80] ss:$8 sps:$4 sm:$0xff]   ;;  %v5992_v52 = vld [vmem:[%s6451_s4 + $0xf74] ss:$8 sps:$4 sm:$0xff]  }
 0x1e4   : > { %v1033_v26 = vrot.slane %v1005_v46, %v6532_v50  ;;  %v5995_v16 = vld [vmem:[%s6451_s4 + $0xe64] ss:$8 sps:$4 sm:$0xff]   ;;  %v6047_v46 = vld [vmem:[%s6451_s4 + $0xed0] ss:$8 sps:$4 sm:$0xff]  }
 0x1e5   : > { %4127 = vmatpush1.bf16.msra.mxu0 %v5903_v49  ;;  %v5984_v49 = vld [vmem:[%s6451_s4 + $0xd80] ss:$8 sps:$4 sm:$0xff]  }
 0x1e6   : > { %4168 = vmatpush1.bf16.msra.mxu1 %v5906_v51  ;;  %4128 = vmatprep.subr.bf16.mxu0 %v5911_v24  ;;  %v5989_v51 = vld [vmem:[%s6451_s4 + $0xe74] ss:$8 sps:$4 sm:$0xff]   ;;  %v1034_v24 = vcombine.high %v1012_v21, %v1012_v21 }
 0x1e7   : > { %4169 = vmatprep.subr.bf16.mxu1 %v5914_v53  ;;  %v5987_v53 = vld [vmem:[%s6451_s4 + $0xe70] ss:$8 sps:$4 sm:$0xff]  }
 0x1e9   : > { %4129 = vmatpush1.bf16.msra.mxu0 %v5909_v54  ;;  %v5990_v54 = vld [vmem:[%s6451_s4 + $0xf70] ss:$8 sps:$4 sm:$0xff]  }
 0x1ea   : > { %4170 = vmatpush1.bf16.msra.mxu1 %v5912_v55  ;;  %4130 = vmatprep.subr.bf16.mxu0 %v5917_v56  ;;  %v5998_v55 = vld [vmem:[%s6451_s4 + $0xf64] ss:$8 sps:$4 sm:$0xff]   ;;  %v1037_v56 = vcombine.high %v1033_v26, %v1033_v26 }
 0x1eb   : > { %4171 = vmatprep.subr.bf16.mxu1 %v5920_v32 }
 0x1ed   : > { %4131 = vmatpush1.bf16.msra.mxu0 %v5915_v59 }
 0x1ee   : > { %4172 = vmatpush1.bf16.msra.mxu1 %v5918_v60  ;;  %4132 = vmatprep.subr.bf16.mxu0 %v5923_v61  ;;  %v5993_v61 = vld [vmem:[%s6451_s4 + $0xe60] ss:$8 sps:$4 sm:$0xff]  }
 0x1ef   : > { %4173 = vmatprep.subr.bf16.mxu1 %v5926_v62  ;;  %v5996_v62 = vld [vmem:[%s6451_s4 + $0xf60] ss:$8 sps:$4 sm:$0xff]  }
 0x1f1   : > { %4133 = vmatpush1.bf16.msra.mxu0 %v5921_v0 }
 0x1f2   : > { %4174 = vmatpush1.bf16.msra.mxu1 %v5924_v1  ;;  %4134 = vmatprep.subr.bf16.mxu0 %v5929_v2  ;;  %v6001_v2 = vld [vmem:[%s6451_s4 + $0xe54] ss:$8 sps:$4 sm:$0xff]  }
 0x1f3   : > { %4175 = vmatprep.subr.bf16.mxu1 %v5932_v3  ;;  %v6004_v3 = vld [vmem:[%s6451_s4 + $0xf54] ss:$8 sps:$4 sm:$0xff]  }
 0x1f5   : > { %4135 = vmatpush1.bf16.msra.mxu0 %v5927_v4 }
 0x1f6   : > { %4176 = vmatpush1.bf16.msra.mxu1 %v5930_v5  ;;  %4136 = vmatprep.subr.bf16.mxu0 %v5935_v6 }
 0x1f7   : > { %4177 = vmatprep.subr.bf16.mxu1 %v5938_v8 }
 0x1f9   : > { %4137 = vmatpush1.bf16.msra.mxu0 %v5933_v9  ;;  %v5999_v9 = vld [vmem:[%s6451_s4 + $0xe50] ss:$8 sps:$4 sm:$0xff]  }
 0x1fa   : > { %4178 = vmatpush1.bf16.msra.mxu1 %v5936_v36  ;;  %4138 = vmatprep.subr.bf16.mxu0 %v5941_v10  ;;  %v6002_v36 = vld [vmem:[%s6451_s4 + $0xf50] ss:$8 sps:$4 sm:$0xff]  }
 0x1fb   : > { %4179 = vmatprep.subr.bf16.mxu1 %v5944_v12 }
 0x1fd   : > { %4139 = vmatpush2.bf16.msra.mxu0 %v5939_v13  ;;  %v6010_v13 = vld [vmem:[%s6451_s4 + $0xf44] ss:$8 sps:$4 sm:$0xff]  }
 0x1fe   : > { %4180 = vmatpush2.bf16.msra.mxu1 %v5942_v14  ;;  %4140 = vmatprep.subr.bf16.mxu0 %v5947_v15  ;;  %v6005_v14 = vld [vmem:[%s6451_s4 + $0xe40] ss:$8 sps:$4 sm:$0xff]  }
 0x1ff   : > { %4181 = vmatprep.subr.bf16.mxu1 %v5950_v17  ;;  %v6008_v15 = vld [vmem:[%s6451_s4 + $0xf40] ss:$8 sps:$4 sm:$0xff]   ;;  %v6013_v17 = vld [vmem:[%s6451_s4 + $0xe34] ss:$8 sps:$4 sm:$0xff]  }
 0x201   : > { %4141 = vmatpush2.bf16.msra.mxu0 %v5945_v18  ;;  %v6016_v18 = vld [vmem:[%s6451_s4 + $0xf34] ss:$8 sps:$4 sm:$0xff]  }
 0x202   : > { %4182 = vmatpush2.bf16.msra.mxu1 %v5948_v19  ;;  %4142 = vmatprep.subr.bf16.mxu0 %v5953_v20  ;;  %v6011_v19 = vld [vmem:[%s6451_s4 + $0xe30] ss:$8 sps:$4 sm:$0xff]  }
 0x203   : > { %4183 = vmatprep.subr.bf16.mxu1 %v5956_v22  ;;  %v6014_v20 = vld [vmem:[%s6451_s4 + $0xf30] ss:$8 sps:$4 sm:$0xff]   ;;  %v6019_v22 = vld [vmem:[%s6451_s4 + $0xe24] ss:$8 sps:$4 sm:$0xff]  }
 0x205   : > { %4143 = vmatpush2.bf16.msra.mxu0 %v5951_v58  ;;  %v6022_v58 = vld [vmem:[%s6451_s4 + $0xf24] ss:$8 sps:$4 sm:$0xff]  }
 0x206   : > { %4184 = vmatpush2.bf16.msra.mxu1 %v5954_v23  ;;  %4144 = vmatprep.subr.bf16.mxu0 %v5959_v25  ;;  %v6017_v23 = vld [vmem:[%s6451_s4 + $0xe20] ss:$8 sps:$4 sm:$0xff]  }
 0x207   : > { %4185 = vmatprep.subr.bf16.mxu1 %v5962_v27  ;;  %v6020_v25 = vld [vmem:[%s6451_s4 + $0xf20] ss:$8 sps:$4 sm:$0xff]   ;;  %v6025_v27 = vld [vmem:[%s6451_s4 + $0xe14] ss:$8 sps:$4 sm:$0xff]  }
 0x209   : > { %4145 = vmatpush2.bf16.msra.mxu0 %v5957_v28  ;;  %v6028_v28 = vld [vmem:[%s6451_s4 + $0xf14] ss:$8 sps:$4 sm:$0xff]  }
 0x20a   : > { %4186 = vmatpush2.bf16.msra.mxu1 %v5960_v7  ;;  %4146 = vmatprep.subr.bf16.mxu0 %v5965_v63  ;;  %v6023_v7 = vld [vmem:[%s6451_s4 + $0xe10] ss:$8 sps:$4 sm:$0xff]  }
 0x20b   : > { %4187 = vmatprep.subr.bf16.mxu1 %v5968_v29  ;;  %v6026_v63 = vld [vmem:[%s6451_s4 + $0xf10] ss:$8 sps:$4 sm:$0xff]   ;;  %v6031_v29 = vld [vmem:[%s6451_s4 + $0xe04] ss:$8 sps:$4 sm:$0xff]  }
 0x20d   : > { %4147 = vmatpush2.bf16.msra.mxu0 %v5963_v31  ;;  %v6034_v31 = vld [vmem:[%s6451_s4 + $0xf04] ss:$8 sps:$4 sm:$0xff]  }
 0x20e   : > { %4188 = vmatpush2.bf16.msra.mxu1 %v5966_v57  ;;  %4148 = vmatprep.subr.bf16.mxu0 %v5971_v33  ;;  %v6029_v57 = vld [vmem:[%s6451_s4 + $0xe00] ss:$8 sps:$4 sm:$0xff]  }
 0x20f   : > { %4189 = vmatprep.subr.bf16.mxu1 %v5974_v34  ;;  %v6032_v33 = vld [vmem:[%s6451_s4 + $0xf00] ss:$8 sps:$4 sm:$0xff]   ;;  %v6037_v34 = vld [vmem:[%s6451_s4 + $0xef4] ss:$8 sps:$4 sm:$0xff]  }
 0x211   : > { %4149 = vmatpush2.bf16.msra.mxu0 %v5969_v37  ;;  %v6035_v37 = vld [vmem:[%s6451_s4 + $0xef0] ss:$8 sps:$4 sm:$0xff]  }
 0x212   : > { %4190 = vmatpush2.bf16.msra.mxu1 %v5972_v38  ;;  %4150 = vmatprep.subr.bf16.mxu0 %v5977_v39  ;;  %v6038_v38 = vld [vmem:[%s6451_s4 + $0xff0] ss:$8 sps:$4 sm:$0xff]   ;;  %v6043_v39 = vld [vmem:[%s6451_s4 + $0xee4] ss:$8 sps:$4 sm:$0xff]  }
 0x213   : > { %4191 = vmatprep.subr.bf16.mxu1 %v5980_v30  ;;  %v6046_v30 = vld [vmem:[%s6451_s4 + $0xfe4] ss:$8 sps:$4 sm:$0xff]  }
 0x215   : > { %4151 = vmatpush2.bf16.msra.mxu0 %v5975_v11  ;;  %v6041_v11 = vld [vmem:[%s6451_s4 + $0xee0] ss:$8 sps:$4 sm:$0xff]  }
 0x216   : > { %4192 = vmatpush2.bf16.msra.mxu1 %v5978_v41  ;;  %4152 = vmatprep.subr.bf16.mxu0 %v5983_v42  ;;  %v6044_v41 = vld [vmem:[%s6451_s4 + $0xfe0] ss:$8 sps:$4 sm:$0xff]   ;;  %v6049_v42 = vld [vmem:[%s6451_s4 + $0xed4] ss:$8 sps:$4 sm:$0xff]  }
 0x217   : > { %4193 = vmatprep.subr.bf16.mxu1 %v5986_v43  ;;  %v6052_v43 = vld [vmem:[%s6451_s4 + $0xfd4] ss:$8 sps:$4 sm:$0xff]  }
 0x219   : > { %4153 = vmatpush2.bf16.msra.mxu0 %v5981_v47  ;;  %v6055_v47 = vld [vmem:[%s6451_s4 + $0xec4] ss:$8 sps:$4 sm:$0xff]  }
 0x21a   : > { %4194 = vmatpush2.bf16.msra.mxu1 %v5984_v49  ;;  %4204 = vmatprep.subr.bf16.mxu0 %v5989_v51  ;;  %v6058_v49 = vld [vmem:[%s6451_s4 + $0xfc4] ss:$8 sps:$4 sm:$0xff]   ;;  %v6053_v51 = vld [vmem:[%s6451_s4 + $0xec0] ss:$8 sps:$4 sm:$0xff]  }
 0x21b   : > { %4245 = vmatprep.subr.bf16.mxu1 %v5992_v52  ;;  %v6056_v52 = vld [vmem:[%s6451_s4 + $0xfc0] ss:$8 sps:$4 sm:$0xff]  }
 0x21c   : > { %v3910_v32 = vpop.f32.mrf.mxu0  ;;  %4155 = vmatmul.mubr.bf16.vlgmr.msra.gmra.mxu0 %v1012_v21  ;;  %v6050_v21 = vld [vmem:[%s6451_s4 + $0xfd0] ss:$8 sps:$4 sm:$0xff]  }
 0x21d   : > { %v3951_v59 = vpop.f32.mrf.mxu1  ;;  %4196 = vmatmul.mubr.bf16.vlgmr.msra.gmra.mxu1 %v1034_v24  ;;  %v3911_v60 = vadd.f32 %v3910_v32, %v6961_v45  ;;  %4205 = vmatpush1.bf16.msra.mxu0 %v5987_v53  ;;  %v6064_v24 = vld [vmem:[%s6451_s4 + $0xfb4] ss:$8 sps:$4 sm:$0xff]   ;;  %v6059_v53 = vld [vmem:[%s6451_s4 + $0xeb0] ss:$8 sps:$4 sm:$0xff]   ;;  %v6068_v32 = vld [vmem:[%s6451_s4 + $0xfa0] ss:$8 sps:$4 sm:$0xff]  }
 0x21e   : > { %4246 = vmatpush1.bf16.msra.mxu1 %v5990_v54  ;;  %v3912_v0 = vpop.f32.mrf.mxu0  ;;  %4206 = vmatprep.subr.bf16.mxu0 %v5995_v16  ;;  %v6062_v54 = vld [vmem:[%s6451_s4 + $0xfb0] ss:$8 sps:$4 sm:$0xff]   ;;  %v6067_v16 = vld [vmem:[%s6451_s4 + $0xea4] ss:$8 sps:$4 sm:$0xff]  }
 0x21f   : > { %v3953_v1 = vpop.f32.mrf.mxu1  ;;  %4247 = vmatprep.subr.bf16.mxu1 %v5998_v55  ;;  %v7041_v4 = vadd.f32 %v3951_v59, %v3911_v60  ;;  %v3913_v5 = vadd.f32 %v3912_v0, %v6964_v48  ;;  %4236 = vmatprep.mubr.bf16.mxu0 %v1033_v26  ;;  %v6007_v48 = vld [vmem:[%s6451_s4 + $0xe44] ss:$8 sps:$4 sm:$0xff]   ;;  %v6061_v26 = vld [vmem:[%s6451_s4 + $0xeb4] ss:$8 sps:$4 sm:$0xff]  }
 0x220   : > { %4277 = vmatprep.mubr.bf16.mxu1 %v1037_v56  ;;  %v3914_v45 = vpop.f32.mrf.mxu0  ;;  %v6070_v55 = vld [vmem:[%s6451_s4 + $0xfa4] ss:$8 sps:$4 sm:$0xff]   ;;  %v6065_v56 = vld [vmem:[%s6451_s4 + $0xea0] ss:$8 sps:$4 sm:$0xff]   ;;  %v6073_v59 = vld [vmem:[%s6451_s4 + $0xe94] ss:$8 sps:$4 sm:$0xff]  }
 0x221   : > { %v3955_v6 = vpop.f32.mrf.mxu1  ;;  %v7044_v8 = vadd.f32 %v3953_v1, %v3913_v5  ;;  %4207 = vmatpush1.bf16.msra.mxu0 %v5993_v61  ;;  %v6076_v60 = vld [vmem:[%s6451_s4 + $0xf94] ss:$8 sps:$4 sm:$0xff]   ;;  %v6071_v61 = vld [vmem:[%s6451_s4 + $0xe90] ss:$8 sps:$4 sm:$0xff]   ;;  %v6079_v0 = vld [vmem:[%s6451_s4 + $0xe84] ss:$8 sps:$4 sm:$0xff]  }
 0x222   : > { %4248 = vmatpush1.bf16.msra.mxu1 %v5996_v62  ;;  %v3915_v10 = vpop.f32.mrf.mxu0  ;;  %4208 = vmatprep.subr.bf16.mxu0 %v6001_v2  ;;  %v6074_v62 = vld [vmem:[%s6451_s4 + $0xf90] ss:$8 sps:$4 sm:$0xff]   ;;  %v6082_v1 = vld [vmem:[%s6451_s4 + $0xf84] ss:$8 sps:$4 sm:$0xff]   ;;  %v1019_v2 = vrot.slane %v7017_v40, %v6532_v50  ;;  %v6080_v5 = vld [vmem:[%s6451_s4 + $0xf80] ss:$8 sps:$4 sm:$0xff]  }
 0x223   : > { %v3956_v12 = vpop.f32.mrf.mxu1  ;;  %4249 = vmatprep.subr.bf16.mxu1 %v6004_v3  ;;  %v6077_v3 = vld [vmem:[%s6451_s4 + $0xe80] ss:$8 sps:$4 sm:$0xff]  }
 0x224   : > { %v1035_v45 = vcombine.high %v1019_v2, %v1019_v2 }
 0x225   : > { %4209 = vmatpush1.bf16.msra.mxu0 %v5999_v9 }
 0x226   : > { %4250 = vmatpush1.bf16.msra.mxu1 %v6002_v36  ;;  %4210 = vmatprep.subr.bf16.mxu0 %v6007_v48 }
 0x227   : > { %4251 = vmatprep.subr.bf16.mxu1 %v6010_v13 }
 0x229   : > { %4211 = vmatpush1.bf16.msra.mxu0 %v6005_v14 }
 0x22a   : > { %4252 = vmatpush1.bf16.msra.mxu1 %v6008_v15  ;;  %4212 = vmatprep.subr.bf16.mxu0 %v6013_v17 }
 0x22b   : > { %4253 = vmatprep.subr.bf16.mxu1 %v6016_v18 }
 0x22d   : > { %4213 = vmatpush1.bf16.msra.mxu0 %v6011_v19 }
 0x22e   : > { %4254 = vmatpush1.bf16.msra.mxu1 %v6014_v20  ;;  %4214 = vmatprep.subr.bf16.mxu0 %v6019_v22 }
 0x22f   : > { %4255 = vmatprep.subr.bf16.mxu1 %v6022_v58 }
 0x231   : > { %4215 = vmatpush1.bf16.msra.mxu0 %v6017_v23 }
 0x232   : > { %4256 = vmatpush1.bf16.msra.mxu1 %v6020_v25  ;;  %4216 = vmatprep.subr.bf16.mxu0 %v6025_v27 }
 0x233   : > { %4257 = vmatprep.subr.bf16.mxu1 %v6028_v28 }
 0x235   : > { %4217 = vmatpush1.bf16.msra.mxu0 %v6023_v7 }
 0x236   : > { %4258 = vmatpush1.bf16.msra.mxu1 %v6026_v63  ;;  %4218 = vmatprep.subr.bf16.mxu0 %v6031_v29 }
 0x237   : > { %4259 = vmatprep.subr.bf16.mxu1 %v6034_v31 }
 0x239   : > { %4219 = vmatpush1.bf16.msra.mxu0 %v6029_v57 }
 0x23a   : > { %4260 = vmatpush1.bf16.msra.mxu1 %v6032_v33  ;;  %4220 = vmatprep.subr.bf16.mxu0 %v6037_v34 }
 0x23b   : > { %4261 = vmatprep.subr.bf16.mxu1 %v6040_v35 }
 0x23d   : > { %4221 = vmatpush2.bf16.msra.mxu0 %v6035_v37 }
 0x23e   : > { %4262 = vmatpush2.bf16.msra.mxu1 %v6038_v38  ;;  %4222 = vmatprep.subr.bf16.mxu0 %v6043_v39 }
 0x23f   : > { %4263 = vmatprep.subr.bf16.mxu1 %v6046_v30 }
 0x241   : > { %4223 = vmatpush2.bf16.msra.mxu0 %v6041_v11  ;;  %v6259_v11 = vmov 1983009808  }
 0x242   : > { %4264 = vmatpush2.bf16.msra.mxu1 %v6044_v41  ;;  %4224 = vmatprep.subr.bf16.mxu0 %v6049_v42  ;;  %v4290_v41 = vunpack.c.l.s4 %v6259_v11 }
 0x243   : > { %4265 = vmatprep.subr.bf16.mxu1 %v6052_v43 }
 0x245   : > { %4225 = vmatpush2.bf16.msra.mxu0 %v6047_v46 }
 0x246   : > { %4266 = vmatpush2.bf16.msra.mxu1 %v6050_v21  ;;  %4226 = vmatprep.subr.bf16.mxu0 %v6055_v47  ;;  %v4291_v47 = vunpack.c.0.s8 %v4290_v41 }
 0x247   : > { %4267 = vmatprep.subr.bf16.mxu1 %v6058_v49 }
 0x249   : > { %4227 = vmatpush2.bf16.msra.mxu0 %v6053_v51 }
 0x24a   : > { %4268 = vmatpush2.bf16.msra.mxu1 %v6056_v52  ;;  %4228 = vmatprep.subr.bf16.mxu0 %v6061_v26 }
 0x24b   : > { %4269 = vmatprep.subr.bf16.mxu1 %v6064_v24 }
 0x24d   : > { %4229 = vmatpush2.bf16.msra.mxu0 %v6059_v53 }
 0x24e   : > { %4270 = vmatpush2.bf16.msra.mxu1 %v6062_v54  ;;  %4230 = vmatprep.subr.bf16.mxu0 %v6067_v16  ;;  %v4294_v16 = vsub.s32 %v4291_v47, %v6524_v44 }
 0x24f   : > { %4271 = vmatprep.subr.bf16.mxu1 %v6070_v55 }
 0x251   : > { %4231 = vmatpush2.bf16.msra.mxu0 %v6065_v56 }
 0x252   : > { %4272 = vmatpush2.bf16.msra.mxu1 %v6068_v32  ;;  %4232 = vmatprep.subr.bf16.mxu0 %v6073_v59  ;;  %v321_v59 = vld [vmem:[#allocation2] sm:$0xf] }
 0x253   : > { %4273 = vmatprep.subr.bf16.mxu1 %v6076_v60 }
 0x255   : > { %4233 = vmatpush2.bf16.msra.mxu0 %v6071_v61 }
 0x256   : > { %4274 = vmatpush2.bf16.msra.mxu1 %v6074_v62  ;;  %4234 = vmatprep.subr.bf16.mxu0 %v6079_v0 }
 0x257   : > { %4275 = vmatprep.subr.bf16.mxu1 %v6082_v1 }
 0x259   : > { %4235 = vmatpush2.bf16.msra.mxu0 %v6077_v3 }
 0x25a   : > { %4276 = vmatpush2.bf16.msra.mxu1 %v6080_v5 }
 0x25c   : > { %v3992_v6 = vpop.f32.mrf.mxu0  ;;  %4237 = vmatmul.mubr.bf16.vlgmr.msra.gmra.mxu0 %v1019_v2 }
 0x25d   : > { %v4033_v9 = vpop.f32.mrf.mxu1  ;;  %4278 = vmatmul.mubr.bf16.vlgmr.msra.gmra.mxu1 %v1035_v45  ;;  %v3993_v36 = vadd.f32 %v3992_v6, %v7041_v4 }
 0x25e   : > { %v3994_v10 = vpop.f32.mrf.mxu0 }
 0x25f   : > { %v4035_v12 = vpop.f32.mrf.mxu1  ;;  %v4034_v48 = vadd.f32 %v4033_v9, %v3993_v36  ;;  %v3995_v50 = vadd.f32 %v3994_v10, %v7044_v8 }
 0x260   : > { %v3996_v40 = vpop.f32.mrf.mxu0 }
 0x261   : > { %v4037_v13 = vpop.f32.mrf.mxu1  ;;  %v4036_v14 = vadd.f32 %v4035_v12, %v3995_v50 }
 0x262   : > { %v3997_v15 = vpop.f32.mrf.mxu0 }
 0x263   : > { %v4038_v17 = vpop.f32.mrf.mxu1 }
 0x29c   : > { %v4074_v18 = vpop.f32.mrf.mxu0 }
 0x29d   : > { %v4115_v19 = vpop.f32.mrf.mxu1  ;;  %v4075_v20 = vadd.f32 %v4074_v18, %v4034_v48 }
 0x29e   : > { %v4076_v22 = vpop.f32.mrf.mxu0 }
 0x29f   : > { %v4117_v58 = vpop.f32.mrf.mxu1  ;;  %v4116_v23 = vadd.f32 %v4115_v19, %v4075_v20  ;;  %v4077_v25 = vadd.f32 %v4076_v22, %v4036_v14 }
 0x2a0   : > { %v4078_v27 = vpop.f32.mrf.mxu0 }
 0x2a1   : > { %v4119_v28 = vpop.f32.mrf.mxu1  ;;  %v4118_v4 = vadd.f32 %v4117_v58, %v4077_v25 }
 0x2a2   : > { %v4079_v7 = vpop.f32.mrf.mxu0 }
 0x2a3   : > { %v4120_v63 = vpop.f32.mrf.mxu1 }
 0x2dc   : > { %v4156_v29 = vpop.f32.mrf.mxu0 }
 0x2dd   : > { %v4197_v31 = vpop.f32.mrf.mxu1  ;;  %v4157_v8 = vadd.f32 %v4156_v29, %v4116_v23 }
 0x2de   : > { %v4158_v57 = vpop.f32.mrf.mxu0 }
 0x2df   : > { %v4199_v33 = vpop.f32.mrf.mxu1  ;;  %v4198_v34 = vadd.f32 %v4197_v31, %v4157_v8  ;;  %v4159_v30 = vadd.f32 %v4158_v57, %v4118_v4 }
 0x2e0   : > { %v4160_v35 = vpop.f32.mrf.mxu0 }
 0x2e1   : > { %v4201_v37 = vpop.f32.mrf.mxu1  ;;  %v4200_v46 = vadd.f32 %v4199_v33, %v4159_v30 }
 0x2e2   : > { %v4161_v38 = vpop.f32.mrf.mxu0 }
 0x2e3   : > { %v4202_v39 = vpop.f32.mrf.mxu1 }
 0x31c   : > { %v4238_v42 = vpop.f32.mrf.mxu0 }
 0x31d   : > { %v4279_v43 = vpop.f32.mrf.mxu1  ;;  %v4239_v21 = vadd.f32 %v4238_v42, %v4198_v34 }
 0x31e   : > { %v4240_v49 = vpop.f32.mrf.mxu0 }
 0x31f   : > { %v4281_v51 = vpop.f32.mrf.mxu1  ;;  %v4241_v52 = vadd.f32 %v4240_v49, %v4200_v46  ;;  %v4280_v53 = vadd.f32 %v4279_v43, %v4239_v21 }
 0x320   : > { %v4242_v26 = vpop.f32.mrf.mxu0 }
 0x321   : > { %v4283_v24 = vpop.f32.mrf.mxu1  ;;  %v4282_v54 = vadd.f32 %v4281_v51, %v4241_v52 }
 0x322   : > { %v4243_v55 = vpop.f32.mrf.mxu0 }
 0x323   : > { %v4284_v56 = vpop.f32.mrf.mxu1  ;;  %v4288_v32 = vcombine.low %v4280_v53, %v4282_v54 }
 0x325   : > { %v4295_v60 = vrot.slane %v4288_v32, %v4294_v16  ;;  %4302 = sbr.rel (%p5163_p1) target bundleno = 1042 (0x412), region = 52 }
 0x327   : > { %v4297_v61 = vadd.f32 %v4295_v60, %v321_v59 }
 0x329   : > { %4298 = vst [vmem:[#allocation2] sm:$0xf] %v4297_v61 }
 0x32a   : > { %v6084_v62 = vld [vmem:[%s6476_s8 + $0x78] sm:$0xff]   ;;  %v6086_v1 = vld [vmem:[%s6476_s8 + $0x70] sm:$0xff]   ;;  %v6088_v3 = vld [vmem:[%s6476_s8 + $0x68] sm:$0xff]   ;;  %v4308_v36 = vsub.s32 0, %v6524_v44  ;;  %v4312_v10 = vsub.s32 1, %v6524_v44  ;;  %vm4506_vm0 = vcmask 58368  }
 0x32b   : > { %v6085_v0 = vld [vmem:[%s6476_s8 + $0x38] sm:$0xff]   ;;  %5184 = vmatprep.subr.bf16.mxu0 %v6084_v62  ;;  %v6087_v2 = vld [vmem:[%s6476_s8 + $0x30] sm:$0xff]   ;;  %v6089_v5 = vld [vmem:[%s6476_s8 + $0x28] sm:$0xff]  }
 0x32c   : > { %5185 = vmatpush3.bf16.msra.mxu0 %v6085_v0  ;;  %v6090_v45 = vld [vmem:[%s6476_s8 + $0x60] sm:$0xff]   ;;  %v6092_v9 = vld [vmem:[%s6476_s8 + $0x58] sm:$0xff]   ;;  %v6094_v48 = vld [vmem:[%s6476_s8 + $0x50] sm:$0xff]  }
 0x32d   : > { %5186 = vmatprep.subr.bf16.mxu0 %v6086_v1  ;;  %v6091_v6 = vld [vmem:[%s6476_s8 + $0x20] sm:$0xff]   ;;  %v6093_v12 = vld [vmem:[%s6476_s8 + $0x18] sm:$0xff]   ;;  %v6095_v14 = vld [vmem:[%s6476_s8 + $0x10] sm:$0xff]  }
 0x32e   : > { %v4304_v50 = vld [vmem:[%s259_s13] sm:$0x3]  ;;  %v6096_v17 = vld [vmem:[%s6476_s8 + $0x48] sm:$0xff]  }
 0x32f   : > { %v4309_v40 = vrot.slane %v4304_v50, %v4308_v36  ;;  %v4313_v13 = vrot.slane %v4304_v50, %v4312_v10  ;;  %v6097_v44 = vld [vmem:[%s6476_s8 + $0x8] sm:$0xff]   ;;  %v6098_v22 = vld [vmem:[%s6476_s8 + $0x40] sm:$0xff]  }
 0x330   : > { %5187 = vmatpush3.bf16.msra.mxu0 %v6087_v2  ;;  %v4303_v18 = vld [vmem:[#allocation2] sm:$0xf] }
 0x331   : > { %5188 = vmatprep.subr.bf16.mxu0 %v6088_v3  ;;  %v4314_v15 = vcombine.low %v4309_v40, %v4313_v13  ;;  %v6099_v23 = vld [vmem:[%s6476_s8] sm:$0xff]  }
 0x333   : > { %v4321_v19 = vrot.slane %v4314_v15, %v4294_v16 }
 0x334   : > { %5189 = vmatpush3.bf16.msra.mxu0 %v6089_v5 }
 0x335   : > { %5190 = vmatprep.subr.bf16.mxu0 %v6090_v45  ;;  %v4323_v20 = vadd.f32 %v4321_v19, %v4303_v18 }
 0x337   : > { %v4324_v58 = vmax.f32 %v4323_v20, 0.0 }
 0x338   : > { %5191 = vmatpush3.bf16.msra.mxu0 %v6091_v6 }
 0x339   : > { %5192 = vmatprep.subr.bf16.mxu0 %v6092_v9  ;;  %v4332_v25 = vrot.slane %v4324_v58, %v4294_v16 }
 0x33b   : > { %v4333_v27 = vcombine.high %v4332_v25, %v4332_v25  ;;  %v4336_v28 = vpack.c.bf16 %v4332_v25, %v4332_v25 }
 0x33c   : > { %5193 = vmatpush3.bf16.msra.mxu0 %v6093_v12 }
 0x33d   : > { %5194 = vmatprep.subr.bf16.mxu0 %v6094_v48  ;;  %v4337_v4 = vpack.c.bf16 %v4333_v27, %v4333_v27 }
 0x33f   : > { %4498 = vmatprep.mubr.bf16.mxu0 %v4337_v4 }
 0x340   : > { %5195 = vmatpush3.bf16.msra.mxu0 %v6095_v14 }
 0x341   : > { %5196 = vmatprep.subr.bf16.mxu0 %v6096_v17 }
 0x344   : > { %5197 = vmatpush3.bf16.msra.mxu0 %v6097_v44 }
 0x345   : > { %5198 = vmatprep.subr.bf16.mxu0 %v6098_v22 }
 0x348   : > { %5199 = vmatpush3.bf16.msra.mxu0 %v6099_v23 }
 0x34b   : > { %4499 = vmatmul.mubr.bf16.vlgmr.msra.gmra.mxu0 %v4336_v28 }
 0x40b   : > { %v5200_v7 = vpop.f32.mrf.mxu0 }
 0x40d   : > { %v5201_v63 = vpop.f32.mrf.mxu0 }
 0x40e   : > { %v5202_v29 = vadd.f32 %v5201_v63, %v5200_v7 }
 0x40f   : > { %v5203_v31 = vpop.f32.mrf.mxu0 }
 0x410   : > { %4507 = vst.msk [vmem:[%s6482_s10] sm:$0x3] %vm4506_vm0, %v5202_v29 }
 0x411   : > { %v5204_v8 = vpop.f32.mrf.mxu0 }
 0x412 PF: > { %s20_s25 = sadd.s32 1, %s6250_s25   ;;  %s7183_s4 = sld [smem:[#allocation9_spill]] }
 0x413   : > { %p17_p2 = scmp.ge.s32.totalorder %s20_s25, 10   ;;  %s7184_s13 = sld [smem:[#allocation10_spill]] }
 0x414   : > { %s7185_s15 = smov %s6214_s16  ;;  %s7186_s16 = smov %s6218_s17 }
 0x415   : > { %s7187_s17 = smov %s6425_s7  ;;  %s7188_s18 = smov %s6226_s19 }
 0x416   : > { %s7189_s19 = smov %s6230_s20  ;;  %s7190_s20 = smov %s6430_s30 }
 0x417   : > { %s7191_s21 = smov %s6242_s23  ;;  %s7192_s22 = smov %s6246_s24 }
 0x418   : > { %s7193_s23 = smov %s7183_s4  ;;  %19 = sbr.rel (!%p17_p2) target bundleno = 12 (0xc), region = 103 }
 0x419   : > { %s7194_s24 = smov %s7184_s13 }
 0x41d   :  { %4527 = vsyncpa [#allocation4], 1 }
 0x41e   :  { %4529 = vsyncpa [#allocation4 + $0x1], 1 }
 0x41f   :  { %4530 = vsyncpa [#allocation6], 1 }
 0x420   :  { %4532 = vsyncpa [#allocation6 + $0x1], 1 }

// kernel: cnn_qnet_forward.2
= control target key start
LH: loop header
LB: loop body
LE: loop exit
PB: predicated region body
PF: predicated region fallthrough
CT: control target
= control target key end

     0   :  { %12 = vsyncpa [#allocation6], 0  ;;  %s6838_s24 = smov 0   ;;  %s9887_s0 = inlined_call_operand.vmem [shape: f32[2,4,256], index: 0, kind: input, shape index: {}]   ;;  %s9888_s1 = inlined_call_operand.vmem [shape: f32[9,32,4], index: 1, kind: input, shape index: {}]   ;;  %s9889_s2 = inlined_call_operand.vmem [shape: f32[32,1], index: 2, kind: input, shape index: {}]   ;;  %s9890_s3 = inlined_call_operand.vmem [shape: f32[9,64,32], index: 3, kind: input, shape index: {}]   ;;  %s9891_s4 = inlined_call_operand.vmem [shape: f32[64,1], index: 4, kind: input, shape index: {}]   ;;  %s9892_s5 = inlined_call_operand.hbm [shape: f32[9,64,64], index: 5, kind: input, shape index: {}]   ;;  %s9893_s6 = inlined_call_operand.vmem [shape: f32[64,1], index: 6, kind: input, shape index: {}]   ;;  %s9894_s7 = inlined_call_operand.vmem [shape: bf16[2,64,256], index: 7, kind: output, shape index: {}]  }
   0x1 LB: > { %s6844_s25 = sadd.s32 4294967295, %s6783_s24   ;;  %p6003_p0 = scmp.ge.s32.totalorder %s6783_s24, 1  ;;  %s6783_s24 = sphi %s6838_s24, %s18_s24  }
   0x2   : > { %p201_p1 = scmp.lt.s32.totalorder %s6783_s24, 3  ;;  %s6785_s26 = smov [#allocation5]  }
   0x3   : > { %s225_s27 = sshll.u32 %s6785_s26, 4  ;;  %p6480_p3 = scmp.eq.s32.totalorder %s6844_s25, 0  ;;  %s226_s27 = int_to_ptr.vmem [resolvable:$true] %s225_s27 }
   0x4   : > { %p6848_p2 = pnand %p6003_p0, %p201_p1  ;;  %s6758_s29 = scalar_lea.vmem %s226_s27, 9216 }
   0x5   : > { %p6759_p7 = scmp.ne.s32.totalorder %s226_s27, %s6758_s29  ;;  %p6766_p10 = scmp.lt.s32.totalorder %s226_s27, %s226_s27 }
   0x6   : > { %p6476_p4 = pneg %p6848_p2  ;;  %p6767_p11 = scmp.lt.s32.totalorder %s6758_s29, %s6758_s29 }
   0x8   : > { %p6477_p5 = pnand %p6480_p3, %p6476_p4  ;;  %p6768_p12 = por %p6767_p11, %p6766_p10 }
   0xa   : > { %p6749_p6 = pneg %p6477_p5 }
   0xc   : > { %p6761_p8 = pnand %p6759_p7, %p6749_p6 }
   0xe   : > { %p6762_p9 = pneg %p6761_p8 }
  0x10   : > { %p6769_p13 = pnand %p6768_p12, %p6762_p9 }
  0x12   : > { %6772 = shalt.err (!%p6769_p13)
}
  0x13   : > { %s6786_s30 = smov 128   ;;  %s6787_s8 = smov 8  }
  0x14   : > { %6479 = dma.hbm_to_vmem [thread:$0]  (!%p6477_p5), %s9892_s5, 9216, %s226_s27, [#allocation6], %s6786_s30, %s6786_s30, %s6787_s8  }
  0x15   : > { %252 = sbr.rel (%p6848_p2) target bundleno = 1538 (0x602), region = 48 }
  0x1a   : > { %6778 = dma.done.wait (%p6480_p3), [#allocation6], 9216  }
  0x1b   : > { %6780 = vsyncadd (%p6480_p3), [#allocation6], 4294958080  ;;  %p284_p0 = scmp.lt.s32.totalorder %s6844_s25, 1  ;;  %v9895_v0 = vmov 0.0   ;;  %s6789_s15 = smov 16   ;;  %v1533_v12 = vld [vmem:[%s9889_s2 + $0x18] sm:$0xff]  ;;  %v294_v17 = vlaneseq }
  0x1c   : > { %326 = vst [vmem:[#allocation2] sm:$0xf] %v9895_v0  ;;  %327 = vst [vmem:[#allocation2 + $0xc] sm:$0xf] %v9895_v0  ;;  %463 = vmatprep.mubr.f32.mxu1 %v9895_v0  ;;  %451 = vmatprep.mubr.f32.mxu0 %v9895_v0  ;;  %s6790_s16 = smov 17   ;;  %s6791_s17 = smov 15  }
  0x1d   : > { %s10121_s25 = smov (!%p284_p0, %s6844_s25), 1  ;;  %s6792_s18 = smov 1   ;;  %v1532_v13 = vld [vmem:[%s9889_s2 + $0x10] sm:$0xff]  ;;  %v6797_v14 = vmov 0   ;;  %v1530_v15 = vld [vmem:[%s9889_s2] sm:$0xff]  ;;  %v1531_v16 = vld [vmem:[%s9889_s2 + $0x8] sm:$0xff] }
  0x1e   : > { %s6460_s11 = sshll.u32 %s10121_s25, 3  ;;  %s6793_s19 = smov 127   ;;  %6503 = vset.pattern.permute.xlu0 %v6797_v14  ;;  %6504 = vset.pattern.permute.xlu1 %v6797_v14  ;;  %v295_v18 = vand.u32 127, %v294_v17  ;;  %vm366_vm0 = vcmask 130048   ;;  %vm382_vm1 = vcmask 1043456   ;;  %v6014_v28 = vld [vmem:[%s9888_s1 + $0x30] sm:$0xff] }
  0x1f   : > { %s288_s14 = scalar_lea.vmem %s9887_s0, %s6460_s11  ;;  %s6794_s20 = smov 113   ;;  %vm369_vm2 = vcmask 31744   ;;  %v6012_v29 = vld [vmem:[%s9888_s1 + $0x20] sm:$0xff]  ;;  %vm344_vm3 = vcmask 138240   ;;  %v9940_v30 = vmov 0  ;;  %v9943_v31 = vmov 0 }
  0x20   : > { %v6878_v1 = vld [vmem:[%s288_s14] sm:$0xff]  ;;  %s6795_s21 = smov 112   ;;  %s6796_s22 = smov 111   ;;  %v296_v19 = vadd.s32 128, %v295_v18  ;;  %v301_v22 = vand.u32 15, %v295_v18  ;;  %v6015_v36 = vld [vmem:[%s9888_s1 + $0x38] sm:$0xff] }
  0x21   : > { %328 = vst [vmem:[#allocation2 + $0x4] sm:$0xff] %v6878_v1  ;;  %v6895_v7 = vcombine.high %v6878_v1, %v6878_v1  ;;  %v6013_v37 = vld [vmem:[%s9888_s1 + $0x28] sm:$0xff]  ;;  %vm598_vm6 = vcmask 121856   ;;  %v9946_v40 = vmov 0  ;;  %v351_v44 = vld [vmem:[%s9888_s1] sm:$0xff]  ;;  %v9949_v46 = vmov 0 }
  0x22   : > { %v308_v23 = vand.u32 15, %v296_v19  ;;  %vm6941_vm4 = vcmp.ne.s32.totalorder %v301_v22, 0  ;;  %vm6982_vm8 = vcmp.ne.s32.totalorder %v301_v22, 15  ;;  %v352_v50 = vld [vmem:[%s9888_s1 + $0x8] sm:$0xff]  ;;  %v6028_v51 = vld [vmem:[%s9888_s1 + $0x40] sm:$0xff]  ;;  %vm736_vm9 = vcmask 7168  }
  0x23   : > { %v985_v8 = vld [vmem:[#allocation2 + $0xc] sm:$0xf]  ;;  %v9941_v30 = vsel %vm6941_vm4, 4294967295, %v9940_v30  ;;  %v9950_v46 = vsel %vm6982_vm8, 4294967295, %v9949_v46  ;;  %v353_v55 = vld [vmem:[%s9888_s1 + $0x10] sm:$0xff]  ;;  %vm995_vm10 = vcmask 1039360  }
  0x24   : > { %v1123_v9 = vld [vmem:[#allocation2 + $0xc] sm:$0xf]  ;;  %9942 = vst [vmem:[#allocation8_spill] sm:$0xff] %v9941_v30  ;;  %vm6945_vm5 = vcmp.ne.s32.totalorder %v308_v23, 0  ;;  %vm6966_vm7 = vcmp.ne.s32.totalorder %v308_v23, 15  ;;  %9951 = vst [vmem:[#allocation11_spill] sm:$0xff] %v9950_v46 }
  0x25   : > { %v1261_v10 = vld [vmem:[#allocation2 + $0xc] sm:$0xf]  ;;  %v9944_v31 = vsel %vm6945_vm5, 4294967295, %v9943_v31  ;;  %v9947_v40 = vsel %vm6966_vm7, 4294967295, %v9946_v40  ;;  %v354_v63 = vld [vmem:[%s9888_s1 + $0x18] sm:$0xff]  ;;  %vm1133_vm11 = vcmask 924672  }
  0x26   : > { %v1393_v11 = vld [vmem:[#allocation2 + $0xc] sm:$0xf]  ;;  %9945 = vst [vmem:[#allocation9_spill] sm:$0xff] %v9944_v31  ;;  %9948 = vst [vmem:[#allocation10_spill] sm:$0xff] %v9947_v40  ;;  %vm1276_vm12 = vcmask 916480   ;;  %vm1403_vm13 = vcmask 908288  }
  0x27   : > { %v6029_v56 = vld [vmem:[%s9888_s1 + $0x48] sm:$0xff]  ;;  %vm1715_vm14 = vcmask 261120   ;;  %vm3781_vm15 = vcmask 523264   ;;  %s6461_s26 = sshll.u32 %s10121_s25, 6 }
  0x28   : > { %v330_v2 = vld [vmem:[#allocation2 + $0x8] sm:$0xf]  ;;  %v329_v3 = vld [vmem:[#allocation2] sm:$0xff]  ;;  %s9844_s28 = scalar_lea.vmem %s9894_s7, %s6461_s26 }
  0x29   : > { %364 = vrot.lane.b32.xlu0 %v330_v2, %s6789_s15  ;;  %360 = vrot.lane.b32.xlu1 %v329_v3, %s6789_s15  ;;  %v337_v4 = vcombine.high %v329_v3, %v329_v3  ;;  %v584_v5 = vld [vmem:[#allocation2 + $0x8] sm:$0xf] }
  0x2a   : > { %v726_v6 = vld [vmem:[#allocation2 + $0x8] sm:$0xf] }
  0x2d   : > { %338 = vrot.lane.b32.xlu1 %v329_v3, %s6790_s16  ;;  %362 = vrot.lane.b32.xlu0 %v337_v4, %s6789_s15 }
  0x31   : > { %340 = vrot.lane.b32.xlu1 %v337_v4, %s6790_s16  ;;  %342 = vrot.lane.b32.xlu0 %v330_v2, %s6790_s16  ;;  %v6030_v2 = vld [vmem:[%s9888_s1 + $0x50] sm:$0xff] }
  0x35   : > { %596 = vrot.lane.b32.xlu1 %v584_v5, %s6791_s17  ;;  %594 = vrot.lane.b32.xlu0 %v337_v4, %s6791_s17 }
  0x39   : > { %592 = vrot.lane.b32.xlu0 %v329_v3, %s6791_s17  ;;  %732 = vrot.lane.b32.xlu1 %v337_v4, %s6792_s18 }
  0x3d   : > { %734 = vrot.lane.b32.xlu0 %v726_v6, %s6792_s18  ;;  %730 = vrot.lane.b32.xlu1 %v329_v3, %s6792_s18  ;;  %v6031_v6 = vld [vmem:[%s9888_s1 + $0x58] sm:$0xff] }
  0x41   : > { %991 = vrot.lane.b32.xlu0 %v6895_v7, %s6793_s19  ;;  %993 = vrot.lane.b32.xlu1 %v985_v8, %s6793_s19 }
  0x45   : > { %989 = vrot.lane.b32.xlu0 %v6878_v1, %s6793_s19  ;;  %1129 = vrot.lane.b32.xlu1 %v6895_v7, %s6794_s20 }
  0x49   : > { %1131 = vrot.lane.b32.xlu0 %v1123_v9, %s6794_s20  ;;  %1127 = vrot.lane.b32.xlu1 %v6878_v1, %s6794_s20 }
  0x4d   : > { %1272 = vrot.lane.b32.xlu0 %v6895_v7, %s6795_s21  ;;  %1274 = vrot.lane.b32.xlu1 %v1261_v10, %s6795_s21 }
  0x51   : > { %1270 = vrot.lane.b32.xlu0 %v6878_v1, %s6795_s21  ;;  %1399 = vrot.lane.b32.xlu1 %v6895_v7, %s6796_s22 }
  0x55   : > { %1401 = vrot.lane.b32.xlu0 %v1393_v11, %s6796_s22  ;;  %1397 = vrot.lane.b32.xlu1 %v6878_v1, %s6796_s22 }
  0x59   : > { %1551 = vperm.xlu0 %6503, %v1533_v12   ;;  %1546 = vperm.xlu1 %6504, %v1532_v13   ;;  %v6039_v12 = vld [vmem:[%s9888_s1 + $0x68] sm:$0xff]  ;;  %v6048_v13 = vld [vmem:[%s9888_s1 + $0x80] sm:$0xff] }
  0x5d   : > { %1536 = vperm.xlu0 %6503, %v1530_v15   ;;  %1541 = vperm.xlu1 %6504, %v1531_v16  }
  0x61   : > { %6506 = vrot.lane.b32.xlu1 %v9895_v0, %s6789_s15  ;;  %6511 = vrot.lane.b32.xlu0 %v9895_v0, %s6789_s15 }
  0x65   : > { %6516 = vrot.lane.b32.xlu1 %v9895_v0, %s6790_s16 }
  0x9b   : > { %v365_v20 = vpop.permute.xlu0 %364  ;;  %v361_v21 = vpop.permute.xlu1 %360 }
  0x9f   : > { %v339_v24 = vpop.permute.xlu1 %338  ;;  %v363_v25 = vpop.permute.xlu0 %362 }
  0xa0   : > { %v368_v26 = vsel %vm366_vm0, %v363_v25, %v365_v20  ;;  %v367_v27 = vsel %vm366_vm0, %v361_v21, %v363_v25  ;;  %v6040_v20 = vld [vmem:[%s9888_s1 + $0x70] sm:$0xff]  ;;  %v6049_v21 = vld [vmem:[%s9888_s1 + $0x88] sm:$0xff]  ;;  %v6041_v25 = vld [vmem:[%s9888_s1 + $0x78] sm:$0xff] }
  0xa1   : > { %6016 = vmatprep.subr.msk.mxu0 %vm382_vm1, %v368_v26  ;;  %6470 = vmatprep.subr.msk.mxu1 %vm382_vm1, %v368_v26  ;;  %v6050_v26 = vld [vmem:[%s9888_s1 + $0x90] sm:$0xff] }
  0xa2   : > { %6017 = vmatpush1.msk.msra.mxu0 %vm382_vm1, %v367_v27  ;;  %6471 = vmatpush1.msk.msra.mxu1 %vm382_vm1, %v367_v27 }
  0xa3   : > { %v341_v32 = vpop.permute.xlu1 %340  ;;  %6020 = vmatmul.mubr.msk.f32.vlgmr.msra.gmra.mxu1 %vm369_vm2, %v6014_v28  ;;  %v343_v33 = vpop.permute.xlu0 %342  ;;  %6018 = vmatmul.mubr.msk.f32.vlgmr.msra.gmra.mxu0 %vm369_vm2, %v6012_v29  ;;  %v6051_v28 = vld [vmem:[%s9888_s1 + $0x98] sm:$0xff]  ;;  %v6058_v29 = vld [vmem:[%s9888_s1 + $0xa0] sm:$0xff] }
  0xa4   : > { %v345_v34 = vsel %vm344_vm3, %v339_v24, %v341_v32  ;;  %v346_v35 = vsel %vm344_vm3, %v341_v32, %v343_v33  ;;  %469 = vmatprep.mubr.f32.mxu1 %v9895_v0  ;;  %457 = vmatprep.mubr.f32.mxu0 %v9895_v0 }
  0xa5   : > { %v349_v38 = vsel %vm6941_vm4, %v345_v34, 0.0  ;;  %v350_v39 = vsel %vm6945_vm5, %v346_v35, 0.0 }
  0xa6   : > { %6022 = vmatprep.subr.msk.mxu1 %vm382_vm1, %v350_v39 }
  0xa7   : > { %v597_v41 = vpop.permute.xlu1 %596  ;;  %6021 = vmatmul.mubr.msk.f32.gmra.mxu1 %vm369_vm2, %v6015_v36  ;;  %v595_v42 = vpop.permute.xlu0 %594  ;;  %6019 = vmatmul.mubr.msk.f32.gmra.mxu0 %vm369_vm2, %v6013_v37  ;;  %v6059_v37 = vld [vmem:[%s9888_s1 + $0xa8] sm:$0xff] }
  0xa8   : > { %6023 = vmatpush1.msk.msra.mxu1 %vm382_vm1, %v349_v38  ;;  %v600_v43 = vsel %vm598_vm6, %v595_v42, %v597_v41  ;;  %558 = vmatprep.mubr.f32.mxu1 %v9895_v0  ;;  %v6068_v38 = vld [vmem:[%s9888_s1 + $0xc0] sm:$0xff]  ;;  %v6060_v41 = vld [vmem:[%s9888_s1 + $0xb0] sm:$0xff] }
  0xa9   : > { %v604_v45 = vsel %vm6966_vm7, %v600_v43, 0.0  ;;  %692 = vmatprep.mubr.f32.mxu0 %v9895_v0  ;;  %v6061_v43 = vld [vmem:[%s9888_s1 + $0xb8] sm:$0xff] }
  0xaa   : > { %6032 = vmatprep.subr.msk.mxu0 %vm382_vm1, %v604_v45  ;;  %v6071_v45 = vld [vmem:[%s9888_s1 + $0xd8] sm:$0xff] }
  0xab   : > { %6024 = vmatmul.mubr.msk.f32.vlgmr.msra.gmra.mxu1 %vm369_vm2, %v351_v44  ;;  %v593_v47 = vpop.permute.xlu0 %592  ;;  %v733_v48 = vpop.permute.xlu1 %732  ;;  %v6070_v44 = vld [vmem:[%s9888_s1 + $0xd0] sm:$0xff] }
  0xac   : > { %v599_v49 = vsel %vm598_vm6, %v593_v47, %v595_v42  ;;  %564 = vmatprep.mubr.f32.mxu1 %v9895_v0  ;;  %v6069_v42 = vld [vmem:[%s9888_s1 + $0xc8] sm:$0xff]  ;;  %v6078_v47 = vld [vmem:[%s9888_s1 + $0xe0] sm:$0xff] }
  0xad   : > { %v603_v52 = vsel %vm6982_vm8, %v599_v49, 0.0  ;;  %v6088_v49 = vld [vmem:[%s9888_s1 + $0x100] sm:$0xff] }
  0xae   : > { %6033 = vmatpush1.msk.msra.mxu0 %vm382_vm1, %v603_v52  ;;  %v6081_v52 = vld [vmem:[%s9888_s1 + $0xf8] sm:$0xff] }
  0xaf   : > { %6025 = vmatmul.mubr.msk.f32.gmra.mxu1 %vm369_vm2, %v352_v50  ;;  %6034 = vmatmul.mubr.msk.f32.vlgmr.msra.gmra.mxu0 %vm369_vm2, %v6028_v51  ;;  %v735_v53 = vpop.permute.xlu0 %734  ;;  %v731_v54 = vpop.permute.xlu1 %730  ;;  %v6080_v50 = vld [vmem:[%s9888_s1 + $0xf0] sm:$0xff]  ;;  %v6089_v51 = vld [vmem:[%s9888_s1 + $0x108] sm:$0xff] }
  0xb0   : > { %570 = vmatprep.mubr.f32.mxu1 %v9895_v0  ;;  %698 = vmatprep.mubr.f32.mxu0 %v9895_v0  ;;  %v738_v57 = vsel %vm736_vm9, %v733_v48, %v735_v53  ;;  %v737_v58 = vsel %vm736_vm9, %v731_v54, %v733_v48  ;;  %v6079_v48 = vld [vmem:[%s9888_s1 + $0xe8] sm:$0xff]  ;;  %v6090_v53 = vld [vmem:[%s9888_s1 + $0x110] sm:$0xff]  ;;  %v6091_v54 = vld [vmem:[%s9888_s1 + $0x118] sm:$0xff] }
  0xb1   : > { %v742_v59 = vsel %vm6945_vm5, %v738_v57, 0.0  ;;  %6052 = vmatprep.subr.msk.mxu0 %vm382_vm1, %v6895_v7  ;;  %v741_v60 = vsel %vm6941_vm4, %v737_v58, 0.0  ;;  %v6038_v7 = vld [vmem:[%s9888_s1 + $0x60] sm:$0xff] }
  0xb2   : > { %6042 = vmatprep.subr.msk.mxu1 %vm382_vm1, %v742_v59  ;;  %6053 = vmatpush1.msk.msra.mxu0 %vm382_vm1, %v6878_v1 }
  0xb3   : > { %6026 = vmatmul.mubr.msk.f32.gmra.mxu1 %vm369_vm2, %v353_v55  ;;  %6035 = vmatmul.mubr.msk.f32.gmra.mxu0 %vm369_vm2, %v6029_v56  ;;  %v992_v61 = vpop.permute.xlu0 %991  ;;  %v994_v62 = vpop.permute.xlu1 %993 }
  0xb4   : > { %576 = vmatprep.mubr.f32.mxu1 %v9895_v0  ;;  %704 = vmatprep.mubr.f32.mxu0 %v9895_v0  ;;  %v997_v1 = vsel %vm995_vm10, %v992_v61, %v994_v62 }
  0xb5   : > { %6043 = vmatpush1.msk.msra.mxu1 %vm382_vm1, %v741_v60  ;;  %v1001_v3 = vsel %vm6966_vm7, %v997_v1, 0.0 }
  0xb6   : > { %6062 = vmatprep.subr.msk.mxu1 %vm382_vm1, %v1001_v3 }
  0xb7   : > { %6027 = vmatmul.mubr.msk.f32.gmra.mxu1 %vm369_vm2, %v354_v63  ;;  %6036 = vmatmul.mubr.msk.f32.gmra.mxu0 %vm369_vm2, %v6030_v2  ;;  %v990_v4 = vpop.permute.xlu0 %989  ;;  %v1130_v5 = vpop.permute.xlu1 %1129 }
  0xb8   : > { %710 = vmatprep.mubr.f32.mxu0 %v9895_v0  ;;  %830 = vmatprep.mubr.f32.mxu1 %v9895_v0  ;;  %v996_v8 = vsel %vm995_vm10, %v990_v4, %v992_v61 }
  0xb9   : > { %v1000_v9 = vsel %vm6982_vm8, %v996_v8, 0.0 }
  0xbb   : > { %6037 = vmatmul.mubr.msk.f32.gmra.mxu0 %vm369_vm2, %v6031_v6  ;;  %6044 = vmatmul.mubr.msk.f32.vlgmr.msra.gmra.mxu1 %vm369_vm2, %v6038_v7  ;;  %v1132_v10 = vpop.permute.xlu0 %1131  ;;  %v1128_v11 = vpop.permute.xlu1 %1127 }
  0xbc   : > { %836 = vmatprep.mubr.f32.mxu1 %v9895_v0  ;;  %951 = vmatprep.mubr.f32.mxu0 %v9895_v0  ;;  %v1135_v14 = vsel %vm1133_vm11, %v1130_v5, %v1132_v10  ;;  %v1134_v15 = vsel %vm1133_vm11, %v1128_v11, %v1130_v5 }
  0xbd   : > { %6063 = vmatpush1.msk.msra.mxu1 %vm382_vm1, %v1000_v9  ;;  %v1139_v16 = vsel %vm6945_vm5, %v1135_v14, 0.0  ;;  %v1138_v17 = vsel %vm6941_vm4, %v1134_v15, 0.0 }
  0xbe   : > { %6072 = vmatprep.subr.msk.mxu0 %vm382_vm1, %v1139_v16 }
  0xbf   : > { %6045 = vmatmul.mubr.msk.f32.gmra.mxu1 %vm369_vm2, %v6039_v12  ;;  %6054 = vmatmul.mubr.msk.f32.vlgmr.msra.gmra.mxu0 %vm369_vm2, %v6048_v13  ;;  %v1273_v18 = vpop.permute.xlu0 %1272  ;;  %v1275_v19 = vpop.permute.xlu1 %1274 }
  0xc0   : > { %842 = vmatprep.mubr.f32.mxu1 %v9895_v0  ;;  %957 = vmatprep.mubr.f32.mxu0 %v9895_v0  ;;  %v1278_v22 = vsel %vm1276_vm12, %v1273_v18, %v1275_v19 }
  0xc1   : > { %6073 = vmatpush1.msk.msra.mxu0 %vm382_vm1, %v1138_v17  ;;  %6082 = vmatprep.subr.msk.mxu1 %vm382_vm1, %v1278_v22 }
  0xc3   : > { %6046 = vmatmul.mubr.msk.f32.gmra.mxu1 %vm369_vm2, %v6040_v20  ;;  %6055 = vmatmul.mubr.msk.f32.gmra.mxu0 %vm369_vm2, %v6049_v21  ;;  %v1271_v23 = vpop.permute.xlu0 %1270  ;;  %v1400_v24 = vpop.permute.xlu1 %1399 }
  0xc4   : > { %848 = vmatprep.mubr.f32.mxu1 %v9895_v0  ;;  %963 = vmatprep.mubr.f32.mxu0 %v9895_v0  ;;  %v1277_v35 = vsel %vm1276_vm12, %v1271_v23, %v1273_v18 }
  0xc7   : > { %6047 = vmatmul.mubr.msk.f32.gmra.mxu1 %vm369_vm2, %v6041_v25  ;;  %6056 = vmatmul.mubr.msk.f32.gmra.mxu0 %vm369_vm2, %v6050_v26  ;;  %v1402_v27 = vpop.permute.xlu0 %1401  ;;  %v1398_v33 = vpop.permute.xlu1 %1397 }
  0xc8   : > { %969 = vmatprep.mubr.f32.mxu0 %v9895_v0  ;;  %1089 = vmatprep.mubr.f32.mxu1 %v9895_v0  ;;  %v1405_v32 = vsel %vm1403_vm13, %v1400_v24, %v1402_v27  ;;  %v1404_v36 = vsel %vm1403_vm13, %v1398_v33, %v1400_v24 }
  0xc9   : > { %v1409_v34 = vsel %vm6966_vm7, %v1405_v32, 0.0  ;;  %v1408_v39 = vsel %vm6982_vm8, %v1404_v36, 0.0 }
  0xca   : > { %6092 = vmatprep.subr.msk.mxu0 %vm382_vm1, %v1409_v34 }
  0xcb   : > { %6057 = vmatmul.mubr.msk.f32.gmra.mxu0 %vm369_vm2, %v6051_v28  ;;  %6064 = vmatmul.mubr.msk.f32.vlgmr.msra.gmra.mxu1 %vm369_vm2, %v6058_v29 }
  0xcc   : > { %1095 = vmatprep.mubr.f32.mxu1 %v9895_v0  ;;  %1227 = vmatprep.mubr.f32.mxu0 %v9895_v0 }
  0xcd   : > { %6083 = vmatpush1.msk.msra.mxu1 %vm382_vm1, %v1277_v35 }
  0xcf   : > { %6065 = vmatmul.mubr.msk.f32.gmra.mxu1 %vm369_vm2, %v6059_v37  ;;  %6074 = vmatmul.mubr.msk.f32.vlgmr.msra.gmra.mxu0 %vm369_vm2, %v6068_v38 }
  0xd0   : > { %1101 = vmatprep.mubr.f32.mxu1 %v9895_v0  ;;  %1233 = vmatprep.mubr.f32.mxu0 %v9895_v0 }
  0xd1   : > { %6093 = vmatpush1.msk.msra.mxu0 %vm382_vm1, %v1408_v39 }
  0xd3   : > { %6066 = vmatmul.mubr.msk.f32.gmra.mxu1 %vm369_vm2, %v6060_v41  ;;  %6075 = vmatmul.mubr.msk.f32.gmra.mxu0 %vm369_vm2, %v6069_v42 }
  0xd4   : > { %1107 = vmatprep.mubr.f32.mxu1 %v9895_v0  ;;  %1239 = vmatprep.mubr.f32.mxu0 %v9895_v0 }
  0xd7   : > { %6067 = vmatmul.mubr.msk.f32.gmra.mxu1 %vm369_vm2, %v6061_v43  ;;  %6076 = vmatmul.mubr.msk.f32.gmra.mxu0 %vm369_vm2, %v6070_v44 }
  0xd8   : > { %1245 = vmatprep.mubr.f32.mxu0 %v9895_v0  ;;  %1359 = vmatprep.mubr.f32.mxu1 %v9895_v0 }
  0xdb   : > { %6077 = vmatmul.mubr.msk.f32.gmra.mxu0 %vm369_vm2, %v6071_v45  ;;  %6084 = vmatmul.mubr.msk.f32.vlgmr.msra.gmra.mxu1 %vm369_vm2, %v6078_v47 }
  0xdc   : > { %1365 = vmatprep.mubr.f32.mxu1 %v9895_v0  ;;  %1497 = vmatprep.mubr.f32.mxu0 %v9895_v0 }
  0xdf   : > { %6085 = vmatmul.mubr.msk.f32.gmra.mxu1 %vm369_vm2, %v6079_v48  ;;  %6094 = vmatmul.mubr.msk.f32.vlgmr.msra.gmra.mxu0 %vm369_vm2, %v6088_v49 }
  0xe0   : > { %1371 = vmatprep.mubr.f32.mxu1 %v9895_v0  ;;  %1503 = vmatprep.mubr.f32.mxu0 %v9895_v0 }
  0xe3   : > { %6086 = vmatmul.mubr.msk.f32.gmra.mxu1 %vm369_vm2, %v6080_v50  ;;  %6095 = vmatmul.mubr.msk.f32.gmra.mxu0 %vm369_vm2, %v6089_v51 }
  0xe4   : > { %1377 = vmatprep.mubr.f32.mxu1 %v9895_v0  ;;  %1509 = vmatprep.mubr.f32.mxu0 %v9895_v0 }
  0xe7   : > { %6087 = vmatmul.mubr.msk.f32.gmra.mxu1 %vm369_vm2, %v6081_v52  ;;  %6096 = vmatmul.mubr.msk.f32.gmra.mxu0 %vm369_vm2, %v6090_v53 }
  0xe8   : > { %1515 = vmatprep.mubr.f32.mxu0 %v9895_v0  ;;  %1804 = vmatprep.mubr.f32.mxu1 %v9895_v0 }
  0xeb   : > { %6097 = vmatmul.mubr.msk.f32.gmra.mxu0 %vm369_vm2, %v6091_v54 }
  0xec   : > { %1941 = vmatprep.mubr.f32.mxu0 %v9895_v0 }
 0x163   : > { %v465_v55 = vpop.f32.mrf.mxu1  ;;  %v453_v56 = vpop.f32.mrf.mxu0 }
 0x165   : > { %v7193_v57 = vpop.f32.mrf.mxu1  ;;  %v455_v58 = vpop.f32.mrf.mxu0 }
 0x167   : > { %v7195_v59 = vpop.f32.mrf.mxu1  ;;  %v459_v60 = vpop.f32.mrf.mxu0 }
 0x169   : > { %v7197_v61 = vpop.f32.mrf.mxu1  ;;  %v461_v63 = vpop.f32.mrf.mxu0 }
 0x16b   : > { %v560_v62 = vpop.f32.mrf.mxu1 }
 0x16c   : > { %v561_v41 = vadd.f32 %v560_v62, %v453_v56 }
 0x16d   : > { %v562_v2 = vpop.f32.mrf.mxu1 }
 0x16e   : > { %v563_v44 = vadd.f32 %v562_v2, %v455_v58 }
 0x16f   : > { %v566_v1 = vpop.f32.mrf.mxu1  ;;  %v694_v3 = vpop.f32.mrf.mxu0 }
 0x170   : > { %v717_v45 = vadd.f32 %v694_v3, %v561_v41  ;;  %v567_v49 = vadd.f32 %v566_v1, %v459_v60  ;;  %v7219_v3 = vpop.permute.xlu0 %1551 }
 0x171   : > { %v568_v4 = vpop.f32.mrf.mxu1  ;;  %v696_v5 = vpop.f32.mrf.mxu0 }
 0x172   : > { %v718_v50 = vadd.f32 %v696_v5, %v563_v44  ;;  %v569_v54 = vadd.f32 %v568_v4, %v461_v63 }
 0x173   : > { %v572_v6 = vpop.f32.mrf.mxu1  ;;  %v700_v7 = vpop.f32.mrf.mxu0 }
 0x174   : > { %v719_v0 = vadd.f32 %v700_v7, %v567_v49  ;;  %v573_v40 = vadd.f32 %v572_v6, %v465_v55 }
 0x175   : > { %v574_v8 = vpop.f32.mrf.mxu1  ;;  %v702_v9 = vpop.f32.mrf.mxu0 }
 0x176   : > { %v720_v62 = vadd.f32 %v702_v9, %v569_v54  ;;  %v575_v60 = vadd.f32 %v574_v8, %v7193_v57 }
 0x177   : > { %v578_v10 = vpop.f32.mrf.mxu1  ;;  %v706_v11 = vpop.f32.mrf.mxu0 }
 0x178   : > { %v721_v1 = vadd.f32 %v706_v11, %v573_v40  ;;  %v579_v55 = vadd.f32 %v578_v10, %v7195_v59 }
 0x179   : > { %v7199_v12 = vpop.f32.mrf.mxu1  ;;  %v708_v13 = vpop.f32.mrf.mxu0 }
 0x17a   : > { %v722_v6 = vadd.f32 %v708_v13, %v575_v60  ;;  %v581_v40 = vadd.f32 %v7199_v12, %v7197_v61 }
 0x17b   : > { %v7201_v14 = vpop.f32.mrf.mxu0  ;;  %v832_v15 = vpop.f32.mrf.mxu1 }
 0x17c   : > { %v855_v51 = vadd.f32 %v832_v15, %v717_v45  ;;  %v723_v57 = vadd.f32 %v7201_v14, %v579_v55 }
 0x17d   : > { %v7203_v16 = vpop.f32.mrf.mxu0  ;;  %v834_v17 = vpop.f32.mrf.mxu1 }
 0x17e   : > { %v856_v46 = vadd.f32 %v834_v17, %v718_v50 }
 0x17f   : > { %v838_v18 = vpop.f32.mrf.mxu1  ;;  %v953_v19 = vpop.f32.mrf.mxu0 }
 0x180   : > { %v976_v30 = vadd.f32 %v953_v19, %v855_v51 }
 0x181   : > { %v840_v20 = vpop.f32.mrf.mxu1  ;;  %v955_v21 = vpop.f32.mrf.mxu0 }
 0x182   : > { %v977_v58 = vadd.f32 %v955_v21, %v856_v46  ;;  %v858_v41 = vadd.f32 %v840_v20, %v720_v62  ;;  %v1547_v21 = vpop.permute.xlu1 %1546 }
 0x183   : > { %v844_v22 = vpop.f32.mrf.mxu1  ;;  %v959_v23 = vpop.f32.mrf.mxu0 }
 0x184   : > { %v859_v17 = vadd.f32 %v844_v22, %v721_v1  ;;  %v1537_v22 = vpop.permute.xlu0 %1536 }
 0x185   : > { %v846_v24 = vpop.f32.mrf.mxu1  ;;  %v961_v25 = vpop.f32.mrf.mxu0 }
 0x186   : > { %v860_v8 = vadd.f32 %v846_v24, %v722_v6 }
 0x187   : > { %v7205_v26 = vpop.f32.mrf.mxu1  ;;  %v965_v27 = vpop.f32.mrf.mxu0 }
 0x188   : > { %v980_v11 = vadd.f32 %v965_v27, %v859_v17 }
 0x189   : > { %v7207_v28 = vpop.f32.mrf.mxu1  ;;  %v7209_v29 = vpop.f32.mrf.mxu0 }
 0x18b   : > { %v7211_v32 = vpop.f32.mrf.mxu0  ;;  %v1091_v33 = vpop.f32.mrf.mxu1 }
 0x18c   : > { %v1114_v2 = vadd.f32 %v1091_v33, %v976_v30 }
 0x18d   : > { %v7213_v34 = vpop.f32.mrf.mxu0  ;;  %v1093_v35 = vpop.f32.mrf.mxu1 }
 0x18e   : > { %9952 = vst [vmem:[#allocation12_spill] sm:$0xff] %v7213_v34  ;;  %v857_v34 = vadd.f32 %v838_v18, %v719_v0  ;;  %v1115_v4 = vadd.f32 %v1093_v35, %v977_v58  ;;  %v979_v0 = vadd.f32 %v961_v25, %v858_v41  ;;  %v724_v25 = vadd.f32 %v7203_v16, %v581_v40 }
 0x18f   : > { %v1097_v36 = vpop.f32.mrf.mxu1  ;;  %v1229_v37 = vpop.f32.mrf.mxu0  ;;  %v981_v35 = vadd.f32 %v7209_v29, %v860_v8 }
 0x190   : > { %v978_v63 = vadd.f32 %v959_v23, %v857_v34  ;;  %v1252_v7 = vadd.f32 %v1229_v37, %v1114_v2  ;;  %v861_v34 = vadd.f32 %v7205_v26, %v723_v57  ;;  %v1542_v29 = vpop.permute.xlu1 %1541 }
 0x191   : > { %v1099_v38 = vpop.f32.mrf.mxu1  ;;  %v1231_v39 = vpop.f32.mrf.mxu0 }
 0x192   : > { %v1116_v46 = vadd.f32 %v1097_v36, %v978_v63  ;;  %v1253_v30 = vadd.f32 %v1231_v39, %v1115_v4  ;;  %v1117_v33 = vadd.f32 %v1099_v38, %v979_v0  ;;  %v862_v39 = vadd.f32 %v7207_v28, %v724_v25 }
 0x193   : > { %v1103_v42 = vpop.f32.mrf.mxu1  ;;  %v1235_v43 = vpop.f32.mrf.mxu0  ;;  %v982_v38 = vadd.f32 %v7211_v32, %v861_v34 }
 0x194   : > { %v1254_v59 = vadd.f32 %v1235_v43, %v1116_v46  ;;  %v1118_v36 = vadd.f32 %v1103_v42, %v980_v11 }
 0x195   : > { %v1105_v47 = vpop.f32.mrf.mxu1  ;;  %v1237_v48 = vpop.f32.mrf.mxu0  ;;  %v9953_v51 = vld [vmem:[#allocation12_spill] sm:$0xff] }
 0x196   : > { %v1255_v12 = vadd.f32 %v1237_v48, %v1117_v33  ;;  %v1119_v43 = vadd.f32 %v1105_v47, %v981_v35  ;;  %v983_v54 = vadd.f32 %v9953_v51, %v862_v39  ;;  %v6507_v33 = vpop.permute.xlu1 %6506 }
 0x197   : > { %v7215_v52 = vpop.f32.mrf.mxu1  ;;  %v1241_v53 = vpop.f32.mrf.mxu0  ;;  %v6509_v39 = vunpack.i.h.bf16 %v6507_v33 }
 0x198   : > { %v1256_v44 = vadd.f32 %v1241_v53, %v1118_v36  ;;  %v1120_v48 = vadd.f32 %v7215_v52, %v982_v38 }
 0x199   : > { %v7217_v31 = vpop.f32.mrf.mxu1  ;;  %v1243_v56 = vpop.f32.mrf.mxu0 }
 0x19a   : > { %v1257_v62 = vadd.f32 %v1243_v56, %v1119_v43  ;;  %v1121_v60 = vadd.f32 %v7217_v31, %v983_v54 }
 0x19b   : > { %v1247_v5 = vpop.f32.mrf.mxu0  ;;  %v1361_v15 = vpop.f32.mrf.mxu1 }
 0x19c   : > { %v1384_v18 = vadd.f32 %v1361_v15, %v1252_v7  ;;  %v1258_v41 = vadd.f32 %v1247_v5, %v1120_v48 }
 0x19d   : > { %v1249_v19 = vpop.f32.mrf.mxu0  ;;  %v1363_v9 = vpop.f32.mrf.mxu1 }
 0x19e   : > { %v1385_v10 = vadd.f32 %v1363_v9, %v1253_v30  ;;  %v1259_v52 = vadd.f32 %v1249_v19, %v1121_v60 }
 0x19f   : > { %v1367_v20 = vpop.f32.mrf.mxu1  ;;  %v1499_v23 = vpop.f32.mrf.mxu0 }
 0x1a0   : > { %v1522_v13 = vadd.f32 %v1499_v23, %v1384_v18  ;;  %v1386_v14 = vadd.f32 %v1367_v20, %v1254_v59  ;;  %v7360_v59 = vpop.permute.xlu1 %6516 }
 0x1a1   : > { %v1369_v37 = vpop.f32.mrf.mxu1  ;;  %v1501_v61 = vpop.f32.mrf.mxu0 }
 0x1a2   : > { %v1554_v24 = vadd.f32 %v1537_v22, %v1522_v13  ;;  %v1523_v27 = vadd.f32 %v1501_v61, %v1385_v10  ;;  %v1387_v26 = vadd.f32 %v1369_v37, %v1255_v12  ;;  %v6512_v10 = vpop.permute.xlu0 %6511 }
 0x1a3   : > { %v1373_v45 = vpop.f32.mrf.mxu1  ;;  %v1505_v49 = vpop.f32.mrf.mxu0 }
 0x1a4   : > { %v7231_v16 = vmax.f32 %v1554_v24, 0.0  ;;  %v1555_v50 = vadd.f32 %v1537_v22, %v1523_v27  ;;  %v1524_v42 = vadd.f32 %v1505_v49, %v1386_v14  ;;  %v1388_v32 = vadd.f32 %v1373_v45, %v1256_v44 }
 0x1a5   : > { %v1375_v58 = vpop.f32.mrf.mxu1  ;;  %v1507_v2 = vpop.f32.mrf.mxu0  ;;  %v6508_v24 = vunpack.i.l.bf16 %v6507_v33  ;;  %v6514_v49 = vunpack.i.h.bf16 %v6512_v10 }
 0x1a6   : > { %v7235_v28 = vmax.f32 %v1555_v50, 0.0  ;;  %v1556_v47 = vadd.f32 %v1542_v29, %v1524_v42  ;;  %v1525_v53 = vadd.f32 %v1507_v2, %v1387_v26  ;;  %1677 = vrot.lane.b32.xlu1 %v7231_v16, %s6789_s15  ;;  %v1389_v63 = vadd.f32 %v1375_v58, %v1257_v62  ;;  %v6098_v62 = vld [vmem:[%s9890_s3 + $0x40] sm:$0xff] }
 0x1a7   : > { %v1379_v1 = vpop.f32.mrf.mxu1  ;;  %v1511_v15 = vpop.f32.mrf.mxu0  ;;  %v6513_v26 = vunpack.i.l.bf16 %v6512_v10  ;;  %v6519_v10 = vunpack.i.h.bf16 %v7360_v59 }
 0x1a8   : > { %v1557_v4 = vadd.f32 %v1542_v29, %v1525_v53  ;;  %v1526_v7 = vadd.f32 %v1511_v15, %v1388_v32  ;;  %1679 = vrot.lane.b32.xlu0 %v7235_v28, %s6789_s15  ;;  %v7242_v56 = vmax.f32 %v1556_v47, 0.0  ;;  %v1390_v9 = vadd.f32 %v1379_v1, %v1258_v41  ;;  %v6099_v47 = vld [vmem:[%s9890_s3 + $0x48] sm:$0xff]  ;;  %v6100_v1 = vld [vmem:[%s9890_s3 + $0x50] sm:$0xff] }
 0x1a9   : > { %v1381_v55 = vpop.f32.mrf.mxu1  ;;  %v1513_v6 = vpop.f32.mrf.mxu0 }
 0x1aa   : > { %v7244_v17 = vmax.f32 %v1557_v4, 0.0  ;;  %v1558_v0 = vadd.f32 %v1547_v21, %v1526_v7  ;;  %v1527_v46 = vadd.f32 %v1513_v6, %v1389_v63  ;;  %v1391_v30 = vadd.f32 %v1381_v55, %v1259_v52  ;;  %v3435_v63 = vld [vmem:[%s9891_s4 + $0x38] sm:$0xff]  ;;  %v3434_v7 = vld [vmem:[%s9891_s4 + $0x30] sm:$0xff]  ;;  %v3433_v6 = vld [vmem:[%s9891_s4 + $0x28] sm:$0xff] }
 0x1ab   : > { %v1517_v31 = vpop.f32.mrf.mxu0  ;;  %v6101_v4 = vld [vmem:[%s9890_s3 + $0x58] sm:$0xff] }
 0x1ac   : > { %v1559_v18 = vadd.f32 %v1547_v21, %v1527_v46  ;;  %v1528_v5 = vadd.f32 %v1517_v31, %v1390_v9  ;;  %1683 = vrot.lane.b32.xlu0 %v7242_v56, %s6789_s15  ;;  %1685 = vrot.lane.b32.xlu1 %v7244_v17, %s6789_s15  ;;  %v7250_v40 = vmax.f32 %v1558_v0, 0.0  ;;  %v6102_v9 = vld [vmem:[%s9890_s3 + $0x60] sm:$0xff] }
 0x1ad   : > { %v1519_v19 = vpop.f32.mrf.mxu0  ;;  %v3432_v0 = vld [vmem:[%s9891_s4 + $0x20] sm:$0xff] }
 0x1ae   : > { %v7252_v57 = vmax.f32 %v1559_v18, 0.0  ;;  %v1560_v8 = vadd.f32 %v7219_v3, %v1528_v5  ;;  %v1529_v11 = vadd.f32 %v1519_v19, %v1391_v30  ;;  %v3431_v18 = vld [vmem:[%s9891_s4 + $0x18] sm:$0xff]  ;;  %v6103_v5 = vld [vmem:[%s9890_s3 + $0x68] sm:$0xff]  ;;  %v6518_v19 = vunpack.i.l.bf16 %v7360_v59 }
 0x1b0   : > { %1689 = vrot.lane.b32.xlu0 %v7250_v40, %s6789_s15  ;;  %1691 = vrot.lane.b32.xlu1 %v7252_v57, %s6789_s15  ;;  %v7259_v21 = vmax.f32 %v1560_v8, 0.0  ;;  %v1561_v20 = vadd.f32 %v7219_v3, %v1529_v11  ;;  %v9954_v3 = vmov 0.0  }
 0x1b2   : > { %v7266_v23 = vmax.f32 %v1561_v20, 0.0 }
 0x1b4   : > { %1624 = vrot.lane.b32.xlu0 %v7250_v40, %s6790_s16  ;;  %1695 = vrot.lane.b32.xlu1 %v7259_v21, %s6789_s15 }
 0x1b8   : > { %1697 = vrot.lane.b32.xlu0 %v7266_v23, %s6789_s15  ;;  %1626 = vrot.lane.b32.xlu1 %v7252_v57, %s6790_s16 }
 0x1bc   : > { %2010 = vrot.lane.b32.xlu0 %v7259_v21, %s6791_s17  ;;  %1630 = vrot.lane.b32.xlu1 %v7259_v21, %s6790_s16 }
 0x1c0   : > { %6521 = vrot.lane.b32.xlu0 %v9954_v3, %s6791_s17  ;;  %1618 = vrot.lane.b32.xlu1 %v7242_v56, %s6790_s16 }
 0x1c4   : > { %1620 = vrot.lane.b32.xlu0 %v7244_v17, %s6790_s16  ;;  %2004 = vrot.lane.b32.xlu1 %v7250_v40, %s6791_s17 }
 0x1c8   : > { %2006 = vrot.lane.b32.xlu0 %v7252_v57, %s6791_s17  ;;  %6526 = vrot.lane.b32.xlu1 %v9954_v3, %s6790_s16 }
 0x1cc   : > { %1612 = vrot.lane.b32.xlu0 %v7231_v16, %s6790_s16  ;;  %1614 = vrot.lane.b32.xlu1 %v7235_v28, %s6790_s16 }
 0x1d0   : > { %1998 = vrot.lane.b32.xlu0 %v7242_v56, %s6791_s17  ;;  %2000 = vrot.lane.b32.xlu1 %v7244_v17, %s6791_s17 }
 0x1d4   : > { %1632 = vrot.lane.b32.xlu0 %v7266_v23, %s6790_s16  ;;  %2012 = vrot.lane.b32.xlu1 %v7266_v23, %s6791_s17 }
 0x1d8   : > { %6531 = vrot.lane.b32.xlu0 %v9954_v3, %s6791_s17  ;;  %1992 = vrot.lane.b32.xlu1 %v7231_v16, %s6791_s17 }
 0x1dc   : > { %1994 = vrot.lane.b32.xlu0 %v7235_v28, %s6791_s17  ;;  %2220 = vrot.lane.b32.xlu1 %v7259_v21, %s6792_s18 }
 0x1e0   : > { %2214 = vrot.lane.b32.xlu0 %v7250_v40, %s6792_s18  ;;  %6536 = vrot.lane.b32.xlu1 %v9954_v3, %s6792_s18 }
 0x1e4   : > { %2208 = vrot.lane.b32.xlu0 %v7242_v56, %s6792_s18  ;;  %2216 = vrot.lane.b32.xlu1 %v7252_v57, %s6792_s18 }
 0x1e8   : > { %6541 = vrot.lane.b32.xlu0 %v9954_v3, %s6792_s18  ;;  %2210 = vrot.lane.b32.xlu1 %v7244_v17, %s6792_s18 }
 0x1ec   : > { %2204 = vrot.lane.b32.xlu0 %v7235_v28, %s6792_s18  ;;  %2202 = vrot.lane.b32.xlu1 %v7231_v16, %s6792_s18 }
 0x1f0   : > { %6546 = vrot.lane.b32.xlu0 %v9954_v3, %s6793_s19  ;;  %2614 = vrot.lane.b32.xlu1 %v7259_v21, %s6793_s19 }
 0x1f4   : > { %2222 = vrot.lane.b32.xlu0 %v7266_v23, %s6792_s18  ;;  %2608 = vrot.lane.b32.xlu1 %v7250_v40, %s6793_s19 }
 0x1f8   : > { %2610 = vrot.lane.b32.xlu0 %v7252_v57, %s6793_s19  ;;  %2604 = vrot.lane.b32.xlu1 %v7244_v17, %s6793_s19 }
 0x1fc   : > { %6551 = vrot.lane.b32.xlu0 %v9954_v3, %s6794_s20  ;;  %2820 = vrot.lane.b32.xlu1 %v7252_v57, %s6794_s20 }
 0x200   : > { %2824 = vrot.lane.b32.xlu0 %v7259_v21, %s6794_s20  ;;  %2818 = vrot.lane.b32.xlu1 %v7250_v40, %s6794_s20 }
 0x204   : > { %6556 = vrot.lane.b32.xlu0 %v9954_v3, %s6793_s19  ;;  %2814 = vrot.lane.b32.xlu1 %v7244_v17, %s6794_s20 }
 0x208   : > { %2602 = vrot.lane.b32.xlu0 %v7242_v56, %s6793_s19  ;;  %2596 = vrot.lane.b32.xlu1 %v7231_v16, %s6793_s19 }
 0x20c   : > { %2598 = vrot.lane.b32.xlu0 %v7235_v28, %s6793_s19  ;;  %2808 = vrot.lane.b32.xlu1 %v7235_v28, %s6794_s20 }
 0x210   : > { %6561 = vrot.lane.b32.xlu0 %v9954_v3, %s6794_s20  ;;  %2616 = vrot.lane.b32.xlu1 %v7266_v23, %s6793_s19 }
 0x214   : > { %2812 = vrot.lane.b32.xlu0 %v7242_v56, %s6794_s20  ;;  %2826 = vrot.lane.b32.xlu1 %v7266_v23, %s6794_s20 }
 0x218   : > { %2806 = vrot.lane.b32.xlu0 %v7231_v16, %s6794_s20  ;;  %3043 = vrot.lane.b32.xlu1 %v7259_v21, %s6795_s21  ;;  %v1678_v13 = vpop.permute.xlu1 %1677 }
 0x219   : > { %v1699_v58 = vsel %vm366_vm0, %v6514_v49, %v1678_v13 }
 0x21a   : > { %v1680_v22 = vpop.permute.xlu0 %1679 }
 0x21b   : > { %v1700_v48 = vsel %vm366_vm0, %v1678_v13, %v1680_v22 }
 0x21c   : > { %6566 = vrot.lane.b32.xlu0 %v9954_v3, %s6795_s21  ;;  %3037 = vrot.lane.b32.xlu1 %v7250_v40, %s6795_s21 }
 0x21e   : > { %v1686_v25 = vpop.permute.xlu1 %1685  ;;  %v1684_v34 = vpop.permute.xlu0 %1683 }
 0x21f   : > { %v1702_v29 = vsel %vm366_vm0, %v1684_v34, %v1686_v25  ;;  %v1701_v42 = vsel %vm366_vm0, %v6513_v26, %v1684_v34 }
 0x220   : > { %3039 = vrot.lane.b32.xlu0 %v7252_v57, %s6795_s21  ;;  %3033 = vrot.lane.b32.xlu1 %v7244_v17, %s6795_s21 }
 0x222   : > { %v1692_v35 = vpop.permute.xlu1 %1691  ;;  %v1690_v36 = vpop.permute.xlu0 %1689 }
 0x223   : > { %v1704_v44 = vsel %vm366_vm0, %v1690_v36, %v1692_v35  ;;  %v1703_v50 = vsel %vm366_vm0, %v6509_v39, %v1690_v36  ;;  %v3429_v39 = vld [vmem:[%s9891_s4 + $0x8] sm:$0xff] }
 0x224   : > { %6571 = vrot.lane.b32.xlu0 %v9954_v3, %s6796_s22  ;;  %3232 = vrot.lane.b32.xlu1 %v7252_v57, %s6796_s22 }
 0x226   : > { %v1696_v37 = vpop.permute.xlu1 %1695  ;;  %v7382_v61 = vpop.permute.xlu0 %1624 }
 0x227   : > { %v1705_v38 = vsel %vm366_vm0, %v6508_v24, %v1696_v37 }
 0x228   : > { %3236 = vrot.lane.b32.xlu0 %v7259_v21, %s6796_s22  ;;  %3230 = vrot.lane.b32.xlu1 %v7250_v40, %s6796_s22 }
 0x22a   : > { %v7388_v12 = vpop.permute.xlu1 %1626  ;;  %v1698_v14 = vpop.permute.xlu0 %1697 }
 0x22b   : > { %v1706_v27 = vsel %vm366_vm0, %v1696_v37, %v1698_v14  ;;  %v1639_v13 = vsel %vm344_vm3, %v7382_v61, %v7388_v12 }
 0x22c   : > { %6576 = vrot.lane.b32.xlu0 %v9954_v3, %s6795_s21  ;;  %3226 = vrot.lane.b32.xlu1 %v7244_v17, %s6796_s22 }
 0x22d   : > { %1764 = vmatprep.subr.mxu1 %v1706_v27  ;;  %v3430_v27 = vld [vmem:[%s9891_s4 + $0x10] sm:$0xff] }
 0x22e   : > { %1765 = vmatpush1.msra.mxu1 %v1705_v38  ;;  %v7396_v43 = vpop.permute.xlu1 %1630  ;;  %v7399_v45 = vpop.permute.xlu0 %2010  ;;  %v1638_v38 = vsel %vm344_vm3, %v6519_v10, %v7382_v61 }
 0x22f   : > { %1766 = vmatprep.subr.mxu1 %v1704_v44  ;;  %v1640_v33 = vsel %vm344_vm3, %v6518_v19, %v7396_v43  ;;  %v6104_v44 = vld [vmem:[%s9890_s3 + $0x70] sm:$0xff] }
 0x230   : > { %1767 = vmatpush1.msra.mxu1 %v1703_v50  ;;  %3031 = vrot.lane.b32.xlu0 %v7242_v56, %s6795_s21  ;;  %v1664_v19 = vld [vmem:[%s9890_s3 + $0x30] sm:$0xff] }
 0x231   : > { %3045 = vrot.lane.b32.xlu1 %v7266_v23, %s6795_s21  ;;  %1768 = vmatprep.subr.mxu1 %v1702_v29 }
 0x232   : > { %1769 = vmatpush1.msra.mxu1 %v1701_v42  ;;  %v7408_v51 = vpop.permute.xlu1 %1618  ;;  %v7410_v54 = vpop.permute.xlu0 %6521 }
 0x233   : > { %1770 = vmatprep.subr.mxu1 %v1700_v48  ;;  %v6523_v46 = vunpack.i.l.bf16 %v7410_v54  ;;  %v6524_v22 = vunpack.i.h.bf16 %v7410_v54 }
 0x234   : > { %1771 = vmatpush1.msra.mxu1 %v1699_v58  ;;  %3027 = vrot.lane.b32.xlu0 %v7235_v28, %s6795_s21  ;;  %v6105_v58 = vld [vmem:[%s9890_s3 + $0x78] sm:$0xff] }
 0x235   : > { %3238 = vrot.lane.b32.xlu1 %v7266_v23, %s6796_s22  ;;  %6106 = vmatmul.mubr.msk.f32.vlgmr.msra.gmra.mxu1 %vm1715_vm14, %v6098_v62  ;;  %v2020_v35 = vsel %vm598_vm6, %v6523_v46, %v7399_v45  ;;  %v3428_v62 = vld [vmem:[%s9891_s4] sm:$0xff] }
 0x236   : > { %v7422_v2 = vpop.permute.xlu1 %2004  ;;  %v7424_v32 = vpop.permute.xlu0 %1620  ;;  %1810 = vmatprep.mubr.f32.mxu1 %v9954_v3 }
 0x237   : > { %v1637_v61 = vsel %vm344_vm3, %v7408_v51, %v7424_v32  ;;  %v1658_v32 = vld [vmem:[%s9890_s3] sm:$0xff] }
 0x238   : > { %6581 = vrot.lane.b32.xlu0 %v9954_v3, %s6796_s22 }
 0x239   : > { %3025 = vrot.lane.b32.xlu1 %v7231_v16, %s6795_s21  ;;  %6107 = vmatmul.mubr.msk.f32.gmra.mxu1 %vm1715_vm14, %v6099_v47 }
 0x23a   : > { %v7435_v53 = vpop.permute.xlu1 %6526  ;;  %v2007_v60 = vpop.permute.xlu0 %2006  ;;  %1816 = vmatprep.mubr.f32.mxu1 %v9954_v3 }
 0x23b   : > { %v6528_v14 = vunpack.i.l.bf16 %v7435_v53  ;;  %v2019_v59 = vsel %vm598_vm6, %v7422_v2, %v2007_v60 }
 0x23c   : > { %3224 = vrot.lane.b32.xlu0 %v7242_v56, %s6796_s22 }
 0x23d   : > { %3220 = vrot.lane.b32.xlu1 %v7235_v28, %s6796_s22  ;;  %6108 = vmatmul.mubr.msk.f32.gmra.mxu1 %vm1715_vm14, %v6100_v1  ;;  %v1636_v42 = vsel %vm344_vm3, %v6528_v14, %v7408_v51  ;;  %v6130_v1 = vld [vmem:[%s9890_s3 + $0x80] sm:$0xff] }
 0x23e   : > { %v7446_v15 = vpop.permute.xlu1 %1614  ;;  %v7448_v41 = vpop.permute.xlu0 %1612  ;;  %1822 = vmatprep.mubr.f32.mxu1 %v9954_v3 }
 0x23f   : > { %v1635_v48 = vsel %vm344_vm3, %v7448_v41, %v7446_v15  ;;  %v1659_v15 = vld [vmem:[%s9890_s3 + $0x8] sm:$0xff] }
 0x240   : > { %3218 = vrot.lane.b32.xlu0 %v7231_v16, %s6796_s22 }
 0x241   : > { %3473 = vperm.xlu1 %6504, %v3435_v63   ;;  %6109 = vmatmul.mubr.msk.f32.gmra.mxu1 %vm1715_vm14, %v6101_v4  ;;  %v6131_v4 = vld [vmem:[%s9890_s3 + $0x88] sm:$0xff] }
 0x242   : > { %v2001_v52 = vpop.permute.xlu1 %2000  ;;  %v1999_v55 = vpop.permute.xlu0 %1998  ;;  %1828 = vmatprep.mubr.f32.mxu1 %v9954_v3 }
 0x243   : > { %v2017_v29 = vsel %vm598_vm6, %v1999_v55, %v2001_v52 }
 0x244   : > { %3468 = vperm.xlu0 %6503, %v3434_v7  }
 0x245   : > { %3463 = vperm.xlu1 %6504, %v3433_v6   ;;  %6110 = vmatmul.mubr.msk.f32.gmra.mxu1 %vm1715_vm14, %v6102_v9  ;;  %v6134_v6 = vld [vmem:[%s9890_s3 + $0xa0] sm:$0xff] }
 0x246   : > { %v2013_v31 = vpop.permute.xlu1 %2012  ;;  %v1633_v30 = vpop.permute.xlu0 %1632  ;;  %1834 = vmatprep.mubr.f32.mxu1 %v9954_v3 }
 0x247   : > { %v2021_v8 = vsel %vm598_vm6, %v7399_v45, %v2013_v31  ;;  %v1641_v11 = vsel %vm344_vm3, %v7396_v43, %v1633_v30  ;;  %v2018_v43 = vsel %vm598_vm6, %v6524_v22, %v7422_v2  ;;  %v6529_v45 = vunpack.i.h.bf16 %v7435_v53 }
 0x248   : > { %3458 = vperm.xlu0 %6503, %v3432_v0   ;;  %6114 = vmatprep.subr.msk.mxu0 %vm6945_vm5, %v1641_v11  ;;  %v1663_v0 = vld [vmem:[%s9890_s3 + $0x28] sm:$0xff] }
 0x249   : > { %3453 = vperm.xlu1 %6504, %v3431_v18   ;;  %6111 = vmatmul.mubr.msk.f32.gmra.mxu1 %vm1715_vm14, %v6103_v5  ;;  %v1634_v51 = vsel %vm344_vm3, %v6529_v45, %v7448_v41  ;;  %v6135_v5 = vld [vmem:[%s9890_s3 + $0xa8] sm:$0xff] }
 0x24a   : > { %6138 = vmatprep.subr.msk.mxu1 %vm6966_vm7, %v2021_v8  ;;  %6115 = vmatpush1.msk.msra.mxu0 %vm6941_vm4, %v1640_v33  ;;  %v1993_v36 = vpop.permute.xlu1 %1992  ;;  %v6532_v37 = vpop.permute.xlu0 %6531 }
 0x24b   : > { %6139 = vmatpush1.msk.msra.mxu1 %vm6982_vm8, %v2020_v35  ;;  %6116 = vmatprep.subr.msk.mxu0 %vm6945_vm5, %v1639_v13  ;;  %v6533_v12 = vunpack.i.l.bf16 %v6532_v37  ;;  %v6534_v54 = vunpack.i.h.bf16 %v6532_v37  ;;  %v6136_v35 = vld [vmem:[%s9890_s3 + $0xb0] sm:$0xff]  ;;  %v1665_v37 = vld [vmem:[%s9890_s3 + $0x38] sm:$0xff] }
 0x24c   : > { %6140 = vmatprep.subr.msk.mxu1 %vm6966_vm7, %v2019_v59  ;;  %1840 = vmatprep.mubr.f32.mxu1 %v9954_v3 }
 0x24d   : > { %6117 = vmatpush1.msk.msra.mxu0 %vm6941_vm4, %v1638_v38  ;;  %6141 = vmatpush1.msk.msra.mxu1 %vm6982_vm8, %v2018_v43  ;;  %v2016_v50 = vsel %vm598_vm6, %v6533_v12, %v1999_v55  ;;  %v2014_v60 = vsel %vm598_vm6, %v6534_v54, %v1993_v36  ;;  %v6137_v43 = vld [vmem:[%s9890_s3 + $0xb8] sm:$0xff]  ;;  %v6156_v54 = vld [vmem:[%s9890_s3 + $0xd0] sm:$0xff] }
 0x24e   : > { %3448 = vperm.xlu0 %6503, %v3430_v27   ;;  %3443 = vperm.xlu1 %6504, %v3429_v39   ;;  %v7534_v49 = vpop.permute.xlu1 %2220  ;;  %v1995_v26 = vpop.permute.xlu0 %1994 }
 0x24f   : > { %6112 = vmatmul.mubr.msk.f32.gmra.mxu1 %vm1715_vm14, %v6104_v44  ;;  %6118 = vmatprep.subr.msk.mxu0 %vm6945_vm5, %v1637_v61  ;;  %v2015_v2 = vsel %vm598_vm6, %v1993_v36, %v1995_v26  ;;  %v6154_v44 = vld [vmem:[%s9890_s3 + $0xc0] sm:$0xff]  ;;  %v6155_v26 = vld [vmem:[%s9890_s3 + $0xc8] sm:$0xff] }
 0x250   : > { %6142 = vmatprep.subr.msk.mxu1 %vm6966_vm7, %v2017_v29  ;;  %6119 = vmatpush1.msk.msra.mxu0 %vm6941_vm4, %v1636_v42  ;;  %v6179_v42 = vld [vmem:[%s9890_s3 + $0x108] sm:$0xff] }
 0x251   : > { %6120 = vmatprep.subr.msk.mxu0 %vm6945_vm5, %v1635_v48  ;;  %6143 = vmatpush1.msk.msra.mxu1 %vm6982_vm8, %v2016_v50 }
 0x252   : > { %1846 = vmatprep.mubr.f32.mxu1 %v9954_v3  ;;  %6121 = vmatpush1.msk.msra.mxu0 %vm6941_vm4, %v1634_v51  ;;  %v7569_v47 = vpop.permute.xlu1 %6536  ;;  %v7571_v53 = vpop.permute.xlu0 %2214  ;;  %v6157_v51 = vld [vmem:[%s9890_s3 + $0xd8] sm:$0xff] }
 0x253   : > { %3438 = vperm.xlu0 %6503, %v3428_v62   ;;  %6113 = vmatmul.mubr.msk.f32.gmra.mxu1 %vm1715_vm14, %v6105_v58  ;;  %v6538_v9 = vunpack.i.l.bf16 %v7569_v47  ;;  %v6539_v18 = vunpack.i.h.bf16 %v7569_v47  ;;  %v6180_v58 = vld [vmem:[%s9890_s3 + $0x110] sm:$0xff]  ;;  %v6181_v47 = vld [vmem:[%s9890_s3 + $0x118] sm:$0xff] }
 0x254   : > { %6122 = vmatmul.mubr.msk.f32.vlgmr.msra.gmra.mxu0 %vm1715_vm14, %v1658_v32  ;;  %6144 = vmatprep.subr.msk.mxu1 %vm6966_vm7, %v2015_v2 }
 0x255   : > { %6145 = vmatpush1.msk.msra.mxu1 %vm6982_vm8, %v2014_v60  ;;  %1947 = vmatprep.mubr.f32.mxu0 %v9954_v3  ;;  %v2230_v8 = vsel %vm736_vm9, %v6538_v9, %v7534_v49  ;;  %v2228_v22 = vsel %vm736_vm9, %v6539_v18, %v7571_v53  ;;  %v6158_v60 = vld [vmem:[%s9890_s3 + $0xe0] sm:$0xff]  ;;  %v6160_v9 = vld [vmem:[%s9890_s3 + $0xf0] sm:$0xff] }
 0x256   : > { %2467 = vmatprep.subr.mxu1 %v7266_v23  ;;  %2135 = vmatprep.mubr.f32.mxu1 %v9954_v3  ;;  %v2217_v41 = vpop.permute.xlu1 %2216  ;;  %v7589_v63 = vpop.permute.xlu0 %2208  ;;  %v1660_v23 = vld [vmem:[%s9890_s3 + $0x10] sm:$0xff] }
 0x257   : > { %6146 = vmatmul.mubr.msk.f32.vlgmr.msra.gmra.mxu1 %vm1715_vm14, %v6130_v1  ;;  %v2229_v11 = vsel %vm736_vm9, %v7571_v53, %v2217_v41  ;;  %6591 = vrot.lane.b32.xlu0 %v9954_v3, %s6789_s15 }
 0x258   : > { %6123 = vmatmul.mubr.msk.f32.gmra.mxu0 %vm1715_vm14, %v1659_v15  ;;  %2468 = vmatpush1.msra.mxu1 %v7259_v21 }
 0x259   : > { %2469 = vmatprep.subr.mxu1 %v7252_v57  ;;  %1953 = vmatprep.mubr.f32.mxu0 %v9954_v3  ;;  %v6132_v57 = vld [vmem:[%s9890_s3 + $0x90] sm:$0xff] }
 0x25a   : > { %2470 = vmatpush1.msra.mxu1 %v7250_v40  ;;  %2141 = vmatprep.mubr.f32.mxu1 %v9954_v3  ;;  %v2211_v7 = vpop.permute.xlu1 %2210  ;;  %v7604_v52 = vpop.permute.xlu0 %6541  ;;  %v1661_v40 = vld [vmem:[%s9890_s3 + $0x18] sm:$0xff] }
 0x25b   : > { %2471 = vmatprep.subr.mxu1 %v7244_v17  ;;  %6147 = vmatmul.mubr.msk.f32.gmra.mxu1 %vm1715_vm14, %v6131_v4  ;;  %v6543_v33 = vunpack.i.l.bf16 %v7604_v52  ;;  %v2227_v36 = vsel %vm736_vm9, %v7589_v63, %v2211_v7  ;;  %v6544_v14 = vunpack.i.h.bf16 %v7604_v52 }
 0x25c   : > { %6124 = vmatmul.mubr.msk.f32.gmra.mxu0 %vm1715_vm14, %v1660_v23  ;;  %2472 = vmatpush1.msra.mxu1 %v7242_v56  ;;  %v6182_v23 = vld [vmem:[%s9890_s3 + $0x120] sm:$0xff] }
 0x25d   : > { %2473 = vmatprep.subr.mxu1 %v7235_v28  ;;  %1959 = vmatprep.mubr.f32.mxu0 %v9954_v3  ;;  %v6133_v28 = vld [vmem:[%s9890_s3 + $0x98] sm:$0xff]  ;;  %v2226_v59 = vsel %vm736_vm9, %v6543_v33, %v7589_v63  ;;  %v6184_v33 = vld [vmem:[%s9890_s3 + $0x130] sm:$0xff] }
 0x25e   : > { %2474 = vmatpush1.msra.mxu1 %v7231_v16  ;;  %2147 = vmatprep.mubr.f32.mxu1 %v9954_v3  ;;  %v2203_v17 = vpop.permute.xlu1 %2202  ;;  %v2205_v21 = vpop.permute.xlu0 %2204  ;;  %v1662_v16 = vld [vmem:[%s9890_s3 + $0x20] sm:$0xff] }
 0x25f   : > { %6148 = vmatmul.mubr.msk.f32.gmra.mxu1 %vm1715_vm14, %v6132_v57  ;;  %v2225_v39 = vsel %vm736_vm9, %v2203_v17, %v2205_v21  ;;  %v2224_v38 = vsel %vm736_vm9, %v6544_v14, %v2203_v17  ;;  %v6159_v57 = vld [vmem:[%s9890_s3 + $0xe8] sm:$0xff]  ;;  %6601 = vrot.lane.b32.xlu0 %v9954_v3, %s6789_s15 }
 0x260   : > { %6125 = vmatmul.mubr.msk.f32.gmra.mxu0 %vm1715_vm14, %v1661_v40  ;;  %2153 = vmatprep.mubr.f32.mxu1 %v9954_v3 }
 0x261   : > { %1965 = vmatprep.mubr.f32.mxu0 %v9954_v3  ;;  %6586 = vrot.lane.b32.xlu1 %v9954_v3, %s6789_s15 }
 0x262   : > { %v7630_v56 = vpop.permute.xlu1 %2614  ;;  %v7632_v55 = vpop.permute.xlu0 %6546 }
 0x263   : > { %6149 = vmatmul.mubr.msk.f32.gmra.mxu1 %vm1715_vm14, %v6133_v28  ;;  %v6548_v53 = vunpack.i.l.bf16 %v7632_v55  ;;  %v6549_v4 = vunpack.i.h.bf16 %v7632_v55  ;;  %v6183_v55 = vld [vmem:[%s9890_s3 + $0x128] sm:$0xff]  ;;  %6611 = vrot.lane.b32.xlu0 %v9954_v3, %s6791_s17 }
 0x264   : > { %6126 = vmatmul.mubr.msk.f32.gmra.mxu0 %vm1715_vm14, %v1662_v16  ;;  %2159 = vmatprep.mubr.f32.mxu1 %v9954_v3 }
 0x265   : > { %1971 = vmatprep.mubr.f32.mxu0 %v9954_v3  ;;  %6596 = vrot.lane.b32.xlu1 %v9954_v3, %s6789_s15 }
 0x266   : > { %v7645_v46 = vpop.permute.xlu1 %2608  ;;  %v2223_v31 = vpop.permute.xlu0 %2222 }
 0x267   : > { %6150 = vmatmul.mubr.msk.f32.gmra.mxu1 %vm1715_vm14, %v6134_v6  ;;  %v2231_v30 = vsel %vm736_vm9, %v7534_v49, %v2223_v31  ;;  %v6178_v49 = vld [vmem:[%s9890_s3 + $0x100] sm:$0xff]  ;;  %6621 = vrot.lane.b32.xlu0 %v9954_v3, %s6791_s17 }
 0x268   : > { %6127 = vmatmul.mubr.msk.f32.gmra.mxu0 %vm1715_vm14, %v1663_v0  ;;  %2165 = vmatprep.mubr.f32.mxu1 %v9954_v3 }
 0x269   : > { %1977 = vmatprep.mubr.f32.mxu0 %v9954_v3  ;;  %6162 = vmatprep.subr.msk.mxu0 %vm6945_vm5, %v2231_v30 }
 0x26a   : > { %6163 = vmatpush1.msk.msra.mxu0 %vm6941_vm4, %v2230_v8  ;;  %v7669_v10 = vpop.permute.xlu1 %2604  ;;  %v7671_v13 = vpop.permute.xlu0 %2610  ;;  %6606 = vrot.lane.b32.xlu1 %v9954_v3, %s6790_s16 }
 0x26b   : > { %6151 = vmatmul.mubr.msk.f32.gmra.mxu1 %vm1715_vm14, %v6135_v5  ;;  %6164 = vmatprep.subr.msk.mxu0 %vm6945_vm5, %v2229_v11  ;;  %v2625_v21 = vsel %vm995_vm10, %v7671_v13, %v6549_v4  ;;  %v2624_v16 = vsel %vm995_vm10, %v7645_v46, %v7671_v13  ;;  %v6161_v11 = vld [vmem:[%s9890_s3 + $0xf8] sm:$0xff] }
 0x26c   : > { %6128 = vmatmul.mubr.msk.f32.gmra.mxu0 %vm1715_vm14, %v1664_v19  ;;  %2171 = vmatprep.mubr.f32.mxu1 %v9954_v3 }
 0x26d   : > { %1983 = vmatprep.mubr.f32.mxu0 %v9954_v3  ;;  %6165 = vmatpush1.msk.msra.mxu0 %vm6941_vm4, %v2228_v22 }
 0x26e   : > { %6166 = vmatprep.subr.msk.mxu0 %vm6945_vm5, %v2227_v36  ;;  %v7696_v12 = vpop.permute.xlu1 %2820  ;;  %v7698_v27 = vpop.permute.xlu0 %6551  ;;  %6631 = vrot.lane.b32.xlu0 %v9954_v3, %s6791_s17 }
 0x26f   : > { %6152 = vmatmul.mubr.msk.f32.gmra.mxu1 %vm1715_vm14, %v6136_v35  ;;  %6167 = vmatpush1.msk.msra.mxu0 %vm6941_vm4, %v2226_v59  ;;  %v6553_v7 = vunpack.i.l.bf16 %v7698_v27  ;;  %v6194_v59 = vld [vmem:[%s9890_s3 + $0x140] sm:$0xff] }
 0x270   : > { %6129 = vmatmul.mubr.msk.f32.gmra.mxu0 %vm1715_vm14, %v1665_v37  ;;  %6168 = vmatprep.subr.msk.mxu0 %vm6945_vm5, %v2225_v39 }
 0x271   : > { %2177 = vmatprep.mubr.f32.mxu1 %v9954_v3  ;;  %6169 = vmatpush1.msk.msra.mxu0 %vm6941_vm4, %v2224_v38 }
 0x272   : > { %2345 = vmatprep.mubr.f32.mxu0 %v9954_v3  ;;  %v7718_v45 = vpop.permute.xlu1 %2818  ;;  %v2825_v61 = vpop.permute.xlu0 %2824  ;;  %6641 = vrot.lane.b32.xlu0 %v9954_v3, %s6791_s17 }
 0x273   : > { %6153 = vmatmul.mubr.msk.f32.gmra.mxu1 %vm1715_vm14, %v6137_v43  ;;  %6616 = vrot.lane.b32.xlu1 %v9954_v3, %s6790_s16 }
 0x274   : > { %6170 = vmatmul.mubr.msk.f32.vlgmr.msra.gmra.mxu0 %vm1715_vm14, %v6154_v44  ;;  %2507 = vmatprep.mubr.f32.mxu1 %v9954_v3  ;;  %v6195_v44 = vld [vmem:[%s9890_s3 + $0x148] sm:$0xff] }
 0x275   : > { %2351 = vmatprep.mubr.f32.mxu0 %v9954_v3 }
 0x276   : > { %v7730_v50 = vpop.permute.xlu1 %2814  ;;  %v7732_v29 = vpop.permute.xlu0 %6556  ;;  %6651 = vrot.lane.b32.xlu0 %v9954_v3, %s6792_s18 }
 0x277   : > { %6186 = vmatmul.mubr.msk.f32.vlgmr.msra.gmra.mxu1 %vm1715_vm14, %v6178_v49  ;;  %v6558_v52 = vunpack.i.l.bf16 %v7732_v29  ;;  %v6559_v46 = vunpack.i.h.bf16 %v7732_v29  ;;  %6626 = vrot.lane.b32.xlu1 %v9954_v3, %s6790_s16 }
 0x278   : > { %6171 = vmatmul.mubr.msk.f32.gmra.mxu0 %vm1715_vm14, %v6155_v26  ;;  %2513 = vmatprep.mubr.f32.mxu1 %v9954_v3  ;;  %v6196_v26 = vld [vmem:[%s9890_s3 + $0x150] sm:$0xff] }
 0x279   : > { %2357 = vmatprep.mubr.f32.mxu0 %v9954_v3  ;;  %v2623_v0 = vsel %vm995_vm10, %v7669_v10, %v6558_v52 }
 0x27a   : > { %v7744_v48 = vpop.permute.xlu1 %2596  ;;  %v2603_v62 = vpop.permute.xlu0 %2602  ;;  %6661 = vrot.lane.b32.xlu0 %v9954_v3, %s6792_s18 }
 0x27b   : > { %6187 = vmatmul.mubr.msk.f32.gmra.mxu1 %vm1715_vm14, %v6179_v42  ;;  %v2622_v31 = vsel %vm995_vm10, %v2603_v62, %v7669_v10  ;;  %v2834_v10 = vsel %vm1133_vm11, %v7718_v45, %v7696_v12  ;;  %v6218_v45 = vld [vmem:[%s9890_s3 + $0x180] sm:$0xff]  ;;  %6636 = vrot.lane.b32.xlu1 %v9954_v3, %s6790_s16 }
 0x27c   : > { %6172 = vmatmul.mubr.msk.f32.gmra.mxu0 %vm1715_vm14, %v6156_v54  ;;  %2519 = vmatprep.mubr.f32.mxu1 %v9954_v3  ;;  %v6197_v54 = vld [vmem:[%s9890_s3 + $0x158] sm:$0xff] }
 0x27d   : > { %2363 = vmatprep.mubr.f32.mxu0 %v9954_v3 }
 0x27e   : > { %v7756_v2 = vpop.permute.xlu1 %2808  ;;  %v2599_v32 = vpop.permute.xlu0 %2598  ;;  %6666 = vrot.lane.b32.xlu0 %v9954_v3, %s6793_s19 }
 0x27f   : > { %6188 = vmatmul.mubr.msk.f32.gmra.mxu1 %vm1715_vm14, %v6180_v58  ;;  %v2621_v19 = vsel %vm995_vm10, %v2599_v32, %v6559_v46  ;;  %v2620_v13 = vsel %vm995_vm10, %v7744_v48, %v2599_v32  ;;  %v6220_v48 = vld [vmem:[%s9890_s3 + $0x190] sm:$0xff]  ;;  %v6221_v32 = vld [vmem:[%s9890_s3 + $0x198] sm:$0xff]  ;;  %6646 = vrot.lane.b32.xlu1 %v9954_v3, %s6792_s18 }
 0x280   : > { %6173 = vmatmul.mubr.msk.f32.gmra.mxu0 %vm1715_vm14, %v6157_v51  ;;  %2525 = vmatprep.mubr.f32.mxu1 %v9954_v3  ;;  %v6198_v51 = vld [vmem:[%s9890_s3 + $0x160] sm:$0xff] }
 0x281   : > { %2369 = vmatprep.mubr.f32.mxu0 %v9954_v3 }
 0x282   : > { %v2617_v1 = vpop.permute.xlu1 %2616  ;;  %v7769_v15 = vpop.permute.xlu0 %6561  ;;  %6671 = vrot.lane.b32.xlu0 %v9954_v3, %s6794_s20 }
 0x283   : > { %6189 = vmatmul.mubr.msk.f32.gmra.mxu1 %vm1715_vm14, %v6181_v47  ;;  %v2626_v41 = vsel %vm995_vm10, %v7630_v56, %v2617_v1  ;;  %v2627_v63 = vsel %vm995_vm10, %v2617_v1, %v6548_v53  ;;  %v6554_v56 = vunpack.i.h.bf16 %v7698_v27  ;;  %v6563_v5 = vunpack.i.l.bf16 %v7769_v15  ;;  %v6185_v27 = vld [vmem:[%s9890_s3 + $0x138] sm:$0xff]  ;;  %6656 = vrot.lane.b32.xlu1 %v9954_v3, %s6792_s18 }
 0x284   : > { %6174 = vmatmul.mubr.msk.f32.gmra.mxu0 %vm1715_vm14, %v6158_v60  ;;  %2531 = vmatprep.mubr.f32.mxu1 %v9954_v3  ;;  %v6564_v22 = vunpack.i.h.bf16 %v7769_v15 }
 0x285   : > { %2375 = vmatprep.mubr.f32.mxu0 %v9954_v3  ;;  %6202 = vmatprep.subr.msk.mxu0 %vm6966_vm7, %v2627_v63  ;;  %v2835_v8 = vsel %vm1133_vm11, %v7696_v12, %v6554_v56  ;;  %v2833_v37 = vsel %vm1133_vm11, %v7730_v50, %v6563_v5  ;;  %v6223_v56 = vld [vmem:[%s9890_s3 + $0x1a8] sm:$0xff]  ;;  %v6201_v5 = vld [vmem:[%s9890_s3 + $0x178] sm:$0xff] }
 0x286   : > { %6203 = vmatpush1.msk.msra.mxu0 %vm6982_vm8, %v2626_v41  ;;  %v2827_v40 = vpop.permute.xlu1 %2826  ;;  %v2813_v17 = vpop.permute.xlu0 %2812  ;;  %v2831_v12 = vsel %vm1133_vm11, %v7756_v2, %v6564_v22  ;;  %v6199_v41 = vld [vmem:[%s9890_s3 + $0x168] sm:$0xff]  ;;  %6676 = vrot.lane.b32.xlu0 %v9954_v3, %s6793_s19 }
 0x287   : > { %6190 = vmatmul.mubr.msk.f32.gmra.mxu1 %vm1715_vm14, %v6182_v23  ;;  %6204 = vmatprep.subr.msk.mxu0 %vm6966_vm7, %v2625_v21  ;;  %v2837_v28 = vsel %vm1133_vm11, %v2827_v40, %v6553_v7  ;;  %v2836_v6 = vsel %vm1133_vm11, %v2825_v61, %v2827_v40  ;;  %v2832_v14 = vsel %vm1133_vm11, %v2813_v17, %v7730_v50  ;;  %v6219_v50 = vld [vmem:[%s9890_s3 + $0x188] sm:$0xff]  ;;  %v6222_v23 = vld [vmem:[%s9890_s3 + $0x1a0] sm:$0xff] }
 0x288   : > { %6175 = vmatmul.mubr.msk.f32.gmra.mxu0 %vm1715_vm14, %v6159_v57  ;;  %2537 = vmatprep.mubr.f32.mxu1 %v9954_v3 }
 0x289   : > { %2381 = vmatprep.mubr.f32.mxu0 %v9954_v3  ;;  %6205 = vmatpush1.msk.msra.mxu0 %vm6982_vm8, %v2624_v16  ;;  %v6200_v16 = vld [vmem:[%s9890_s3 + $0x170] sm:$0xff] }
 0x28a   : > { %6206 = vmatprep.subr.msk.mxu0 %vm6966_vm7, %v2623_v0  ;;  %6226 = vmatprep.subr.msk.mxu1 %vm6945_vm5, %v2837_v28  ;;  %v7822_v30 = vpop.permute.xlu1 %3043  ;;  %v2807_v18 = vpop.permute.xlu0 %2806 }
 0x28b   : > { %6191 = vmatmul.mubr.msk.f32.gmra.mxu1 %vm1715_vm14, %v6183_v55  ;;  %6207 = vmatpush1.msk.msra.mxu0 %vm6982_vm8, %v2622_v31  ;;  %v2830_v43 = vsel %vm1133_vm11, %v2807_v18, %v7756_v2 }
 0x28c   : > { %6176 = vmatmul.mubr.msk.f32.gmra.mxu0 %vm1715_vm14, %v6160_v9  ;;  %6227 = vmatpush1.msk.msra.mxu1 %vm6941_vm4, %v2836_v6 }
 0x28d   : > { %6208 = vmatprep.subr.msk.mxu0 %vm6966_vm7, %v2621_v19  ;;  %6228 = vmatprep.subr.msk.mxu1 %vm6945_vm5, %v2835_v8  ;;  %v6224_v8 = vld [vmem:[%s9890_s3 + $0x1b0] sm:$0xff] }
 0x28e   : > { %2387 = vmatprep.mubr.f32.mxu0 %v9954_v3  ;;  %2543 = vmatprep.mubr.f32.mxu1 %v9954_v3  ;;  %v7852_v35 = vpop.permute.xlu1 %3037  ;;  %v7854_v36 = vpop.permute.xlu0 %6566 }
 0x28f   : > { %6209 = vmatpush1.msk.msra.mxu0 %vm6982_vm8, %v2620_v13  ;;  %6229 = vmatpush1.msk.msra.mxu1 %vm6941_vm4, %v2834_v10  ;;  %v6568_v2 = vunpack.i.l.bf16 %v7854_v36  ;;  %v6569_v15 = vunpack.i.h.bf16 %v7854_v36  ;;  %v6242_v36 = vld [vmem:[%s9890_s3 + $0x1c0] sm:$0xff] }
 0x290   : > { %6177 = vmatmul.mubr.msk.f32.gmra.mxu0 %vm1715_vm14, %v6161_v11  ;;  %6192 = vmatmul.mubr.msk.f32.gmra.mxu1 %vm1715_vm14, %v6184_v33 }
 0x291   : > { %6230 = vmatprep.subr.msk.mxu1 %vm6945_vm5, %v2833_v37  ;;  %2549 = vmatprep.mubr.f32.mxu1 %v9954_v3 }
 0x292   : > { %6231 = vmatpush1.msk.msra.mxu1 %vm6941_vm4, %v2832_v14  ;;  %2741 = vmatprep.mubr.f32.mxu0 %v9954_v3  ;;  %v7880_v39 = vpop.permute.xlu1 %3033  ;;  %v3040_v38 = vpop.permute.xlu0 %3039  ;;  %v6225_v14 = vld [vmem:[%s9890_s3 + $0x1b8] sm:$0xff] }
 0x293   : > { %6232 = vmatprep.subr.msk.mxu1 %vm6945_vm5, %v2831_v12  ;;  %v3054_v57 = vsel %vm1276_vm12, %v3040_v38, %v6569_v15  ;;  %v3053_v28 = vsel %vm1276_vm12, %v7852_v35, %v3040_v38  ;;  %v6244_v38 = vld [vmem:[%s9890_s3 + $0x1d0] sm:$0xff] }
 0x294   : > { %6233 = vmatpush1.msk.msra.mxu1 %vm6941_vm4, %v2830_v43  ;;  %6210 = vmatmul.mubr.msk.f32.vlgmr.msra.gmra.mxu0 %vm1715_vm14, %v6194_v59  ;;  %v6259_v43 = vld [vmem:[%s9890_s3 + $0x208] sm:$0xff] }
 0x295   : > { %6193 = vmatmul.mubr.msk.f32.gmra.mxu1 %vm1715_vm14, %v6185_v27  ;;  %2747 = vmatprep.mubr.f32.mxu0 %v9954_v3  ;;  %v6243_v27 = vld [vmem:[%s9890_s3 + $0x1c8] sm:$0xff] }
 0x296   : > { %2951 = vmatprep.mubr.f32.mxu1 %v9954_v3  ;;  %v7898_v61 = vpop.permute.xlu1 %3232  ;;  %v7900_v49 = vpop.permute.xlu0 %6571 }
 0x297   : > { %v6573_v63 = vunpack.i.l.bf16 %v7900_v49  ;;  %v6574_v17 = vunpack.i.h.bf16 %v7900_v49  ;;  %v6261_v49 = vld [vmem:[%s9890_s3 + $0x218] sm:$0xff] }
 0x298   : > { %6211 = vmatmul.mubr.msk.f32.gmra.mxu0 %vm1715_vm14, %v6195_v44  ;;  %v6245_v44 = vld [vmem:[%s9890_s3 + $0x1d8] sm:$0xff] }
 0x299   : > { %6234 = vmatmul.mubr.msk.f32.vlgmr.msra.gmra.mxu1 %vm1715_vm14, %v6218_v45  ;;  %2753 = vmatprep.mubr.f32.mxu0 %v9954_v3  ;;  %v3247_v18 = vsel %vm1403_vm13, %v7898_v61, %v6574_v17  ;;  %v6260_v45 = vld [vmem:[%s9890_s3 + $0x210] sm:$0xff] }
 0x29a   : > { %2957 = vmatprep.mubr.f32.mxu1 %v9954_v3  ;;  %v7912_v29 = vpop.permute.xlu1 %3230  ;;  %v3237_v42 = vpop.permute.xlu0 %3236 }
 0x29b   : > { %v3246_v33 = vsel %vm1403_vm13, %v7912_v29, %v7898_v61  ;;  %v6246_v61 = vld [vmem:[%s9890_s3 + $0x1e0] sm:$0xff]  ;;  %v6248_v29 = vld [vmem:[%s9890_s3 + $0x1f0] sm:$0xff] }
 0x29c   : > { %6212 = vmatmul.mubr.msk.f32.gmra.mxu0 %vm1715_vm14, %v6196_v26  ;;  %v6247_v26 = vld [vmem:[%s9890_s3 + $0x1e8] sm:$0xff] }
 0x29d   : > { %6235 = vmatmul.mubr.msk.f32.gmra.mxu1 %vm1715_vm14, %v6219_v50  ;;  %2759 = vmatprep.mubr.f32.mxu0 %v9954_v3  ;;  %v6262_v50 = vld [vmem:[%s9890_s3 + $0x220] sm:$0xff] }
 0x29e   : > { %2963 = vmatprep.mubr.f32.mxu1 %v9954_v3  ;;  %v7924_v62 = vpop.permute.xlu1 %3226  ;;  %v6577_v58 = vpop.permute.xlu0 %6576 }
 0x29f   : > { %v6578_v4 = vunpack.i.l.bf16 %v6577_v58  ;;  %v6579_v9 = vunpack.i.h.bf16 %v6577_v58 }
 0x2a0   : > { %6213 = vmatmul.mubr.msk.f32.gmra.mxu0 %vm1715_vm14, %v6197_v54  ;;  %v6249_v54 = vld [vmem:[%s9890_s3 + $0x1f8] sm:$0xff] }
 0x2a1   : > { %6236 = vmatmul.mubr.msk.f32.gmra.mxu1 %vm1715_vm14, %v6220_v48  ;;  %2765 = vmatprep.mubr.f32.mxu0 %v9954_v3  ;;  %v3052_v55 = vsel %vm1276_vm12, %v7880_v39, %v6578_v4  ;;  %v6264_v48 = vld [vmem:[%s9890_s3 + $0x230] sm:$0xff] }
 0x2a2   : > { %2969 = vmatprep.mubr.f32.mxu1 %v9954_v3  ;;  %v3032_v47 = vpop.permute.xlu0 %3031 }
 0x2a3   : > { %v3046_v53 = vpop.permute.xlu1 %3045  ;;  %v3051_v31 = vsel %vm1276_vm12, %v3032_v47, %v7880_v39  ;;  %v6258_v39 = vld [vmem:[%s9890_s3 + $0x200] sm:$0xff] }
 0x2a4   : > { %6214 = vmatmul.mubr.msk.f32.gmra.mxu0 %vm1715_vm14, %v6198_v51  ;;  %v3056_v60 = vsel %vm1276_vm12, %v3046_v53, %v6568_v2  ;;  %v3055_v1 = vsel %vm1276_vm12, %v7822_v30, %v3046_v53 }
 0x2a5   : > { %6237 = vmatmul.mubr.msk.f32.gmra.mxu1 %vm1715_vm14, %v6221_v32  ;;  %2771 = vmatprep.mubr.f32.mxu0 %v9954_v3 }
 0x2a6   : > { %2975 = vmatprep.mubr.f32.mxu1 %v9954_v3  ;;  %3113 = vmatprep.subr.mxu0 %v3056_v60  ;;  %v3028_v7 = vpop.permute.xlu0 %3027 }
 0x2a7   : > { %3114 = vmatpush1.msra.mxu0 %v3055_v1  ;;  %v3239_v52 = vpop.permute.xlu1 %3238  ;;  %v3050_v30 = vsel %vm1276_vm12, %v3028_v7, %v6579_v9 }
 0x2a8   : > { %6215 = vmatmul.mubr.msk.f32.gmra.mxu0 %vm1715_vm14, %v6199_v41  ;;  %3115 = vmatprep.subr.mxu0 %v3054_v57  ;;  %v3249_v40 = vsel %vm1403_vm13, %v3239_v52, %v6573_v63  ;;  %v3248_v21 = vsel %vm1403_vm13, %v3237_v42, %v3239_v52  ;;  %v6263_v42 = vld [vmem:[%s9890_s3 + $0x228] sm:$0xff] }
 0x2a9   : > { %6238 = vmatmul.mubr.msk.f32.gmra.mxu1 %vm1715_vm14, %v6222_v23  ;;  %2777 = vmatprep.mubr.f32.mxu0 %v9954_v3 }
 0x2aa   : > { %2981 = vmatprep.mubr.f32.mxu1 %v9954_v3  ;;  %3116 = vmatpush1.msra.mxu0 %v3053_v28  ;;  %v6582_v6 = vpop.permute.xlu0 %6581 }
 0x2ab   : > { %3117 = vmatprep.subr.mxu0 %v3052_v55  ;;  %6266 = vmatprep.subr.msk.mxu1 %vm6966_vm7, %v3249_v40  ;;  %v3026_v0 = vpop.permute.xlu1 %3025  ;;  %v6583_v46 = vunpack.i.l.bf16 %v6582_v6  ;;  %v6584_v10 = vunpack.i.h.bf16 %v6582_v6 }
 0x2ac   : > { %6216 = vmatmul.mubr.msk.f32.gmra.mxu0 %vm1715_vm14, %v6200_v16  ;;  %6267 = vmatpush1.msk.msra.mxu1 %vm6982_vm8, %v3248_v21  ;;  %v3049_v19 = vsel %vm1276_vm12, %v3026_v0, %v3028_v7 }
 0x2ad   : > { %6239 = vmatmul.mubr.msk.f32.gmra.mxu1 %vm1715_vm14, %v6223_v56  ;;  %3118 = vmatpush1.msra.mxu0 %v3051_v31  ;;  %v3245_v22 = vsel %vm1403_vm13, %v7924_v62, %v6583_v46 }
 0x2ae   : > { %3119 = vmatprep.subr.mxu0 %v3050_v30  ;;  %6268 = vmatprep.subr.msk.mxu1 %vm6966_vm7, %v3247_v18  ;;  %v3225_v11 = vpop.permute.xlu0 %3224 }
 0x2af   : > { %2783 = vmatprep.mubr.f32.mxu0 %v9954_v3  ;;  %2987 = vmatprep.mubr.f32.mxu1 %v9954_v3  ;;  %v3221_v13 = vpop.permute.xlu1 %3220  ;;  %v3244_v35 = vsel %vm1403_vm13, %v3225_v11, %v7924_v62  ;;  %v6265_v62 = vld [vmem:[%s9890_s3 + $0x238] sm:$0xff] }
 0x2b0   : > { %6269 = vmatpush1.msk.msra.mxu1 %vm6982_vm8, %v3246_v33  ;;  %6217 = vmatmul.mubr.msk.f32.gmra.mxu0 %vm1715_vm14, %v6201_v5  ;;  %v3243_v37 = vsel %vm1403_vm13, %v3221_v13, %v6584_v10 }
 0x2b1   : > { %6240 = vmatmul.mubr.msk.f32.gmra.mxu1 %vm1715_vm14, %v6224_v8  ;;  %3120 = vmatpush1.msra.mxu0 %v3049_v19 }
 0x2b2   : > { %6270 = vmatprep.subr.msk.mxu1 %vm6966_vm7, %v3245_v22  ;;  %2993 = vmatprep.mubr.f32.mxu1 %v9954_v3  ;;  %v3219_v59 = vpop.permute.xlu0 %3218 }
 0x2b3   : > { %3153 = vmatprep.mubr.f32.mxu0 %v9954_v3  ;;  %6271 = vmatpush1.msk.msra.mxu1 %vm6982_vm8, %v3244_v35  ;;  %v3242_v12 = vsel %vm1403_vm13, %v3219_v59, %v3221_v13 }
 0x2b4   : > { %6250 = vmatmul.mubr.msk.f32.vlgmr.msra.gmra.mxu0 %vm1715_vm14, %v6242_v36  ;;  %6272 = vmatprep.subr.msk.mxu1 %vm6966_vm7, %v3243_v37 }
 0x2b5   : > { %6241 = vmatmul.mubr.msk.f32.gmra.mxu1 %vm1715_vm14, %v6225_v14  ;;  %3159 = vmatprep.mubr.f32.mxu0 %v9954_v3 }
 0x2b6   : > { %6273 = vmatpush1.msk.msra.mxu1 %vm6982_vm8, %v3242_v12  ;;  %3363 = vmatprep.mubr.f32.mxu1 %v9954_v3 }
 0x2b8   : > { %6251 = vmatmul.mubr.msk.f32.gmra.mxu0 %vm1715_vm14, %v6243_v27 }
 0x2b9   : > { %6274 = vmatmul.mubr.msk.f32.vlgmr.msra.gmra.mxu1 %vm1715_vm14, %v6258_v39  ;;  %3165 = vmatprep.mubr.f32.mxu0 %v9954_v3 }
 0x2ba   : > { %3369 = vmatprep.mubr.f32.mxu1 %v9954_v3 }
 0x2bc   : > { %6252 = vmatmul.mubr.msk.f32.gmra.mxu0 %vm1715_vm14, %v6244_v38 }
 0x2bd   : > { %6275 = vmatmul.mubr.msk.f32.gmra.mxu1 %vm1715_vm14, %v6259_v43  ;;  %3171 = vmatprep.mubr.f32.mxu0 %v9954_v3 }
 0x2be   : > { %3375 = vmatprep.mubr.f32.mxu1 %v9954_v3 }
 0x2c0   : > { %6253 = vmatmul.mubr.msk.f32.gmra.mxu0 %vm1715_vm14, %v6245_v44 }
 0x2c1   : > { %6276 = vmatmul.mubr.msk.f32.gmra.mxu1 %vm1715_vm14, %v6260_v45  ;;  %3177 = vmatprep.mubr.f32.mxu0 %v9954_v3 }
 0x2c2   : > { %3381 = vmatprep.mubr.f32.mxu1 %v9954_v3 }
 0x2c4   : > { %6254 = vmatmul.mubr.msk.f32.gmra.mxu0 %vm1715_vm14, %v6246_v61 }
 0x2c5   : > { %6277 = vmatmul.mubr.msk.f32.gmra.mxu1 %vm1715_vm14, %v6261_v49  ;;  %3183 = vmatprep.mubr.f32.mxu0 %v9954_v3 }
 0x2c6   : > { %3387 = vmatprep.mubr.f32.mxu1 %v9954_v3 }
 0x2c8   : > { %6255 = vmatmul.mubr.msk.f32.gmra.mxu0 %vm1715_vm14, %v6247_v26 }
 0x2c9   : > { %6278 = vmatmul.mubr.msk.f32.gmra.mxu1 %vm1715_vm14, %v6262_v50  ;;  %3189 = vmatprep.mubr.f32.mxu0 %v9954_v3 }
 0x2ca   : > { %3393 = vmatprep.mubr.f32.mxu1 %v9954_v3 }
 0x2cc   : > { %6256 = vmatmul.mubr.msk.f32.gmra.mxu0 %vm1715_vm14, %v6248_v29 }
 0x2cd   : > { %6279 = vmatmul.mubr.msk.f32.gmra.mxu1 %vm1715_vm14, %v6263_v42  ;;  %3195 = vmatprep.mubr.f32.mxu0 %v9954_v3 }
 0x2ce   : > { %3399 = vmatprep.mubr.f32.mxu1 %v9954_v3 }
 0x2d0   : > { %6257 = vmatmul.mubr.msk.f32.gmra.mxu0 %vm1715_vm14, %v6249_v54 }
 0x2d1   : > { %6280 = vmatmul.mubr.msk.f32.gmra.mxu1 %vm1715_vm14, %v6264_v48  ;;  %3870 = vmatprep.mubr.f32.mxu0 %v9954_v3 }
 0x2d2   : > { %3405 = vmatprep.mubr.f32.mxu1 %v9954_v3 }
 0x2d5   : > { %6281 = vmatmul.mubr.msk.f32.gmra.mxu1 %vm1715_vm14, %v6265_v62 }
 0x2d6   : > { %4007 = vmatprep.mubr.f32.mxu1 %v9954_v3 }
 0x2f5   : > { %v1806_v58 = vpop.f32.mrf.mxu1 }
 0x2f7   : > { %v8130_v51 = vpop.f32.mrf.mxu1 }
 0x2f9   : > { %v1812_v2 = vpop.f32.mrf.mxu1 }
 0x2fb   : > { %v8136_v32 = vpop.f32.mrf.mxu1 }
 0x2fd   : > { %v1818_v47 = vpop.f32.mrf.mxu1 }
 0x2ff   : > { %v8142_v53 = vpop.f32.mrf.mxu1 }
 0x300   : > { %9959 = vst [vmem:[#allocation12_spill] sm:$0xff] %v8142_v53 }
 0x301   : > { %v1824_v60 = vpop.f32.mrf.mxu1 }
 0x303   : > { %v8144_v1 = vpop.f32.mrf.mxu1 }
 0x305   : > { %v1830_v15 = vpop.f32.mrf.mxu1 }
 0x307   : > { %v8146_v41 = vpop.f32.mrf.mxu1 }
 0x309   : > { %v1836_v63 = vpop.f32.mrf.mxu1 }
 0x30b   : > { %v8148_v4 = vpop.f32.mrf.mxu1 }
 0x30f   : > { %v1842_v23 = vpop.f32.mrf.mxu1 }
 0x311   : > { %v8150_v7 = vpop.f32.mrf.mxu1 }
 0x313   : > { %v1848_v52 = vpop.f32.mrf.mxu1 }
 0x314   : > { %v1943_v57 = vpop.f32.mrf.mxu0 }
 0x315   : > { %v1944_v40 = vadd.f32 %v1943_v57, %v1806_v58  ;;  %v8152_v17 = vpop.f32.mrf.mxu1 }
 0x316   : > { %v8154_v21 = vpop.f32.mrf.mxu0 }
 0x317   : > { %v2137_v28 = vpop.f32.mrf.mxu1 }
 0x318   : > { %v1949_v16 = vpop.f32.mrf.mxu0  ;;  %v8156_v56 = vadd.f32 %v2137_v28, %v1944_v40 }
 0x319   : > { %v1950_v55 = vadd.f32 %v1949_v16, %v1812_v2  ;;  %v8158_v6 = vpop.f32.mrf.mxu1 }
 0x31a   : > { %v8160_v9 = vpop.f32.mrf.mxu0 }
 0x31b   : > { %v2143_v0 = vpop.f32.mrf.mxu1 }
 0x31c   : > { %v1955_v46 = vpop.f32.mrf.mxu0  ;;  %v2186_v31 = vadd.f32 %v2143_v0, %v1950_v55 }
 0x31d   : > { %v1956_v30 = vadd.f32 %v1955_v46, %v1818_v47  ;;  %v8162_v18 = vpop.f32.mrf.mxu1 }
 0x31e   : > { %v8164_v5 = vpop.f32.mrf.mxu0 }
 0x31f   : > { %9960 = vst [vmem:[#allocation13_spill] sm:$0xff] %v8164_v5  ;;  %v2149_v19 = vpop.f32.mrf.mxu1 }
 0x320   : > { %v1961_v8 = vpop.f32.mrf.mxu0  ;;  %v2188_v11 = vadd.f32 %v2149_v19, %v1956_v30 }
 0x321   : > { %v1962_v33 = vadd.f32 %v1961_v8, %v1824_v60  ;;  %v8166_v10 = vpop.f32.mrf.mxu1 }
 0x322   : > { %9961 = vst [vmem:[#allocation14_spill] sm:$0xff] %v8166_v10  ;;  %v8168_v13 = vpop.f32.mrf.mxu0 }
 0x323   : > { %v2155_v22 = vpop.f32.mrf.mxu1 }
 0x324   : > { %v1967_v35 = vpop.f32.mrf.mxu0  ;;  %v2190_v36 = vadd.f32 %v2155_v22, %v1962_v33 }
 0x325   : > { %v1968_v37 = vadd.f32 %v1967_v35, %v1830_v15  ;;  %v8170_v14 = vpop.f32.mrf.mxu1 }
 0x326   : > { %v8172_v59 = vpop.f32.mrf.mxu0 }
 0x327   : > { %v2161_v12 = vpop.f32.mrf.mxu1 }
 0x328   : > { %v1973_v27 = vpop.f32.mrf.mxu0  ;;  %v2192_v39 = vadd.f32 %v2161_v12, %v1968_v37 }
 0x329   : > { %v1974_v38 = vadd.f32 %v1973_v27, %v1836_v63  ;;  %v8174_v43 = vpop.f32.mrf.mxu1 }
 0x32a   : > { %v8176_v44 = vpop.f32.mrf.mxu0 }
 0x32b   : > { %v2167_v45 = vpop.f32.mrf.mxu1 }
 0x32c   : > { %v1979_v61 = vpop.f32.mrf.mxu0  ;;  %v2194_v49 = vadd.f32 %v2167_v45, %v1974_v38 }
 0x32d   : > { %v1980_v26 = vadd.f32 %v1979_v61, %v1842_v23  ;;  %v8178_v50 = vpop.f32.mrf.mxu1 }
 0x32e   : > { %v8180_v29 = vpop.f32.mrf.mxu0 }
 0x32f   : > { %v2173_v42 = vpop.f32.mrf.mxu1 }
 0x330   : > { %v1985_v54 = vpop.f32.mrf.mxu0  ;;  %v2196_v48 = vadd.f32 %v2173_v42, %v1980_v26 }
 0x331   : > { %v1986_v62 = vadd.f32 %v1985_v54, %v1848_v52  ;;  %v8182_v58 = vpop.f32.mrf.mxu1 }
 0x332   : > { %v8184_v2 = vpop.f32.mrf.mxu0 }
 0x333   : > { %v2179_v47 = vpop.f32.mrf.mxu1 }
 0x334   : > { %v2198_v60 = vadd.f32 %v2179_v47, %v1986_v62  ;;  %v8186_v15 = vpop.f32.mrf.mxu0 }
 0x335   : > { %v8188_v63 = vpop.f32.mrf.mxu1 }
 0x336   : > { %v8190_v57 = vpop.f32.mrf.mxu0 }
 0x337   : > { %v8192_v23 = vpop.f32.mrf.mxu1 }
 0x338   : > { %v2353_v40 = vpop.f32.mrf.mxu0 }
 0x339   : > { %v2396_v28 = vadd.f32 %v2353_v40, %v2186_v31  ;;  %v8194_v16 = vpop.f32.mrf.mxu1 }
 0x33a   : > { %v8196_v55 = vpop.f32.mrf.mxu0 }
 0x33b   : > { %v2515_v52 = vpop.f32.mrf.mxu1 }
 0x33c   : > { %v2359_v0 = vpop.f32.mrf.mxu0  ;;  %v8198_v46 = vadd.f32 %v2515_v52, %v2396_v28 }
 0x33d   : > { %v2398_v30 = vadd.f32 %v2359_v0, %v2188_v11  ;;  %v8200_v19 = vpop.f32.mrf.mxu1 }
 0x33e   : > { %v8202_v8 = vpop.f32.mrf.mxu0 }
 0x33f   : > { %9962 = vst [vmem:[#allocation15_spill] sm:$0xff] %v8202_v8  ;;  %v2521_v33 = vpop.f32.mrf.mxu1 }
 0x340   : > { %v2365_v22 = vpop.f32.mrf.mxu0  ;;  %v8204_v35 = vadd.f32 %v2521_v33, %v2398_v30 }
 0x341   : > { %v2400_v37 = vadd.f32 %v2365_v22, %v2190_v36  ;;  %v8206_v12 = vpop.f32.mrf.mxu1 }
 0x342   : > { %9963 = vst [vmem:[#allocation16_spill] sm:$0xff] %v8204_v35  ;;  %9964 = vst [vmem:[#allocation17_spill] sm:$0xff] %v8206_v12  ;;  %v2367_v31 = vpop.f32.mrf.mxu0 }
 0x343   : > { %v2527_v27 = vpop.f32.mrf.mxu1 }
 0x344   : > { %v2371_v38 = vpop.f32.mrf.mxu0  ;;  %v2562_v45 = vadd.f32 %v2527_v27, %v2400_v37 }
 0x345   : > { %v2402_v61 = vadd.f32 %v2371_v38, %v2192_v39  ;;  %v2529_v26 = vpop.f32.mrf.mxu1 }
 0x346   : > { %v2373_v42 = vpop.f32.mrf.mxu0 }
 0x347   : > { %v2533_v54 = vpop.f32.mrf.mxu1 }
 0x348   : > { %v2377_v11 = vpop.f32.mrf.mxu0  ;;  %v2564_v62 = vadd.f32 %v2533_v54, %v2402_v61 }
 0x349   : > { %v2404_v47 = vadd.f32 %v2377_v11, %v2194_v49  ;;  %v2535_v40 = vpop.f32.mrf.mxu1 }
 0x34a   : > { %v2379_v28 = vpop.f32.mrf.mxu0 }
 0x34b   : > { %v2539_v52 = vpop.f32.mrf.mxu1 }
 0x34c   : > { %v2383_v0 = vpop.f32.mrf.mxu0  ;;  %v2566_v30 = vadd.f32 %v2539_v52, %v2404_v47 }
 0x34d   : > { %v2406_v33 = vadd.f32 %v2383_v0, %v2196_v48  ;;  %v2541_v36 = vpop.f32.mrf.mxu1 }
 0x34e   : > { %v2385_v22 = vpop.f32.mrf.mxu0 }
 0x350   : > { %v2389_v24 = vpop.f32.mrf.mxu0  ;;  %v2545_v25 = vpop.f32.mrf.mxu1 }
 0x351   : > { %v2408_v34 = vadd.f32 %v2389_v24, %v2198_v60  ;;  %v2568_v20 = vadd.f32 %v2545_v25, %v2406_v33  ;;  %v1964_v25 = vadd.f32 %v8168_v13, %v8144_v1  ;;  %v1970_v33 = vadd.f32 %v8172_v59, %v8146_v41 }
 0x352   : > { %v8208_v37 = vpop.f32.mrf.mxu0  ;;  %v2547_v39 = vpop.f32.mrf.mxu1 }
 0x353   : > { %v2193_v35 = vadd.f32 %v8174_v43, %v1970_v33 }
 0x354   : > { %v8210_v27 = vpop.f32.mrf.mxu0 }
 0x355   : > { %v2551_v38 = vpop.f32.mrf.mxu1 }
 0x356   : > { %v8212_v61 = vadd.f32 %v2551_v38, %v2408_v34  ;;  %v8214_v49 = vpop.f32.mrf.mxu0  ;;  %v2191_v34 = vadd.f32 %v8170_v14, %v1964_v25  ;;  %v1976_v14 = vadd.f32 %v8176_v44, %v8148_v4  ;;  %v2403_v25 = vadd.f32 %v2373_v42, %v2193_v35  ;;  %v8253_v35 = vpop.permute.xlu0 %3468 }
 0x357   : > { %v8216_v54 = vpop.f32.mrf.mxu1 }
 0x358   : > { %v8218_v11 = vpop.f32.mrf.mxu0  ;;  %v2401_v38 = vadd.f32 %v2367_v31, %v2191_v34  ;;  %v2195_v41 = vadd.f32 %v8178_v50, %v1976_v14  ;;  %v2565_v59 = vadd.f32 %v2535_v40, %v2403_v25 }
 0x359   : > { %v8220_v48 = vpop.f32.mrf.mxu1 }
 0x35a   : > { %v8222_v47 = vpop.f32.mrf.mxu0  ;;  %v2563_v1 = vadd.f32 %v2529_v26, %v2401_v38  ;;  %v1988_v38 = vadd.f32 %v8184_v2, %v8152_v17 }
 0x35b   : > { %v8226_v24 = vpop.f32.mrf.mxu1 }
 0x35c   : > { %v8228_v60 = vpop.f32.mrf.mxu0 }
 0x35d   : > { %9965 = vst [vmem:[#allocation18_spill] sm:$0xff] %v8228_v60  ;;  %v8231_v52 = vpop.f32.mrf.mxu1 }
 0x35e   : > { %v8233_v0 = vpop.f32.mrf.mxu0 }
 0x35f   : > { %9966 = vst [vmem:[#allocation19_spill] sm:$0xff] %v8233_v0  ;;  %v8237_v3 = vpop.f32.mrf.mxu1 }
 0x360   : > { %v2761_v12 = vpop.f32.mrf.mxu0 }
 0x361   : > { %v2796_v13 = vadd.f32 %v2761_v12, %v2562_v45  ;;  %v8240_v8 = vpop.f32.mrf.mxu1  ;;  %v1982_v12 = vadd.f32 %v8180_v29, %v8150_v7  ;;  %v2405_v45 = vadd.f32 %v2379_v28, %v2195_v41 }
 0x362   : > { %v2763_v60 = vpop.f32.mrf.mxu0 }
 0x363   : > { %v2797_v10 = vadd.f32 %v2763_v60, %v2563_v1  ;;  %v8244_v0 = vpop.f32.mrf.mxu1  ;;  %v2197_v42 = vadd.f32 %v8182_v58, %v1982_v12  ;;  %v2567_v50 = vadd.f32 %v2541_v36, %v2405_v45 }
 0x364   : > { %v2767_v5 = vpop.f32.mrf.mxu0 }
 0x365   : > { %v2798_v31 = vadd.f32 %v2767_v5, %v2564_v62  ;;  %v2971_v34 = vpop.f32.mrf.mxu1  ;;  %v2407_v7 = vadd.f32 %v2385_v22, %v2197_v42  ;;  %v8287_v42 = vpop.permute.xlu1 %3473 }
 0x366   : > { %v8247_v53 = vadd.f32 %v2971_v34, %v2796_v13  ;;  %v2769_v43 = vpop.f32.mrf.mxu0  ;;  %v2199_v13 = vadd.f32 %v8188_v63, %v1988_v38  ;;  %v2394_v63 = vadd.f32 %v8186_v15, %v8156_v56 }
 0x367   : > { %v2799_v26 = vadd.f32 %v2769_v43, %v2565_v59  ;;  %v2973_v33 = vpop.f32.mrf.mxu1  ;;  %v2569_v14 = vadd.f32 %v2547_v39, %v2407_v7  ;;  %v8267_v59 = vpop.permute.xlu0 %3458 }
 0x368   : > { %v8251_v4 = vadd.f32 %v2973_v33, %v2797_v10  ;;  %v2773_v44 = vpop.f32.mrf.mxu0  ;;  %v2409_v17 = vadd.f32 %v8208_v37, %v2199_v13  ;;  %v2556_v12 = vadd.f32 %v8192_v23, %v2394_v63  ;;  %v1952_v13 = vadd.f32 %v8160_v9, %v8136_v32 }
 0x369   : > { %v2800_v40 = vadd.f32 %v2773_v44, %v2566_v30  ;;  %v2977_v5 = vpop.f32.mrf.mxu1  ;;  %v1946_v30 = vadd.f32 %v8154_v21, %v8130_v51 }
 0x36a   : > { %v8256_v62 = vadd.f32 %v2977_v5, %v2798_v31  ;;  %v2775_v60 = vpop.f32.mrf.mxu0  ;;  %v2571_v34 = vadd.f32 %v8216_v54, %v2409_v17  ;;  %v2790_v56 = vadd.f32 %v8210_v27, %v2556_v12 }
 0x36b   : > { %v2801_v29 = vadd.f32 %v2775_v60, %v2567_v50  ;;  %v2979_v28 = vpop.f32.mrf.mxu1  ;;  %v2185_v31 = vadd.f32 %v8158_v6, %v1946_v30  ;;  %v8285_v54 = vpop.permute.xlu0 %3448 }
 0x36c   : > { %v8260_v1 = vadd.f32 %v2979_v28, %v2799_v26  ;;  %v2779_v10 = vpop.f32.mrf.mxu0  ;;  %v3000_v23 = vadd.f32 %v8220_v48, %v2790_v56  ;;  %v8298_v48 = vpop.permute.xlu1 %3463  ;;  %v9971_v56 = vld [vmem:[#allocation16_spill] sm:$0xff] }
 0x36d   : > { %v2802_v25 = vadd.f32 %v2779_v10, %v2568_v20  ;;  %v2983_v58 = vpop.f32.mrf.mxu1  ;;  %v2395_v43 = vadd.f32 %v8190_v57, %v2185_v31 }
 0x36e   : > { %v8265_v36 = vadd.f32 %v2983_v58, %v2800_v40  ;;  %v2781_v41 = vpop.f32.mrf.mxu0 }
 0x36f   : > { %v2803_v2 = vadd.f32 %v2781_v41, %v2569_v14  ;;  %v2985_v22 = vpop.f32.mrf.mxu1  ;;  %v2557_v33 = vadd.f32 %v8194_v16, %v2395_v43  ;;  %v3439_v28 = vpop.permute.xlu0 %3438  ;;  %v2792_v41 = vadd.f32 %v8218_v11, %v8198_v46 }
 0x370   : > { %v8273_v39 = vadd.f32 %v2985_v22, %v2801_v29  ;;  %v2785_v20 = vpop.f32.mrf.mxu0 }
 0x371   : > { %v2804_v51 = vadd.f32 %v2785_v20, %v8212_v61  ;;  %v2989_v21 = vpop.f32.mrf.mxu1  ;;  %v2791_v57 = vadd.f32 %v8214_v49, %v2557_v33  ;;  %v3002_v17 = vadd.f32 %v8231_v52, %v2792_v41 }
 0x372   : > { %v8279_v37 = vadd.f32 %v2989_v21, %v2802_v25  ;;  %v2787_v45 = vpop.f32.mrf.mxu0  ;;  %v2187_v25 = vadd.f32 %v8162_v18, %v1952_v13  ;;  %v9968_v21 = vld [vmem:[#allocation13_spill] sm:$0xff] }
 0x373   : > { %v2805_v26 = vadd.f32 %v2787_v45, %v2571_v34  ;;  %v2991_v6 = vpop.f32.mrf.mxu1  ;;  %v3001_v16 = vadd.f32 %v8226_v24, %v2791_v57 }
 0x374   : > { %v8283_v15 = vadd.f32 %v2991_v6, %v2803_v2  ;;  %v3155_v44 = vpop.f32.mrf.mxu0  ;;  %v2397_v30 = vadd.f32 %v8196_v55, %v2187_v25  ;;  %v8314_v2 = vpop.permute.xlu1 %3453  ;;  %v9970_v6 = vld [vmem:[#allocation15_spill] sm:$0xff] }
 0x375   : > { %v2995_v61 = vpop.f32.mrf.mxu1  ;;  %v3202_v60 = vadd.f32 %v3155_v44, %v3000_v23  ;;  %v9972_v44 = vld [vmem:[#allocation18_spill] sm:$0xff]  ;;  %v9973_v23 = vld [vmem:[#allocation17_spill] sm:$0xff] }
 0x376   : > { %v8291_v50 = vadd.f32 %v2995_v61, %v2804_v51  ;;  %v3157_v5 = vpop.f32.mrf.mxu0  ;;  %v2559_v9 = vadd.f32 %v8200_v19, %v2397_v30  ;;  %v9967_v51 = vld [vmem:[#allocation12_spill] sm:$0xff]  ;;  %v2794_v61 = vadd.f32 %v9972_v44, %v9971_v56 }
 0x377   : > { %v2997_v40 = vpop.f32.mrf.mxu1  ;;  %v3203_v7 = vadd.f32 %v3157_v5, %v3001_v16  ;;  %v1958_v43 = vadd.f32 %v9968_v21, %v9967_v51 }
 0x378   : > { %v8294_v27 = vadd.f32 %v2997_v40, %v2805_v26  ;;  %v3161_v32 = vpop.f32.mrf.mxu0  ;;  %v2793_v55 = vadd.f32 %v8222_v47, %v2559_v9  ;;  %v3444_v47 = vpop.permute.xlu1 %3443  ;;  %v3004_v5 = vadd.f32 %v8240_v8, %v2794_v61 }
 0x379   : > { %v3365_v38 = vpop.f32.mrf.mxu1  ;;  %v3204_v31 = vadd.f32 %v3161_v32, %v3002_v17 }
 0x37a   : > { %v3412_v29 = vadd.f32 %v3365_v38, %v3202_v60  ;;  %v3163_v46 = vpop.f32.mrf.mxu0  ;;  %v3003_v11 = vadd.f32 %v8237_v3, %v2793_v55  ;;  %v9969_v3 = vld [vmem:[#allocation14_spill] sm:$0xff]  ;;  %v9974_v38 = vld [vmem:[#allocation19_spill] sm:$0xff] }
 0x37b   : > { %v3367_v10 = vpop.f32.mrf.mxu1  ;;  %v2189_v12 = vadd.f32 %v9969_v3, %v1958_v43 }
 0x37c   : > { %v3476_v49 = vadd.f32 %v3439_v28, %v3412_v29  ;;  %v3413_v14 = vadd.f32 %v3367_v10, %v3203_v7  ;;  %v3205_v52 = vadd.f32 %v3163_v46, %v3003_v11  ;;  %v3167_v57 = vpop.f32.mrf.mxu0 }
 0x37d   : > { %v3371_v22 = vpop.f32.mrf.mxu1  ;;  %v2399_v33 = vadd.f32 %v9970_v6, %v2189_v12  ;;  %v3206_v29 = vadd.f32 %v3167_v57, %v3004_v5 }
 0x37e   : > { %v8301_v58 = vmax.f32 %v3476_v49, 0.0  ;;  %v3477_v24 = vadd.f32 %v3439_v28, %v3413_v14  ;;  %v3414_v19 = vadd.f32 %v3371_v22, %v3204_v31  ;;  %v3169_v28 = vpop.f32.mrf.mxu0 }
 0x37f   : > { %v3373_v63 = vpop.f32.mrf.mxu1  ;;  %v2561_v40 = vadd.f32 %v9973_v23, %v2399_v33  ;;  %v8424_v33 = vpop.permute.xlu1 %6586 }
 0x380   : > { %3590 = vrot.lane.b32.xlu0 %v8301_v58, %s6790_s16  ;;  %3703 = vrot.lane.b32.xlu1 %v8301_v58, %s6789_s15  ;;  %v8312_v18 = vmax.f32 %v3477_v24, 0.0  ;;  %v3478_v20 = vadd.f32 %v3444_v47, %v3414_v19  ;;  %v3415_v34 = vadd.f32 %v3373_v63, %v3205_v52  ;;  %v3173_v30 = vpop.f32.mrf.mxu0 }
 0x381   : > { %v3377_v60 = vpop.f32.mrf.mxu1  ;;  %v2795_v7 = vadd.f32 %v9974_v38, %v2561_v40  ;;  %v3208_v9 = vadd.f32 %v3173_v30, %v8247_v53 }
 0x382   : > { %v8333_v45 = vmax.f32 %v3478_v20, 0.0  ;;  %v3479_v26 = vadd.f32 %v3444_v47, %v3415_v34  ;;  %v3416_v13 = vadd.f32 %v3377_v60, %v3206_v29  ;;  %v3175_v17 = vpop.f32.mrf.mxu0 }
 0x383   : > { %v3005_v10 = vadd.f32 %v8244_v0, %v2795_v7  ;;  %v3379_v49 = vpop.f32.mrf.mxu1  ;;  %v3209_v55 = vadd.f32 %v3175_v17, %v8251_v4  ;;  %v8392_v4 = vpop.permute.xlu0 %6591 }
 0x384   : > { %4058 = vrot.lane.b32.xlu1 %v8301_v58, %s6791_s17  ;;  %3705 = vrot.lane.b32.xlu0 %v8312_v18, %s6789_s15  ;;  %v8344_v16 = vmax.f32 %v3479_v26, 0.0  ;;  %v3480_v8 = vadd.f32 %v8285_v54, %v3416_v13  ;;  %v3179_v19 = vpop.f32.mrf.mxu0  ;;  %v8438_v5 = vpop.permute.xlu1 %6596 }
 0x385   : > { %v3207_v14 = vadd.f32 %v3169_v28, %v3005_v10  ;;  %v3383_v32 = vpop.f32.mrf.mxu1  ;;  %v3210_v47 = vadd.f32 %v3179_v19, %v8256_v62 }
 0x386   : > { %v8361_v24 = vmax.f32 %v3480_v8, 0.0 }
 0x387   : > { %v3417_v25 = vadd.f32 %v3379_v49, %v3207_v14  ;;  %v3385_v22 = vpop.f32.mrf.mxu1  ;;  %v8401_v34 = vpop.permute.xlu0 %6601 }
 0x388   : > { %4316 = vrot.lane.b32.xlu1 %v8301_v58, %s6792_s18  ;;  %4060 = vrot.lane.b32.xlu0 %v8312_v18, %s6791_s17  ;;  %v3419_v53 = vadd.f32 %v3385_v22, %v3209_v55  ;;  %v8450_v29 = vpop.permute.xlu1 %6606 }
 0x389   : > { %v3481_v0 = vadd.f32 %v8285_v54, %v3417_v25  ;;  %v3418_v54 = vadd.f32 %v3383_v32, %v3208_v9  ;;  %v3389_v52 = vpop.f32.mrf.mxu1 }
 0x38a   : > { %v3483_v11 = vadd.f32 %v8314_v2, %v3419_v53  ;;  %v3420_v20 = vadd.f32 %v3389_v52, %v3210_v47 }
 0x38b   : > { %v8368_v41 = vmax.f32 %v3481_v0, 0.0  ;;  %v3482_v31 = vadd.f32 %v8314_v2, %v3418_v54  ;;  %v3181_v2 = vpop.f32.mrf.mxu0  ;;  %v3391_v51 = vpop.f32.mrf.mxu1 }
 0x38c   : > { %3592 = vrot.lane.b32.xlu1 %v8312_v18, %s6790_s16  ;;  %4318 = vrot.lane.b32.xlu0 %v8312_v18, %s6792_s18  ;;  %v8394_v63 = vmax.f32 %v3483_v11, 0.0  ;;  %v3211_v21 = vadd.f32 %v3181_v2, %v8260_v1  ;;  %v3484_v62 = vadd.f32 %v8267_v59, %v3420_v20  ;;  %v8413_v3 = vpop.permute.xlu0 %6611  ;;  %v8464_v13 = vpop.permute.xlu1 %6616 }
 0x38d   : > { %v8385_v46 = vmax.f32 %v3482_v31, 0.0  ;;  %v3185_v26 = vpop.f32.mrf.mxu0  ;;  %v3395_v44 = vpop.f32.mrf.mxu1 }
 0x38e   : > { %v3421_v43 = vadd.f32 %v3391_v51, %v3211_v21  ;;  %v8415_v12 = vmax.f32 %v3484_v62, 0.0  ;;  %v3212_v61 = vadd.f32 %v3185_v26, %v8265_v36 }
 0x38f   : > { %v3397_v23 = vpop.f32.mrf.mxu1 }
 0x390   : > { %3596 = vrot.lane.b32.xlu1 %v8333_v45, %s6790_s16  ;;  %3709 = vrot.lane.b32.xlu0 %v8333_v45, %s6789_s15  ;;  %v3485_v1 = vadd.f32 %v8267_v59, %v3421_v43  ;;  %v8426_v56 = vpop.permute.xlu0 %6621  ;;  %v3187_v59 = vpop.f32.mrf.mxu0  ;;  %v3422_v57 = vadd.f32 %v3395_v44, %v3212_v61 }
 0x391   : > { %v3213_v40 = vadd.f32 %v3187_v59, %v8273_v39  ;;  %v3401_v14 = vpop.f32.mrf.mxu1  ;;  %v8473_v0 = vpop.permute.xlu1 %6626 }
 0x392   : > { %v8422_v6 = vmax.f32 %v3485_v1, 0.0  ;;  %v3486_v60 = vadd.f32 %v8298_v48, %v3422_v57  ;;  %v3191_v49 = vpop.f32.mrf.mxu0 }
 0x393   : > { %v3423_v38 = vadd.f32 %v3397_v23, %v3213_v40  ;;  %v3214_v8 = vadd.f32 %v3191_v49, %v8279_v37  ;;  %v3403_v22 = vpop.f32.mrf.mxu1 }
 0x394   : > { %4064 = vrot.lane.b32.xlu0 %v8333_v45, %s6791_s17  ;;  %3711 = vrot.lane.b32.xlu1 %v8344_v16, %s6789_s15  ;;  %v8440_v36 = vpop.permute.xlu0 %6631  ;;  %v8447_v39 = vmax.f32 %v3486_v60, 0.0  ;;  %v3193_v17 = vpop.f32.mrf.mxu0 }
 0x395   : > { %9975 = vst [vmem:[#allocation12_spill] sm:$0xff] %v8440_v36  ;;  %v3487_v7 = vadd.f32 %v8298_v48, %v3423_v38  ;;  %v3424_v25 = vadd.f32 %v3401_v14, %v3214_v8  ;;  %v8486_v37 = vpop.permute.xlu1 %6636  ;;  %v3215_v55 = vadd.f32 %v3193_v17, %v8283_v15  ;;  %v3407_v52 = vpop.f32.mrf.mxu1 }
 0x396   : > { %9976 = vst [vmem:[#allocation13_spill] sm:$0xff] %v8447_v39  ;;  %v3197_v19 = vpop.f32.mrf.mxu0 }
 0x397   : > { %v8458_v10 = vmax.f32 %v3487_v7, 0.0  ;;  %v3488_v32 = vadd.f32 %v8253_v35, %v3424_v25  ;;  %v3425_v31 = vadd.f32 %v3403_v22, %v3215_v55  ;;  %v3216_v47 = vadd.f32 %v3197_v19, %v8291_v50  ;;  %v3409_v1 = vpop.f32.mrf.mxu1 }
 0x398   : > { %4322 = vrot.lane.b32.xlu0 %v8333_v45, %s6792_s18  ;;  %4066 = vrot.lane.b32.xlu1 %v8344_v16, %s6791_s17  ;;  %v8452_v28 = vpop.permute.xlu0 %6641  ;;  %v9994_v25 = vmov 0.0  }
 0x399   : > { %9977 = vst [vmem:[#allocation14_spill] sm:$0xff] %v8452_v28  ;;  %9978 = vst [vmem:[#allocation15_spill] sm:$0xff] %v8458_v10  ;;  %v8490_v54 = vmax.f32 %v3488_v32, 0.0  ;;  %v8497_v53 = vpop.permute.xlu1 %6646  ;;  %v3489_v15 = vadd.f32 %v8253_v35, %v3425_v31  ;;  %v3426_v21 = vadd.f32 %v3407_v52, %v3216_v47  ;;  %v3199_v35 = vpop.f32.mrf.mxu0 }
 0x39a   : > { %9983 = vst [vmem:[#allocation20_spill] sm:$0xff] %v8497_v53  ;;  %v3217_v26 = vadd.f32 %v3199_v35, %v8294_v27 }
 0x39b   : > { %9982 = vst [vmem:[#allocation19_spill] sm:$0xff] %v8490_v54  ;;  %v8515_v51 = vmax.f32 %v3489_v15, 0.0  ;;  %v3490_v50 = vadd.f32 %v8287_v42, %v3426_v21 }
 0x39c   : > { %3598 = vrot.lane.b32.xlu0 %v8344_v16, %s6790_s16  ;;  %4324 = vrot.lane.b32.xlu1 %v8344_v16, %s6792_s18  ;;  %v8466_v48 = vpop.permute.xlu0 %6651  ;;  %v3427_v61 = vadd.f32 %v3409_v1, %v3217_v26 }
 0x39d   : > { %9979 = vst [vmem:[#allocation16_spill] sm:$0xff] %v8466_v48  ;;  %v8511_v2 = vpop.permute.xlu1 %6656  ;;  %9987 = vst [vmem:[#allocation24_spill] sm:$0xff] %v8515_v51  ;;  %v8531_v44 = vmax.f32 %v3490_v50, 0.0 }
 0x39e   : > { %9985 = vst [vmem:[#allocation22_spill] sm:$0xff] %v8511_v2  ;;  %v3491_v27 = vadd.f32 %v8287_v42, %v3427_v61 }
 0x39f   : > { %9988 = vst [vmem:[#allocation25_spill] sm:$0xff] %v8531_v44 }
 0x3a0   : > { %4070 = vrot.lane.b32.xlu1 %v8361_v24, %s6791_s17  ;;  %3715 = vrot.lane.b32.xlu0 %v8361_v24, %s6789_s15  ;;  %v8475_v30 = vpop.permute.xlu0 %6661  ;;  %v8550_v60 = vmax.f32 %v3491_v27, 0.0 }
 0x3a1   : > { %9980 = vst [vmem:[#allocation18_spill] sm:$0xff] %v8475_v30 }
 0x3a4   : > { %3602 = vrot.lane.b32.xlu0 %v8361_v24, %s6790_s16  ;;  %3717 = vrot.lane.b32.xlu1 %v8368_v41, %s6789_s15  ;;  %v8488_v9 = vpop.permute.xlu0 %6666 }
 0x3a5   : > { %9981 = vst [vmem:[#allocation17_spill] sm:$0xff] %v8488_v9 }
 0x3a8   : > { %4328 = vrot.lane.b32.xlu0 %v8361_v24, %s6792_s18  ;;  %3604 = vrot.lane.b32.xlu1 %v8368_v41, %s6790_s16  ;;  %v8499_v11 = vpop.permute.xlu0 %6671 }
 0x3a9   : > { %9984 = vst [vmem:[#allocation21_spill] sm:$0xff] %v8499_v11 }
 0x3ac   : > { %4072 = vrot.lane.b32.xlu0 %v8368_v41, %s6791_s17  ;;  %4330 = vrot.lane.b32.xlu1 %v8368_v41, %s6792_s18  ;;  %v8513_v20 = vpop.permute.xlu0 %6676 }
 0x3ad   : > { %9986 = vst [vmem:[#allocation23_spill] sm:$0xff] %v8513_v20 }
 0x3b0   : > { %4076 = vrot.lane.b32.xlu0 %v8385_v46, %s6791_s17  ;;  %3721 = vrot.lane.b32.xlu1 %v8385_v46, %s6789_s15 }
 0x3b4   : > { %3608 = vrot.lane.b32.xlu1 %v8385_v46, %s6790_s16  ;;  %3723 = vrot.lane.b32.xlu0 %v8394_v63, %s6789_s15 }
 0x3b8   : > { %4334 = vrot.lane.b32.xlu1 %v8385_v46, %s6792_s18  ;;  %3610 = vrot.lane.b32.xlu0 %v8394_v63, %s6790_s16 }
 0x3bc   : > { %4078 = vrot.lane.b32.xlu1 %v8394_v63, %s6791_s17  ;;  %4336 = vrot.lane.b32.xlu0 %v8394_v63, %s6792_s18 }
 0x3c0   : > { %3614 = vrot.lane.b32.xlu0 %v8415_v12, %s6790_s16  ;;  %3727 = vrot.lane.b32.xlu1 %v8415_v12, %s6789_s15 }
 0x3c4   : > { %4082 = vrot.lane.b32.xlu1 %v8415_v12, %s6791_s17  ;;  %3729 = vrot.lane.b32.xlu0 %v8422_v6, %s6789_s15 }
 0x3c8   : > { %4340 = vrot.lane.b32.xlu1 %v8415_v12, %s6792_s18  ;;  %4084 = vrot.lane.b32.xlu0 %v8422_v6, %s6791_s17 }
 0x3cc   : > { %3616 = vrot.lane.b32.xlu1 %v8422_v6, %s6790_s16  ;;  %4342 = vrot.lane.b32.xlu0 %v8422_v6, %s6792_s18 }
 0x3d0   : > { %3620 = vrot.lane.b32.xlu1 %v8447_v39, %s6790_s16  ;;  %3733 = vrot.lane.b32.xlu0 %v8447_v39, %s6789_s15 }
 0x3d4   : > { %4088 = vrot.lane.b32.xlu0 %v8447_v39, %s6791_s17  ;;  %3735 = vrot.lane.b32.xlu1 %v8458_v10, %s6789_s15 }
 0x3d8   : > { %4346 = vrot.lane.b32.xlu0 %v8447_v39, %s6792_s18  ;;  %4090 = vrot.lane.b32.xlu1 %v8458_v10, %s6791_s17 }
 0x3dc   : > { %4812 = vrot.lane.b32.xlu0 %v8447_v39, %s6793_s19  ;;  %4348 = vrot.lane.b32.xlu1 %v8458_v10, %s6792_s18 }
 0x3e0   : > { %3622 = vrot.lane.b32.xlu0 %v8458_v10, %s6790_s16  ;;  %4814 = vrot.lane.b32.xlu1 %v8458_v10, %s6793_s19 }
 0x3e4   : > { %4094 = vrot.lane.b32.xlu1 %v8490_v54, %s6791_s17  ;;  %3739 = vrot.lane.b32.xlu0 %v8490_v54, %s6789_s15 }
 0x3e8   : > { %4818 = vrot.lane.b32.xlu1 %v8490_v54, %s6793_s19  ;;  %3626 = vrot.lane.b32.xlu0 %v8490_v54, %s6790_s16 }
 0x3ec   : > { %5076 = vrot.lane.b32.xlu1 %v8490_v54, %s6794_s20  ;;  %4352 = vrot.lane.b32.xlu0 %v8490_v54, %s6792_s18 }
 0x3f0   : > { %4096 = vrot.lane.b32.xlu0 %v8515_v51, %s6791_s17  ;;  %3741 = vrot.lane.b32.xlu1 %v8515_v51, %s6789_s15 }
 0x3f2   : > { %v8522_v62 = vpop.permute.xlu0 %3590  ;;  %v8524_v43 = vpop.permute.xlu1 %3703 }
 0x3f4   : > { %4820 = vrot.lane.b32.xlu0 %v8515_v51, %s6793_s19  ;;  %3628 = vrot.lane.b32.xlu1 %v8515_v51, %s6790_s16 }
 0x3f6   : > { %v8533_v59 = vpop.permute.xlu1 %4058  ;;  %v8535_v57 = vpop.permute.xlu0 %3705 }
 0x3f7   : > { %9989 = vst [vmem:[#allocation26_spill] sm:$0xff] %v8533_v59 }
 0x3f8   : > { %4354 = vrot.lane.b32.xlu1 %v8515_v51, %s6792_s18  ;;  %4100 = vrot.lane.b32.xlu0 %v8531_v44, %s6791_s17 }
 0x3fa   : > { %v8542_v23 = vpop.permute.xlu1 %4316  ;;  %v8544_v40 = vpop.permute.xlu0 %4060 }
 0x3fb   : > { %9990 = vst [vmem:[#allocation27_spill] sm:$0xff] %v8542_v23  ;;  %9991 = vst [vmem:[#allocation28_spill] sm:$0xff] %v8544_v40 }
 0x3fc   : > { %5078 = vrot.lane.b32.xlu1 %v8515_v51, %s6794_s20  ;;  %5082 = vrot.lane.b32.xlu0 %v8531_v44, %s6794_s20 }
 0x3fe   : > { %v8552_v38 = vpop.permute.xlu1 %3592  ;;  %v8554_v7 = vpop.permute.xlu0 %4318 }
 0x3ff   : > { %9992 = vst [vmem:[#allocation29_spill] sm:$0xff] %v8554_v7 }
 0x400   : > { %3745 = vrot.lane.b32.xlu1 %v8531_v44, %s6789_s15  ;;  %3747 = vrot.lane.b32.xlu0 %v8550_v60, %s6789_s15 }
 0x402   : > { %v8560_v42 = vpop.permute.xlu1 %3596  ;;  %v8562_v49 = vpop.permute.xlu0 %3709 }
 0x404   : > { %3632 = vrot.lane.b32.xlu1 %v8531_v44, %s6790_s16  ;;  %4808 = vrot.lane.b32.xlu0 %v8422_v6, %s6793_s19 }
 0x406   : > { %v8568_v14 = vpop.permute.xlu0 %4064  ;;  %v8570_v8 = vpop.permute.xlu1 %3711 }
 0x407   : > { %9993 = vst [vmem:[#allocation30_spill] sm:$0xff] %v8568_v14 }
 0x408   : > { %4358 = vrot.lane.b32.xlu1 %v8531_v44, %s6792_s18  ;;  %6681 = vrot.lane.b32.xlu0 %v9994_v25, %s6794_s20 }
 0x40a   : > { %v8576_v32 = vpop.permute.xlu0 %4322  ;;  %v8578_v17 = vpop.permute.xlu1 %4066 }
 0x40b   : > { %9995 = vst [vmem:[#allocation31_spill] sm:$0xff] %v8576_v32  ;;  %9996 = vst [vmem:[#allocation32_spill] sm:$0xff] %v8578_v17 }
 0x40c   : > { %4824 = vrot.lane.b32.xlu1 %v8531_v44, %s6793_s19  ;;  %5070 = vrot.lane.b32.xlu0 %v8447_v39, %s6794_s20 }
 0x40e   : > { %v8584_v22 = vpop.permute.xlu0 %3598  ;;  %v8586_v55 = vpop.permute.xlu1 %4324 }
 0x40f   : > { %9997 = vst [vmem:[#allocation33_spill] sm:$0xff] %v8586_v55 }
 0x410   : > { %5072 = vrot.lane.b32.xlu1 %v8458_v10, %s6794_s20  ;;  %6686 = vrot.lane.b32.xlu0 %v9994_v25, %s6793_s19 }
 0x412   : > { %v8592_v31 = vpop.permute.xlu1 %4070  ;;  %v8594_v19 = vpop.permute.xlu0 %3715 }
 0x413   : > { %9998 = vst [vmem:[#allocation34_spill] sm:$0xff] %v8592_v31 }
 0x414   : > { %4806 = vrot.lane.b32.xlu1 %v8415_v12, %s6793_s19  ;;  %4800 = vrot.lane.b32.xlu0 %v8385_v46, %s6793_s19 }
 0x416   : > { %v8600_v15 = vpop.permute.xlu0 %3602  ;;  %v8602_v52 = vpop.permute.xlu1 %3717 }
 0x418   : > { %4802 = vrot.lane.b32.xlu1 %v8394_v63, %s6793_s19  ;;  %4796 = vrot.lane.b32.xlu0 %v8368_v41, %s6793_s19 }
 0x41a   : > { %v8608_v47 = vpop.permute.xlu0 %4328  ;;  %v8610_v21 = vpop.permute.xlu1 %3604 }
 0x41b   : > { %9999 = vst [vmem:[#allocation35_spill] sm:$0xff] %v8608_v47 }
 0x41c   : > { %5066 = vrot.lane.b32.xlu1 %v8422_v6, %s6794_s20  ;;  %3634 = vrot.lane.b32.xlu0 %v8550_v60, %s6790_s16 }
 0x41e   : > { %v8616_v35 = vpop.permute.xlu0 %4072  ;;  %v8618_v50 = vpop.permute.xlu1 %4330 }
 0x41f   : > { %10000 = vst [vmem:[#allocation36_spill] sm:$0xff] %v8616_v35  ;;  %10001 = vst [vmem:[#allocation37_spill] sm:$0xff] %v8618_v50 }
 0x420   : > { %5064 = vrot.lane.b32.xlu1 %v8415_v12, %s6794_s20  ;;  %6691 = vrot.lane.b32.xlu0 %v9994_v25, %s6794_s20 }
 0x422   : > { %v8624_v1 = vpop.permute.xlu0 %4076  ;;  %v8626_v26 = vpop.permute.xlu1 %3721 }
 0x423   : > { %10002 = vst [vmem:[#allocation38_spill] sm:$0xff] %v8624_v1 }
 0x424   : > { %5060 = vrot.lane.b32.xlu1 %v8394_v63, %s6794_s20  ;;  %5058 = vrot.lane.b32.xlu0 %v8385_v46, %s6794_s20 }
 0x426   : > { %v8632_v61 = vpop.permute.xlu1 %3608  ;;  %v8634_v27 = vpop.permute.xlu0 %3723 }
 0x428   : > { %4794 = vrot.lane.b32.xlu1 %v8361_v24, %s6793_s19  ;;  %6696 = vrot.lane.b32.xlu0 %v9994_v25, %s6793_s19 }
 0x42a   : > { %v8640_v20 = vpop.permute.xlu1 %4334  ;;  %v8642_v11 = vpop.permute.xlu0 %3610 }
 0x42b   : > { %10003 = vst [vmem:[#allocation39_spill] sm:$0xff] %v8640_v20 }
 0x42c   : > { %4102 = vrot.lane.b32.xlu1 %v8550_v60, %s6791_s17  ;;  %4788 = vrot.lane.b32.xlu0 %v8333_v45, %s6793_s19 }
 0x42e   : > { %v8648_v9 = vpop.permute.xlu1 %4078  ;;  %v8650_v23 = vpop.permute.xlu0 %4336 }
 0x42f   : > { %10004 = vst [vmem:[#allocation40_spill] sm:$0xff] %v8648_v9  ;;  %10005 = vst [vmem:[#allocation41_spill] sm:$0xff] %v8650_v23 }
 0x430   : > { %4790 = vrot.lane.b32.xlu1 %v8344_v16, %s6793_s19  ;;  %4784 = vrot.lane.b32.xlu0 %v8312_v18, %s6793_s19 }
 0x432   : > { %v8656_v7 = vpop.permute.xlu0 %3614  ;;  %v8658_v32 = vpop.permute.xlu1 %3727 }
 0x434   : > { %5054 = vrot.lane.b32.xlu1 %v8368_v41, %s6794_s20  ;;  %6701 = vrot.lane.b32.xlu0 %v9994_v25, %s6794_s20 }
 0x436   : > { %v8664_v55 = vpop.permute.xlu1 %4082  ;;  %v8666_v30 = vpop.permute.xlu0 %3729 }
 0x437   : > { %10006 = vst [vmem:[#allocation42_spill] sm:$0xff] %v8664_v55 }
 0x438   : > { %5052 = vrot.lane.b32.xlu1 %v8361_v24, %s6794_s20  ;;  %5046 = vrot.lane.b32.xlu0 %v8333_v45, %s6794_s20 }
 0x43a   : > { %v8672_v47 = vpop.permute.xlu1 %4340  ;;  %v8674_v50 = vpop.permute.xlu0 %4084 }
 0x43b   : > { %10007 = vst [vmem:[#allocation43_spill] sm:$0xff] %v8672_v47  ;;  %10008 = vst [vmem:[#allocation44_spill] sm:$0xff] %v8674_v50 }
 0x43c   : > { %5048 = vrot.lane.b32.xlu1 %v8344_v16, %s6794_s20  ;;  %4360 = vrot.lane.b32.xlu0 %v8550_v60, %s6792_s18 }
 0x43e   : > { %v8680_v20 = vpop.permute.xlu1 %3616  ;;  %v8682_v23 = vpop.permute.xlu0 %4342 }
 0x43f   : > { %10009 = vst [vmem:[#allocation45_spill] sm:$0xff] %v8682_v23 }
 0x440   : > { %4782 = vrot.lane.b32.xlu1 %v8301_v58, %s6793_s19  ;;  %5040 = vrot.lane.b32.xlu0 %v8301_v58, %s6794_s20 }
 0x442   : > { %v8688_v2 = vpop.permute.xlu1 %3620  ;;  %v8690_v47 = vpop.permute.xlu0 %3733 }
 0x444   : > { %5042 = vrot.lane.b32.xlu1 %v8312_v18, %s6794_s20  ;;  %6706 = vrot.lane.b32.xlu0 %v9994_v25, %s6795_s21 }
 0x446   : > { %v8696_v48 = vpop.permute.xlu0 %4088  ;;  %v8698_v59 = vpop.permute.xlu1 %3735 }
 0x448   : > { %5349 = vrot.lane.b32.xlu1 %v8531_v44, %s6795_s21  ;;  %5345 = vrot.lane.b32.xlu0 %v8515_v51, %s6795_s21 }
 0x44a   : > { %v8704_v23 = vpop.permute.xlu0 %4346  ;;  %v8706_v40 = vpop.permute.xlu1 %4090 }
 0x44b   : > { %10010 = vst [vmem:[#allocation46_spill] sm:$0xff] %v8704_v23 }
 0x44c   : > { %5343 = vrot.lane.b32.xlu1 %v8490_v54, %s6795_s21  ;;  %6711 = vrot.lane.b32.xlu0 %v9994_v25, %s6796_s22 }
 0x44e   : > { %v8712_v53 = vpop.permute.xlu0 %4812  ;;  %v8714_v14 = vpop.permute.xlu1 %4348 }
 0x44f   : > { %10011 = vst [vmem:[#allocation47_spill] sm:$0xff] %v8712_v53  ;;  %10012 = vst [vmem:[#allocation48_spill] sm:$0xff] %v8714_v14 }
 0x450   : > { %5339 = vrot.lane.b32.xlu1 %v8458_v10, %s6795_s21  ;;  %5582 = vrot.lane.b32.xlu0 %v8531_v44, %s6796_s22 }
 0x452   : > { %v8720_v17 = vpop.permute.xlu0 %3622  ;;  %v8722_v23 = vpop.permute.xlu1 %4814 }
 0x453   : > { %10013 = vst [vmem:[#allocation49_spill] sm:$0xff] %v8722_v23 }
 0x454   : > { %5578 = vrot.lane.b32.xlu1 %v8515_v51, %s6796_s22  ;;  %6716 = vrot.lane.b32.xlu0 %v9994_v25, %s6795_s21 }
 0x456   : > { %v8728_v28 = vpop.permute.xlu1 %4094  ;;  %v3740_v53 = vpop.permute.xlu0 %3739 }
 0x458   : > { %5576 = vrot.lane.b32.xlu1 %v8490_v54, %s6796_s22  ;;  %5337 = vrot.lane.b32.xlu0 %v8447_v39, %s6795_s21 }
 0x45a   : > { %v8734_v14 = vpop.permute.xlu1 %4818  ;;  %v8736_v44 = vpop.permute.xlu0 %3626 }
 0x45b   : > { %10014 = vst [vmem:[#allocation50_spill] sm:$0xff] %v8734_v14 }
 0x45c   : > { %5572 = vrot.lane.b32.xlu1 %v8458_v10, %s6796_s22  ;;  %5333 = vrot.lane.b32.xlu0 %v8422_v6, %s6795_s21 }
 0x45e   : > { %v5077_v23 = vpop.permute.xlu1 %5076  ;;  %v8742_v51 = vpop.permute.xlu0 %4352 }
 0x45f   : > { %10015 = vst [vmem:[#allocation51_spill] sm:$0xff] %v8742_v51 }
 0x460   : > { %5331 = vrot.lane.b32.xlu1 %v8415_v12, %s6795_s21  ;;  %6721 = vrot.lane.b32.xlu0 %v9994_v25, %s6796_s22 }
 0x462   : > { %v8748_v54 = vpop.permute.xlu0 %4096  ;;  %v3742_v14 = vpop.permute.xlu1 %3741 }
 0x464   : > { %5327 = vrot.lane.b32.xlu1 %v8394_v63, %s6795_s21  ;;  %5570 = vrot.lane.b32.xlu0 %v8447_v39, %s6796_s22 }
 0x466   : > { %v8754_v10 = vpop.permute.xlu0 %4820  ;;  %v8756_v31 = vpop.permute.xlu1 %3628 }
 0x467   : > { %10016 = vst [vmem:[#allocation52_spill] sm:$0xff] %v8754_v10 }
 0x468   : > { %4826 = vrot.lane.b32.xlu1 %v8550_v60, %s6793_s19  ;;  %6726 = vrot.lane.b32.xlu0 %v9994_v25, %s6795_s21 }
 0x46a   : > { %v4355_v35 = vpop.permute.xlu1 %4354  ;;  %v8762_v1 = vpop.permute.xlu0 %4100 }
 0x46b   : > { %v8766_v9 = vsel %vm736_vm9, %v8742_v51, %v4355_v35  ;;  %v6588_v35 = vunpack.i.l.bf16 %v8424_v33 }
 0x46c   : > { %10017 = vst [vmem:[#allocation53_spill] sm:$0xff] %v8766_v9  ;;  %5084 = vrot.lane.b32.xlu1 %v8550_v60, %s6794_s20  ;;  %5325 = vrot.lane.b32.xlu0 %v8385_v46, %s6795_s21 }
 0x46e   : > { %v8772_v10 = vpop.permute.xlu1 %5078  ;;  %v8774_v39 = vpop.permute.xlu0 %5082 }
 0x46f   : > { %10018 = vst [vmem:[#allocation54_spill] sm:$0xff] %v8772_v10  ;;  %10019 = vst [vmem:[#allocation55_spill] sm:$0xff] %v8774_v39  ;;  %v8778_v36 = vsel %vm1133_vm11, %v5077_v23, %v8772_v10  ;;  %v6589_v23 = vunpack.i.h.bf16 %v8424_v33  ;;  %v3762_v10 = vsel %vm366_vm0, %v3740_v53, %v3742_v14  ;;  %v3760_v33 = vsel %vm366_vm0, %v8690_v47, %v8698_v59 }
 0x470   : > { %10020 = vst [vmem:[#allocation56_spill] sm:$0xff] %v8778_v36  ;;  %5566 = vrot.lane.b32.xlu1 %v8422_v6, %s6796_s22  ;;  %5321 = vrot.lane.b32.xlu0 %v8368_v41, %s6795_s21  ;;  %v6598_v59 = vunpack.i.l.bf16 %v8438_v5 }
 0x472   : > { %v3746_v51 = vpop.permute.xlu1 %3745  ;;  %v3748_v9 = vpop.permute.xlu0 %3747 }
 0x473   : > { %v3763_v55 = vsel %vm366_vm0, %v6588_v35, %v3746_v51  ;;  %v3764_v50 = vsel %vm366_vm0, %v3746_v51, %v3748_v9  ;;  %v6593_v35 = vunpack.i.l.bf16 %v8392_v4  ;;  %v3761_v9 = vsel %vm366_vm0, %v6589_v23, %v3740_v53 }
 0x474   : > { %5564 = vrot.lane.b32.xlu1 %v8415_v12, %s6796_s22  ;;  %6731 = vrot.lane.b32.xlu0 %v9994_v25, %s6796_s22  ;;  %v6594_v51 = vunpack.i.h.bf16 %v8392_v4 }
 0x475   : > { %3822 = vmatprep.subr.mxu0 %v3764_v50  ;;  %v3759_v14 = vsel %vm366_vm0, %v6593_v35, %v8690_v47  ;;  %v3756_v47 = vsel %vm366_vm0, %v8626_v26, %v8634_v27  ;;  %v6599_v50 = vunpack.i.h.bf16 %v8438_v5 }
 0x476   : > { %3823 = vmatpush1.msra.mxu0 %v3763_v55  ;;  %v8792_v36 = vpop.permute.xlu1 %3632  ;;  %v8795_v39 = vpop.permute.xlu0 %4808  ;;  %v3757_v4 = vsel %vm366_vm0, %v6594_v51, %v8658_v32 }
 0x477   : > { %3824 = vmatprep.subr.mxu0 %v3762_v10  ;;  %v3758_v10 = vsel %vm366_vm0, %v8658_v32, %v8666_v30  ;;  %v3755_v30 = vsel %vm366_vm0, %v6598_v59, %v8626_v26  ;;  %v3754_v32 = vsel %vm366_vm0, %v8594_v19, %v8602_v52  ;;  %v3753_v5 = vsel %vm366_vm0, %v6599_v50, %v8594_v19 }
 0x478   : > { %3825 = vmatpush1.msra.mxu0 %v3761_v9  ;;  %5560 = vrot.lane.b32.xlu1 %v8394_v63, %s6796_s22  ;;  %v6603_v9 = vunpack.i.l.bf16 %v8401_v34  ;;  %v3752_v26 = vsel %vm366_vm0, %v8562_v49, %v8570_v8  ;;  %v3750_v19 = vsel %vm366_vm0, %v8524_v43, %v8535_v57 }
 0x479   : > { %5558 = vrot.lane.b32.xlu0 %v8385_v46, %s6796_s22  ;;  %3826 = vmatprep.subr.mxu0 %v3760_v33  ;;  %v6604_v33 = vunpack.i.h.bf16 %v8401_v34 }
 0x47a   : > { %3827 = vmatpush1.msra.mxu0 %v3759_v14  ;;  %v8809_v53 = vpop.permute.xlu1 %4358  ;;  %v8814_v55 = vpop.permute.xlu0 %6681  ;;  %v3751_v52 = vsel %vm366_vm0, %v6603_v9, %v8562_v49 }
 0x47b   : > { %3828 = vmatprep.subr.mxu0 %v3758_v10  ;;  %v6683_v27 = vunpack.i.l.bf16 %v8814_v55  ;;  %v3693_v10 = vld [vmem:[#allocation5 + $0x40] sm:$0xff]  ;;  %v3749_v59 = vsel %vm366_vm0, %v6604_v33, %v8524_v43  ;;  %v6608_v33 = vunpack.i.l.bf16 %v8450_v29 }
 0x47c   : > { %3829 = vmatpush1.msra.mxu0 %v3757_v4  ;;  %5319 = vrot.lane.b32.xlu1 %v8361_v24, %s6795_s21  ;;  %v3694_v4 = vld [vmem:[#allocation5 + $0x48] sm:$0xff] }
 0x47d   : > { %6736 = vrot.lane.b32.xlu0 %v9994_v25, %s6795_s21  ;;  %3830 = vmatprep.subr.mxu0 %v3756_v47 }
 0x47e   : > { %3831 = vmatpush1.msra.mxu0 %v3755_v30  ;;  %v8829_v23 = vpop.permute.xlu1 %4824  ;;  %v5071_v35 = vpop.permute.xlu0 %5070 }
 0x47f   : > { %3832 = vmatprep.subr.mxu0 %v3754_v32 }
 0x480   : > { %3833 = vmatpush1.msra.mxu0 %v3753_v5  ;;  %5315 = vrot.lane.b32.xlu1 %v8344_v16, %s6795_s21 }
 0x481   : > { %5313 = vrot.lane.b32.xlu0 %v8333_v45, %s6795_s21  ;;  %3834 = vmatprep.subr.mxu0 %v3752_v26  ;;  %v6684_v26 = vunpack.i.h.bf16 %v8814_v55  ;;  %v6609_v55 = vunpack.i.h.bf16 %v8450_v29  ;;  %v6618_v29 = vunpack.i.l.bf16 %v8464_v13 }
 0x482   : > { %3835 = vmatpush1.msra.mxu0 %v3751_v52  ;;  %v5073_v51 = vpop.permute.xlu1 %5072  ;;  %v6687_v14 = vpop.permute.xlu0 %6686 }
 0x483   : > { %v8852_v8 = vsel %vm1133_vm11, %v5071_v35, %v5073_v51  ;;  %v8855_v34 = vsel %vm1133_vm11, %v5073_v51, %v6683_v27  ;;  %3836 = vmatprep.subr.mxu0 %v3750_v19  ;;  %v6689_v47 = vunpack.i.h.bf16 %v6687_v14  ;;  %v6688_v50 = vunpack.i.l.bf16 %v6687_v14  ;;  %v3695_v35 = vld [vmem:[#allocation5 + $0x50] sm:$0xff] }
 0x484   : > { %3837 = vmatpush1.msra.mxu0 %v3749_v59  ;;  %5554 = vrot.lane.b32.xlu1 %v8368_v41, %s6796_s22  ;;  %v3650_v59 = vsel %vm344_vm3, %v6608_v33, %v8792_v36  ;;  %v6619_v33 = vunpack.i.h.bf16 %v8464_v13 }
 0x485   : > { %5309 = vrot.lane.b32.xlu0 %v8312_v18, %s6795_s21  ;;  %6282 = vmatmul.mubr.msk.f32.vlgmr.msra.gmra.mxu0 %vm3781_vm15, %v3693_v10  ;;  %v3696_v10 = vld [vmem:[#allocation5 + $0x58] sm:$0xff] }
 0x486   : > { %v4807_v57 = vpop.permute.xlu1 %4806  ;;  %v4801_v49 = vpop.permute.xlu0 %4800  ;;  %3876 = vmatprep.mubr.f32.mxu0 %v9994_v25  ;;  %v3644_v13 = vsel %vm344_vm3, %v6619_v33, %v8656_v7 }
 0x487   : > { %v8867_v30 = vsel %vm995_vm10, %v4807_v57, %v8795_v39 }
 0x488   : > { %5351 = vrot.lane.b32.xlu1 %v8550_v60, %s6795_s21 }
 0x489   : > { %6741 = vrot.lane.b32.xlu0 %v9994_v25, %s6796_s22  ;;  %6283 = vmatmul.mubr.msk.f32.gmra.mxu0 %vm3781_vm15, %v3694_v4 }
 0x48a   : > { %v4803_v43 = vpop.permute.xlu1 %4802  ;;  %v8874_v32 = vpop.permute.xlu0 %4796  ;;  %3882 = vmatprep.mubr.f32.mxu0 %v9994_v25 }
 0x48b   : > { %v8878_v9 = vsel %vm995_vm10, %v4801_v49, %v4803_v43  ;;  %v8881_v27 = vsel %vm995_vm10, %v4803_v43, %v6688_v50  ;;  %v8885_v5 = vsel %vm995_vm10, %v8874_v32, %v6689_v47  ;;  %v3649_v49 = vsel %vm344_vm3, %v8736_v44, %v8756_v31  ;;  %v5799_v31 = vld [vmem:[%s9893_s6 + $0x8] sm:$0xff] }
 0x48c   : > { %5584 = vrot.lane.b32.xlu1 %v8550_v60, %s6796_s22  ;;  %v3647_v43 = vsel %vm344_vm3, %v8688_v2, %v8720_v17  ;;  %v3645_v17 = vsel %vm344_vm3, %v8656_v7, %v8680_v20  ;;  %v3643_v20 = vsel %vm344_vm3, %v8632_v61, %v8642_v11  ;;  %v3641_v11 = vsel %vm344_vm3, %v8600_v15, %v8610_v21 }
 0x48d   : > { %5546 = vrot.lane.b32.xlu0 %v8333_v45, %s6796_s22  ;;  %6284 = vmatmul.mubr.msk.f32.gmra.mxu0 %vm3781_vm15, %v3695_v35  ;;  %v3639_v21 = vsel %vm344_vm3, %v8560_v42, %v8584_v22  ;;  %v3637_v22 = vsel %vm344_vm3, %v8522_v62, %v8552_v38  ;;  %v5805_v38 = vld [vmem:[%s9893_s6 + $0x38] sm:$0xff] }
 0x48e   : > { %v5067_v52 = vpop.permute.xlu1 %5066  ;;  %v3635_v51 = vpop.permute.xlu0 %3634  ;;  %3888 = vmatprep.mubr.f32.mxu0 %v9994_v25 }
 0x48f   : > { %v8896_v19 = vsel %vm1133_vm11, %v5067_v52, %v6684_v26  ;;  %v3651_v14 = vsel %vm344_vm3, %v8792_v36, %v3635_v51  ;;  %v3648_v36 = vsel %vm344_vm3, %v6609_v55, %v8736_v44  ;;  %v3697_v26 = vld [vmem:[#allocation5 + $0x60] sm:$0xff]  ;;  %v3646_v51 = vsel %vm344_vm3, %v6618_v29, %v8688_v2 }
 0x490   : > { %5552 = vrot.lane.b32.xlu1 %v8361_v24, %s6796_s22  ;;  %6290 = vmatprep.subr.msk.mxu1 %vm6945_vm5, %v3651_v14 }
 0x491   : > { %5540 = vrot.lane.b32.xlu0 %v8301_v58, %s6796_s22  ;;  %6291 = vmatpush1.msk.msra.mxu1 %vm6941_vm4, %v3650_v59  ;;  %v3698_v59 = vld [vmem:[#allocation5 + $0x68] sm:$0xff] }
 0x492   : > { %v5065_v47 = vpop.permute.xlu1 %5064  ;;  %6292 = vmatprep.subr.msk.mxu1 %vm6945_vm5, %v3649_v49  ;;  %v8919_v50 = vpop.permute.xlu0 %6691  ;;  %6285 = vmatmul.mubr.msk.f32.gmra.mxu0 %vm3781_vm15, %v3696_v10  ;;  %v5801_v10 = vld [vmem:[%s9893_s6 + $0x18] sm:$0xff]  ;;  %v6629_v49 = vunpack.i.h.bf16 %v8473_v0 }
 0x493   : > { %v8929_v35 = vsel %vm1133_vm11, %v5065_v47, %v5067_v52  ;;  %v6693_v44 = vunpack.i.l.bf16 %v8919_v50  ;;  %6293 = vmatpush1.msk.msra.mxu1 %vm6941_vm4, %v3648_v36  ;;  %3894 = vmatprep.mubr.f32.mxu0 %v9994_v25  ;;  %v6628_v52 = vunpack.i.l.bf16 %v8473_v0  ;;  %v6638_v36 = vunpack.i.l.bf16 %v8486_v37 }
 0x494   : > { %5548 = vrot.lane.b32.xlu1 %v8344_v16, %s6796_s22  ;;  %6294 = vmatprep.subr.msk.mxu1 %vm6945_vm5, %v3647_v43  ;;  %v3640_v0 = vsel %vm344_vm3, %v6629_v49, %v8600_v15  ;;  %v3699_v15 = vld [vmem:[#allocation5 + $0x70] sm:$0xff] }
 0x495   : > { %5813 = vperm.xlu0 %6503, %v5799_v31   ;;  %6295 = vmatpush1.msk.msra.mxu1 %vm6941_vm4, %v3646_v51  ;;  %v3642_v29 = vsel %vm344_vm3, %v6628_v52, %v8632_v61  ;;  %v5803_v31 = vld [vmem:[%s9893_s6 + $0x28] sm:$0xff] }
 0x496   : > { %v5061_v2 = vpop.permute.xlu1 %5060  ;;  %6296 = vmatprep.subr.msk.mxu1 %vm6945_vm5, %v3645_v17  ;;  %v5059_v14 = vpop.permute.xlu0 %5058  ;;  %6286 = vmatmul.mubr.msk.f32.gmra.mxu0 %vm3781_vm15, %v3697_v26  ;;  %v3638_v26 = vsel %vm344_vm3, %v6638_v36, %v8560_v42  ;;  %v6613_v17 = vunpack.i.l.bf16 %v8413_v3  ;;  %v3685_v36 = vld [vmem:[#allocation5 + $0x8] sm:$0xff] }
 0x497   : > { %v8960_v55 = vsel %vm1133_vm11, %v5061_v2, %v6693_v44  ;;  %v8963_v7 = vsel %vm1133_vm11, %v5059_v14, %v5061_v2  ;;  %6297 = vmatpush1.msk.msra.mxu1 %vm6941_vm4, %v3644_v13  ;;  %3900 = vmatprep.mubr.f32.mxu0 %v9994_v25  ;;  %v6639_v44 = vunpack.i.h.bf16 %v8486_v37  ;;  %v5798_v37 = vld [vmem:[%s9893_s6] sm:$0xff]  ;;  %v3700_v14 = vld [vmem:[#allocation5 + $0x78] sm:$0xff] }
 0x498   : > { %5307 = vrot.lane.b32.xlu1 %v8301_v58, %s6795_s21  ;;  %6298 = vmatprep.subr.msk.mxu1 %vm6945_vm5, %v3643_v20  ;;  %v5639_v20 = vld [vmem:[#allocation5 + $0x210] sm:$0xff] }
 0x499   : > { %5823 = vperm.xlu0 %6503, %v5801_v10   ;;  %6299 = vmatpush1.msk.msra.mxu1 %vm6941_vm4, %v3642_v29  ;;  %v3636_v42 = vsel %vm344_vm3, %v6639_v44, %v8522_v62  ;;  %v6614_v62 = vunpack.i.h.bf16 %v8413_v3  ;;  %v4118_v10 = vsel %vm598_vm6, %v6613_v17, %v8762_v1  ;;  %v4117_v3 = vsel %vm598_vm6, %v8728_v28, %v8748_v54  ;;  %v10025_v44 = vld [vmem:[#allocation44_spill] sm:$0xff]  ;;  %v5302_v29 = vld [vmem:[#allocation5 + $0x1d8] sm:$0xff] }
 0x49a   : > { %v4795_v61 = vpop.permute.xlu1 %4794  ;;  %6300 = vmatprep.subr.msk.mxu1 %vm6945_vm5, %v3641_v11  ;;  %v6697_v47 = vpop.permute.xlu0 %6696  ;;  %6287 = vmatmul.mubr.msk.f32.gmra.mxu0 %vm3781_vm15, %v3698_v59  ;;  %v5800_v59 = vld [vmem:[%s9893_s6 + $0x10] sm:$0xff]  ;;  %v4115_v54 = vsel %vm598_vm6, %v8696_v48, %v8706_v40  ;;  %v5802_v40 = vld [vmem:[%s9893_s6 + $0x20] sm:$0xff] }
 0x49b   : > { %v8994_v43 = vsel %vm995_vm10, %v4795_v61, %v8874_v32  ;;  %6301 = vmatpush1.msk.msra.mxu1 %vm6941_vm4, %v3640_v0  ;;  %3906 = vmatprep.mubr.f32.mxu0 %v9994_v25  ;;  %v3684_v32 = vld [vmem:[#allocation5] sm:$0xff]  ;;  %v6699_v52 = vunpack.i.h.bf16 %v6697_v47  ;;  %v6698_v13 = vunpack.i.l.bf16 %v6697_v47  ;;  %v4116_v49 = vsel %vm598_vm6, %v6614_v62, %v8728_v28 }
 0x49c   : > { %5542 = vrot.lane.b32.xlu1 %v8312_v18, %s6796_s22  ;;  %6302 = vmatprep.subr.msk.mxu1 %vm6945_vm5, %v3639_v21  ;;  %v6623_v0 = vunpack.i.l.bf16 %v8426_v56  ;;  %v10030_v62 = vld [vmem:[#allocation36_spill] sm:$0xff] }
 0x49d   : > { %5833 = vperm.xlu0 %6503, %v5803_v31   ;;  %6303 = vmatpush1.msk.msra.mxu1 %vm6941_vm4, %v3638_v26  ;;  %v6624_v31 = vunpack.i.h.bf16 %v8426_v56  ;;  %v10026_v26 = vld [vmem:[#allocation42_spill] sm:$0xff] }
 0x49e   : > { %v4103_v33 = vpop.permute.xlu1 %4102  ;;  %6304 = vmatprep.subr.msk.mxu1 %vm6945_vm5, %v3637_v22  ;;  %v4789_v51 = vpop.permute.xlu0 %4788  ;;  %6288 = vmatmul.mubr.msk.f32.gmra.mxu0 %vm3781_vm15, %v3699_v15  ;;  %v4114_v21 = vsel %vm598_vm6, %v6623_v0, %v8696_v48  ;;  %v6694_v15 = vunpack.i.h.bf16 %v8919_v50  ;;  %v4113_v22 = vsel %vm598_vm6, %v10026_v26, %v10025_v44  ;;  %v3686_v50 = vld [vmem:[#allocation5 + $0x10] sm:$0xff] }
 0x49f   : > { %v4119_v2 = vsel %vm598_vm6, %v8762_v1, %v4103_v33  ;;  %6305 = vmatpush1.msk.msra.mxu1 %vm6941_vm4, %v3636_v42  ;;  %3912 = vmatprep.mubr.f32.mxu0 %v9994_v25  ;;  %v4112_v42 = vsel %vm598_vm6, %v6624_v31, %v10026_v26 }
 0x4a0   : > { %5808 = vperm.xlu1 %6504, %v5798_v37   ;;  %6306 = vmatmul.mubr.msk.f32.vlgmr.msra.gmra.mxu1 %vm3781_vm15, %v3684_v32  ;;  %v10027_v37 = vld [vmem:[#allocation12_spill] sm:$0xff] }
 0x4a1   : > { %5843 = vperm.xlu0 %6503, %v5805_v38   ;;  %6314 = vmatprep.subr.msk.mxu0 %vm6966_vm7, %v4119_v2  ;;  %v6633_v32 = vunpack.i.l.bf16 %v10027_v37  ;;  %v10029_v38 = vld [vmem:[#allocation38_spill] sm:$0xff]  ;;  %v5804_v2 = vld [vmem:[%s9893_s6 + $0x30] sm:$0xff] }
 0x4a2   : > { %6315 = vmatpush1.msk.msra.mxu0 %vm6982_vm8, %v4118_v10  ;;  %v4791_v11 = vpop.permute.xlu1 %4790  ;;  %v9044_v1 = vpop.permute.xlu0 %4784  ;;  %4013 = vmatprep.mubr.f32.mxu1 %v9994_v25 }
 0x4a3   : > { %v9049_v61 = vsel %vm995_vm10, %v4789_v51, %v4791_v11  ;;  %v9052_v47 = vsel %vm995_vm10, %v4791_v11, %v6698_v13  ;;  %6316 = vmatprep.subr.msk.mxu0 %vm6966_vm7, %v4117_v3  ;;  %v9058_v28 = vsel %vm995_vm10, %v9044_v1, %v6699_v52  ;;  %6289 = vmatmul.mubr.msk.f32.gmra.mxu0 %vm3781_vm15, %v3700_v14  ;;  %v10028_v51 = vld [vmem:[#allocation40_spill] sm:$0xff]  ;;  %v6634_v52 = vunpack.i.h.bf16 %v10027_v37  ;;  %v10031_v14 = vld [vmem:[#allocation34_spill] sm:$0xff]  ;;  %v3687_v3 = vld [vmem:[#allocation5 + $0x18] sm:$0xff] }
 0x4a4   : > { %6317 = vmatpush1.msk.msra.mxu0 %vm6982_vm8, %v4116_v49  ;;  %5818 = vperm.xlu1 %6504, %v5800_v59   ;;  %v4111_v17 = vsel %vm598_vm6, %v10029_v38, %v10028_v51  ;;  %v4110_v13 = vsel %vm598_vm6, %v6633_v32, %v10029_v38  ;;  %v4109_v10 = vsel %vm598_vm6, %v10031_v14, %v10030_v62  ;;  %v10032_v11 = vld [vmem:[#allocation14_spill] sm:$0xff]  ;;  %v3688_v38 = vld [vmem:[#allocation5 + $0x20] sm:$0xff] }
 0x4a5   : > { %6307 = vmatmul.mubr.msk.f32.gmra.mxu1 %vm3781_vm15, %v3685_v36  ;;  %6318 = vmatprep.subr.msk.mxu0 %vm6966_vm7, %v4115_v54  ;;  %v6643_v36 = vunpack.i.l.bf16 %v10032_v11  ;;  %v4108_v0 = vsel %vm598_vm6, %v6634_v52, %v10031_v14  ;;  %v6644_v44 = vunpack.i.h.bf16 %v10032_v11  ;;  %v10037_v37 = vld [vmem:[#allocation26_spill] sm:$0xff]  ;;  %v10039_v11 = vld [vmem:[#allocation53_spill] sm:$0xff] }
 0x4a6   : > { %6319 = vmatpush1.msk.msra.mxu0 %vm6982_vm8, %v4114_v21  ;;  %v5055_v56 = vpop.permute.xlu1 %5054  ;;  %v9081_v48 = vpop.permute.xlu0 %6701  ;;  %4019 = vmatprep.mubr.f32.mxu1 %v9994_v25  ;;  %v10033_v21 = vld [vmem:[#allocation32_spill] sm:$0xff] }
 0x4a7   : > { %v9088_v33 = vsel %vm1133_vm11, %v5055_v56, %v6694_v15  ;;  %6320 = vmatprep.subr.msk.mxu0 %vm6966_vm7, %v4113_v22  ;;  %4249 = vmatprep.mubr.f32.mxu0 %v9994_v25  ;;  %v6703_v54 = vunpack.i.l.bf16 %v9081_v48  ;;  %v10034_v15 = vld [vmem:[#allocation30_spill] sm:$0xff]  ;;  %v10035_v22 = vld [vmem:[#allocation20_spill] sm:$0xff]  ;;  %v4104_v52 = vsel %vm598_vm6, %v6644_v44, %v10037_v37 }
 0x4a8   : > { %6321 = vmatpush1.msk.msra.mxu0 %vm6982_vm8, %v4112_v42  ;;  %5828 = vperm.xlu1 %6504, %v5802_v40   ;;  %v4107_v40 = vsel %vm598_vm6, %v10034_v15, %v10033_v21  ;;  %v4106_v26 = vsel %vm598_vm6, %v6643_v36, %v10034_v15  ;;  %v10040_v36 = vld [vmem:[#allocation51_spill] sm:$0xff]  ;;  %v10042_v21 = vld [vmem:[#allocation16_spill] sm:$0xff]  ;;  %v10044_v44 = vld [vmem:[#allocation46_spill] sm:$0xff] }
 0x4a9   : > { %6308 = vmatmul.mubr.msk.f32.gmra.mxu1 %vm3781_vm15, %v3686_v50  ;;  %6322 = vmatprep.subr.msk.mxu0 %vm6966_vm7, %v4111_v17  ;;  %v10036_v50 = vld [vmem:[#allocation28_spill] sm:$0xff]  ;;  %v6653_v15 = vunpack.i.l.bf16 %v10042_v21 }
 0x4aa   : > { %6323 = vmatpush1.msk.msra.mxu0 %vm6982_vm8, %v4110_v13  ;;  %v5053_v59 = vpop.permute.xlu1 %5052  ;;  %v5047_v49 = vpop.permute.xlu0 %5046  ;;  %4025 = vmatprep.mubr.f32.mxu1 %v9994_v25  ;;  %v4105_v32 = vsel %vm598_vm6, %v10037_v37, %v10036_v50  ;;  %v4153_v17 = vld [vmem:[#allocation5 + $0x80] sm:$0xff] }
 0x4ab   : > { %v9118_v31 = vsel %vm1133_vm11, %v5053_v59, %v5055_v56  ;;  %6324 = vmatprep.subr.msk.mxu0 %vm6966_vm7, %v4109_v10  ;;  %v6648_v56 = vunpack.i.l.bf16 %v10035_v22  ;;  %v6649_v10 = vunpack.i.h.bf16 %v10035_v22  ;;  %v10045_v22 = vld [vmem:[#allocation19_spill] sm:$0xff]  ;;  %v4372_v37 = vsel %vm736_vm9, %v6653_v15, %v10044_v44  ;;  %v10053_v15 = vld [vmem:[#allocation37_spill] sm:$0xff] }
 0x4ac   : > { %6325 = vmatpush1.msk.msra.mxu0 %vm6982_vm8, %v4108_v0  ;;  %5838 = vperm.xlu1 %6504, %v5804_v2  }
 0x4ad   : > { %6309 = vmatmul.mubr.msk.f32.gmra.mxu1 %vm3781_vm15, %v3687_v3  ;;  %6326 = vmatprep.subr.msk.mxu0 %vm6966_vm7, %v4107_v40  ;;  %v4376_v14 = vsel %vm736_vm9, %v6648_v56, %v8809_v53  ;;  %v10038_v3 = vld [vmem:[#allocation25_spill] sm:$0xff]  ;;  %v4374_v0 = vsel %vm736_vm9, %v6649_v10, %v10040_v36  ;;  %v10043_v40 = vld [vmem:[#allocation48_spill] sm:$0xff]  ;;  %v4155_v10 = vld [vmem:[#allocation5 + $0x90] sm:$0xff] }
 0x4ae   : > { %6327 = vmatpush1.msk.msra.mxu0 %vm6982_vm8, %v4106_v26  ;;  %v5049_v42 = vpop.permute.xlu1 %5048  ;;  %v4361_v51 = vpop.permute.xlu0 %4360  ;;  %4031 = vmatprep.mubr.f32.mxu1 %v9994_v25  ;;  %v4373_v26 = vsel %vm736_vm9, %v10044_v44, %v10043_v40  ;;  %v10054_v40 = vld [vmem:[#allocation35_spill] sm:$0xff] }
 0x4af   : > { %v9143_v13 = vsel %vm1133_vm11, %v5047_v49, %v5049_v42  ;;  %v9146_v2 = vsel %vm1133_vm11, %v5049_v42, %v6703_v54  ;;  %6328 = vmatprep.subr.msk.mxu0 %vm6966_vm7, %v4105_v32  ;;  %v4377_v62 = vsel %vm736_vm9, %v8809_v53, %v4361_v51  ;;  %v3689_v53 = vld [vmem:[#allocation5 + $0x28] sm:$0xff]  ;;  %v10041_v54 = vld [vmem:[#allocation24_spill] sm:$0xff]  ;;  %v6654_v32 = vunpack.i.h.bf16 %v10042_v21  ;;  %v10047_v51 = vld [vmem:[#allocation43_spill] sm:$0xff] }
 0x4b0   : > { %6329 = vmatpush1.msk.msra.mxu0 %vm6982_vm8, %v4104_v52  ;;  %6338 = vmatprep.subr.msk.mxu1 %vm6945_vm5, %v4377_v62  ;;  %v10046_v42 = vld [vmem:[#allocation45_spill] sm:$0xff]  ;;  %v3690_v62 = vld [vmem:[#allocation5 + $0x30] sm:$0xff]  ;;  %v4367_v44 = vsel %vm736_vm9, %v10054_v40, %v10053_v15 }
 0x4b1   : > { %6310 = vmatmul.mubr.msk.f32.gmra.mxu1 %vm3781_vm15, %v3688_v38  ;;  %6330 = vmatmul.mubr.msk.f32.vlgmr.msra.gmra.mxu0 %vm3781_vm15, %v4153_v17  ;;  %v4371_v38 = vsel %vm736_vm9, %v10047_v51, %v10046_v42  ;;  %v10048_v17 = vld [vmem:[#allocation15_spill] sm:$0xff]  ;;  %v10049_v52 = vld [vmem:[#allocation13_spill] sm:$0xff] }
 0x4b2   : > { %4621 = vmatprep.subr.mxu0 %v8550_v60  ;;  %6339 = vmatpush1.msk.msra.mxu1 %vm6941_vm4, %v4376_v14  ;;  %v9164_v59 = vpop.permute.xlu1 %4782  ;;  %v9166_v49 = vpop.permute.xlu0 %5040  ;;  %v4154_v60 = vld [vmem:[#allocation5 + $0x88] sm:$0xff]  ;;  %v4370_v14 = vsel %vm736_vm9, %v6654_v32, %v10047_v51  ;;  %v10055_v32 = vld [vmem:[#allocation18_spill] sm:$0xff]  ;;  %v10057_v51 = vld [vmem:[#allocation31_spill] sm:$0xff] }
 0x4b3   : > { %4622 = vmatpush1.msra.mxu0 %v10038_v3  ;;  %6340 = vmatprep.subr.msk.mxu1 %vm6945_vm5, %v10039_v11  ;;  %v6663_v42 = vunpack.i.l.bf16 %v10055_v32 }
 0x4b4   : > { %4623 = vmatprep.subr.mxu0 %v10041_v54  ;;  %4037 = vmatprep.mubr.f32.mxu1 %v9994_v25  ;;  %v10052_v54 = vld [vmem:[#allocation39_spill] sm:$0xff] }
 0x4b5   : > { %4255 = vmatprep.mubr.f32.mxu0 %v9994_v25  ;;  %6341 = vmatpush1.msk.msra.mxu1 %vm6941_vm4, %v4374_v0  ;;  %v10051_v0 = vld [vmem:[#allocation41_spill] sm:$0xff] }
 0x4b6   : > { %4624 = vmatpush1.msra.mxu0 %v10045_v22  ;;  %6311 = vmatmul.mubr.msk.f32.gmra.mxu1 %vm3781_vm15, %v3689_v53  ;;  %v9185_v56 = vpop.permute.xlu1 %5042  ;;  %v9187_v50 = vpop.permute.xlu0 %6706  ;;  %v10050_v53 = vld [vmem:[#allocation22_spill] sm:$0xff]  ;;  %v3691_v22 = vld [vmem:[#allocation5 + $0x38] sm:$0xff] }
 0x4b7   : > { %6331 = vmatmul.mubr.msk.f32.gmra.mxu0 %vm3781_vm15, %v4154_v60  ;;  %6342 = vmatprep.subr.msk.mxu1 %vm6945_vm5, %v4373_v26  ;;  %v6658_v36 = vunpack.i.l.bf16 %v10050_v53  ;;  %v4369_v60 = vsel %vm736_vm9, %v10052_v54, %v10051_v0  ;;  %v6659_v21 = vunpack.i.h.bf16 %v10050_v53  ;;  %v4411_v53 = vld [vmem:[#allocation5 + $0xc0] sm:$0xff] }
 0x4b8   : > { %4625 = vmatprep.subr.mxu0 %v10048_v17  ;;  %6343 = vmatpush1.msk.msra.mxu1 %vm6941_vm4, %v4372_v37  ;;  %v4157_v0 = vld [vmem:[#allocation5 + $0xa0] sm:$0xff] }
 0x4b9   : > { %4626 = vmatpush1.msra.mxu0 %v10049_v52  ;;  %6344 = vmatprep.subr.msk.mxu1 %vm6945_vm5, %v4371_v38  ;;  %v4366_v37 = vsel %vm736_vm9, %v6659_v21, %v10054_v40  ;;  %v4364_v52 = vsel %vm736_vm9, %v6663_v42, %v10057_v51  ;;  %v4159_v21 = vld [vmem:[#allocation5 + $0xb0] sm:$0xff]  ;;  %v4573_v42 = vld [vmem:[#allocation5 + $0x100] sm:$0xff] }
 0x4ba   : > { %4627 = vmatprep.subr.mxu0 %v8422_v6  ;;  %4043 = vmatprep.mubr.f32.mxu1 %v9994_v25  ;;  %v9208_v3 = vpop.permute.xlu1 %5349  ;;  %v9210_v11 = vpop.permute.xlu0 %5345  ;;  %v4368_v6 = vsel %vm736_vm9, %v6658_v36, %v10052_v54 }
 0x4bb   : > { %4261 = vmatprep.mubr.f32.mxu0 %v9994_v25  ;;  %6345 = vmatpush1.msk.msra.mxu1 %vm6941_vm4, %v4370_v14  ;;  %v10058_v14 = vld [vmem:[#allocation29_spill] sm:$0xff] }
 0x4bc   : > { %4628 = vmatpush1.msra.mxu0 %v8415_v12  ;;  %6312 = vmatmul.mubr.msk.f32.gmra.mxu1 %vm3781_vm15, %v3690_v62  ;;  %v6664_v62 = vunpack.i.h.bf16 %v10055_v32  ;;  %v4415_v32 = vld [vmem:[#allocation5 + $0xe0] sm:$0xff] }
 0x4bd   : > { %6332 = vmatmul.mubr.msk.f32.gmra.mxu0 %vm3781_vm15, %v4155_v10  ;;  %6346 = vmatprep.subr.msk.mxu1 %vm6945_vm5, %v4369_v60  ;;  %v10059_v10 = vld [vmem:[#allocation27_spill] sm:$0xff] }
 0x4be   : > { %4629 = vmatprep.subr.mxu0 %v8394_v63  ;;  %6347 = vmatpush1.msk.msra.mxu1 %vm6941_vm4, %v4368_v6  ;;  %v9233_v12 = vpop.permute.xlu1 %5343  ;;  %v9235_v26 = vpop.permute.xlu0 %6711  ;;  %v4156_v63 = vld [vmem:[#allocation5 + $0x98] sm:$0xff]  ;;  %v4362_v36 = vsel %vm736_vm9, %v6664_v62, %v10059_v10  ;;  %v4416_v62 = vld [vmem:[#allocation5 + $0xe8] sm:$0xff] }
 0x4bf   : > { %4630 = vmatpush1.msra.mxu0 %v8385_v46  ;;  %6348 = vmatprep.subr.msk.mxu1 %vm6945_vm5, %v4367_v44  ;;  %v10056_v46 = vld [vmem:[#allocation33_spill] sm:$0xff]  ;;  %v4414_v44 = vld [vmem:[#allocation5 + $0xd8] sm:$0xff] }
 0x4c0   : > { %4631 = vmatprep.subr.mxu0 %v8368_v41  ;;  %4049 = vmatprep.mubr.f32.mxu1 %v9994_v25  ;;  %v4365_v38 = vsel %vm736_vm9, %v10057_v51, %v10056_v46 }
 0x4c1   : > { %4267 = vmatprep.mubr.f32.mxu0 %v9994_v25  ;;  %6349 = vmatpush1.msk.msra.mxu1 %vm6941_vm4, %v4366_v37 }
 0x4c2   : > { %4632 = vmatpush1.msra.mxu0 %v8361_v24  ;;  %6313 = vmatmul.mubr.msk.f32.gmra.mxu1 %vm3781_vm15, %v3691_v22  ;;  %v9253_v17 = vpop.permute.xlu1 %5339  ;;  %v9255_v41 = vpop.permute.xlu0 %5582  ;;  %v4363_v24 = vsel %vm736_vm9, %v10059_v10, %v10058_v14  ;;  %v4160_v22 = vld [vmem:[#allocation5 + $0xb8] sm:$0xff]  ;;  %v4574_v14 = vld [vmem:[#allocation5 + $0x108] sm:$0xff] }
 0x4c3   : > { %6333 = vmatmul.mubr.msk.f32.gmra.mxu0 %vm3781_vm15, %v4156_v63  ;;  %6350 = vmatprep.subr.msk.mxu1 %vm6945_vm5, %v4365_v38  ;;  %v10060_v38 = vld [vmem:[#allocation17_spill] sm:$0xff] }
 0x4c4   : > { %4633 = vmatprep.subr.mxu0 %v8344_v16  ;;  %6351 = vmatpush1.msk.msra.mxu1 %vm6941_vm4, %v4364_v52  ;;  %v6668_v52 = vunpack.i.l.bf16 %v10060_v38 }
 0x4c5   : > { %4634 = vmatpush1.msra.mxu0 %v8333_v45  ;;  %6352 = vmatprep.subr.msk.mxu1 %vm6945_vm5, %v4363_v24  ;;  %v4158_v45 = vld [vmem:[#allocation5 + $0xa8] sm:$0xff] }
 0x4c6   : > { %4635 = vmatprep.subr.mxu0 %v8312_v18  ;;  %4273 = vmatprep.mubr.f32.mxu0 %v9994_v25  ;;  %v9276_v54 = vpop.permute.xlu1 %5578  ;;  %v9278_v16 = vpop.permute.xlu0 %6716  ;;  %v4412_v18 = vld [vmem:[#allocation5 + $0xc8] sm:$0xff] }
 0x4c7   : > { %6353 = vmatpush1.msk.msra.mxu1 %vm6941_vm4, %v4362_v36  ;;  %4507 = vmatprep.mubr.f32.mxu1 %v9994_v25 }
 0x4c8   : > { %4636 = vmatpush1.msra.mxu0 %v8301_v58  ;;  %6354 = vmatmul.mubr.msk.f32.vlgmr.msra.gmra.mxu1 %vm3781_vm15, %v4411_v53  ;;  %v4413_v58 = vld [vmem:[#allocation5 + $0xd0] sm:$0xff] }
 0x4c9   : > { %6334 = vmatmul.mubr.msk.f32.gmra.mxu0 %vm3781_vm15, %v4157_v0  ;;  %4513 = vmatprep.mubr.f32.mxu1 %v9994_v25  ;;  %v6669_v0 = vunpack.i.h.bf16 %v10060_v38  ;;  %v10063_v38 = vld [vmem:[#allocation23_spill] sm:$0xff] }
 0x4ca   : > { %4279 = vmatprep.mubr.f32.mxu0 %v9994_v25  ;;  %v9288_v60 = vpop.permute.xlu1 %5576  ;;  %v9290_v6 = vpop.permute.xlu0 %5337 }
 0x4cc   : > { %6355 = vmatmul.mubr.msk.f32.gmra.mxu1 %vm3781_vm15, %v4412_v18  ;;  %v10061_v18 = vld [vmem:[#allocation21_spill] sm:$0xff] }
 0x4cd   : > { %6335 = vmatmul.mubr.msk.f32.gmra.mxu0 %vm3781_vm15, %v4158_v45  ;;  %4519 = vmatprep.mubr.f32.mxu1 %v9994_v25  ;;  %v6673_v45 = vunpack.i.l.bf16 %v10061_v18 }
 0x4ce   : > { %4285 = vmatprep.mubr.f32.mxu0 %v9994_v25  ;;  %v9296_v15 = vpop.permute.xlu1 %5572  ;;  %v9298_v40 = vpop.permute.xlu0 %5333 }
 0x4d0   : > { %6356 = vmatmul.mubr.msk.f32.gmra.mxu1 %vm3781_vm15, %v4413_v58  ;;  %v4417_v58 = vld [vmem:[#allocation5 + $0xf0] sm:$0xff] }
 0x4d1   : > { %6336 = vmatmul.mubr.msk.f32.gmra.mxu0 %vm3781_vm15, %v4159_v21  ;;  %4525 = vmatprep.mubr.f32.mxu1 %v9994_v25  ;;  %v10062_v21 = vld [vmem:[#allocation52_spill] sm:$0xff] }
 0x4d2   : > { %4291 = vmatprep.mubr.f32.mxu0 %v9994_v25  ;;  %v9304_v37 = vpop.permute.xlu1 %5331  ;;  %v9306_v63 = vpop.permute.xlu0 %6721 }
 0x4d4   : > { %6357 = vmatmul.mubr.msk.f32.gmra.mxu1 %vm3781_vm15, %v4414_v44  ;;  %v4843_v44 = vsel %vm995_vm10, %v10062_v21, %v6669_v0  ;;  %v4418_v0 = vld [vmem:[#allocation5 + $0xf8] sm:$0xff] }
 0x4d5   : > { %6337 = vmatmul.mubr.msk.f32.gmra.mxu0 %vm3781_vm15, %v4160_v22  ;;  %4531 = vmatprep.mubr.f32.mxu1 %v9994_v25 }
 0x4d6   : > { %4669 = vmatprep.mubr.f32.mxu0 %v9994_v25  ;;  %v9312_v46 = vpop.permute.xlu1 %5327  ;;  %v9314_v51 = vpop.permute.xlu0 %5570 }
 0x4d8   : > { %6358 = vmatmul.mubr.msk.f32.gmra.mxu1 %vm3781_vm15, %v4415_v32 }
 0x4d9   : > { %6362 = vmatmul.mubr.msk.f32.vlgmr.msra.gmra.mxu0 %vm3781_vm15, %v4573_v42  ;;  %4537 = vmatprep.mubr.f32.mxu1 %v9994_v25 }
 0x4da   : > { %4675 = vmatprep.mubr.f32.mxu0 %v9994_v25  ;;  %v4827_v10 = vpop.permute.xlu1 %4826  ;;  %v9321_v24 = vpop.permute.xlu0 %6726 }
 0x4db   : > { %v4844_v53 = vsel %vm995_vm10, %v8829_v23, %v4827_v10  ;;  %v4845_v36 = vsel %vm995_vm10, %v4827_v10, %v6668_v52  ;;  %v4575_v23 = vld [vmem:[#allocation5 + $0x110] sm:$0xff]  ;;  %v6678_v52 = vunpack.i.l.bf16 %v10063_v38  ;;  %v6674_v10 = vunpack.i.h.bf16 %v10061_v18 }
 0x4dc   : > { %6359 = vmatmul.mubr.msk.f32.gmra.mxu1 %vm3781_vm15, %v4416_v62  ;;  %6370 = vmatprep.subr.msk.mxu1 %vm6966_vm7, %v4845_v36  ;;  %v10064_v62 = vld [vmem:[#allocation55_spill] sm:$0xff]  ;;  %v6679_v18 = vunpack.i.h.bf16 %v10063_v38 }
 0x4dd   : > { %6363 = vmatmul.mubr.msk.f32.gmra.mxu0 %vm3781_vm15, %v4574_v14  ;;  %4543 = vmatprep.mubr.f32.mxu1 %v9994_v25 }
 0x4de   : > { %4681 = vmatprep.mubr.f32.mxu0 %v9994_v25  ;;  %6371 = vmatpush1.msk.msra.mxu1 %vm6982_vm8, %v4844_v53  ;;  %v5085_v22 = vpop.permute.xlu1 %5084  ;;  %v9341_v42 = vpop.permute.xlu0 %5325  ;;  %v10065_v53 = vld [vmem:[#allocation50_spill] sm:$0xff]  ;;  %v4839_v38 = vsel %vm995_vm10, %v8795_v39, %v6679_v18  ;;  %v10069_v39 = vld [vmem:[#allocation56_spill] sm:$0xff]  ;;  %v6719_v18 = vunpack.i.h.bf16 %v9278_v16 }
 0x4df   : > { %v5103_v32 = vsel %vm1133_vm11, %v5085_v22, %v6673_v45  ;;  %6372 = vmatprep.subr.msk.mxu1 %vm6966_vm7, %v4843_v44  ;;  %v5102_v14 = vsel %vm1133_vm11, %v10064_v62, %v5085_v22  ;;  %v4842_v36 = vsel %vm995_vm10, %v10065_v53, %v10062_v21  ;;  %v4576_v45 = vld [vmem:[#allocation5 + $0x118] sm:$0xff] }
 0x4e0   : > { %6360 = vmatmul.mubr.msk.f32.gmra.mxu1 %vm3781_vm15, %v4417_v58  ;;  %6394 = vmatprep.subr.msk.mxu0 %vm6945_vm5, %v5103_v32  ;;  %v10066_v58 = vld [vmem:[#allocation49_spill] sm:$0xff]  ;;  %v10067_v32 = vld [vmem:[#allocation54_spill] sm:$0xff] }
 0x4e1   : > { %6364 = vmatmul.mubr.msk.f32.gmra.mxu0 %vm3781_vm15, %v4575_v23  ;;  %4549 = vmatprep.mubr.f32.mxu1 %v9994_v25  ;;  %v4841_v44 = vsel %vm995_vm10, %v10066_v58, %v6678_v52  ;;  %v5101_v21 = vsel %vm1133_vm11, %v10067_v32, %v6674_v10  ;;  %v10068_v23 = vld [vmem:[#allocation47_spill] sm:$0xff]  ;;  %v4883_v32 = vld [vmem:[#allocation5 + $0x160] sm:$0xff] }
 0x4e2   : > { %4687 = vmatprep.mubr.f32.mxu0 %v9994_v25  ;;  %6373 = vmatpush1.msk.msra.mxu1 %vm6982_vm8, %v4842_v36  ;;  %v9360_v22 = vpop.permute.xlu1 %5566  ;;  %v4840_v62 = vsel %vm995_vm10, %v10068_v23, %v10066_v58  ;;  %v9380_v52 = vpop.permute.xlu0 %5321  ;;  %v5367_v58 = vsel %vm1276_vm12, %v9233_v12, %v9210_v11 }
 0x4e3   : > { %6374 = vmatprep.subr.msk.mxu1 %vm6966_vm7, %v4841_v44  ;;  %6395 = vmatpush1.msk.msra.mxu0 %vm6941_vm4, %v5102_v14  ;;  %v4577_v14 = vld [vmem:[#allocation5 + $0x120] sm:$0xff] }
 0x4e4   : > { %6361 = vmatmul.mubr.msk.f32.gmra.mxu1 %vm3781_vm15, %v4418_v0  ;;  %6396 = vmatprep.subr.msk.mxu0 %vm6945_vm5, %v5101_v21 }
 0x4e5   : > { %6365 = vmatmul.mubr.msk.f32.gmra.mxu0 %vm3781_vm15, %v4576_v45  ;;  %6375 = vmatpush1.msk.msra.mxu1 %vm6982_vm8, %v4840_v62  ;;  %v6714_v62 = vunpack.i.h.bf16 %v9235_v26 }
 0x4e6   : > { %4693 = vmatprep.mubr.f32.mxu0 %v9994_v25  ;;  %6376 = vmatprep.subr.msk.mxu1 %vm6966_vm7, %v4839_v38  ;;  %v9385_v10 = vpop.permute.xlu1 %5564  ;;  %v4884_v38 = vld [vmem:[#allocation5 + $0x168] sm:$0xff] }
 0x4e7   : > { %6377 = vmatpush1.msk.msra.mxu1 %vm6982_vm8, %v8867_v30  ;;  %6397 = vmatpush1.msk.msra.mxu0 %vm6941_vm4, %v10069_v39  ;;  %v4578_v30 = vld [vmem:[#allocation5 + $0x128] sm:$0xff]  ;;  %v5601_v39 = vsel %vm1403_vm13, %v9276_v54, %v6714_v62 }
 0x4e8   : > { %6378 = vmatprep.subr.msk.mxu1 %vm6966_vm7, %v8881_v27  ;;  %6398 = vmatprep.subr.msk.mxu0 %vm6945_vm5, %v8855_v34  ;;  %v9409_v27 = vpop.permute.xlu0 %6731  ;;  %v5642_v62 = vld [vmem:[#allocation5 + $0x228] sm:$0xff] }
 0x4e9   : > { %6366 = vmatmul.mubr.msk.f32.gmra.mxu0 %vm3781_vm15, %v4577_v14  ;;  %6379 = vmatpush1.msk.msra.mxu1 %vm6982_vm8, %v8878_v9  ;;  %v4830_v9 = vsel %vm995_vm10, %v9164_v59, %v9044_v1  ;;  %v5364_v14 = vsel %vm1276_vm12, %v9298_v40, %v6719_v18  ;;  %v5640_v18 = vld [vmem:[#allocation5 + $0x218] sm:$0xff] }
 0x4ea   : > { %4699 = vmatprep.mubr.f32.mxu0 %v9994_v25  ;;  %6399 = vmatpush1.msk.msra.mxu0 %vm6941_vm4, %v8852_v8  ;;  %v9407_v53 = vpop.permute.xlu1 %5560  ;;  %v4579_v8 = vld [vmem:[#allocation5 + $0x130] sm:$0xff] }
 0x4eb   : > { %6380 = vmatprep.subr.msk.mxu1 %vm6966_vm7, %v8885_v5  ;;  %6400 = vmatprep.subr.msk.mxu0 %vm6945_vm5, %v8896_v19  ;;  %v4879_v5 = vld [vmem:[#allocation5 + $0x140] sm:$0xff] }
 0x4ec   : > { %6381 = vmatpush1.msk.msra.mxu1 %vm6982_vm8, %v8994_v43  ;;  %6401 = vmatpush1.msk.msra.mxu0 %vm6941_vm4, %v8929_v35  ;;  %v9449_v19 = vpop.permute.xlu0 %5558  ;;  %v6704_v35 = vunpack.i.h.bf16 %v9081_v48  ;;  %v4880_v43 = vld [vmem:[#allocation5 + $0x148] sm:$0xff] }
 0x4ed   : > { %6367 = vmatmul.mubr.msk.f32.gmra.mxu0 %vm3781_vm15, %v4578_v30  ;;  %6382 = vmatprep.subr.msk.mxu1 %vm6966_vm7, %v9052_v47  ;;  %v5141_v30 = vld [vmem:[#allocation5 + $0x1a0] sm:$0xff] }
 0x4ee   : > { %4705 = vmatprep.mubr.f32.mxu0 %v9994_v25  ;;  %6402 = vmatprep.subr.msk.mxu0 %vm6945_vm5, %v8960_v55  ;;  %v9431_v34 = vpop.permute.xlu1 %5319  ;;  %v4580_v55 = vld [vmem:[#allocation5 + $0x138] sm:$0xff]  ;;  %v5089_v1 = vsel %vm1133_vm11, %v9185_v56, %v6704_v35 }
 0x4ef   : > { %6383 = vmatpush1.msk.msra.mxu1 %vm6982_vm8, %v9049_v61  ;;  %6403 = vmatpush1.msk.msra.mxu0 %vm6941_vm4, %v8963_v7  ;;  %v5137_v61 = vld [vmem:[#allocation5 + $0x180] sm:$0xff] }
 0x4f0   : > { %6384 = vmatprep.subr.msk.mxu1 %vm6966_vm7, %v9058_v28  ;;  %6404 = vmatprep.subr.msk.mxu0 %vm6945_vm5, %v9088_v33  ;;  %v5088_v28 = vsel %vm1133_vm11, %v9166_v49, %v9185_v56  ;;  %v9478_v48 = vpop.permute.xlu0 %6736  ;;  %v4881_v33 = vld [vmem:[#allocation5 + $0x150] sm:$0xff]  ;;  %v6718_v49 = vunpack.i.l.bf16 %v9278_v16  ;;  %v4882_v56 = vld [vmem:[#allocation5 + $0x158] sm:$0xff] }
 0x4f1   : > { %6368 = vmatmul.mubr.msk.f32.gmra.mxu0 %vm3781_vm15, %v4579_v8  ;;  %6385 = vmatpush1.msk.msra.mxu1 %vm6982_vm8, %v4830_v9  ;;  %v5363_v9 = vsel %vm1276_vm12, %v9304_v37, %v9298_v40  ;;  %v5598_v37 = vsel %vm1403_vm13, %v9314_v51, %v9296_v15 }
 0x4f2   : > { %4711 = vmatprep.mubr.f32.mxu0 %v9994_v25  ;;  %4975 = vmatprep.mubr.f32.mxu1 %v9994_v25  ;;  %v9456_v7 = vpop.permute.xlu1 %5315  ;;  %v5366_v23 = vsel %vm1276_vm12, %v9253_v17, %v6718_v49  ;;  %v5299_v49 = vld [vmem:[#allocation5 + $0x1c0] sm:$0xff] }
 0x4f3   : > { %6405 = vmatpush1.msk.msra.mxu0 %vm6941_vm4, %v9118_v31  ;;  %6386 = vmatmul.mubr.msk.f32.vlgmr.msra.gmra.mxu1 %vm3781_vm15, %v4879_v5  ;;  %v6709_v31 = vunpack.i.h.bf16 %v9187_v50  ;;  %v6724_v5 = vunpack.i.h.bf16 %v9306_v63 }
 0x4f4   : > { %6406 = vmatprep.subr.msk.mxu0 %vm6945_vm5, %v9146_v2  ;;  %4981 = vmatprep.mubr.f32.mxu1 %v9994_v25  ;;  %v5138_v2 = vld [vmem:[#allocation5 + $0x188] sm:$0xff]  ;;  %v9497_v36 = vpop.permute.xlu0 %5313 }
 0x4f5   : > { %6369 = vmatmul.mubr.msk.f32.gmra.mxu0 %vm3781_vm15, %v4580_v55  ;;  %v5368_v0 = vsel %vm1276_vm12, %v9210_v11, %v6709_v31  ;;  %v5140_v11 = vld [vmem:[#allocation5 + $0x198] sm:$0xff]  ;;  %v6739_v31 = vunpack.i.h.bf16 %v9478_v48 }
 0x4f6   : > { %6407 = vmatpush1.msk.msra.mxu0 %vm6941_vm4, %v9143_v13  ;;  %5233 = vmatprep.mubr.f32.mxu0 %v9994_v25  ;;  %v9473_v47 = vpop.permute.xlu1 %5554  ;;  %v6708_v13 = vunpack.i.l.bf16 %v9187_v50  ;;  %v6713_v50 = vunpack.i.l.bf16 %v9235_v26  ;;  %v6728_v26 = vunpack.i.l.bf16 %v9321_v24 }
 0x4f7   : > { %6408 = vmatprep.subr.msk.mxu0 %vm6945_vm5, %v5089_v1  ;;  %6387 = vmatmul.mubr.msk.f32.gmra.mxu1 %vm3781_vm15, %v4880_v43  ;;  %v5597_v43 = vsel %vm1403_vm13, %v9360_v22, %v6724_v5  ;;  %v6738_v1 = vunpack.i.l.bf16 %v9478_v48 }
 0x4f8   : > { %6409 = vmatpush1.msk.msra.mxu0 %vm6941_vm4, %v5088_v28  ;;  %4987 = vmatprep.mubr.f32.mxu1 %v9994_v25  ;;  %v9524_v16 = vpop.permute.xlu0 %5309  ;;  %v5362_v35 = vsel %vm1276_vm12, %v9312_v46, %v6728_v26  ;;  %v6734_v28 = vunpack.i.h.bf16 %v9409_v27 }
 0x4f9   : > { %6410 = vmatmul.mubr.msk.f32.vlgmr.msra.gmra.mxu0 %vm3781_vm15, %v5137_v61  ;;  %v5596_v61 = vsel %vm1403_vm13, %v9385_v10, %v9360_v22  ;;  %v5358_v22 = vsel %vm1276_vm12, %v9456_v7, %v6738_v1 }
 0x4fa   : > { %5239 = vmatprep.mubr.f32.mxu0 %v9994_v25  ;;  %v5352_v59 = vpop.permute.xlu1 %5351  ;;  %v5593_v48 = vsel %vm1403_vm13, %v9473_v47, %v6734_v28 }
 0x4fb   : > { %6388 = vmatmul.mubr.msk.f32.gmra.mxu1 %vm3781_vm15, %v4881_v33  ;;  %v5369_v57 = vsel %vm1276_vm12, %v9208_v3, %v5352_v59  ;;  %v5370_v4 = vsel %vm1276_vm12, %v5352_v59, %v6708_v13  ;;  %v5139_v3 = vld [vmem:[#allocation5 + $0x190] sm:$0xff]  ;;  %v5359_v33 = vsel %vm1276_vm12, %v9431_v34, %v9380_v52 }
 0x4fc   : > { %4993 = vmatprep.mubr.f32.mxu1 %v9994_v25  ;;  %5427 = vmatprep.subr.mxu1 %v5370_v4  ;;  %v6742_v55 = vpop.permute.xlu0 %6741  ;;  %v5143_v13 = vld [vmem:[#allocation5 + $0x1b0] sm:$0xff] }
 0x4fd   : > { %6411 = vmatmul.mubr.msk.f32.gmra.mxu0 %vm3781_vm15, %v5138_v2  ;;  %5428 = vmatpush1.msra.mxu1 %v5369_v57  ;;  %v6743_v34 = vunpack.i.l.bf16 %v6742_v55  ;;  %v6744_v57 = vunpack.i.h.bf16 %v6742_v55 }
 0x4fe   : > { %5245 = vmatprep.mubr.f32.mxu0 %v9994_v25  ;;  %v5585_v45 = vpop.permute.xlu1 %5584  ;;  %5429 = vmatprep.subr.mxu1 %v5368_v0 }
 0x4ff   : > { %6389 = vmatmul.mubr.msk.f32.gmra.mxu1 %vm3781_vm15, %v4882_v56  ;;  %v5603_v44 = vsel %vm1403_vm13, %v5585_v45, %v6713_v50  ;;  %v5602_v21 = vsel %vm1403_vm13, %v9255_v41, %v5585_v45  ;;  %v5365_v41 = vsel %vm1276_vm12, %v9290_v6, %v9253_v17  ;;  %v6723_v17 = vunpack.i.l.bf16 %v9306_v63  ;;  %v5142_v63 = vld [vmem:[#allocation5 + $0x1a8] sm:$0xff] }
 0x500   : > { %4999 = vmatprep.mubr.f32.mxu1 %v9994_v25  ;;  %5430 = vmatpush1.msra.mxu1 %v5367_v58  ;;  %v5600_v6 = vsel %vm1403_vm13, %v9288_v60, %v9276_v54  ;;  %v6729_v54 = vunpack.i.h.bf16 %v9321_v24  ;;  %v4885_v60 = vld [vmem:[#allocation5 + $0x170] sm:$0xff]  ;;  %v5361_v24 = vsel %vm1276_vm12, %v9341_v42, %v9312_v46  ;;  %v4886_v42 = vld [vmem:[#allocation5 + $0x178] sm:$0xff]  ;;  %v5547_v2 = vpop.permute.xlu0 %5546  ;;  %v5300_v45 = vld [vmem:[#allocation5 + $0x1c8] sm:$0xff] }
 0x501   : > { %6412 = vmatmul.mubr.msk.f32.gmra.mxu0 %vm3781_vm15, %v5139_v3  ;;  %5431 = vmatprep.subr.mxu1 %v5366_v23  ;;  %v5599_v40 = vsel %vm1403_vm13, %v9296_v15, %v6723_v17  ;;  %v6733_v15 = vunpack.i.l.bf16 %v9409_v27  ;;  %v5357_v27 = vsel %vm1276_vm12, %v9497_v36, %v9456_v7  ;;  %v5144_v7 = vld [vmem:[#allocation5 + $0x1b8] sm:$0xff]  ;;  %v5637_v3 = vld [vmem:[#allocation5 + $0x200] sm:$0xff]  ;;  %v5638_v58 = vld [vmem:[#allocation5 + $0x208] sm:$0xff] }
 0x502   : > { %5251 = vmatprep.mubr.f32.mxu0 %v9994_v25  ;;  %6426 = vmatprep.subr.msk.mxu0 %vm6966_vm7, %v5603_v44  ;;  %v9519_v12 = vpop.permute.xlu1 %5552  ;;  %v5360_v51 = vsel %vm1276_vm12, %v9380_v52, %v6729_v54  ;;  %v5594_v52 = vsel %vm1403_vm13, %v9449_v19, %v9407_v53  ;;  %v5356_v19 = vsel %vm1276_vm12, %v9524_v16, %v6739_v31  ;;  %v5301_v44 = vld [vmem:[#allocation5 + $0x1d0] sm:$0xff]  ;;  %v5304_v23 = vld [vmem:[#allocation5 + $0x1e8] sm:$0xff] }
 0x503   : > { %6390 = vmatmul.mubr.msk.f32.gmra.mxu1 %vm3781_vm15, %v4883_v32  ;;  %6427 = vmatpush1.msk.msra.mxu0 %vm6982_vm8, %v5602_v21  ;;  %v5595_v10 = vsel %vm1403_vm13, %v9407_v53, %v6733_v15  ;;  %v5592_v4 = vsel %vm1403_vm13, %v9519_v12, %v9473_v47  ;;  %v5303_v32 = vld [vmem:[#allocation5 + $0x1e0] sm:$0xff]  ;;  %v5643_v12 = vld [vmem:[#allocation5 + $0x230] sm:$0xff] }
 0x504   : > { %5005 = vmatprep.mubr.f32.mxu1 %v9994_v25  ;;  %5432 = vmatpush1.msra.mxu1 %v5365_v41  ;;  %v5541_v56 = vpop.permute.xlu0 %5540  ;;  %v5641_v21 = vld [vmem:[#allocation5 + $0x220] sm:$0xff]  ;;  %v5306_v41 = vld [vmem:[#allocation5 + $0x1f8] sm:$0xff] }
 0x505   : > { %6413 = vmatmul.mubr.msk.f32.gmra.mxu0 %vm3781_vm15, %v5140_v11  ;;  %5433 = vmatprep.subr.mxu1 %v5364_v14  ;;  %v5305_v11 = vld [vmem:[#allocation5 + $0x1f0] sm:$0xff] }
 0x506   : > { %5257 = vmatprep.mubr.f32.mxu0 %v9994_v25  ;;  %6428 = vmatprep.subr.msk.mxu0 %vm6966_vm7, %v5601_v39  ;;  %v9543_v8 = vpop.permute.xlu1 %5548 }
 0x507   : > { %6391 = vmatmul.mubr.msk.f32.gmra.mxu1 %vm3781_vm15, %v4884_v38  ;;  %6429 = vmatpush1.msk.msra.mxu0 %vm6982_vm8, %v5600_v6  ;;  %v5591_v50 = vsel %vm1403_vm13, %v9543_v8, %v6743_v34  ;;  %v5590_v47 = vsel %vm1403_vm13, %v5547_v2, %v9543_v8 }
 0x508   : > { %5011 = vmatprep.mubr.f32.mxu1 %v9994_v25  ;;  %5434 = vmatpush1.msra.mxu1 %v5363_v9 }
 0x509   : > { %6414 = vmatmul.mubr.msk.f32.gmra.mxu0 %vm3781_vm15, %v5141_v30  ;;  %5435 = vmatprep.subr.mxu1 %v5362_v35 }
 0x50a   : > { %5263 = vmatprep.mubr.f32.mxu0 %v9994_v25  ;;  %6430 = vmatprep.subr.msk.mxu0 %vm6966_vm7, %v5599_v40  ;;  %v5308_v46 = vpop.permute.xlu1 %5307 }
 0x50b   : > { %6392 = vmatmul.mubr.msk.f32.gmra.mxu1 %vm3781_vm15, %v4885_v60  ;;  %6431 = vmatpush1.msk.msra.mxu0 %vm6982_vm8, %v5598_v37  ;;  %v5355_v53 = vsel %vm1276_vm12, %v5308_v46, %v9524_v16  ;;  %v5644_v16 = vld [vmem:[#allocation5 + $0x238] sm:$0xff] }
 0x50c   : > { %5436 = vmatpush1.msra.mxu1 %v5361_v24  ;;  %6432 = vmatprep.subr.msk.mxu0 %vm6966_vm7, %v5597_v43 }
 0x50d   : > { %6415 = vmatmul.mubr.msk.f32.gmra.mxu0 %vm3781_vm15, %v5142_v63  ;;  %5437 = vmatprep.subr.mxu1 %v5360_v51 }
 0x50e   : > { %5017 = vmatprep.mubr.f32.mxu1 %v9994_v25  ;;  %5269 = vmatprep.mubr.f32.mxu0 %v9994_v25  ;;  %v5543_v59 = vpop.permute.xlu1 %5542 }
 0x50f   : > { %5438 = vmatpush1.msra.mxu1 %v5359_v33  ;;  %6433 = vmatpush1.msk.msra.mxu0 %vm6982_vm8, %v5596_v61  ;;  %v5589_v36 = vsel %vm1403_vm13, %v5543_v59, %v6744_v57  ;;  %v5588_v0 = vsel %vm1403_vm13, %v5541_v56, %v5543_v59 }
 0x510   : > { %6393 = vmatmul.mubr.msk.f32.gmra.mxu1 %vm3781_vm15, %v4886_v42  ;;  %5439 = vmatprep.subr.mxu1 %v5358_v22 }
 0x511   : > { %6416 = vmatmul.mubr.msk.f32.gmra.mxu0 %vm3781_vm15, %v5143_v13  ;;  %6434 = vmatprep.subr.msk.mxu0 %vm6966_vm7, %v5595_v10 }
 0x512   : > { %5440 = vmatpush1.msra.mxu1 %v5357_v27  ;;  %6435 = vmatpush1.msk.msra.mxu0 %vm6982_vm8, %v5594_v52 }
 0x513   : > { %5441 = vmatprep.subr.mxu1 %v5356_v19  ;;  %6436 = vmatprep.subr.msk.mxu0 %vm6966_vm7, %v5593_v48 }
 0x514   : > { %5275 = vmatprep.mubr.f32.mxu0 %v9994_v25  ;;  %6437 = vmatpush1.msk.msra.mxu0 %vm6982_vm8, %v5592_v4 }
 0x515   : > { %6417 = vmatmul.mubr.msk.f32.gmra.mxu0 %vm3781_vm15, %v5144_v7  ;;  %5442 = vmatpush1.msra.mxu1 %v5355_v53 }
 0x516   : > { %5475 = vmatprep.mubr.f32.mxu1 %v9994_v25  ;;  %6438 = vmatprep.subr.msk.mxu0 %vm6966_vm7, %v5591_v50 }
 0x517   : > { %6418 = vmatmul.mubr.msk.f32.vlgmr.msra.gmra.mxu1 %vm3781_vm15, %v5299_v49  ;;  %6439 = vmatpush1.msk.msra.mxu0 %vm6982_vm8, %v5590_v47 }
 0x518   : > { %5481 = vmatprep.mubr.f32.mxu1 %v9994_v25  ;;  %6440 = vmatprep.subr.msk.mxu0 %vm6966_vm7, %v5589_v36 }
 0x519   : > { %6441 = vmatpush1.msk.msra.mxu0 %vm6982_vm8, %v5588_v0  ;;  %5733 = vmatprep.mubr.f32.mxu0 %v9994_v25 }
 0x51a   : > { %6442 = vmatmul.mubr.msk.f32.vlgmr.msra.gmra.mxu0 %vm3781_vm15, %v5637_v3 }
 0x51b   : > { %6419 = vmatmul.mubr.msk.f32.gmra.mxu1 %vm3781_vm15, %v5300_v45  ;;  %5739 = vmatprep.mubr.f32.mxu0 %v9994_v25 }
 0x51c   : > { %5487 = vmatprep.mubr.f32.mxu1 %v9994_v25 }
 0x51e   : > { %6443 = vmatmul.mubr.msk.f32.gmra.mxu0 %vm3781_vm15, %v5638_v58 }
 0x51f   : > { %6420 = vmatmul.mubr.msk.f32.gmra.mxu1 %vm3781_vm15, %v5301_v44  ;;  %5745 = vmatprep.mubr.f32.mxu0 %v9994_v25 }
 0x520   : > { %5493 = vmatprep.mubr.f32.mxu1 %v9994_v25 }
 0x522   : > { %6444 = vmatmul.mubr.msk.f32.gmra.mxu0 %vm3781_vm15, %v5639_v20 }
 0x523   : > { %6421 = vmatmul.mubr.msk.f32.gmra.mxu1 %vm3781_vm15, %v5302_v29  ;;  %5751 = vmatprep.mubr.f32.mxu0 %v9994_v25 }
 0x524   : > { %5499 = vmatprep.mubr.f32.mxu1 %v9994_v25 }
 0x526   : > { %6445 = vmatmul.mubr.msk.f32.gmra.mxu0 %vm3781_vm15, %v5640_v18 }
 0x527   : > { %6422 = vmatmul.mubr.msk.f32.gmra.mxu1 %vm3781_vm15, %v5303_v32  ;;  %5757 = vmatprep.mubr.f32.mxu0 %v9994_v25 }
 0x528   : > { %5505 = vmatprep.mubr.f32.mxu1 %v9994_v25 }
 0x52a   : > { %6446 = vmatmul.mubr.msk.f32.gmra.mxu0 %vm3781_vm15, %v5641_v21 }
 0x52b   : > { %6423 = vmatmul.mubr.msk.f32.gmra.mxu1 %vm3781_vm15, %v5304_v23  ;;  %5763 = vmatprep.mubr.f32.mxu0 %v9994_v25 }
 0x52c   : > { %5511 = vmatprep.mubr.f32.mxu1 %v9994_v25 }
 0x52e   : > { %6447 = vmatmul.mubr.msk.f32.gmra.mxu0 %vm3781_vm15, %v5642_v62 }
 0x52f   : > { %6424 = vmatmul.mubr.msk.f32.gmra.mxu1 %vm3781_vm15, %v5305_v11  ;;  %5769 = vmatprep.mubr.f32.mxu0 %v9994_v25 }
 0x530   : > { %5517 = vmatprep.mubr.f32.mxu1 %v9994_v25 }
 0x532   : > { %6448 = vmatmul.mubr.msk.f32.gmra.mxu0 %vm3781_vm15, %v5643_v12 }
 0x533   : > { %6425 = vmatmul.mubr.msk.f32.gmra.mxu1 %vm3781_vm15, %v5306_v41  ;;  %5775 = vmatprep.mubr.f32.mxu0 %v9994_v25 }
 0x536   : > { %6449 = vmatmul.mubr.msk.f32.gmra.mxu0 %vm3781_vm15, %v5644_v16 }
 0x545   : > { %v3872_v26 = vpop.f32.mrf.mxu0 }
 0x547   : > { %v3874_v38 = vpop.f32.mrf.mxu0 }
 0x549   : > { %v3878_v14 = vpop.f32.mrf.mxu0 }
 0x54b   : > { %v3880_v39 = vpop.f32.mrf.mxu0 }
 0x54d   : > { %v3884_v17 = vpop.f32.mrf.mxu0 }
 0x54f   : > { %v3886_v6 = vpop.f32.mrf.mxu0 }
 0x552   : > { %v3890_v30 = vpop.f32.mrf.mxu0 }
 0x554   : > { %v3892_v8 = vpop.f32.mrf.mxu0 }
 0x556   : > { %v3896_v9 = vpop.f32.mrf.mxu0 }
 0x558   : > { %v3898_v5 = vpop.f32.mrf.mxu0 }
 0x55a   : > { %v3902_v54 = vpop.f32.mrf.mxu0 }
 0x55c   : > { %v3904_v60 = vpop.f32.mrf.mxu0 }
 0x55e   : > { %v3908_v40 = vpop.f32.mrf.mxu0 }
 0x560   : > { %v4009_v35 = vpop.f32.mrf.mxu1  ;;  %v3910_v24 = vpop.f32.mrf.mxu0 }
 0x561   : > { %v4010_v55 = vadd.f32 %v4009_v35, %v3872_v26 }
 0x562   : > { %v4011_v37 = vpop.f32.mrf.mxu1 }
 0x563   : > { %v4012_v25 = vadd.f32 %v4011_v37, %v3874_v38  ;;  %v3914_v46 = vpop.f32.mrf.mxu0 }
 0x565   : > { %v4015_v63 = vpop.f32.mrf.mxu1  ;;  %v3916_v31 = vpop.f32.mrf.mxu0 }
 0x566   : > { %v4016_v43 = vadd.f32 %v4015_v63, %v3878_v14 }
 0x567   : > { %v4017_v1 = vpop.f32.mrf.mxu1 }
 0x568   : > { %v4018_v15 = vadd.f32 %v4017_v1, %v3880_v39 }
 0x569   : > { %v4021_v51 = vpop.f32.mrf.mxu1 }
 0x56a   : > { %v4022_v42 = vadd.f32 %v4021_v51, %v3884_v17 }
 0x56b   : > { %v4023_v61 = vpop.f32.mrf.mxu1 }
 0x56c   : > { %v4024_v28 = vadd.f32 %v4023_v61, %v3886_v6 }
 0x56d   : > { %v4027_v33 = vpop.f32.mrf.mxu1 }
 0x56e   : > { %v4028_v13 = vadd.f32 %v4027_v33, %v3890_v30 }
 0x56f   : > { %v4029_v2 = vpop.f32.mrf.mxu1 }
 0x570   : > { %v4030_v22 = vadd.f32 %v4029_v2, %v3892_v8 }
 0x571   : > { %v4033_v10 = vpop.f32.mrf.mxu1  ;;  %v4251_v52 = vpop.f32.mrf.mxu0 }
 0x572   : > { %v4034_v27 = vadd.f32 %v4033_v10, %v3896_v9  ;;  %v9669_v34 = vadd.f32 %v4251_v52, %v4010_v55 }
 0x573   : > { %v4035_v48 = vpop.f32.mrf.mxu1  ;;  %v4253_v53 = vpop.f32.mrf.mxu0 }
 0x574   : > { %v4036_v19 = vadd.f32 %v4035_v48, %v3898_v5  ;;  %v9671_v7 = vadd.f32 %v4253_v53, %v4012_v25 }
 0x576   : > { %v4039_v59 = vpop.f32.mrf.mxu1 }
 0x577   : > { %v4040_v57 = vadd.f32 %v4039_v59, %v3902_v54  ;;  %v4257_v4 = vpop.f32.mrf.mxu0 }
 0x578   : > { %v9673_v49 = vadd.f32 %v4257_v4, %v4016_v43  ;;  %v4041_v56 = vpop.f32.mrf.mxu1 }
 0x579   : > { %v4042_v50 = vadd.f32 %v4041_v56, %v3904_v60  ;;  %v4259_v36 = vpop.f32.mrf.mxu0 }
 0x57a   : > { %v9675_v47 = vadd.f32 %v4259_v36, %v4018_v15 }
 0x57c   : > { %v4045_v0 = vpop.f32.mrf.mxu1 }
 0x57d   : > { %v4046_v3 = vadd.f32 %v4045_v0, %v3908_v40  ;;  %v4263_v45 = vpop.f32.mrf.mxu0 }
 0x57e   : > { %v9677_v58 = vadd.f32 %v4263_v45, %v4022_v42  ;;  %v4047_v44 = vpop.f32.mrf.mxu1 }
 0x57f   : > { %v4048_v20 = vadd.f32 %v4047_v44, %v3910_v24  ;;  %v4265_v29 = vpop.f32.mrf.mxu0 }
 0x580   : > { %v9679_v18 = vadd.f32 %v4265_v29, %v4024_v28 }
 0x582   : > { %v4051_v32 = vpop.f32.mrf.mxu1 }
 0x583   : > { %v4052_v21 = vadd.f32 %v4051_v32, %v3914_v46  ;;  %v4269_v23 = vpop.f32.mrf.mxu0 }
 0x584   : > { %v9681_v62 = vadd.f32 %v4269_v23, %v4028_v13  ;;  %v4053_v11 = vpop.f32.mrf.mxu1 }
 0x585   : > { %v4054_v12 = vadd.f32 %v4053_v11, %v3916_v31  ;;  %v4271_v41 = vpop.f32.mrf.mxu0 }
 0x586   : > { %v9683_v16 = vadd.f32 %v4271_v41, %v4030_v22 }
 0x588   : > { %v9685_v26 = vpop.f32.mrf.mxu1 }
 0x589   : > { %v4275_v38 = vpop.f32.mrf.mxu0 }
 0x58a   : > { %v9687_v14 = vadd.f32 %v4275_v38, %v4034_v27  ;;  %v9689_v39 = vpop.f32.mrf.mxu1 }
 0x58b   : > { %v4277_v17 = vpop.f32.mrf.mxu0 }
 0x58c   : > { %v9691_v6 = vadd.f32 %v4277_v17, %v4036_v19  ;;  %v9693_v30 = vpop.f32.mrf.mxu1 }
 0x58d   : > { %v4281_v8 = vpop.f32.mrf.mxu0 }
 0x58e   : > { %v9695_v9 = vadd.f32 %v4281_v8, %v4040_v57  ;;  %v9697_v5 = vpop.f32.mrf.mxu1 }
 0x58f   : > { %v4283_v54 = vpop.f32.mrf.mxu0 }
 0x590   : > { %v9699_v60 = vadd.f32 %v4283_v54, %v4042_v50  ;;  %v9701_v35 = vpop.f32.mrf.mxu1 }
 0x591   : > { %v4287_v55 = vpop.f32.mrf.mxu0 }
 0x592   : > { %v9703_v40 = vadd.f32 %v4287_v55, %v4046_v3  ;;  %v9705_v37 = vpop.f32.mrf.mxu1 }
 0x593   : > { %v4289_v25 = vpop.f32.mrf.mxu0 }
 0x594   : > { %v9707_v63 = vadd.f32 %v4289_v25, %v4048_v20  ;;  %v9709_v24 = vpop.f32.mrf.mxu1 }
 0x595   : > { %v4293_v43 = vpop.f32.mrf.mxu0 }
 0x596   : > { %10070 = vst [vmem:[#allocation9_spill] sm:$0xff] %v9707_v63  ;;  %v9711_v1 = vadd.f32 %v4293_v43, %v4052_v21  ;;  %v9713_v15 = vpop.f32.mrf.mxu1 }
 0x597   : > { %v4295_v51 = vpop.f32.mrf.mxu0 }
 0x598   : > { %10071 = vst [vmem:[#allocation8_spill] sm:$0xff] %v9711_v1  ;;  %v9715_v46 = vadd.f32 %v4295_v51, %v4054_v12  ;;  %v9717_v42 = vpop.f32.mrf.mxu1 }
 0x599   : > { %v4671_v61 = vpop.f32.mrf.mxu0 }
 0x59a   : > { %10072 = vst [vmem:[#allocation10_spill] sm:$0xff] %v9715_v46  ;;  %v9719_v28 = vpop.f32.mrf.mxu1 }
 0x59b   : > { %v4673_v33 = vpop.f32.mrf.mxu0 }
 0x59c   : > { %v9721_v31 = vpop.f32.mrf.mxu1 }
 0x59d   : > { %v4677_v13 = vpop.f32.mrf.mxu0 }
 0x59e   : > { %v9723_v22 = vpop.f32.mrf.mxu1 }
 0x59f   : > { %v4679_v2 = vpop.f32.mrf.mxu0 }
 0x5a0   : > { %v9729_v27 = vpop.f32.mrf.mxu1 }
 0x5a1   : > { %v9725_v10 = vpop.f32.mrf.mxu0 }
 0x5a2   : > { %v9735_v19 = vpop.f32.mrf.mxu1 }
 0x5a3   : > { %v9727_v52 = vpop.f32.mrf.mxu0  ;;  %10073 = vst [vmem:[#allocation11_spill] sm:$0xff] %v9735_v19 }
 0x5a4   : > { %v9741_v4 = vpop.f32.mrf.mxu1 }
 0x5a5   : > { %v9731_v48 = vpop.f32.mrf.mxu0  ;;  %10074 = vst [vmem:[#allocation44_spill] sm:$0xff] %v9741_v4 }
 0x5a6   : > { %v9747_v36 = vpop.f32.mrf.mxu1 }
 0x5a7   : > { %v9733_v53 = vpop.f32.mrf.mxu0  ;;  %10077 = vst [vmem:[#allocation40_spill] sm:$0xff] %v9747_v36 }
 0x5a9   : > { %v9737_v59 = vpop.f32.mrf.mxu0 }
 0x5ab   : > { %v9739_v57 = vpop.f32.mrf.mxu0 }
 0x5ad   : > { %v9743_v56 = vpop.f32.mrf.mxu0 }
 0x5ae   : > { %10075 = vst [vmem:[#allocation42_spill] sm:$0xff] %v9743_v56 }
 0x5af   : > { %v9745_v50 = vpop.f32.mrf.mxu0 }
 0x5b0   : > { %10076 = vst [vmem:[#allocation12_spill] sm:$0xff] %v9745_v50 }
 0x5b1   : > { %v9749_v0 = vpop.f32.mrf.mxu0 }
 0x5b2   : > { %10078 = vst [vmem:[#allocation38_spill] sm:$0xff] %v9749_v0 }
 0x5b3   : > { %v9751_v3 = vpop.f32.mrf.mxu0  ;;  %v4977_v45 = vpop.f32.mrf.mxu1 }
 0x5b4   : > { %10079 = vst [vmem:[#allocation36_spill] sm:$0xff] %v9751_v3 }
 0x5b5   : > { %v9753_v44 = vpop.f32.mrf.mxu0  ;;  %v4979_v20 = vpop.f32.mrf.mxu1 }
 0x5b6   : > { %10080 = vst [vmem:[#allocation34_spill] sm:$0xff] %v9753_v44 }
 0x5b7   : > { %v9755_v29 = vpop.f32.mrf.mxu0  ;;  %v4983_v32 = vpop.f32.mrf.mxu1 }
 0x5b8   : > { %10081 = vst [vmem:[#allocation14_spill] sm:$0xff] %v9755_v29 }
 0x5b9   : > { %v5235_v21 = vpop.f32.mrf.mxu0  ;;  %v4985_v23 = vpop.f32.mrf.mxu1 }
 0x5bb   : > { %v5237_v11 = vpop.f32.mrf.mxu0  ;;  %v4989_v12 = vpop.f32.mrf.mxu1 }
 0x5bd   : > { %v5241_v41 = vpop.f32.mrf.mxu0  ;;  %v9757_v38 = vpop.f32.mrf.mxu1 }
 0x5bf   : > { %v5243_v17 = vpop.f32.mrf.mxu0  ;;  %v9759_v8 = vpop.f32.mrf.mxu1 }
 0x5c1   : > { %v9761_v54 = vpop.f32.mrf.mxu0  ;;  %v9763_v55 = vpop.f32.mrf.mxu1 }
 0x5c3   : > { %v9765_v25 = vpop.f32.mrf.mxu0  ;;  %v9767_v43 = vpop.f32.mrf.mxu1 }
 0x5c5   : > { %v9769_v51 = vpop.f32.mrf.mxu0  ;;  %v9771_v29 = vpop.f32.mrf.mxu1 }
 0x5c6   : > { %10082 = vst [vmem:[#allocation32_spill] sm:$0xff] %v9771_v29  ;;  %v4556_v29 = vadd.f32 %v9685_v26, %v9669_v34  ;;  %v4559_v34 = vadd.f32 %v9697_v5, %v9675_v47  ;;  %v4562_v47 = vadd.f32 %v9709_v24, %v9681_v62  ;;  %v4563_v5 = vadd.f32 %v9713_v15, %v9683_v16 }
 0x5c7   : > { %v9773_v44 = vpop.f32.mrf.mxu0  ;;  %v9775_v36 = vpop.f32.mrf.mxu1 }
 0x5c8   : > { %10083 = vst [vmem:[#allocation30_spill] sm:$0xff] %v9773_v44  ;;  %10084 = vst [vmem:[#allocation20_spill] sm:$0xff] %v9775_v36 }
 0x5c9   : > { %v9777_v46 = vpop.f32.mrf.mxu0  ;;  %v9779_v3 = vpop.f32.mrf.mxu1 }
 0x5ca   : > { %10085 = vst [vmem:[#allocation28_spill] sm:$0xff] %v9777_v46  ;;  %10086 = vst [vmem:[#allocation26_spill] sm:$0xff] %v9779_v3  ;;  %v4557_v3 = vadd.f32 %v9689_v39, %v9671_v7  ;;  %v4718_v46 = vadd.f32 %v4671_v61, %v4556_v29  ;;  %v4560_v7 = vadd.f32 %v9701_v35, %v9677_v58 }
 0x5cb   : > { %v9781_v0 = vpop.f32.mrf.mxu0  ;;  %v9783_v4 = vpop.f32.mrf.mxu1  ;;  %v4721_v61 = vadd.f32 %v4679_v2, %v4559_v34 }
 0x5cc   : > { %10087 = vst [vmem:[#allocation25_spill] sm:$0xff] %v9781_v0  ;;  %10088 = vst [vmem:[#allocation53_spill] sm:$0xff] %v9783_v4 }
 0x5cd   : > { %v9785_v1 = vpop.f32.mrf.mxu0  ;;  %v9787_v50 = vpop.f32.mrf.mxu1  ;;  %v5027_v58 = vadd.f32 %v4985_v23, %v4721_v61  ;;  %v4725_v23 = vadd.f32 %v9733_v53, %v4563_v5 }
 0x5ce   : > { %10089 = vst [vmem:[#allocation51_spill] sm:$0xff] %v9785_v1  ;;  %10090 = vst [vmem:[#allocation24_spill] sm:$0xff] %v9787_v50  ;;  %v4558_v50 = vadd.f32 %v9693_v30, %v9673_v49  ;;  %v4719_v1 = vadd.f32 %v4673_v33, %v4557_v3 }
 0x5cf   : > { %v9789_v56 = vpop.f32.mrf.mxu0  ;;  %v5285_v24 = vadd.f32 %v5243_v17, %v5027_v58  ;;  %v4568_v17 = vadd.f32 %v9729_v27, %v9703_v40  ;;  %v5031_v34 = vadd.f32 %v9763_v55, %v4725_v23  ;;  %v10096_v58 = vld [vmem:[#allocation9_spill] sm:$0xff] }
 0x5d0   : > { %10091 = vst [vmem:[#allocation16_spill] sm:$0xff] %v9789_v56  ;;  %v9791_v19 = vpop.f32.mrf.mxu1  ;;  %v5024_v56 = vadd.f32 %v4977_v45, %v4718_v46  ;;  %v4720_v26 = vadd.f32 %v4677_v13, %v4558_v50  ;;  %v4561_v46 = vadd.f32 %v9705_v37, %v9679_v18  ;;  %v4564_v50 = vadd.f32 %v9717_v42, %v9687_v14 }
 0x5d1   : > { %10092 = vst [vmem:[#allocation48_spill] sm:$0xff] %v9791_v19  ;;  %v9795_v36 = vpop.f32.mrf.mxu0  ;;  %v5025_v19 = vadd.f32 %v4979_v20, %v4719_v1  ;;  %v4722_v1 = vadd.f32 %v9725_v10, %v4560_v7  ;;  %v4565_v18 = vadd.f32 %v9719_v28, %v9691_v6  ;;  %v4567_v45 = vadd.f32 %v9723_v22, %v9699_v60 }
 0x5d2   : > { %10093 = vst [vmem:[#allocation46_spill] sm:$0xff] %v9795_v36  ;;  %v9799_v0 = vpop.f32.mrf.mxu1  ;;  %v5282_v36 = vadd.f32 %v5235_v21, %v5024_v56  ;;  %v5026_v29 = vadd.f32 %v4983_v32, %v4720_v26  ;;  %v4723_v62 = vadd.f32 %v9727_v52, %v4561_v46  ;;  %v4724_v14 = vadd.f32 %v9731_v48, %v4562_v47  ;;  %v5814_v21 = vpop.permute.xlu0 %5813 }
 0x5d3   : > { %10094 = vst [vmem:[#allocation19_spill] sm:$0xff] %v9799_v0  ;;  %v9801_v4 = vpop.f32.mrf.mxu0  ;;  %v5283_v0 = vadd.f32 %v5237_v11, %v5025_v19  ;;  %v5809_v19 = vpop.permute.xlu1 %5808  ;;  %v5028_v37 = vadd.f32 %v4989_v12, %v4722_v1  ;;  %v4727_v40 = vadd.f32 %v9739_v57, %v4565_v18 }
 0x5d4   : > { %v5284_v35 = vadd.f32 %v5241_v41, %v5026_v29  ;;  %v5029_v6 = vadd.f32 %v9757_v38, %v4723_v62 }
 0x5d5   : > { %v9805_v63 = vpop.f32.mrf.mxu0  ;;  %v5286_v28 = vadd.f32 %v9761_v54, %v5028_v37  ;;  %v4726_v54 = vadd.f32 %v9737_v59, %v4564_v50  ;;  %v10095_v59 = vld [vmem:[#allocation30_spill] sm:$0xff]  ;;  %v10100_v50 = vld [vmem:[#allocation28_spill] sm:$0xff] }
 0x5d6   : > { %v5289_v55 = vadd.f32 %v10095_v59, %v5031_v34 }
 0x5d7   : > { %v5477_v44 = vpop.f32.mrf.mxu1  ;;  %v9811_v39 = vpop.f32.mrf.mxu0  ;;  %v5032_v27 = vadd.f32 %v9767_v43, %v4726_v54 }
 0x5d8   : > { %v5524_v49 = vadd.f32 %v5477_v44, %v5282_v36 }
 0x5d9   : > { %v5479_v30 = vpop.f32.mrf.mxu1  ;;  %v5290_v43 = vadd.f32 %v10100_v50, %v5032_v27 }
 0x5da   : > { %v5735_v33 = vpop.f32.mrf.mxu0  ;;  %v5525_v13 = vadd.f32 %v5479_v30, %v5283_v0  ;;  %v4566_v0 = vadd.f32 %v9721_v31, %v9695_v9  ;;  %v5030_v9 = vadd.f32 %v9759_v8, %v4724_v14  ;;  %v5287_v31 = vadd.f32 %v9765_v25, %v5029_v6  ;;  %v10102_v14 = vld [vmem:[#allocation20_spill] sm:$0xff] }
 0x5db   : > { %v5483_v2 = vpop.f32.mrf.mxu1  ;;  %v5782_v56 = vadd.f32 %v5735_v33, %v5524_v49  ;;  %v5819_v49 = vpop.permute.xlu1 %5818 }
 0x5dc   : > { %v5737_v16 = vpop.f32.mrf.mxu0  ;;  %v5526_v15 = vadd.f32 %v5483_v2, %v5284_v35  ;;  %v5288_v53 = vadd.f32 %v9769_v51, %v5030_v9  ;;  %v10097_v35 = vld [vmem:[#allocation11_spill] sm:$0xff]  ;;  %v10098_v2 = vld [vmem:[#allocation42_spill] sm:$0xff]  ;;  %v10104_v9 = vld [vmem:[#allocation8_spill] sm:$0xff] }
 0x5dd   : > { %v5846_v10 = vadd.f32 %v5809_v19, %v5782_v56  ;;  %v5485_v36 = vpop.f32.mrf.mxu1  ;;  %v5783_v3 = vadd.f32 %v5737_v16, %v5525_v13  ;;  %v4569_v13 = vadd.f32 %v10097_v35, %v10096_v58  ;;  %v4728_v56 = vadd.f32 %v10098_v2, %v4566_v0  ;;  %v10114_v58 = vld [vmem:[#allocation34_spill] sm:$0xff]  ;;  %v10115_v2 = vld [vmem:[#allocation24_spill] sm:$0xff] }
 0x5de   : > { %v5741_v42 = vpop.f32.mrf.mxu0  ;;  %v5527_v52 = vadd.f32 %v5485_v36, %v5285_v24  ;;  %v10101_v36 = vld [vmem:[#allocation12_spill] sm:$0xff] }
 0x5df   : > { %v5847_v44 = vadd.f32 %v5809_v19, %v5783_v3  ;;  %v5489_v20 = vpop.f32.mrf.mxu1  ;;  %v5784_v32 = vadd.f32 %v5741_v42, %v5526_v15  ;;  %v5862_v60 = vmax.f32 %v5846_v10, 0.0  ;;  %v10099_v19 = vld [vmem:[#allocation32_spill] sm:$0xff]  ;;  %v5824_v10 = vpop.permute.xlu0 %5823  ;;  %v4729_v3 = vadd.f32 %v10101_v36, %v4567_v45  ;;  %v10103_v42 = vld [vmem:[#allocation25_spill] sm:$0xff] }
 0x5e0   : > { %v5743_v22 = vpop.f32.mrf.mxu0  ;;  %v5528_v11 = vadd.f32 %v5489_v20, %v5286_v28  ;;  %v5033_v57 = vadd.f32 %v10099_v19, %v4727_v40  ;;  %v5034_v6 = vadd.f32 %v10102_v14, %v4728_v56  ;;  %v10111_v40 = vld [vmem:[#allocation16_spill] sm:$0xff]  ;;  %v10116_v56 = vld [vmem:[#allocation46_spill] sm:$0xff] }
 0x5e1   : > { %v5863_v48 = vmax.f32 %v5847_v44, 0.0  ;;  %v5848_v12 = vadd.f32 %v5814_v21, %v5784_v32  ;;  %v5491_v41 = vpop.f32.mrf.mxu1  ;;  %v5785_v38 = vadd.f32 %v5743_v22, %v5527_v52  ;;  %v10106_v22 = vld [vmem:[#allocation38_spill] sm:$0xff] }
 0x5e2   : > { %v5747_v8 = vpop.f32.mrf.mxu0  ;;  %v5529_v26 = vadd.f32 %v5491_v41, %v5287_v31  ;;  %v5291_v28 = vadd.f32 %v10103_v42, %v5033_v57  ;;  %v10105_v31 = vld [vmem:[#allocation44_spill] sm:$0xff] }
 0x5e3   : > { %v6462_v25 = vpack.c.bf16 %v5863_v48, %v5862_v60  ;;  %v5849_v7 = vadd.f32 %v5814_v21, %v5785_v38  ;;  %v5495_v61 = vpop.f32.mrf.mxu1  ;;  %v5786_v29 = vadd.f32 %v5747_v8, %v5528_v11  ;;  %v5864_v51 = vmax.f32 %v5848_v12, 0.0  ;;  %v10107_v11 = vld [vmem:[#allocation26_spill] sm:$0xff]  ;;  %v10108_v12 = vld [vmem:[#allocation51_spill] sm:$0xff] }
 0x5e4   : > { %v5749_v30 = vpop.f32.mrf.mxu0  ;;  %v5530_v47 = vadd.f32 %v5495_v61, %v5288_v53  ;;  %v4570_v60 = vadd.f32 %v10105_v31, %v10104_v9  ;;  %v4730_v48 = vadd.f32 %v10106_v22, %v4568_v17  ;;  %v5035_v45 = vadd.f32 %v10107_v11, %v4729_v3 }
 0x5e5   : > { %5926 = vst [vmem:[%s9844_s28] sm:$0xff] %v6462_v25  ;;  %v5865_v46 = vmax.f32 %v5849_v7, 0.0  ;;  %v5850_v5 = vadd.f32 %v5819_v49, %v5786_v29  ;;  %v5497_v1 = vpop.f32.mrf.mxu1  ;;  %v5787_v33 = vadd.f32 %v5749_v30, %v5529_v26  ;;  %v5292_v41 = vadd.f32 %v10108_v12, %v5034_v6  ;;  %v5829_v26 = vpop.permute.xlu1 %5828  ;;  %v10109_v7 = vld [vmem:[#allocation36_spill] sm:$0xff]  ;;  %v10110_v29 = vld [vmem:[#allocation53_spill] sm:$0xff] }
 0x5e6   : > { %v5753_v18 = vpop.f32.mrf.mxu0  ;;  %v5531_v37 = vadd.f32 %v5497_v1, %v5289_v55  ;;  %v4731_v61 = vadd.f32 %v10109_v7, %v4569_v13  ;;  %v5293_v27 = vadd.f32 %v10111_v40, %v5035_v45  ;;  %v10113_v1 = vld [vmem:[#allocation40_spill] sm:$0xff]  ;;  %v4732_v35 = vadd.f32 %v10114_v58, %v4570_v60 }
 0x5e7   : > { %v6463_v62 = vpack.c.bf16 %v5865_v46, %v5864_v51  ;;  %v5851_v16 = vadd.f32 %v5819_v49, %v5787_v33  ;;  %v5501_v24 = vpop.f32.mrf.mxu1  ;;  %v5788_v15 = vadd.f32 %v5753_v18, %v5530_v47  ;;  %v5866_v52 = vmax.f32 %v5850_v5, 0.0  ;;  %v10112_v5 = vld [vmem:[#allocation10_spill] sm:$0xff] }
 0x5e8   : > { %v5755_v44 = vpop.f32.mrf.mxu0  ;;  %v5532_v20 = vadd.f32 %v5501_v24, %v5290_v43  ;;  %v5036_v49 = vadd.f32 %v10110_v29, %v4730_v48  ;;  %v4571_v33 = vadd.f32 %v10113_v1, %v10112_v5  ;;  %v5037_v13 = vadd.f32 %v10115_v2, %v4731_v61  ;;  %v10117_v24 = vld [vmem:[#allocation14_spill] sm:$0xff] }
 0x5e9   : > { %5927 = vst [vmem:[%s9844_s28 + $0x8] sm:$0xff] %v6463_v62  ;;  %v5867_v0 = vmax.f32 %v5851_v16, 0.0  ;;  %v5852_v32 = vadd.f32 %v5824_v10, %v5788_v15  ;;  %v5503_v21 = vpop.f32.mrf.mxu1  ;;  %v5789_v23 = vadd.f32 %v5755_v44, %v5531_v37  ;;  %v5834_v16 = vpop.permute.xlu0 %5833 }
 0x5ea   : > { %v5759_v38 = vpop.f32.mrf.mxu0  ;;  %v5533_v34 = vadd.f32 %v5503_v21, %v5291_v28  ;;  %v5294_v19 = vadd.f32 %v10116_v56, %v5036_v49  ;;  %v4733_v15 = vadd.f32 %v10117_v24, %v4571_v33  ;;  %v5295_v3 = vadd.f32 %v9801_v4, %v5037_v13  ;;  %v5839_v4 = vpop.permute.xlu1 %5838 }
 0x5eb   : > { %v6464_v54 = vpack.c.bf16 %v5867_v0, %v5866_v52  ;;  %v5853_v53 = vadd.f32 %v5824_v10, %v5789_v23  ;;  %v5507_v8 = vpop.f32.mrf.mxu1  ;;  %v5790_v25 = vadd.f32 %v5759_v38, %v5532_v20  ;;  %v5868_v59 = vmax.f32 %v5852_v32, 0.0  ;;  %v10118_v10 = vld [vmem:[#allocation48_spill] sm:$0xff]  ;;  %v10119_v20 = vld [vmem:[#allocation19_spill] sm:$0xff] }
 0x5ec   : > { %v5761_v55 = vpop.f32.mrf.mxu0  ;;  %v5534_v51 = vadd.f32 %v5507_v8, %v5292_v41  ;;  %v5038_v36 = vadd.f32 %v10118_v10, %v4732_v35  ;;  %v5039_v32 = vadd.f32 %v10119_v20, %v4733_v15 }
 0x5ed   : > { %5928 = vst [vmem:[%s9844_s28 + $0x10] sm:$0xff] %v6464_v54  ;;  %v5869_v17 = vmax.f32 %v5853_v53, 0.0  ;;  %v5854_v30 = vadd.f32 %v5829_v26, %v5790_v25  ;;  %v5509_v46 = vpop.f32.mrf.mxu1  ;;  %v5791_v47 = vadd.f32 %v5761_v55, %v5533_v34  ;;  %v5844_v61 = vpop.permute.xlu0 %5843 }
 0x5ee   : > { %v5765_v57 = vpop.f32.mrf.mxu0  ;;  %v5535_v43 = vadd.f32 %v5509_v46, %v5293_v27  ;;  %v5296_v21 = vadd.f32 %v9805_v63, %v5038_v36  ;;  %v5297_v11 = vadd.f32 %v9811_v39, %v5039_v32 }
 0x5ef   : > { %v6465_v50 = vpack.c.bf16 %v5869_v17, %v5868_v59  ;;  %v5855_v18 = vadd.f32 %v5829_v26, %v5791_v47  ;;  %v5513_v62 = vpop.f32.mrf.mxu1  ;;  %v5792_v37 = vadd.f32 %v5765_v57, %v5534_v51  ;;  %v5870_v14 = vmax.f32 %v5854_v30, 0.0 }
 0x5f0   : > { %v5767_v6 = vpop.f32.mrf.mxu0  ;;  %v5536_v28 = vadd.f32 %v5513_v62, %v5294_v19 }
 0x5f1   : > { %5929 = vst [vmem:[%s9844_s28 + $0x18] sm:$0xff] %v6465_v50  ;;  %v5871_v42 = vmax.f32 %v5855_v18, 0.0  ;;  %v5856_v52 = vadd.f32 %v5834_v16, %v5792_v37  ;;  %v5515_v44 = vpop.f32.mrf.mxu1  ;;  %v5793_v0 = vadd.f32 %v5767_v6, %v5535_v43 }
 0x5f2   : > { %v5771_v23 = vpop.f32.mrf.mxu0  ;;  %v5537_v31 = vadd.f32 %v5515_v44, %v5295_v3 }
 0x5f3   : > { %v6466_v9 = vpack.c.bf16 %v5871_v42, %v5870_v14  ;;  %v5857_v60 = vadd.f32 %v5834_v16, %v5793_v0  ;;  %v5519_v22 = vpop.f32.mrf.mxu1  ;;  %v5794_v48 = vadd.f32 %v5771_v23, %v5536_v28  ;;  %v5872_v45 = vmax.f32 %v5856_v52, 0.0 }
 0x5f4   : > { %v5773_v12 = vpop.f32.mrf.mxu0  ;;  %v5538_v38 = vadd.f32 %v5519_v22, %v5296_v21 }
 0x5f5   : > { %5930 = vst [vmem:[%s9844_s28 + $0x20] sm:$0xff] %v6466_v9  ;;  %v5873_v41 = vmax.f32 %v5857_v60, 0.0  ;;  %v5858_v54 = vadd.f32 %v5839_v4, %v5794_v48  ;;  %v5521_v34 = vpop.f32.mrf.mxu1  ;;  %v5795_v53 = vadd.f32 %v5773_v12, %v5537_v31 }
 0x5f6   : > { %v5777_v63 = vpop.f32.mrf.mxu0  ;;  %v5539_v25 = vadd.f32 %v5521_v34, %v5297_v11 }
 0x5f7   : > { %v6467_v8 = vpack.c.bf16 %v5873_v41, %v5872_v45  ;;  %v5859_v26 = vadd.f32 %v5839_v4, %v5795_v53  ;;  %v5796_v7 = vadd.f32 %v5777_v63, %v5538_v38  ;;  %v5874_v39 = vmax.f32 %v5858_v54, 0.0 }
 0x5f8   : > { %v5779_v29 = vpop.f32.mrf.mxu0 }
 0x5f9   : > { %5931 = vst [vmem:[%s9844_s28 + $0x28] sm:$0xff] %v6467_v8  ;;  %v5875_v49 = vmax.f32 %v5859_v26, 0.0  ;;  %v5860_v40 = vadd.f32 %v5844_v61, %v5796_v7  ;;  %v5797_v27 = vadd.f32 %v5779_v29, %v5539_v25 }
 0x5fb   : > { %v6468_v59 = vpack.c.bf16 %v5875_v49, %v5874_v39  ;;  %v5861_v55 = vadd.f32 %v5844_v61, %v5797_v27  ;;  %v5876_v17 = vmax.f32 %v5860_v40, 0.0 }
 0x5fd   : > { %5932 = vst [vmem:[%s9844_s28 + $0x30] sm:$0xff] %v6468_v59  ;;  %v5877_v51 = vmax.f32 %v5861_v55, 0.0 }
 0x5ff   : > { %v6469_v30 = vpack.c.bf16 %v5877_v51, %v5876_v17 }
 0x601   : > { %5933 = vst [vmem:[%s9844_s28 + $0x38] sm:$0xff] %v6469_v30 }
 0x602 PF: > { %s18_s24 = sadd.s32 1, %s6783_s24  }
 0x603   : > { %p15_p1 = scmp.ge.s32.totalorder %s18_s24, 4  }
 0x605   :  { %17 = sbr.rel (!%p15_p1) target bundleno = 1 (0x1), region = 107 }
 0x60a   :  { %5955 = vsyncpa [#allocation6], 1 }
 0x60b   :  { %5957 = vsyncpa [#allocation6 + $0x1], 1 }

</bundles_post_ra>
